<compile_context>
chip_gen: v6e
topology: v6e:2x2x1
jax: 0.10.0
libtpu: 0.0.40
codegen_flags: <defaults>
</compile_context>

<pallas_src>
import jax
import jax.numpy as jnp
from jax.experimental import pallas as pl
from jax.experimental.pallas import tpu as pltpu


# ----------------------------- in-kernel math helpers -----------------------------

def _gelu(x):
    # tanh-form GELU: the transcendental lands on the EUP slot instead of a ~12-op erf
    # polynomial on the VPU.  Max abs deviation vs torch.nn.GELU (exact erf) is ~1e-3,
    # on par with the adopted bf16 matmul drift.
    c = 0.7978845608028654  # sqrt(2/pi)
    return 0.5 * x * (1.0 + jnp.tanh(c * (x + 0.044715 * (x * x * x))))


def _layernorm_ch(x, gamma, beta, eps=1e-6):
    # LayerNorm over the channel axis (sublane axis 0); gamma/beta are (Ch, 1) columns.
    # eps=1e-6 matches the module's partial(nn.LayerNorm, eps=1e-06).
    mu = jnp.mean(x, axis=0, keepdims=True)
    xc = x - mu
    var = jnp.mean(xc * xc, axis=0, keepdims=True)
    return xc * jax.lax.rsqrt(var + eps) * gamma + beta


# --------------------------------- the Pallas kernel ---------------------------------

def _make_kernel(S2, S3, C, E, L, taps_per_chunk=4):
    # tap k = kd*9 + kh*3 + kw  ->  flattened voxel offset (dd, dh, dw) = (kd-1, kh-1, kw-1)
    offs = []
    for k in range(27):
        dd, dh, dw = k // 9 - 1, (k // 3) % 3 - 1, k % 3 - 1
        offs.append(dd * S2 * S3 + dh * S3 + dw)
    chunks = [(k0, min(k0 + taps_per_chunk, 27)) for k0 in range(0, 27, taps_per_chunk)]

    def kernel(x_ref, mask_ref, w1_ref, wall_ref, w2_ref, pe_ref, pc_ref,
               o_ref, hstack_ref):
        # Packed per-channel vectors: one small tile + one DMA instead of nine.
        pe = pe_ref[...]                                      # (E, 6) f32
        pc = pc_ref[...]                                      # (C, 3) f32
        b1, g1, be1 = pe[:, 0:1], pe[:, 1:2], pe[:, 2:3]
        bdw, g2, be2 = pe[:, 3:4], pe[:, 4:5], pe[:, 5:6]
        b2, g3, be3 = pc[:, 0:1], pc[:, 1:2], pc[:, 2:3]

        x = x_ref[0]                                          # (C, L) f32, lane-dense

        # ---- pwconv1 (1x1x1 conv) + LayerNorm1 + GELU ----
        h = jnp.dot(w1_ref[...], x.astype(jnp.bfloat16),
                    preferred_element_type=jnp.float32)       # (E, L) f32
        h = _gelu(_layernorm_ch(h + b1, g1, be1))

        # ---- grouped 3x3x3 conv (groups=16, zero pad 1) ----
        # Taps are XLU lane-rotations of h (pltpu.roll -> vrot), boundary-masked and
        # stored bf16 into the (27*E, L) neighbor stack.  The contraction is chunked so
        # each K-slice matmul overlaps the build of the next chunk (distinct scratch
        # rows -> no WAR hazard).  No K padding, nothing to re-zero per step.
        acc = None
        for (k0, k1) in chunks:
            for k in range(k0, k1):
                off = offs[k]
                if off == 0:
                    nb = h                                    # center tap: mask is all ones
                else:
                    # pltpu.roll(x, s) == jnp.roll(x, s); shift (-off) % L is a static
                    # non-negative amount, equivalent mod L to the desired -off roll.
                    nb = pltpu.roll(h, (-off) % L, axis=1) * mask_ref[pl.ds(k, 1), :]
                hstack_ref[pl.ds(k * E, E), :] = nb.astype(jnp.bfloat16)
            ck = (k1 - k0) * E
            d = jnp.dot(wall_ref[:, pl.ds(k0 * E, ck)],
                        hstack_ref[pl.ds(k0 * E, ck), :],
                        preferred_element_type=jnp.float32)   # (E, L) f32
            acc = d if acc is None else acc + d
        acc = _gelu(_layernorm_ch(acc + bdw, g2, be2))

        # ---- pwconv2 (1x1x1 conv) + LayerNorm3 ----
        y = jnp.dot(w2_ref[...], acc.astype(jnp.bfloat16),
                    preferred_element_type=jnp.float32)       # (C, L) f32
        y = _layernorm_ch(y + b2, g3, be3)

        # ---- residual (proj_drop p=0.0 == identity) + final GELU ----
        # TODO(synk): nn.Dropout(p=0.0) is an identity in this forward pass; no kernel op needed.
        o_ref[0] = _gelu(x + y).astype(o_ref.dtype)

    return kernel


# --------------------------------- wrapper / glue ---------------------------------

def init_params(key, embed_dims=16, expand_ratio=4):
    C, E = embed_dims, embed_dims * expand_ratio
    ks = jax.random.split(key, 6)
    return {
        # pwconv1: torch weight (E, C, 1, 1, 1) -> stored as (E, C)
        "w1": jax.random.normal(ks[0], (E, C), jnp.float32) * 0.1,
        "b1": jax.random.normal(ks[1], (E,), jnp.float32) * 0.1,
        # dwconv: torch weight (E, E // groups, 3, 3, 3), groups = embed_dims
        "wdw": jax.random.normal(ks[2], (E, E // C, 3, 3, 3), jnp.float32) * 0.1,
        "bdw": jax.random.normal(ks[3], (E,), jnp.float32) * 0.1,
        # pwconv2: torch weight (C, E, 1, 1, 1) -> stored as (C, E)
        "w2": jax.random.normal(ks[4], (C, E), jnp.float32) * 0.1,
        "b2": jax.random.normal(ks[5], (C,), jnp.float32) * 0.1,
        # LayerNorm params (PyTorch default init: weight=1, bias=0)
        "g1": jnp.ones((E,), jnp.float32), "be1": jnp.zeros((E,), jnp.float32),
        "g2": jnp.ones((E,), jnp.float32), "be2": jnp.zeros((E,), jnp.float32),
        "g3": jnp.ones((C,), jnp.float32), "be3": jnp.zeros((C,), jnp.float32),
    }


def _expand_grouped_weight(wdw_raw, groups):
    # (E, ipg, 3, 3, 3) grouped-conv weight -> (27, E_in, E_out) block-diagonal
    # matrices, one per spatial offset k = kd*9 + kh*3 + kw.
    E, ipg = wdw_raw.shape[0], wdw_raw.shape[1]
    opg = E // groups
    w_t = jnp.transpose(wdw_raw.reshape(E, ipg, 27), (2, 1, 0))              # (27, ipg, E_out)
    ci = jnp.arange(E)
    gmask = (ci[:, None] // ipg == ci[None, :] // opg).astype(jnp.float32)   # (E_in, E_out)
    return w_t[:, ci % ipg, :] * gmask[None]                                 # (27, E_in, E_out)


def group_conv_block(x_ncdhw, params, embed_dims=16, expand_ratio=4):
    """Forward pass of GroupConvBlock; x_ncdhw is (B, C, S1, S2, S3) like PyTorch."""
    B, C, S1, S2, S3 = x_ncdhw.shape
    E = embed_dims * expand_ratio
    assert C == embed_dims
    L = S1 * S2 * S3  # 512 -> multiple of 128: lane-dense blocks, zero-copy reshape

    x_ncl = x_ncdhw.reshape(B, C, L).astype(jnp.float32)

    # Grouped 3x3x3 weight -> one wide-K matrix (E_out, 27*E_in); tap k's block occupies
    # columns [64k, 64k+64).  No pad block: the contraction is chunked in-kernel.
    wdw27 = _expand_grouped_weight(params["wdw"], groups=embed_dims)         # (27, E_in, E_out)
    w_all = jnp.transpose(wdw27, (2, 0, 1)).reshape(E, 27 * E).astype(jnp.bfloat16)

    # Zero-padding boundary masks for the 27 taps (pure geometry, exact 0/1 values).
    li = jnp.arange(L)
    d0, h0, w0 = li // (S2 * S3), (li // S3) % S2, li % S3
    rows = []
    for k in range(27):
        dd, dh, dw = k // 9 - 1, (k // 3) % 3 - 1, k % 3 - 1
        rows.append((d0 + dd >= 0) & (d0 + dd < S1) & (h0 + dh >= 0) & (h0 + dh < S2)
                    & (w0 + dw >= 0) & (w0 + dw < S3))
    masks = jnp.stack(rows).astype(jnp.float32)                              # (27, L)

    # Pack the nine per-channel vectors into two small 2-D arrays (columns slice cleanly
    # into the (Ch, 1) shape the channel-axis LayerNorm/bias broadcasts need).
    pe = jnp.stack([params["b1"], params["g1"], params["be1"],
                    params["bdw"], params["g2"], params["be2"]], axis=1).astype(jnp.float32)  # (E, 6)
    pc = jnp.stack([params["b2"], params["g3"], params["be3"]], axis=1).astype(jnp.float32)   # (C, 3)

    kernel = _make_kernel(S2, S3, C, E, L, taps_per_chunk=4)

    # grid=(B,): with B=2 this is one step per TensorCore on v7x; for larger B one would
    # fuse more voxels/batch items per step to amortize per-step overhead on v5e/v6e.
    out_ncl = pl.pallas_call(
        kernel,
        out_shape=jax.ShapeDtypeStruct((B, C, L), jnp.float32),
        grid=(B,),
        in_specs=[
            pl.BlockSpec((1, C, L), lambda b: (b, 0, 0)),        # x (lane-dense: L lanes)
            pl.BlockSpec((27, L), lambda b: (0, 0)),             # boundary masks
            pl.BlockSpec((E, C), lambda b: (0, 0)),              # w1 (bf16)
            pl.BlockSpec((E, 27 * E), lambda b: (0, 0)),         # stacked grouped-conv weight (bf16)
            pl.BlockSpec((C, E), lambda b: (0, 0)),              # w2 (bf16)
            pl.BlockSpec((E, 6), lambda b: (0, 0)),              # packed E-sized bias/LN params
            pl.BlockSpec((C, 3), lambda b: (0, 0)),              # packed C-sized bias/LN params
        ],
        out_specs=pl.BlockSpec((1, C, L), lambda b: (b, 0, 0)),
        scratch_shapes=[pltpu.VMEM((27 * E, L), jnp.bfloat16)],  # neighbor stack (~1.7 MiB)
        compiler_params=pltpu.CompilerParams(dimension_semantics=("parallel",)),
    )(x_ncl, masks,
      params["w1"].astype(jnp.bfloat16), w_all, params["w2"].astype(jnp.bfloat16),
      pe, pc)

    # (B, C, L) -> NCDHW (zero-copy reshape)
    return out_ncl.reshape(B, C, S1, S2, S3)


# ------------------------------------- main -------------------------------------

if __name__ == "__main__":
    embed_dims, expand_ratio = 16, 4
    B, C, S = 2, embed_dims, 8   # x: (2, 16, 8, 8, 8) in PyTorch NCDHW convention

    key = jax.random.PRNGKey(0)
    kx, kp = jax.random.split(key)
    x = jax.random.normal(kx, (B, C, S, S, S), jnp.float32)
    params = init_params(kp, embed_dims, expand_ratio)

    out = group_conv_block(x, params, embed_dims, expand_ratio)
    out = jax.block_until_ready(out)
    assert out.shape == (B, C, S, S, S), out.shape
    assert bool(jnp.all(jnp.isfinite(out)))
    print("KERNEL_OK")
</pallas_src>

<mosaic_0001>
module attributes {stable_mosaic.version = 11 : i64} {
  func.func @kernel(%arg0: i32, %arg1: memref<1x16x512xf32, #tpu.memory_space<vmem>>, %arg2: memref<27x512xf32, #tpu.memory_space<vmem>>, %arg3: memref<64x16xbf16, #tpu.memory_space<vmem>>, %arg4: memref<64x1728xbf16, #tpu.memory_space<vmem>>, %arg5: memref<16x64xbf16, #tpu.memory_space<vmem>>, %arg6: memref<64x6xf32, #tpu.memory_space<vmem>>, %arg7: memref<16x3xf32, #tpu.memory_space<vmem>>, %arg8: memref<1x16x512xf32, #tpu.memory_space<vmem>>, %arg9: memref<1728x512xbf16, #tpu.memory_space<vmem>>) attributes {dimension_semantics = [#tpu.dimension_semantics<parallel>], iteration_bounds = array<i64: 2>, scalar_prefetch = 0 : i64, scratch_operands = 1 : i64, tpu.core_type = #tpu.core_type<tc>, window_params = [{transform_indices = @transform_0, window_bounds = array<i64: 1, 16, 512>}, {pipeline_mode = #tpu.pipeline_mode<synchronous>, transform_indices = @transform_1, window_bounds = array<i64: 27, 512>}, {pipeline_mode = #tpu.pipeline_mode<synchronous>, transform_indices = @transform_2, window_bounds = array<i64: 64, 16>}, {pipeline_mode = #tpu.pipeline_mode<synchronous>, transform_indices = @transform_3, window_bounds = array<i64: 64, 1728>}, {pipeline_mode = #tpu.pipeline_mode<synchronous>, transform_indices = @transform_4, window_bounds = array<i64: 16, 64>}, {pipeline_mode = #tpu.pipeline_mode<synchronous>, transform_indices = @transform_5, window_bounds = array<i64: 64, 6>}, {pipeline_mode = #tpu.pipeline_mode<synchronous>, transform_indices = @transform_6, window_bounds = array<i64: 16, 3>}, {transform_indices = @transform_7, window_bounds = array<i64: 1, 16, 512>}]} {
    %c0 = arith.constant 0 : index
    %c0_0 = arith.constant 0 : index
    %0 = vector.load %arg6[%c0, %c0_0] : memref<64x6xf32, #tpu.memory_space<vmem>>, vector<64x6xf32>
    %c0_1 = arith.constant 0 : index
    %c0_2 = arith.constant 0 : index
    %1 = vector.load %arg7[%c0_1, %c0_2] : memref<16x3xf32, #tpu.memory_space<vmem>>, vector<16x3xf32>
    %2 = vector.extract_strided_slice %0 {offsets = [0, 0], sizes = [64, 1], strides = [1, 1]} : vector<64x6xf32> to vector<64x1xf32>
    %3 = vector.extract_strided_slice %0 {offsets = [0, 1], sizes = [64, 1], strides = [1, 1]} : vector<64x6xf32> to vector<64x1xf32>
    %4 = vector.extract_strided_slice %0 {offsets = [0, 2], sizes = [64, 1], strides = [1, 1]} : vector<64x6xf32> to vector<64x1xf32>
    %5 = vector.extract_strided_slice %0 {offsets = [0, 3], sizes = [64, 1], strides = [1, 1]} : vector<64x6xf32> to vector<64x1xf32>
    %6 = vector.extract_strided_slice %0 {offsets = [0, 4], sizes = [64, 1], strides = [1, 1]} : vector<64x6xf32> to vector<64x1xf32>
    %7 = vector.extract_strided_slice %0 {offsets = [0, 5], sizes = [64, 1], strides = [1, 1]} : vector<64x6xf32> to vector<64x1xf32>
    %8 = vector.extract_strided_slice %1 {offsets = [0, 0], sizes = [16, 1], strides = [1, 1]} : vector<16x3xf32> to vector<16x1xf32>
    %9 = vector.extract_strided_slice %1 {offsets = [0, 1], sizes = [16, 1], strides = [1, 1]} : vector<16x3xf32> to vector<16x1xf32>
    %10 = vector.extract_strided_slice %1 {offsets = [0, 2], sizes = [16, 1], strides = [1, 1]} : vector<16x3xf32> to vector<16x1xf32>
    %c0_3 = arith.constant 0 : index
    %c0_4 = arith.constant 0 : index
    %c0_5 = arith.constant 0 : index
    %11 = vector.load %arg1[%c0_3, %c0_4, %c0_5] : memref<1x16x512xf32, #tpu.memory_space<vmem>>, vector<1x16x512xf32>
    %12 = vector.shape_cast %11 : vector<1x16x512xf32> to vector<16x512xf32>
    %c0_6 = arith.constant 0 : index
    %c0_7 = arith.constant 0 : index
    %13 = vector.load %arg3[%c0_6, %c0_7] : memref<64x16xbf16, #tpu.memory_space<vmem>>, vector<64x16xbf16>
    %14 = arith.truncf %12 : vector<16x512xf32> to vector<16x512xbf16>
    %cst = arith.constant dense<0.000000e+00> : vector<64x512xf32>
    %15 = tpu.matmul %13, %14, %cst {dimension_numbers = #tpu.dot_dimension_numbers<[1], [0], [0], [1], [0, 0, 1, 1], [], []>} : vector<64x16xbf16>, vector<16x512xbf16>, vector<64x512xf32> -> vector<64x512xf32>
    %16 = vector.broadcast %2 : vector<64x1xf32> to vector<64x512xf32>
    %17 = arith.addf %15, %16 : vector<64x512xf32>
    %cst_8 = arith.constant dense<0.000000e+00> : vector<512xf32>
    %18 = vector.multi_reduction <add>, %17, %cst_8 [0] : vector<64x512xf32> to vector<512xf32>
    %19 = vector.shape_cast %18 : vector<512xf32> to vector<1x512xf32>
    %cst_9 = arith.constant 6.400000e+01 : f32
    %20 = vector.broadcast %cst_9 : f32 to vector<1x512xf32>
    %21 = arith.divf %19, %20 : vector<1x512xf32>
    %22 = vector.broadcast %21 : vector<1x512xf32> to vector<64x512xf32>
    %23 = arith.subf %17, %22 : vector<64x512xf32>
    %24 = arith.mulf %23, %23 : vector<64x512xf32>
    %cst_10 = arith.constant dense<0.000000e+00> : vector<512xf32>
    %25 = vector.multi_reduction <add>, %24, %cst_10 [0] : vector<64x512xf32> to vector<512xf32>
    %26 = vector.shape_cast %25 : vector<512xf32> to vector<1x512xf32>
    %cst_11 = arith.constant 6.400000e+01 : f32
    %27 = vector.broadcast %cst_11 : f32 to vector<1x512xf32>
    %28 = arith.divf %26, %27 : vector<1x512xf32>
    %cst_12 = arith.constant 9.99999997E-7 : f32
    %29 = vector.broadcast %cst_12 : f32 to vector<1x512xf32>
    %30 = arith.addf %28, %29 : vector<1x512xf32>
    %31 = math.rsqrt %30 : vector<1x512xf32>
    %32 = vector.broadcast %31 : vector<1x512xf32> to vector<64x512xf32>
    %33 = arith.mulf %23, %32 : vector<64x512xf32>
    %34 = vector.broadcast %3 : vector<64x1xf32> to vector<64x512xf32>
    %35 = arith.mulf %33, %34 : vector<64x512xf32>
    %36 = vector.broadcast %4 : vector<64x1xf32> to vector<64x512xf32>
    %37 = arith.addf %35, %36 : vector<64x512xf32>
    %cst_13 = arith.constant 5.000000e-01 : f32
    %38 = vector.broadcast %cst_13 : f32 to vector<64x512xf32>
    %39 = arith.mulf %38, %37 : vector<64x512xf32>
    %40 = arith.mulf %37, %37 : vector<64x512xf32>
    %41 = arith.mulf %40, %37 : vector<64x512xf32>
    %cst_14 = arith.constant 4.471500e-02 : f32
    %42 = vector.broadcast %cst_14 : f32 to vector<64x512xf32>
    %43 = arith.mulf %42, %41 : vector<64x512xf32>
    %44 = arith.addf %37, %43 : vector<64x512xf32>
    %cst_15 = arith.constant 0.797884583 : f32
    %45 = vector.broadcast %cst_15 : f32 to vector<64x512xf32>
    %46 = arith.mulf %45, %44 : vector<64x512xf32>
    %47 = math.tanh %46 : vector<64x512xf32>
    %cst_16 = arith.constant 1.000000e+00 : f32
    %48 = vector.broadcast %cst_16 : f32 to vector<64x512xf32>
    %49 = arith.addf %48, %47 : vector<64x512xf32>
    %50 = arith.mulf %39, %49 : vector<64x512xf32>
    %c73_i32 = arith.constant 73 : i32
    %51 = tpu.dynamic_rotate %50 by %c73_i32 dim 1 : vector<64x512xf32>, i32 -> vector<64x512xf32>
    %c0_17 = arith.constant 0 : index
    %c0_18 = arith.constant 0 : index
    %52 = vector.load %arg2[%c0_17, %c0_18] : memref<27x512xf32, #tpu.memory_space<vmem>>, vector<1x512xf32>
    %53 = vector.broadcast %52 : vector<1x512xf32> to vector<64x512xf32>
    %54 = arith.mulf %51, %53 : vector<64x512xf32>
    %55 = arith.truncf %54 : vector<64x512xf32> to vector<64x512xbf16>
    %c0_19 = arith.constant 0 : index
    %c0_20 = arith.constant 0 : index
    %56 = vector.load %arg9[%c0_19, %c0_20] : memref<1728x512xbf16, #tpu.memory_space<vmem>>, vector<64x512xbf16>
    tpu.vector_store %arg9[%c0_19, %c0_20], %55 {strides = array<i32>} : memref<1728x512xbf16, #tpu.memory_space<vmem>>, vector<64x512xbf16>,
    %c72_i32 = arith.constant 72 : i32
    %57 = tpu.dynamic_rotate %50 by %c72_i32 dim 1 : vector<64x512xf32>, i32 -> vector<64x512xf32>
    %c1 = arith.constant 1 : index
    %c0_21 = arith.constant 0 : index
    %58 = vector.load %arg2[%c1, %c0_21] : memref<27x512xf32, #tpu.memory_space<vmem>>, vector<1x512xf32>
    %59 = vector.broadcast %58 : vector<1x512xf32> to vector<64x512xf32>
    %60 = arith.mulf %57, %59 : vector<64x512xf32>
    %61 = arith.truncf %60 : vector<64x512xf32> to vector<64x512xbf16>
    %c64 = arith.constant 64 : index
    %c0_22 = arith.constant 0 : index
    %62 = vector.load %arg9[%c64, %c0_22] : memref<1728x512xbf16, #tpu.memory_space<vmem>>, vector<64x512xbf16>
    tpu.vector_store %arg9[%c64, %c0_22], %61 {strides = array<i32>} : memref<1728x512xbf16, #tpu.memory_space<vmem>>, vector<64x512xbf16>,
    %c71_i32 = arith.constant 71 : i32
    %63 = tpu.dynamic_rotate %50 by %c71_i32 dim 1 : vector<64x512xf32>, i32 -> vector<64x512xf32>
    %c2 = arith.constant 2 : index
    %c0_23 = arith.constant 0 : index
    %64 = vector.load %arg2[%c2, %c0_23] : memref<27x512xf32, #tpu.memory_space<vmem>>, vector<1x512xf32>
    %65 = vector.broadcast %64 : vector<1x512xf32> to vector<64x512xf32>
    %66 = arith.mulf %63, %65 : vector<64x512xf32>
    %67 = arith.truncf %66 : vector<64x512xf32> to vector<64x512xbf16>
    %c128 = arith.constant 128 : index
    %c0_24 = arith.constant 0 : index
    %68 = vector.load %arg9[%c128, %c0_24] : memref<1728x512xbf16, #tpu.memory_space<vmem>>, vector<64x512xbf16>
    tpu.vector_store %arg9[%c128, %c0_24], %67 {strides = array<i32>} : memref<1728x512xbf16, #tpu.memory_space<vmem>>, vector<64x512xbf16>,
    %c65_i32 = arith.constant 65 : i32
    %69 = tpu.dynamic_rotate %50 by %c65_i32 dim 1 : vector<64x512xf32>, i32 -> vector<64x512xf32>
    %c3 = arith.constant 3 : index
    %c0_25 = arith.constant 0 : index
    %70 = vector.load %arg2[%c3, %c0_25] : memref<27x512xf32, #tpu.memory_space<vmem>>, vector<1x512xf32>
    %71 = vector.broadcast %70 : vector<1x512xf32> to vector<64x512xf32>
    %72 = arith.mulf %69, %71 : vector<64x512xf32>
    %73 = arith.truncf %72 : vector<64x512xf32> to vector<64x512xbf16>
    %c192 = arith.constant 192 : index
    %c0_26 = arith.constant 0 : index
    %74 = vector.load %arg9[%c192, %c0_26] : memref<1728x512xbf16, #tpu.memory_space<vmem>>, vector<64x512xbf16>
    tpu.vector_store %arg9[%c192, %c0_26], %73 {strides = array<i32>} : memref<1728x512xbf16, #tpu.memory_space<vmem>>, vector<64x512xbf16>,
    %c0_27 = arith.constant 0 : index
    %c0_28 = arith.constant 0 : index
    %75 = vector.load %arg4[%c0_27, %c0_28] : memref<64x1728xbf16, #tpu.memory_space<vmem>>, vector<64x256xbf16>
    %c0_29 = arith.constant 0 : index
    %c0_30 = arith.constant 0 : index
    %76 = vector.load %arg9[%c0_29, %c0_30] : memref<1728x512xbf16, #tpu.memory_space<vmem>>, vector<256x512xbf16>
    %cst_31 = arith.constant dense<0.000000e+00> : vector<64x512xf32>
    %77 = tpu.matmul %75, %76, %cst_31 {dimension_numbers = #tpu.dot_dimension_numbers<[1], [0], [0], [1], [0, 0, 1, 1], [], []>} : vector<64x256xbf16>, vector<256x512xbf16>, vector<64x512xf32> -> vector<64x512xf32>
    %c64_i32 = arith.constant 64 : i32
    %78 = tpu.dynamic_rotate %50 by %c64_i32 dim 1 : vector<64x512xf32>, i32 -> vector<64x512xf32>
    %c4 = arith.constant 4 : index
    %c0_32 = arith.constant 0 : index
    %79 = vector.load %arg2[%c4, %c0_32] : memref<27x512xf32, #tpu.memory_space<vmem>>, vector<1x512xf32>
    %80 = vector.broadcast %79 : vector<1x512xf32> to vector<64x512xf32>
    %81 = arith.mulf %78, %80 : vector<64x512xf32>
    %82 = arith.truncf %81 : vector<64x512xf32> to vector<64x512xbf16>
    %c256 = arith.constant 256 : index
    %c0_33 = arith.constant 0 : index
    %83 = vector.load %arg9[%c256, %c0_33] : memref<1728x512xbf16, #tpu.memory_space<vmem>>, vector<64x512xbf16>
    tpu.vector_store %arg9[%c256, %c0_33], %82 {strides = array<i32>} : memref<1728x512xbf16, #tpu.memory_space<vmem>>, vector<64x512xbf16>,
    %c63_i32 = arith.constant 63 : i32
    %84 = tpu.dynamic_rotate %50 by %c63_i32 dim 1 : vector<64x512xf32>, i32 -> vector<64x512xf32>
    %c5 = arith.constant 5 : index
    %c0_34 = arith.constant 0 : index
    %85 = vector.load %arg2[%c5, %c0_34] : memref<27x512xf32, #tpu.memory_space<vmem>>, vector<1x512xf32>
    %86 = vector.broadcast %85 : vector<1x512xf32> to vector<64x512xf32>
    %87 = arith.mulf %84, %86 : vector<64x512xf32>
    %88 = arith.truncf %87 : vector<64x512xf32> to vector<64x512xbf16>
    %c320 = arith.constant 320 : index
    %c0_35 = arith.constant 0 : index
    %89 = vector.load %arg9[%c320, %c0_35] : memref<1728x512xbf16, #tpu.memory_space<vmem>>, vector<64x512xbf16>
    tpu.vector_store %arg9[%c320, %c0_35], %88 {strides = array<i32>} : memref<1728x512xbf16, #tpu.memory_space<vmem>>, vector<64x512xbf16>,
    %c57_i32 = arith.constant 57 : i32
    %90 = tpu.dynamic_rotate %50 by %c57_i32 dim 1 : vector<64x512xf32>, i32 -> vector<64x512xf32>
    %c6 = arith.constant 6 : index
    %c0_36 = arith.constant 0 : index
    %91 = vector.load %arg2[%c6, %c0_36] : memref<27x512xf32, #tpu.memory_space<vmem>>, vector<1x512xf32>
    %92 = vector.broadcast %91 : vector<1x512xf32> to vector<64x512xf32>
    %93 = arith.mulf %90, %92 : vector<64x512xf32>
    %94 = arith.truncf %93 : vector<64x512xf32> to vector<64x512xbf16>
    %c384 = arith.constant 384 : index
    %c0_37 = arith.constant 0 : index
    %95 = vector.load %arg9[%c384, %c0_37] : memref<1728x512xbf16, #tpu.memory_space<vmem>>, vector<64x512xbf16>
    tpu.vector_store %arg9[%c384, %c0_37], %94 {strides = array<i32>} : memref<1728x512xbf16, #tpu.memory_space<vmem>>, vector<64x512xbf16>,
    %c56_i32 = arith.constant 56 : i32
    %96 = tpu.dynamic_rotate %50 by %c56_i32 dim 1 : vector<64x512xf32>, i32 -> vector<64x512xf32>
    %c7 = arith.constant 7 : index
    %c0_38 = arith.constant 0 : index
    %97 = vector.load %arg2[%c7, %c0_38] : memref<27x512xf32, #tpu.memory_space<vmem>>, vector<1x512xf32>
    %98 = vector.broadcast %97 : vector<1x512xf32> to vector<64x512xf32>
    %99 = arith.mulf %96, %98 : vector<64x512xf32>
    %100 = arith.truncf %99 : vector<64x512xf32> to vector<64x512xbf16>
    %c448 = arith.constant 448 : index
    %c0_39 = arith.constant 0 : index
    %101 = vector.load %arg9[%c448, %c0_39] : memref<1728x512xbf16, #tpu.memory_space<vmem>>, vector<64x512xbf16>
    tpu.vector_store %arg9[%c448, %c0_39], %100 {strides = array<i32>} : memref<1728x512xbf16, #tpu.memory_space<vmem>>, vector<64x512xbf16>,
    %c0_40 = arith.constant 0 : index
    %c256_41 = arith.constant 256 : index
    %102 = vector.load %arg4[%c0_40, %c256_41] : memref<64x1728xbf16, #tpu.memory_space<vmem>>, vector<64x256xbf16>
    %c256_42 = arith.constant 256 : index
    %c0_43 = arith.constant 0 : index
    %103 = vector.load %arg9[%c256_42, %c0_43] : memref<1728x512xbf16, #tpu.memory_space<vmem>>, vector<256x512xbf16>
    %cst_44 = arith.constant dense<0.000000e+00> : vector<64x512xf32>
    %104 = tpu.matmul %102, %103, %cst_44 {dimension_numbers = #tpu.dot_dimension_numbers<[1], [0], [0], [1], [0, 0, 1, 1], [], []>} : vector<64x256xbf16>, vector<256x512xbf16>, vector<64x512xf32> -> vector<64x512xf32>
    %105 = arith.addf %77, %104 : vector<64x512xf32>
    %c55_i32 = arith.constant 55 : i32
    %106 = tpu.dynamic_rotate %50 by %c55_i32 dim 1 : vector<64x512xf32>, i32 -> vector<64x512xf32>
    %c8 = arith.constant 8 : index
    %c0_45 = arith.constant 0 : index
    %107 = vector.load %arg2[%c8, %c0_45] : memref<27x512xf32, #tpu.memory_space<vmem>>, vector<1x512xf32>
    %108 = vector.broadcast %107 : vector<1x512xf32> to vector<64x512xf32>
    %109 = arith.mulf %106, %108 : vector<64x512xf32>
    %110 = arith.truncf %109 : vector<64x512xf32> to vector<64x512xbf16>
    %c512 = arith.constant 512 : index
    %c0_46 = arith.constant 0 : index
    %111 = vector.load %arg9[%c512, %c0_46] : memref<1728x512xbf16, #tpu.memory_space<vmem>>, vector<64x512xbf16>
    tpu.vector_store %arg9[%c512, %c0_46], %110 {strides = array<i32>} : memref<1728x512xbf16, #tpu.memory_space<vmem>>, vector<64x512xbf16>,
    %c9_i32 = arith.constant 9 : i32
    %112 = tpu.dynamic_rotate %50 by %c9_i32 dim 1 : vector<64x512xf32>, i32 -> vector<64x512xf32>
    %c9 = arith.constant 9 : index
    %c0_47 = arith.constant 0 : index
    %113 = vector.load %arg2[%c9, %c0_47] : memref<27x512xf32, #tpu.memory_space<vmem>>, vector<1x512xf32>
    %114 = vector.broadcast %113 : vector<1x512xf32> to vector<64x512xf32>
    %115 = arith.mulf %112, %114 : vector<64x512xf32>
    %116 = arith.truncf %115 : vector<64x512xf32> to vector<64x512xbf16>
    %c576 = arith.constant 576 : index
    %c0_48 = arith.constant 0 : index
    %117 = vector.load %arg9[%c576, %c0_48] : memref<1728x512xbf16, #tpu.memory_space<vmem>>, vector<64x512xbf16>
    tpu.vector_store %arg9[%c576, %c0_48], %116 {strides = array<i32>} : memref<1728x512xbf16, #tpu.memory_space<vmem>>, vector<64x512xbf16>,
    %c8_i32 = arith.constant 8 : i32
    %118 = tpu.dynamic_rotate %50 by %c8_i32 dim 1 : vector<64x512xf32>, i32 -> vector<64x512xf32>
    %c10 = arith.constant 10 : index
    %c0_49 = arith.constant 0 : index
    %119 = vector.load %arg2[%c10, %c0_49] : memref<27x512xf32, #tpu.memory_space<vmem>>, vector<1x512xf32>
    %120 = vector.broadcast %119 : vector<1x512xf32> to vector<64x512xf32>
    %121 = arith.mulf %118, %120 : vector<64x512xf32>
    %122 = arith.truncf %121 : vector<64x512xf32> to vector<64x512xbf16>
    %c640 = arith.constant 640 : index
    %c0_50 = arith.constant 0 : index
    %123 = vector.load %arg9[%c640, %c0_50] : memref<1728x512xbf16, #tpu.memory_space<vmem>>, vector<64x512xbf16>
    tpu.vector_store %arg9[%c640, %c0_50], %122 {strides = array<i32>} : memref<1728x512xbf16, #tpu.memory_space<vmem>>, vector<64x512xbf16>,
    %c7_i32 = arith.constant 7 : i32
    %124 = tpu.dynamic_rotate %50 by %c7_i32 dim 1 : vector<64x512xf32>, i32 -> vector<64x512xf32>
    %c11 = arith.constant 11 : index
    %c0_51 = arith.constant 0 : index
    %125 = vector.load %arg2[%c11, %c0_51] : memref<27x512xf32, #tpu.memory_space<vmem>>, vector<1x512xf32>
    %126 = vector.broadcast %125 : vector<1x512xf32> to vector<64x512xf32>
    %127 = arith.mulf %124, %126 : vector<64x512xf32>
    %128 = arith.truncf %127 : vector<64x512xf32> to vector<64x512xbf16>
    %c704 = arith.constant 704 : index
    %c0_52 = arith.constant 0 : index
    %129 = vector.load %arg9[%c704, %c0_52] : memref<1728x512xbf16, #tpu.memory_space<vmem>>, vector<64x512xbf16>
    tpu.vector_store %arg9[%c704, %c0_52], %128 {strides = array<i32>} : memref<1728x512xbf16, #tpu.memory_space<vmem>>, vector<64x512xbf16>,
    %c0_53 = arith.constant 0 : index
    %c512_54 = arith.constant 512 : index
    %130 = vector.load %arg4[%c0_53, %c512_54] : memref<64x1728xbf16, #tpu.memory_space<vmem>>, vector<64x256xbf16>
    %c512_55 = arith.constant 512 : index
    %c0_56 = arith.constant 0 : index
    %131 = vector.load %arg9[%c512_55, %c0_56] : memref<1728x512xbf16, #tpu.memory_space<vmem>>, vector<256x512xbf16>
    %cst_57 = arith.constant dense<0.000000e+00> : vector<64x512xf32>
    %132 = tpu.matmul %130, %131, %cst_57 {dimension_numbers = #tpu.dot_dimension_numbers<[1], [0], [0], [1], [0, 0, 1, 1], [], []>} : vector<64x256xbf16>, vector<256x512xbf16>, vector<64x512xf32> -> vector<64x512xf32>
    %133 = arith.addf %105, %132 : vector<64x512xf32>
    %c1_i32 = arith.constant 1 : i32
    %134 = tpu.dynamic_rotate %50 by %c1_i32 dim 1 : vector<64x512xf32>, i32 -> vector<64x512xf32>
    %c12 = arith.constant 12 : index
    %c0_58 = arith.constant 0 : index
    %135 = vector.load %arg2[%c12, %c0_58] : memref<27x512xf32, #tpu.memory_space<vmem>>, vector<1x512xf32>
    %136 = vector.broadcast %135 : vector<1x512xf32> to vector<64x512xf32>
    %137 = arith.mulf %134, %136 : vector<64x512xf32>
    %138 = arith.truncf %137 : vector<64x512xf32> to vector<64x512xbf16>
    %c768 = arith.constant 768 : index
    %c0_59 = arith.constant 0 : index
    %139 = vector.load %arg9[%c768, %c0_59] : memref<1728x512xbf16, #tpu.memory_space<vmem>>, vector<64x512xbf16>
    tpu.vector_store %arg9[%c768, %c0_59], %138 {strides = array<i32>} : memref<1728x512xbf16, #tpu.memory_space<vmem>>, vector<64x512xbf16>,
    %140 = arith.truncf %50 : vector<64x512xf32> to vector<64x512xbf16>
    %c832 = arith.constant 832 : index
    %c0_60 = arith.constant 0 : index
    %141 = vector.load %arg9[%c832, %c0_60] : memref<1728x512xbf16, #tpu.memory_space<vmem>>, vector<64x512xbf16>
    tpu.vector_store %arg9[%c832, %c0_60], %140 {strides = array<i32>} : memref<1728x512xbf16, #tpu.memory_space<vmem>>, vector<64x512xbf16>,
    %c511_i32 = arith.constant 511 : i32
    %142 = tpu.dynamic_rotate %50 by %c511_i32 dim 1 : vector<64x512xf32>, i32 -> vector<64x512xf32>
    %c14 = arith.constant 14 : index
    %c0_61 = arith.constant 0 : index
    %143 = vector.load %arg2[%c14, %c0_61] : memref<27x512xf32, #tpu.memory_space<vmem>>, vector<1x512xf32>
    %144 = vector.broadcast %143 : vector<1x512xf32> to vector<64x512xf32>
    %145 = arith.mulf %142, %144 : vector<64x512xf32>
    %146 = arith.truncf %145 : vector<64x512xf32> to vector<64x512xbf16>
    %c896 = arith.constant 896 : index
    %c0_62 = arith.constant 0 : index
    %147 = vector.load %arg9[%c896, %c0_62] : memref<1728x512xbf16, #tpu.memory_space<vmem>>, vector<64x512xbf16>
    tpu.vector_store %arg9[%c896, %c0_62], %146 {strides = array<i32>} : memref<1728x512xbf16, #tpu.memory_space<vmem>>, vector<64x512xbf16>,
    %c505_i32 = arith.constant 505 : i32
    %148 = tpu.dynamic_rotate %50 by %c505_i32 dim 1 : vector<64x512xf32>, i32 -> vector<64x512xf32>
    %c15 = arith.constant 15 : index
    %c0_63 = arith.constant 0 : index
    %149 = vector.load %arg2[%c15, %c0_63] : memref<27x512xf32, #tpu.memory_space<vmem>>, vector<1x512xf32>
    %150 = vector.broadcast %149 : vector<1x512xf32> to vector<64x512xf32>
    %151 = arith.mulf %148, %150 : vector<64x512xf32>
    %152 = arith.truncf %151 : vector<64x512xf32> to vector<64x512xbf16>
    %c960 = arith.constant 960 : index
    %c0_64 = arith.constant 0 : index
    %153 = vector.load %arg9[%c960, %c0_64] : memref<1728x512xbf16, #tpu.memory_space<vmem>>, vector<64x512xbf16>
    tpu.vector_store %arg9[%c960, %c0_64], %152 {strides = array<i32>} : memref<1728x512xbf16, #tpu.memory_space<vmem>>, vector<64x512xbf16>,
    %c0_65 = arith.constant 0 : index
    %c768_66 = arith.constant 768 : index
    %154 = vector.load %arg4[%c0_65, %c768_66] : memref<64x1728xbf16, #tpu.memory_space<vmem>>, vector<64x256xbf16>
    %c768_67 = arith.constant 768 : index
    %c0_68 = arith.constant 0 : index
    %155 = vector.load %arg9[%c768_67, %c0_68] : memref<1728x512xbf16, #tpu.memory_space<vmem>>, vector<256x512xbf16>
    %cst_69 = arith.constant dense<0.000000e+00> : vector<64x512xf32>
    %156 = tpu.matmul %154, %155, %cst_69 {dimension_numbers = #tpu.dot_dimension_numbers<[1], [0], [0], [1], [0, 0, 1, 1], [], []>} : vector<64x256xbf16>, vector<256x512xbf16>, vector<64x512xf32> -> vector<64x512xf32>
    %157 = arith.addf %133, %156 : vector<64x512xf32>
    %c504_i32 = arith.constant 504 : i32
    %158 = tpu.dynamic_rotate %50 by %c504_i32 dim 1 : vector<64x512xf32>, i32 -> vector<64x512xf32>
    %c16 = arith.constant 16 : index
    %c0_70 = arith.constant 0 : index
    %159 = vector.load %arg2[%c16, %c0_70] : memref<27x512xf32, #tpu.memory_space<vmem>>, vector<1x512xf32>
    %160 = vector.broadcast %159 : vector<1x512xf32> to vector<64x512xf32>
    %161 = arith.mulf %158, %160 : vector<64x512xf32>
    %162 = arith.truncf %161 : vector<64x512xf32> to vector<64x512xbf16>
    %c1024 = arith.constant 1024 : index
    %c0_71 = arith.constant 0 : index
    %163 = vector.load %arg9[%c1024, %c0_71] : memref<1728x512xbf16, #tpu.memory_space<vmem>>, vector<64x512xbf16>
    tpu.vector_store %arg9[%c1024, %c0_71], %162 {strides = array<i32>} : memref<1728x512xbf16, #tpu.memory_space<vmem>>, vector<64x512xbf16>,
    %c503_i32 = arith.constant 503 : i32
    %164 = tpu.dynamic_rotate %50 by %c503_i32 dim 1 : vector<64x512xf32>, i32 -> vector<64x512xf32>
    %c17 = arith.constant 17 : index
    %c0_72 = arith.constant 0 : index
    %165 = vector.load %arg2[%c17, %c0_72] : memref<27x512xf32, #tpu.memory_space<vmem>>, vector<1x512xf32>
    %166 = vector.broadcast %165 : vector<1x512xf32> to vector<64x512xf32>
    %167 = arith.mulf %164, %166 : vector<64x512xf32>
    %168 = arith.truncf %167 : vector<64x512xf32> to vector<64x512xbf16>
    %c1088 = arith.constant 1088 : index
    %c0_73 = arith.constant 0 : index
    %169 = vector.load %arg9[%c1088, %c0_73] : memref<1728x512xbf16, #tpu.memory_space<vmem>>, vector<64x512xbf16>
    tpu.vector_store %arg9[%c1088, %c0_73], %168 {strides = array<i32>} : memref<1728x512xbf16, #tpu.memory_space<vmem>>, vector<64x512xbf16>,
    %c457_i32 = arith.constant 457 : i32
    %170 = tpu.dynamic_rotate %50 by %c457_i32 dim 1 : vector<64x512xf32>, i32 -> vector<64x512xf32>
    %c18 = arith.constant 18 : index
    %c0_74 = arith.constant 0 : index
    %171 = vector.load %arg2[%c18, %c0_74] : memref<27x512xf32, #tpu.memory_space<vmem>>, vector<1x512xf32>
    %172 = vector.broadcast %171 : vector<1x512xf32> to vector<64x512xf32>
    %173 = arith.mulf %170, %172 : vector<64x512xf32>
    %174 = arith.truncf %173 : vector<64x512xf32> to vector<64x512xbf16>
    %c1152 = arith.constant 1152 : index
    %c0_75 = arith.constant 0 : index
    %175 = vector.load %arg9[%c1152, %c0_75] : memref<1728x512xbf16, #tpu.memory_space<vmem>>, vector<64x512xbf16>
    tpu.vector_store %arg9[%c1152, %c0_75], %174 {strides = array<i32>} : memref<1728x512xbf16, #tpu.memory_space<vmem>>, vector<64x512xbf16>,
    %c456_i32 = arith.constant 456 : i32
    %176 = tpu.dynamic_rotate %50 by %c456_i32 dim 1 : vector<64x512xf32>, i32 -> vector<64x512xf32>
    %c19 = arith.constant 19 : index
    %c0_76 = arith.constant 0 : index
    %177 = vector.load %arg2[%c19, %c0_76] : memref<27x512xf32, #tpu.memory_space<vmem>>, vector<1x512xf32>
    %178 = vector.broadcast %177 : vector<1x512xf32> to vector<64x512xf32>
    %179 = arith.mulf %176, %178 : vector<64x512xf32>
    %180 = arith.truncf %179 : vector<64x512xf32> to vector<64x512xbf16>
    %c1216 = arith.constant 1216 : index
    %c0_77 = arith.constant 0 : index
    %181 = vector.load %arg9[%c1216, %c0_77] : memref<1728x512xbf16, #tpu.memory_space<vmem>>, vector<64x512xbf16>
    tpu.vector_store %arg9[%c1216, %c0_77], %180 {strides = array<i32>} : memref<1728x512xbf16, #tpu.memory_space<vmem>>, vector<64x512xbf16>,
    %c0_78 = arith.constant 0 : index
    %c1024_79 = arith.constant 1024 : index
    %182 = vector.load %arg4[%c0_78, %c1024_79] : memref<64x1728xbf16, #tpu.memory_space<vmem>>, vector<64x256xbf16>
    %c1024_80 = arith.constant 1024 : index
    %c0_81 = arith.constant 0 : index
    %183 = vector.load %arg9[%c1024_80, %c0_81] : memref<1728x512xbf16, #tpu.memory_space<vmem>>, vector<256x512xbf16>
    %cst_82 = arith.constant dense<0.000000e+00> : vector<64x512xf32>
    %184 = tpu.matmul %182, %183, %cst_82 {dimension_numbers = #tpu.dot_dimension_numbers<[1], [0], [0], [1], [0, 0, 1, 1], [], []>} : vector<64x256xbf16>, vector<256x512xbf16>, vector<64x512xf32> -> vector<64x512xf32>
    %185 = arith.addf %157, %184 : vector<64x512xf32>
    %c455_i32 = arith.constant 455 : i32
    %186 = tpu.dynamic_rotate %50 by %c455_i32 dim 1 : vector<64x512xf32>, i32 -> vector<64x512xf32>
    %c20 = arith.constant 20 : index
    %c0_83 = arith.constant 0 : index
    %187 = vector.load %arg2[%c20, %c0_83] : memref<27x512xf32, #tpu.memory_space<vmem>>, vector<1x512xf32>
    %188 = vector.broadcast %187 : vector<1x512xf32> to vector<64x512xf32>
    %189 = arith.mulf %186, %188 : vector<64x512xf32>
    %190 = arith.truncf %189 : vector<64x512xf32> to vector<64x512xbf16>
    %c1280 = arith.constant 1280 : index
    %c0_84 = arith.constant 0 : index
    %191 = vector.load %arg9[%c1280, %c0_84] : memref<1728x512xbf16, #tpu.memory_space<vmem>>, vector<64x512xbf16>
    tpu.vector_store %arg9[%c1280, %c0_84], %190 {strides = array<i32>} : memref<1728x512xbf16, #tpu.memory_space<vmem>>, vector<64x512xbf16>,
    %c449_i32 = arith.constant 449 : i32
    %192 = tpu.dynamic_rotate %50 by %c449_i32 dim 1 : vector<64x512xf32>, i32 -> vector<64x512xf32>
    %c21 = arith.constant 21 : index
    %c0_85 = arith.constant 0 : index
    %193 = vector.load %arg2[%c21, %c0_85] : memref<27x512xf32, #tpu.memory_space<vmem>>, vector<1x512xf32>
    %194 = vector.broadcast %193 : vector<1x512xf32> to vector<64x512xf32>
    %195 = arith.mulf %192, %194 : vector<64x512xf32>
    %196 = arith.truncf %195 : vector<64x512xf32> to vector<64x512xbf16>
    %c1344 = arith.constant 1344 : index
    %c0_86 = arith.constant 0 : index
    %197 = vector.load %arg9[%c1344, %c0_86] : memref<1728x512xbf16, #tpu.memory_space<vmem>>, vector<64x512xbf16>
    tpu.vector_store %arg9[%c1344, %c0_86], %196 {strides = array<i32>} : memref<1728x512xbf16, #tpu.memory_space<vmem>>, vector<64x512xbf16>,
    %c448_i32 = arith.constant 448 : i32
    %198 = tpu.dynamic_rotate %50 by %c448_i32 dim 1 : vector<64x512xf32>, i32 -> vector<64x512xf32>
    %c22 = arith.constant 22 : index
    %c0_87 = arith.constant 0 : index
    %199 = vector.load %arg2[%c22, %c0_87] : memref<27x512xf32, #tpu.memory_space<vmem>>, vector<1x512xf32>
    %200 = vector.broadcast %199 : vector<1x512xf32> to vector<64x512xf32>
    %201 = arith.mulf %198, %200 : vector<64x512xf32>
    %202 = arith.truncf %201 : vector<64x512xf32> to vector<64x512xbf16>
    %c1408 = arith.constant 1408 : index
    %c0_88 = arith.constant 0 : index
    %203 = vector.load %arg9[%c1408, %c0_88] : memref<1728x512xbf16, #tpu.memory_space<vmem>>, vector<64x512xbf16>
    tpu.vector_store %arg9[%c1408, %c0_88], %202 {strides = array<i32>} : memref<1728x512xbf16, #tpu.memory_space<vmem>>, vector<64x512xbf16>,
    %c447_i32 = arith.constant 447 : i32
    %204 = tpu.dynamic_rotate %50 by %c447_i32 dim 1 : vector<64x512xf32>, i32 -> vector<64x512xf32>
    %c23 = arith.constant 23 : index
    %c0_89 = arith.constant 0 : index
    %205 = vector.load %arg2[%c23, %c0_89] : memref<27x512xf32, #tpu.memory_space<vmem>>, vector<1x512xf32>
    %206 = vector.broadcast %205 : vector<1x512xf32> to vector<64x512xf32>
    %207 = arith.mulf %204, %206 : vector<64x512xf32>
    %208 = arith.truncf %207 : vector<64x512xf32> to vector<64x512xbf16>
    %c1472 = arith.constant 1472 : index
    %c0_90 = arith.constant 0 : index
    %209 = vector.load %arg9[%c1472, %c0_90] : memref<1728x512xbf16, #tpu.memory_space<vmem>>, vector<64x512xbf16>
    tpu.vector_store %arg9[%c1472, %c0_90], %208 {strides = array<i32>} : memref<1728x512xbf16, #tpu.memory_space<vmem>>, vector<64x512xbf16>,
    %c0_91 = arith.constant 0 : index
    %c1280_92 = arith.constant 1280 : index
    %210 = vector.load %arg4[%c0_91, %c1280_92] : memref<64x1728xbf16, #tpu.memory_space<vmem>>, vector<64x256xbf16>
    %c1280_93 = arith.constant 1280 : index
    %c0_94 = arith.constant 0 : index
    %211 = vector.load %arg9[%c1280_93, %c0_94] : memref<1728x512xbf16, #tpu.memory_space<vmem>>, vector<256x512xbf16>
    %cst_95 = arith.constant dense<0.000000e+00> : vector<64x512xf32>
    %212 = tpu.matmul %210, %211, %cst_95 {dimension_numbers = #tpu.dot_dimension_numbers<[1], [0], [0], [1], [0, 0, 1, 1], [], []>} : vector<64x256xbf16>, vector<256x512xbf16>, vector<64x512xf32> -> vector<64x512xf32>
    %213 = arith.addf %185, %212 : vector<64x512xf32>
    %c441_i32 = arith.constant 441 : i32
    %214 = tpu.dynamic_rotate %50 by %c441_i32 dim 1 : vector<64x512xf32>, i32 -> vector<64x512xf32>
    %c24 = arith.constant 24 : index
    %c0_96 = arith.constant 0 : index
    %215 = vector.load %arg2[%c24, %c0_96] : memref<27x512xf32, #tpu.memory_space<vmem>>, vector<1x512xf32>
    %216 = vector.broadcast %215 : vector<1x512xf32> to vector<64x512xf32>
    %217 = arith.mulf %214, %216 : vector<64x512xf32>
    %218 = arith.truncf %217 : vector<64x512xf32> to vector<64x512xbf16>
    %c1536 = arith.constant 1536 : index
    %c0_97 = arith.constant 0 : index
    %219 = vector.load %arg9[%c1536, %c0_97] : memref<1728x512xbf16, #tpu.memory_space<vmem>>, vector<64x512xbf16>
    tpu.vector_store %arg9[%c1536, %c0_97], %218 {strides = array<i32>} : memref<1728x512xbf16, #tpu.memory_space<vmem>>, vector<64x512xbf16>,
    %c440_i32 = arith.constant 440 : i32
    %220 = tpu.dynamic_rotate %50 by %c440_i32 dim 1 : vector<64x512xf32>, i32 -> vector<64x512xf32>
    %c25 = arith.constant 25 : index
    %c0_98 = arith.constant 0 : index
    %221 = vector.load %arg2[%c25, %c0_98] : memref<27x512xf32, #tpu.memory_space<vmem>>, vector<1x512xf32>
    %222 = vector.broadcast %221 : vector<1x512xf32> to vector<64x512xf32>
    %223 = arith.mulf %220, %222 : vector<64x512xf32>
    %224 = arith.truncf %223 : vector<64x512xf32> to vector<64x512xbf16>
    %c1600 = arith.constant 1600 : index
    %c0_99 = arith.constant 0 : index
    %225 = vector.load %arg9[%c1600, %c0_99] : memref<1728x512xbf16, #tpu.memory_space<vmem>>, vector<64x512xbf16>
    tpu.vector_store %arg9[%c1600, %c0_99], %224 {strides = array<i32>} : memref<1728x512xbf16, #tpu.memory_space<vmem>>, vector<64x512xbf16>,
    %c439_i32 = arith.constant 439 : i32
    %226 = tpu.dynamic_rotate %50 by %c439_i32 dim 1 : vector<64x512xf32>, i32 -> vector<64x512xf32>
    %c26 = arith.constant 26 : index
    %c0_100 = arith.constant 0 : index
    %227 = vector.load %arg2[%c26, %c0_100] : memref<27x512xf32, #tpu.memory_space<vmem>>, vector<1x512xf32>
    %228 = vector.broadcast %227 : vector<1x512xf32> to vector<64x512xf32>
    %229 = arith.mulf %226, %228 : vector<64x512xf32>
    %230 = arith.truncf %229 : vector<64x512xf32> to vector<64x512xbf16>
    %c1664 = arith.constant 1664 : index
    %c0_101 = arith.constant 0 : index
    %231 = vector.load %arg9[%c1664, %c0_101] : memref<1728x512xbf16, #tpu.memory_space<vmem>>, vector<64x512xbf16>
    tpu.vector_store %arg9[%c1664, %c0_101], %230 {strides = array<i32>} : memref<1728x512xbf16, #tpu.memory_space<vmem>>, vector<64x512xbf16>,
    %c0_102 = arith.constant 0 : index
    %c1536_103 = arith.constant 1536 : index
    %232 = vector.load %arg4[%c0_102, %c1536_103] : memref<64x1728xbf16, #tpu.memory_space<vmem>>, vector<64x192xbf16>
    %c1536_104 = arith.constant 1536 : index
    %c0_105 = arith.constant 0 : index
    %233 = vector.load %arg9[%c1536_104, %c0_105] : memref<1728x512xbf16, #tpu.memory_space<vmem>>, vector<192x512xbf16>
    %cst_106 = arith.constant dense<0.000000e+00> : vector<64x512xf32>
    %234 = tpu.matmul %232, %233, %cst_106 {dimension_numbers = #tpu.dot_dimension_numbers<[1], [0], [0], [1], [0, 0, 1, 1], [], []>} : vector<64x192xbf16>, vector<192x512xbf16>, vector<64x512xf32> -> vector<64x512xf32>
    %235 = arith.addf %213, %234 : vector<64x512xf32>
    %236 = vector.broadcast %5 : vector<64x1xf32> to vector<64x512xf32>
    %237 = arith.addf %235, %236 : vector<64x512xf32>
    %cst_107 = arith.constant dense<0.000000e+00> : vector<512xf32>
    %238 = vector.multi_reduction <add>, %237, %cst_107 [0] : vector<64x512xf32> to vector<512xf32>
    %239 = vector.shape_cast %238 : vector<512xf32> to vector<1x512xf32>
    %cst_108 = arith.constant 6.400000e+01 : f32
    %240 = vector.broadcast %cst_108 : f32 to vector<1x512xf32>
    %241 = arith.divf %239, %240 : vector<1x512xf32>
    %242 = vector.broadcast %241 : vector<1x512xf32> to vector<64x512xf32>
    %243 = arith.subf %237, %242 : vector<64x512xf32>
    %244 = arith.mulf %243, %243 : vector<64x512xf32>
    %cst_109 = arith.constant dense<0.000000e+00> : vector<512xf32>
    %245 = vector.multi_reduction <add>, %244, %cst_109 [0] : vector<64x512xf32> to vector<512xf32>
    %246 = vector.shape_cast %245 : vector<512xf32> to vector<1x512xf32>
    %cst_110 = arith.constant 6.400000e+01 : f32
    %247 = vector.broadcast %cst_110 : f32 to vector<1x512xf32>
    %248 = arith.divf %246, %247 : vector<1x512xf32>
    %cst_111 = arith.constant 9.99999997E-7 : f32
    %249 = vector.broadcast %cst_111 : f32 to vector<1x512xf32>
    %250 = arith.addf %248, %249 : vector<1x512xf32>
    %251 = math.rsqrt %250 : vector<1x512xf32>
    %252 = vector.broadcast %251 : vector<1x512xf32> to vector<64x512xf32>
    %253 = arith.mulf %243, %252 : vector<64x512xf32>
    %254 = vector.broadcast %6 : vector<64x1xf32> to vector<64x512xf32>
    %255 = arith.mulf %253, %254 : vector<64x512xf32>
    %256 = vector.broadcast %7 : vector<64x1xf32> to vector<64x512xf32>
    %257 = arith.addf %255, %256 : vector<64x512xf32>
    %cst_112 = arith.constant 5.000000e-01 : f32
    %258 = vector.broadcast %cst_112 : f32 to vector<64x512xf32>
    %259 = arith.mulf %258, %257 : vector<64x512xf32>
    %260 = arith.mulf %257, %257 : vector<64x512xf32>
    %261 = arith.mulf %260, %257 : vector<64x512xf32>
    %cst_113 = arith.constant 4.471500e-02 : f32
    %262 = vector.broadcast %cst_113 : f32 to vector<64x512xf32>
    %263 = arith.mulf %262, %261 : vector<64x512xf32>
    %264 = arith.addf %257, %263 : vector<64x512xf32>
    %cst_114 = arith.constant 0.797884583 : f32
    %265 = vector.broadcast %cst_114 : f32 to vector<64x512xf32>
    %266 = arith.mulf %265, %264 : vector<64x512xf32>
    %267 = math.tanh %266 : vector<64x512xf32>
    %cst_115 = arith.constant 1.000000e+00 : f32
    %268 = vector.broadcast %cst_115 : f32 to vector<64x512xf32>
    %269 = arith.addf %268, %267 : vector<64x512xf32>
    %270 = arith.mulf %259, %269 : vector<64x512xf32>
    %c0_116 = arith.constant 0 : index
    %c0_117 = arith.constant 0 : index
    %271 = vector.load %arg5[%c0_116, %c0_117] : memref<16x64xbf16, #tpu.memory_space<vmem>>, vector<16x64xbf16>
    %272 = arith.truncf %270 : vector<64x512xf32> to vector<64x512xbf16>
    %cst_118 = arith.constant dense<0.000000e+00> : vector<16x512xf32>
    %273 = tpu.matmul %271, %272, %cst_118 {dimension_numbers = #tpu.dot_dimension_numbers<[1], [0], [0], [1], [0, 0, 1, 1], [], []>} : vector<16x64xbf16>, vector<64x512xbf16>, vector<16x512xf32> -> vector<16x512xf32>
    %274 = vector.broadcast %8 : vector<16x1xf32> to vector<16x512xf32>
    %275 = arith.addf %273, %274 : vector<16x512xf32>
    %cst_119 = arith.constant dense<0.000000e+00> : vector<512xf32>
    %276 = vector.multi_reduction <add>, %275, %cst_119 [0] : vector<16x512xf32> to vector<512xf32>
    %277 = vector.shape_cast %276 : vector<512xf32> to vector<1x512xf32>
    %cst_120 = arith.constant 1.600000e+01 : f32
    %278 = vector.broadcast %cst_120 : f32 to vector<1x512xf32>
    %279 = arith.divf %277, %278 : vector<1x512xf32>
    %280 = vector.broadcast %279 : vector<1x512xf32> to vector<16x512xf32>
    %281 = arith.subf %275, %280 : vector<16x512xf32>
    %282 = arith.mulf %281, %281 : vector<16x512xf32>
    %cst_121 = arith.constant dense<0.000000e+00> : vector<512xf32>
    %283 = vector.multi_reduction <add>, %282, %cst_121 [0] : vector<16x512xf32> to vector<512xf32>
    %284 = vector.shape_cast %283 : vector<512xf32> to vector<1x512xf32>
    %cst_122 = arith.constant 1.600000e+01 : f32
    %285 = vector.broadcast %cst_122 : f32 to vector<1x512xf32>
    %286 = arith.divf %284, %285 : vector<1x512xf32>
    %cst_123 = arith.constant 9.99999997E-7 : f32
    %287 = vector.broadcast %cst_123 : f32 to vector<1x512xf32>
    %288 = arith.addf %286, %287 : vector<1x512xf32>
    %289 = math.rsqrt %288 : vector<1x512xf32>
    %290 = vector.broadcast %289 : vector<1x512xf32> to vector<16x512xf32>
    %291 = arith.mulf %281, %290 : vector<16x512xf32>
    %292 = vector.broadcast %9 : vector<16x1xf32> to vector<16x512xf32>
    %293 = arith.mulf %291, %292 : vector<16x512xf32>
    %294 = vector.broadcast %10 : vector<16x1xf32> to vector<16x512xf32>
    %295 = arith.addf %293, %294 : vector<16x512xf32>
    %296 = arith.addf %12, %295 : vector<16x512xf32>
    %cst_124 = arith.constant 5.000000e-01 : f32
    %297 = vector.broadcast %cst_124 : f32 to vector<16x512xf32>
    %298 = arith.mulf %297, %296 : vector<16x512xf32>
    %299 = arith.mulf %296, %296 : vector<16x512xf32>
    %300 = arith.mulf %299, %296 : vector<16x512xf32>
    %cst_125 = arith.constant 4.471500e-02 : f32
    %301 = vector.broadcast %cst_125 : f32 to vector<16x512xf32>
    %302 = arith.mulf %301, %300 : vector<16x512xf32>
    %303 = arith.addf %296, %302 : vector<16x512xf32>
    %cst_126 = arith.constant 0.797884583 : f32
    %304 = vector.broadcast %cst_126 : f32 to vector<16x512xf32>
    %305 = arith.mulf %304, %303 : vector<16x512xf32>
    %306 = math.tanh %305 : vector<16x512xf32>
    %cst_127 = arith.constant 1.000000e+00 : f32
    %307 = vector.broadcast %cst_127 : f32 to vector<16x512xf32>
    %308 = arith.addf %307, %306 : vector<16x512xf32>
    %309 = arith.mulf %298, %308 : vector<16x512xf32>
    %c0_128 = arith.constant 0 : index
    %c0_129 = arith.constant 0 : index
    %c0_130 = arith.constant 0 : index
    %310 = vector.load %arg8[%c0_128, %c0_129, %c0_130] : memref<1x16x512xf32, #tpu.memory_space<vmem>>, vector<1x16x512xf32>
    %311 = vector.shape_cast %310 : vector<1x16x512xf32> to vector<16x512xf32>
    %312 = vector.shape_cast %309 : vector<16x512xf32> to vector<1x16x512xf32>
    tpu.vector_store %arg8[%c0_128, %c0_129, %c0_130], %312 {strides = array<i32>} : memref<1x16x512xf32, #tpu.memory_space<vmem>>, vector<1x16x512xf32>,
    return
  }
  func.func @transform_0(%arg0: i32) -> (i32, i32, i32) {
    %c0_i32 = arith.constant 0 : i32
    %c0_i32_0 = arith.constant 0 : i32
    %c0_i32_1 = arith.constant 0 : i32
    return %arg0, %c0_i32, %c0_i32_0 : i32, i32, i32
  }
  func.func @transform_1(%arg0: i32) -> (i32, i32) {
    %c0_i32 = arith.constant 0 : i32
    %c0_i32_0 = arith.constant 0 : i32
    %c0_i32_1 = arith.constant 0 : i32
    return %c0_i32, %c0_i32_0 : i32, i32
  }
  func.func @transform_2(%arg0: i32) -> (i32, i32) {
    %c0_i32 = arith.constant 0 : i32
    %c0_i32_0 = arith.constant 0 : i32
    %c0_i32_1 = arith.constant 0 : i32
    return %c0_i32, %c0_i32_0 : i32, i32
  }
  func.func @transform_3(%arg0: i32) -> (i32, i32) {
    %c0_i32 = arith.constant 0 : i32
    %c0_i32_0 = arith.constant 0 : i32
    %c0_i32_1 = arith.constant 0 : i32
    return %c0_i32, %c0_i32_0 : i32, i32
  }
  func.func @transform_4(%arg0: i32) -> (i32, i32) {
    %c0_i32 = arith.constant 0 : i32
    %c0_i32_0 = arith.constant 0 : i32
    %c0_i32_1 = arith.constant 0 : i32
    return %c0_i32, %c0_i32_0 : i32, i32
  }
  func.func @transform_5(%arg0: i32) -> (i32, i32) {
    %c0_i32 = arith.constant 0 : i32
    %c0_i32_0 = arith.constant 0 : i32
    %c0_i32_1 = arith.constant 0 : i32
    return %c0_i32, %c0_i32_0 : i32, i32
  }
  func.func @transform_6(%arg0: i32) -> (i32, i32) {
    %c0_i32 = arith.constant 0 : i32
    %c0_i32_0 = arith.constant 0 : i32
    %c0_i32_1 = arith.constant 0 : i32
    return %c0_i32, %c0_i32_0 : i32, i32
  }
  func.func @transform_7(%arg0: i32) -> (i32, i32, i32) {
    %c0_i32 = arith.constant 0 : i32
    %c0_i32_0 = arith.constant 0 : i32
    %c0_i32_1 = arith.constant 0 : i32
    return %arg0, %c0_i32, %c0_i32_0 : i32, i32, i32
  }
}

</mosaic_0001>

<bundles_post_ra>
// kernel: tpu_custom_call.1
= control target key start
LH: loop header
LB: loop body
LE: loop exit
PB: predicated region body
PF: predicated region fallthrough
CT: control target
= control target key end

     0   :  { %12 = vsyncpa [#allocation4], 0  ;;  %s22873_s0 = inlined_call_operand.vmem [shape: f32[2,16,512], index: 0, kind: input, shape index: {}]   ;;  %s22874_s1 = inlined_call_operand.hbm [shape: f32[27,512], index: 1, kind: input, shape index: {}]   ;;  %s22875_s2 = inlined_call_operand.vmem [shape: bf16[64,16], index: 2, kind: input, shape index: {}]   ;;  %s22876_s3 = inlined_call_operand.hbm [shape: bf16[64,1728], index: 3, kind: input, shape index: {}]   ;;  %s22877_s4 = inlined_call_operand.vmem [shape: bf16[16,64], index: 4, kind: input, shape index: {}]   ;;  %s22878_s5 = inlined_call_operand.vmem [shape: f32[64,6], index: 5, kind: input, shape index: {}]   ;;  %s22879_s6 = inlined_call_operand.vmem [shape: f32[16,3], index: 6, kind: input, shape index: {}]   ;;  %s22880_s7 = inlined_call_operand.hbm [shape: f32[2,16,512], index: 7, kind: output, shape index: {}]  }
   0x1   :  { %13 = vsyncpa [#allocation7], 0 }
   0x2   :  { %14 = vsyncpa [#allocation5], 0 }
   0x3   :  { %16 = vsyncpa [#allocation5 + $0x1], 0  ;;  %s14951_s24 = smov 0   ;;  %s14953_s25 = smov 0  }
   0x4   :  { %s14955_s26 = smov 0   ;;  %s14957_s27 = smov 0  }
   0x5 LB: > { %s14972_s28 = sadd.s32 4294967295, %s14877_s27   ;;  %s12546_s29 = sadd.s32 4294967294, %s14877_s27   ;;  %s14877_s27 = sphi %s14957_s27, %s24683_s27   ;;  %s14873_s26 = sphi %s14955_s26, %s24682_s26   ;;  %s14869_s25 = sphi %s14953_s25, %s24681_s25   ;;  %s14865_s24 = sphi %s14951_s24, %s24680_s24  }
   0x6   : > { %s14976_s30 = sadd.s32 1, %s14877_s27   ;;  %s181_s8 = sadd.s32 1, %s14873_s26 }
   0x7   : > { %s178_s9 = ssub.s32 %s14877_s27, %s14976_s30  ;;  %p191_p0 = scmp.ne.s32.totalorder %s14873_s26, %s14869_s25 }
   0x8   : > { %p179_p1 = scmp.eq.s32.totalorder %s178_s9, 0  ;;  %p192_p2 = scmp.eq.s32.totalorder %s14972_s28, 1 }
   0x9   : > { %p197_p3 = scmp.ne.s32.totalorder %s14869_s25, %s14865_s24  ;;  %p198_p4 = scmp.eq.s32.totalorder %s12546_s29, 1 }
   0xa   : > { %s14987_s10 = scalar_select %p179_p1, %s14873_s26, %s181_s8  }
   0xb   : > { %p14989_p5 = por %p192_p2, %p191_p0  ;;  %p14993_p6 = por %p198_p4, %p197_p3 }
   0xc   : > { %p12547_p7 = scmp.ge.s32.totalorder %s14877_s27, 1  ;;  %p205_p8 = scmp.lt.s32.totalorder %s14877_s27, 3 }
   0xd   : > { %s23427_s12 = scalar_select %p14993_p6, 1, 0 }
   0xe   : > { %p22881_p9 = scmp.eq.s32.totalorder %s14972_s28, 0  ;;  %p15000_p10 = pnand %p12547_p7, %p205_p8 }
   0xf   : > { %s14879_s14 = smov [#allocation3]   ;;  %s14880_s17 = smov [#allocation6]  }
  0x10   : > { %s217_s15 = sshll.u32 %s14879_s14, 4  ;;  %p14381_p11 = pneg %p15000_p10  ;;  %s218_s15 = int_to_ptr.vmem [resolvable:$true] %s217_s15 }
  0x11   : > { %s233_s18 = sshll.u32 %s14880_s17, 4  ;;  %s14768_s19 = scalar_lea.vmem %s218_s15, 2048  ;;  %s234_s18 = int_to_ptr.vmem [resolvable:$true] %s233_s18 }
  0x12   : > { %p15008_p12 = pnand %p22881_p9, %p14381_p11  ;;  %p14769_p0 = scmp.ne.s32.totalorder %s218_s15, %s14768_s19 }
  0x13   : > { %p14776_p3 = scmp.lt.s32.totalorder %s218_s15, %s218_s15  ;;  %p14777_p4 = scmp.lt.s32.totalorder %s14768_s19, %s14768_s19 }
  0x14   : > { %p14759_p13 = pneg %p15008_p12 }
  0x15   : > { %p14778_p7 = por %p14777_p4, %p14776_p3 }
  0x16   : > { %p14771_p1 = pnand %p14769_p0, %p14759_p13 }
  0x18   : > { %p14772_p2 = pneg %p14771_p1 }
  0x1a   : > { %p14779_p8 = pnand %p14778_p7, %p14772_p2 }
  0x1c   : > { %14782 = shalt.err (!%p14779_p8)
}
  0x1d   : > { %s14881_s20 = smov 512   ;;  %s14882_s21 = smov 32  }
  0x1e   : > { %14384 = dma.hbm_to_vmem [thread:$0]  (!%p15008_p12), %s22874_s1, 2048, %s218_s15, [#allocation4], %s14881_s20, %s14881_s20, %s14882_s21  }
  0x1f   : > { %s14794_s29 = scalar_lea.vmem %s234_s18, 7168  ;;  %p14802_p9 = scmp.lt.s32.totalorder %s234_s18, %s234_s18 }
  0x20   : > { %p14795_p11 = scmp.ne.s32.totalorder %s234_s18, %s14794_s29  ;;  %p14803_p6 = scmp.lt.s32.totalorder %s14794_s29, %s14794_s29 }
  0x22   : > { %p14797_p0 = pnand %p14795_p11, %p14759_p13  ;;  %p14804_p3 = por %p14803_p6, %p14802_p9 }
  0x24   : > { %p14798_p1 = pneg %p14797_p0 }
  0x26   : > { %p14805_p2 = pnand %p14804_p3, %p14798_p1 }
  0x28   : > { %14808 = shalt.err (!%p14805_p2)
}
  0x29   : > { %s14883_s8 = smov 896   ;;  %s14884_s9 = smov 56  }
  0x2a   : > { %14387 = dma.hbm_to_vmem [thread:$0]  (!%p15008_p12), %s22876_s3, 7168, %s234_s18, [#allocation7], %s14883_s8, %s14883_s8, %s14884_s9  }
  0x2b   : > { %266 = sbr.rel (%p15000_p10) target bundleno = 2505 (0x9c9), region = 48 }
  0x30   : > { %p23430_p4 = scmp.eq.s32.totalorder %s14972_s28, 0 }
  0x32   : > { %14852 = dma.done.wait (%p23430_p4), [#allocation4], 2048   ;;  %p23431_p13 = pmov %p23430_p4 }
  0x33   : > { %p23432_p6 = pmov %p23430_p4 }
  0x34   : > { %14854 = vsyncadd (%p23431_p13), [#allocation4], 4294965248 }
  0x35   : > { %14856 = dma.done.wait (%p23432_p6), [#allocation7], 7168   ;;  %p23433_p9 = pmov %p23430_p4 }
  0x36   : > { %p302_p7 = scmp.lt.s32.totalorder %s14972_s28, 1  ;;  %v22885_v0 = vmov 0   ;;  %v14484_v13 = vld [vmem:[%s22875_s2] sm:$0xff]   ;;  %vm398_vm0 = vcmask 130048   ;;  %v310_v15 = vld [vmem:[%s22878_s5 + $0x10] sm:$0xff]  ;;  %v309_v16 = vld [vmem:[%s22878_s5 + $0x8] sm:$0xff] }
  0x37   : > { %14858 = vsyncadd (%p23433_p9), [#allocation7], 4294960128  ;;  %443 = vmatprep.mubr.bf16.mxu0 %v22885_v0  ;;  %516 = vmatprep.mubr.bf16.mxu1 %v22885_v0  ;;  %v308_v14 = vld [vmem:[%s22878_s5] sm:$0xff]  ;;  %v14485_v17 = vld [vmem:[%s22875_s2 + $0x8] sm:$0xff]   ;;  %v22884_v24 = vmov 1   ;;  %v22882_v26 = vmov 2  }
  0x38   : > { %s303_s13 = scalar_select %p302_p7, %s14972_s28, 1  ;;  %14460 = vset.pattern.permute.xlu0 %v22885_v0  ;;  %14461 = vset.pattern.permute.xlu1 %v22885_v0  ;;  %v311_v18 = vld [vmem:[%s22878_s5 + $0x18] sm:$0xff]  ;;  %v312_v19 = vld [vmem:[%s22878_s5 + $0x20] sm:$0xff]  ;;  %v313_v20 = vld [vmem:[%s22878_s5 + $0x28] sm:$0xff] }
  0x39   : > { %340 = vperm.xlu0 %14460, %v308_v14   ;;  %350 = vperm.xlu1 %14461, %v310_v15   ;;  %v314_v21 = vld [vmem:[%s22878_s5 + $0x30] sm:$0xff]  ;;  %v315_v22 = vld [vmem:[%s22878_s5 + $0x38] sm:$0xff]  ;;  %s14888_s16 = smov 73   ;;  %s14889_s18 = smov 72  }
  0x3a   : > { %s13505_s15 = sshll.u32 %s303_s13, 6  ;;  %v14486_v23 = vld [vmem:[%s22875_s2 + $0x10] sm:$0xff]   ;;  %v14487_v25 = vld [vmem:[%s22875_s2 + $0x18] sm:$0xff]   ;;  %s14890_s20 = smov 63  }
  0x3b   : > { %s15049_s19 = scalar_lea.vmem %s22873_s0, %s13505_s15  ;;  %s14891_s21 = smov 64  }
  0x3c   : > { %v319_v1 = vld [vmem:[%s15049_s19 + $0x8] sm:$0xff]  ;;  %v321_v3 = vld [vmem:[%s15049_s19 + $0x18] sm:$0xff]  ;;  %v318_v6 = vld [vmem:[%s15049_s19] sm:$0xff]  ;;  %s14892_s22 = smov 56   ;;  %s14893_s23 = smov 57  }
  0x3d   : > { %v323_v2 = vld [vmem:[%s15049_s19 + $0x28] sm:$0xff]  ;;  %v325_v5 = vld [vmem:[%s15049_s19 + $0x38] sm:$0xff]  ;;  %v322_v7 = vld [vmem:[%s15049_s19 + $0x20] sm:$0xff]  ;;  %345 = vperm.xlu0 %14460, %v309_v16   ;;  %355 = vperm.xlu1 %14461, %v311_v18   ;;  %s14894_s29 = smov 65   ;;  %s14895_s8 = smov 71  }
  0x3e   : > { %v335_v4 = vpack.c.bf16 %v323_v2, %v319_v1  ;;  %v337_v8 = vpack.c.bf16 %v325_v5, %v321_v3  ;;  %v334_v9 = vpack.c.bf16 %v322_v7, %v318_v6  ;;  %v320_v10 = vld [vmem:[%s15049_s19 + $0x10] sm:$0xff]  ;;  %s14896_s9 = smov 9   ;;  %s14897_s14 = smov 55  }
  0x3f   : > { %v324_v11 = vld [vmem:[%s15049_s19 + $0x30] sm:$0xff]  ;;  %s14898_s17 = smov 7   ;;  %s14899_s13 = smov 8  }
  0x40   : > { %425 = vmatprep.subr.bf16.mxu0 %v335_v4  ;;  %v336_v12 = vpack.c.bf16 %v324_v11, %v320_v10  ;;  %498 = vmatprep.subr.bf16.mxu1 %v337_v8  ;;  %s14900_s15 = smov 1  }
  0x41   : > { %426 = vmatpush1.bf16.msra.mxu0 %v334_v9  ;;  %360 = vperm.xlu0 %14460, %v312_v19  }
  0x42   : > { %499 = vmatpush1.bf16.msra.mxu1 %v336_v12  ;;  %365 = vperm.xlu1 %14461, %v313_v20  }
  0x44   : > { %12561 = vmatmul.mubr.msk.bf16.vlgmr.msra.gmra.mxu0 %vm398_vm0, %v14484_v13 }
  0x45   : > { %12565 = vmatmul.mubr.msk.bf16.vlgmr.msra.gmra.mxu1 %vm398_vm0, %v14484_v13  ;;  %453 = vmatprep.mubr.bf16.mxu0 %v22885_v0 }
  0x46   : > { %526 = vmatprep.mubr.bf16.mxu1 %v22885_v0  ;;  %370 = vperm.xlu0 %14460, %v314_v21  }
  0x47   : > { %375 = vperm.xlu1 %14461, %v315_v22  }
  0x4a   : > { %14462 = vset.pattern.permute.xlu0 %v22884_v24 }
  0x4b   : > { %14463 = vset.pattern.permute.xlu1 %v22884_v24  ;;  %775 = vperm.xlu0 %14462, %v308_v14  }
  0x4c   : > { %12562 = vmatmul.mubr.msk.bf16.gmra.mxu0 %vm398_vm0, %v14485_v17  ;;  %779 = vperm.xlu1 %14463, %v309_v16  }
  0x4d   : > { %12566 = vmatmul.mubr.msk.bf16.gmra.mxu1 %vm398_vm0, %v14485_v17  ;;  %463 = vmatprep.mubr.bf16.mxu0 %v22885_v0 }
  0x4e   : > { %536 = vmatprep.mubr.bf16.mxu1 %v22885_v0 }
  0x4f   : > { %787 = vperm.xlu0 %14462, %v311_v18  }
  0x50   : > { %783 = vperm.xlu1 %14463, %v310_v15  }
  0x53   : > { %795 = vperm.xlu0 %14462, %v313_v20  }
  0x54   : > { %12563 = vmatmul.mubr.msk.bf16.gmra.mxu0 %vm398_vm0, %v14486_v23  ;;  %791 = vperm.xlu1 %14463, %v312_v19  }
  0x55   : > { %12567 = vmatmul.mubr.msk.bf16.gmra.mxu1 %vm398_vm0, %v14486_v23  ;;  %473 = vmatprep.mubr.bf16.mxu0 %v22885_v0 }
  0x56   : > { %546 = vmatprep.mubr.bf16.mxu1 %v22885_v0 }
  0x57   : > { %803 = vperm.xlu0 %14462, %v315_v22  }
  0x58   : > { %799 = vperm.xlu1 %14463, %v314_v21  }
  0x5b   : > { %14465 = vset.pattern.permute.xlu0 %v22882_v26 }
  0x5c   : > { %12564 = vmatmul.mubr.msk.bf16.gmra.mxu0 %vm398_vm0, %v14487_v25  ;;  %14464 = vset.pattern.permute.xlu1 %v22882_v26 }
  0x5d   : > { %12568 = vmatmul.mubr.msk.bf16.gmra.mxu1 %vm398_vm0, %v14487_v25  ;;  %839 = vperm.xlu1 %14464, %v308_v14  }
  0x5e   : > { %843 = vperm.xlu0 %14465, %v309_v16  }
  0x61   : > { %847 = vperm.xlu1 %14464, %v310_v15  }
  0x62   : > { %855 = vperm.xlu0 %14465, %v312_v19  }
  0x65   : > { %851 = vperm.xlu1 %14464, %v311_v18  }
  0x66   : > { %867 = vperm.xlu0 %14465, %v315_v22  }
  0x69   : > { %863 = vperm.xlu1 %14464, %v314_v21  }
  0x6d   : > { %859 = vperm.xlu1 %14464, %v313_v20  }
  0xb4   : > { %v341_v28 = vpop.permute.xlu0 %340  ;;  %v351_v39 = vpop.permute.xlu1 %350 }
  0xb8   : > { %v346_v35 = vpop.permute.xlu0 %345  ;;  %v356_v57 = vpop.permute.xlu1 %355 }
  0xbc   : > { %v361_v6 = vpop.permute.xlu0 %360 }
  0xbd   : > { %v366_v22 = vpop.permute.xlu1 %365 }
 0x104   : > { %v445_v27 = vpop.f32.mrf.mxu0 }
 0x105   : > { %v518_v29 = vpop.f32.mrf.mxu1  ;;  %v15145_v2 = vadd.f32 %v445_v27, %v341_v28 }
 0x106   : > { %v447_v30 = vpop.f32.mrf.mxu0  ;;  %v15123_v45 = vadd.f32 %v518_v29, %v341_v28 }
 0x107   : > { %v520_v31 = vpop.f32.mrf.mxu1  ;;  %v15119_v42 = vadd.f32 %v447_v30, %v341_v28 }
 0x108   : > { %v449_v32 = vpop.f32.mrf.mxu0  ;;  %v15113_v34 = vadd.f32 %v520_v31, %v341_v28 }
 0x109   : > { %v522_v33 = vpop.f32.mrf.mxu1  ;;  %v15139_v60 = vadd.f32 %v449_v32, %v346_v35  ;;  %v371_v32 = vpop.permute.xlu0 %370 }
 0x10a   : > { %v451_v36 = vpop.f32.mrf.mxu0  ;;  %v15125_v46 = vadd.f32 %v522_v33, %v346_v35 }
 0x10b   : > { %v15115_v37 = vadd.f32 %v451_v36, %v346_v35  ;;  %v524_v38 = vpop.f32.mrf.mxu1  ;;  %v557_v10 = vadd.f32 %v15139_v60, %v15145_v2 }
 0x10c   : > { %v15117_v40 = vadd.f32 %v524_v38, %v346_v35  ;;  %v455_v41 = vpop.f32.mrf.mxu0  ;;  %v583_v56 = vadd.f32 %v15125_v46, %v15123_v45 }
 0x10d   : > { %v528_v43 = vpop.f32.mrf.mxu1  ;;  %v570_v48 = vadd.f32 %v15115_v37, %v15119_v42  ;;  %v15147_v3 = vadd.f32 %v455_v41, %v351_v39 }
 0x10e   : > { %v596_v44 = vadd.f32 %v15117_v40, %v15113_v34  ;;  %v457_v47 = vpop.f32.mrf.mxu0  ;;  %v15134_v55 = vadd.f32 %v528_v43, %v351_v39 }
 0x10f   : > { %v15129_v49 = vadd.f32 %v457_v47, %v351_v39  ;;  %v530_v50 = vpop.f32.mrf.mxu1  ;;  %v558_v17 = vadd.f32 %v557_v10, %v15147_v3 }
 0x110   : > { %v15131_v51 = vadd.f32 %v530_v50, %v351_v39  ;;  %v459_v52 = vpop.f32.mrf.mxu0  ;;  %v584_v5 = vadd.f32 %v583_v56, %v15134_v55 }
 0x111   : > { %v571_v53 = vadd.f32 %v570_v48, %v15129_v49  ;;  %v532_v54 = vpop.f32.mrf.mxu1  ;;  %v15155_v11 = vadd.f32 %v459_v52, %v356_v57 }
 0x112   : > { %v597_v58 = vadd.f32 %v596_v44, %v15131_v51  ;;  %v461_v59 = vpop.f32.mrf.mxu0  ;;  %v15150_v7 = vadd.f32 %v532_v54, %v356_v57  ;;  %v376_v54 = vpop.permute.xlu1 %375 }
 0x113   : > { %v15141_v61 = vadd.f32 %v461_v59, %v356_v57  ;;  %v534_v62 = vpop.f32.mrf.mxu1  ;;  %v559_v28 = vadd.f32 %v558_v17, %v15155_v11 }
 0x114   : > { %v15143_v63 = vadd.f32 %v534_v62, %v356_v57  ;;  %v465_v1 = vpop.f32.mrf.mxu0  ;;  %v585_v21 = vadd.f32 %v584_v5, %v15150_v7 }
 0x115   : > { %v538_v4 = vpop.f32.mrf.mxu1  ;;  %v572_v12 = vadd.f32 %v571_v53, %v15141_v61  ;;  %v15163_v18 = vadd.f32 %v465_v1, %v361_v6 }
 0x116   : > { %v598_v8 = vadd.f32 %v597_v58, %v15143_v63  ;;  %v467_v9 = vpop.f32.mrf.mxu0  ;;  %v15167_v23 = vadd.f32 %v538_v4, %v361_v6 }
 0x117   : > { %v15158_v13 = vadd.f32 %v467_v9, %v361_v6  ;;  %v540_v14 = vpop.f32.mrf.mxu1  ;;  %v560_v38 = vadd.f32 %v559_v28, %v15163_v18 }
 0x118   : > { %v15160_v15 = vadd.f32 %v540_v14, %v361_v6  ;;  %v469_v16 = vpop.f32.mrf.mxu0  ;;  %v586_v43 = vadd.f32 %v585_v21, %v15167_v23 }
 0x119   : > { %v573_v19 = vadd.f32 %v572_v12, %v15158_v13  ;;  %v542_v20 = vpop.f32.mrf.mxu1  ;;  %v15171_v29 = vadd.f32 %v469_v16, %v366_v22 }
 0x11a   : > { %v599_v25 = vadd.f32 %v598_v8, %v15160_v15  ;;  %v471_v27 = vpop.f32.mrf.mxu0  ;;  %v15175_v33 = vadd.f32 %v542_v20, %v366_v22 }
 0x11b   : > { %v15173_v30 = vadd.f32 %v471_v27, %v366_v22  ;;  %v544_v31 = vpop.f32.mrf.mxu1  ;;  %v561_v48 = vadd.f32 %v560_v38, %v15171_v29 }
 0x11c   : > { %v15177_v35 = vadd.f32 %v544_v31, %v366_v22  ;;  %v475_v36 = vpop.f32.mrf.mxu0  ;;  %v587_v56 = vadd.f32 %v586_v43, %v15175_v33 }
 0x11d   : > { %v15180_v39 = vadd.f32 %v475_v36, %v371_v32  ;;  %v548_v41 = vpop.f32.mrf.mxu1  ;;  %v574_v50 = vadd.f32 %v573_v19, %v15173_v30 }
 0x11e   : > { %v15183_v44 = vadd.f32 %v548_v41, %v371_v32  ;;  %v477_v47 = vpop.f32.mrf.mxu0  ;;  %v600_v57 = vadd.f32 %v599_v25, %v15177_v35 }
 0x11f   : > { %v15187_v52 = vadd.f32 %v477_v47, %v371_v32  ;;  %v550_v53 = vpop.f32.mrf.mxu1  ;;  %v562_v62 = vadd.f32 %v561_v48, %v15180_v39 }
 0x120   : > { %v15191_v58 = vadd.f32 %v550_v53, %v371_v32  ;;  %v479_v59 = vpop.f32.mrf.mxu0  ;;  %v588_v6 = vadd.f32 %v587_v56, %v15183_v44 }
 0x121   : > { %v575_v1 = vadd.f32 %v574_v50, %v15187_v52  ;;  %v480_v4 = vadd.f32 %v479_v59, %v376_v54  ;;  %v552_v5 = vpop.f32.mrf.mxu1 }
 0x122   : > { %v601_v8 = vadd.f32 %v600_v57, %v15191_v58  ;;  %v15197_v9 = vadd.f32 %v552_v5, %v376_v54  ;;  %v481_v10 = vpop.f32.mrf.mxu0 }
 0x123   : > { %v563_v12 = vadd.f32 %v562_v62, %v480_v4  ;;  %v15199_v14 = vadd.f32 %v481_v10, %v376_v54  ;;  %v554_v16 = vpop.f32.mrf.mxu1 }
 0x124   : > { %v589_v17 = vadd.f32 %v588_v6, %v15197_v9  ;;  %v15202_v19 = vadd.f32 %v554_v16, %v376_v54 }
 0x125   : > { %v564_v20 = vrot.slane %v563_v12, 4  ;;  %v576_v21 = vadd.f32 %v575_v1, %v15199_v14 }
 0x126   : > { %v590_v22 = vrot.slane %v589_v17, 4  ;;  %v602_v25 = vadd.f32 %v601_v8, %v15202_v19 }
 0x127   : > { %v565_v27 = vadd.f32 %v564_v20, %v563_v12  ;;  %v577_v28 = vrot.slane %v576_v21, 4 }
 0x128   : > { %v603_v31 = vrot.slane %v602_v25, 4  ;;  %v591_v38 = vadd.f32 %v590_v22, %v589_v17 }
 0x129   : > { %v566_v32 = vrot.slane %v565_v27, 2  ;;  %v578_v36 = vadd.f32 %v577_v28, %v576_v21 }
 0x12a   : > { %v604_v43 = vadd.f32 %v603_v31, %v602_v25  ;;  %v592_v50 = vrot.slane %v591_v38, 2 }
 0x12b   : > { %v567_v41 = vadd.f32 %v566_v32, %v565_v27  ;;  %v579_v47 = vrot.slane %v578_v36, 2 }
 0x12c   : > { %v605_v54 = vrot.slane %v604_v43, 2  ;;  %v593_v59 = vadd.f32 %v592_v50, %v591_v38 }
 0x12d   : > { %v568_v48 = vrot.slane %v567_v41, 1  ;;  %v580_v56 = vadd.f32 %v579_v47, %v578_v36 }
 0x12e   : > { %v606_v6 = vadd.f32 %v605_v54, %v604_v43  ;;  %v594_v17 = vrot.slane %v593_v59, 1 }
 0x12f   : > { %v569_v53 = vadd.f32 %v568_v48, %v567_v41  ;;  %v581_v8 = vrot.slane %v580_v56, 1 }
 0x130   : > { %v607_v20 = vrot.slane %v606_v6, 1  ;;  %v595_v27 = vadd.f32 %v594_v17, %v593_v59 }
 0x131   : > { %v610_v57 = vmul.f32 0.015625, %v569_v53  ;;  %v582_v21 = vadd.f32 %v581_v8, %v580_v56 }
 0x132   : > { %v608_v32 = vadd.f32 %v607_v20, %v606_v6  ;;  %v15241_v43 = vmul.f32 0.015625, %v595_v27 }
 0x133   : > { %v15207_v62 = vsub.f32 %v15145_v2, %v610_v57  ;;  %v15210_v1 = vsub.f32 %v15139_v60, %v610_v57  ;;  %v15213_v5 = vsub.f32 %v15147_v3, %v610_v57  ;;  %v15216_v10 = vsub.f32 %v15155_v11, %v610_v57 }
 0x134   : > { %v15223_v2 = vsub.f32 %v15163_v18, %v610_v57  ;;  %v15228_v22 = vsub.f32 %v15171_v29, %v610_v57  ;;  %v15233_v28 = vsub.f32 %v15180_v39, %v610_v57  ;;  %v611_v36 = vmul.f32 0.015625, %v582_v21 }
 0x135   : > { %v646_v12 = vmul.f32 %v15207_v62, %v15207_v62  ;;  %v650_v16 = vmul.f32 %v15210_v1, %v15210_v1  ;;  %v654_v60 = vmul.f32 %v15213_v5, %v15213_v5  ;;  %v658_v11 = vmul.f32 %v15216_v10, %v15216_v10 }
 0x136   : > { %v662_v18 = vmul.f32 %v15223_v2, %v15223_v2  ;;  %v15237_v38 = vsub.f32 %v480_v4, %v610_v57  ;;  %v666_v29 = vmul.f32 %v15228_v22, %v15228_v22  ;;  %v15244_v47 = vsub.f32 %v15119_v42, %v611_v36 }
 0x137   : > { %v678_v3 = vadd.f32 %v650_v16, %v646_v12  ;;  %v15247_v39 = vsub.f32 %v15115_v37, %v611_v36  ;;  %v15250_v48 = vsub.f32 %v15129_v49, %v611_v36  ;;  %v670_v50 = vmul.f32 %v15233_v28, %v15233_v28 }
 0x138   : > { %v15255_v53 = vsub.f32 %v15158_v13, %v611_v36  ;;  %v613_v54 = vmul.f32 0.015625, %v608_v32  ;;  %v15258_v56 = vsub.f32 %v15187_v52, %v611_v36  ;;  %v647_v42 = vmul.f32 %v15244_v47, %v15244_v47 }
 0x139   : > { %v679_v25 = vadd.f32 %v678_v3, %v654_v60  ;;  %v651_v37 = vmul.f32 %v15247_v39, %v15247_v39  ;;  %v674_v49 = vmul.f32 %v15237_v38, %v15237_v38  ;;  %v15267_v59 = vsub.f32 %v15141_v61, %v611_v36 }
 0x13a   : > { %v15271_v13 = vsub.f32 %v15123_v45, %v15241_v43  ;;  %v655_v52 = vmul.f32 %v15250_v48, %v15250_v48  ;;  %v15276_v12 = vsub.f32 %v15113_v34, %v613_v54  ;;  %v15280_v16 = vsub.f32 %v15125_v46, %v15241_v43 }
 0x13b   : > { %v680_v31 = vadd.f32 %v679_v25, %v658_v11  ;;  %v691_v8 = vadd.f32 %v651_v37, %v647_v42  ;;  %v15283_v17 = vsub.f32 %v15117_v40, %v613_v54  ;;  %v15286_v61 = vsub.f32 %v15131_v51, %v613_v54 }
 0x13c   : > { %v15289_v45 = vsub.f32 %v15160_v15, %v613_v54  ;;  %v15292_v3 = vsub.f32 %v15173_v30, %v611_v36  ;;  %v659_v34 = vmul.f32 %v15267_v59, %v15267_v59  ;;  %v15297_v46 = vsub.f32 %v15191_v58, %v613_v54 }
 0x13d   : > { %v681_v41 = vadd.f32 %v680_v31, %v662_v18  ;;  %v692_v20 = vadd.f32 %v691_v8, %v655_v52  ;;  %v649_v40 = vmul.f32 %v15276_v12, %v15276_v12  ;;  %v653_v51 = vmul.f32 %v15283_v17, %v15283_v17 }
 0x13e   : > { %v663_v15 = vmul.f32 %v15255_v53, %v15255_v53  ;;  %v648_v30 = vmul.f32 %v15271_v13, %v15271_v13  ;;  %v652_v25 = vmul.f32 %v15280_v16, %v15280_v16  ;;  %v15310_v58 = vsub.f32 %v15143_v63, %v613_v54 }
 0x13f   : > { %v682_v4 = vadd.f32 %v681_v41, %v666_v29  ;;  %v693_v11 = vadd.f32 %v692_v20, %v659_v34  ;;  %v15313_v18 = vsub.f32 %v15199_v14, %v611_v36  ;;  %v667_v31 = vmul.f32 %v15292_v3, %v15292_v3 }
 0x140   : > { %v657_v29 = vmul.f32 %v15286_v61, %v15286_v61  ;;  %v717_v41 = vadd.f32 %v653_v51, %v649_v40  ;;  %v671_v63 = vmul.f32 %v15258_v56, %v15258_v56  ;;  %v15326_v14 = vsub.f32 %v15177_v35, %v613_v54  ;;  %v15340_v40 = vpop.permute.xlu1 %779 }
 0x141   : > { %v683_v57 = vadd.f32 %v682_v4, %v670_v50  ;;  %v694_v32 = vadd.f32 %v693_v11, %v663_v15  ;;  %v15321_v4 = vsub.f32 %v15134_v55, %v15241_v43  ;;  %v661_v36 = vmul.f32 %v15310_v58, %v15310_v58 }
 0x142   : > { %v718_v37 = vadd.f32 %v717_v41, %v657_v29  ;;  %v665_v55 = vmul.f32 %v15289_v45, %v15289_v45  ;;  %v15336_v34 = vsub.f32 %v15150_v7, %v15241_v43  ;;  %v15343_v51 = vsub.f32 %v15202_v19, %v613_v54 }
 0x143   : > { %v684_v6 = vadd.f32 %v683_v57, %v674_v49  ;;  %v695_v42 = vadd.f32 %v694_v32, %v667_v31  ;;  %v704_v57 = vadd.f32 %v652_v25, %v648_v30  ;;  %v656_v35 = vmul.f32 %v15321_v4, %v15321_v4 }
 0x144   : > { %v719_v8 = vadd.f32 %v718_v37, %v661_v36  ;;  %v673_v7 = vmul.f32 %v15297_v46, %v15297_v46  ;;  %v15351_v32 = vsub.f32 %v15167_v23, %v15241_v43  ;;  %v660_v19 = vmul.f32 %v15336_v34, %v15336_v34 }
 0x145   : > { %v685_v60 = vrot.slane %v684_v6, 4  ;;  %v696_v52 = vadd.f32 %v695_v42, %v671_v63  ;;  %v705_v30 = vadd.f32 %v704_v57, %v656_v35  ;;  %v677_v29 = vmul.f32 %v15343_v51, %v15343_v51  ;;  %v15357_v42 = vpop.permute.xlu1 %783 }
 0x146   : > { %v720_v15 = vadd.f32 %v719_v8, %v665_v55  ;;  %v15361_v37 = vsub.f32 %v15175_v33, %v15241_v43  ;;  %v664_v23 = vmul.f32 %v15351_v32, %v15351_v32  ;;  %v15367_v8 = vsub.f32 %v15183_v44, %v15241_v43 }
 0x147   : > { %v686_v21 = vadd.f32 %v685_v60, %v684_v6  ;;  %v675_v6 = vmul.f32 %v15313_v18, %v15313_v18 }
 0x149   : > { %v687_v27 = vrot.slane %v686_v21, 2  ;;  %v697_v20 = vadd.f32 %v696_v52, %v675_v6 }
 0x14b   : > { %v688_v50 = vadd.f32 %v687_v27, %v686_v21  ;;  %v669_v21 = vmul.f32 %v15326_v14, %v15326_v14  ;;  %v698_v25 = vrot.slane %v697_v20, 4 }
 0x14d   : > { %v689_v49 = vrot.slane %v688_v50, 1  ;;  %v721_v27 = vadd.f32 %v720_v15, %v669_v21  ;;  %v699_v54 = vadd.f32 %v698_v25, %v697_v20  ;;  %v15371_v20 = vpop.permute.xlu1 %791  ;;  %v672_v25 = vmul.f32 %v15367_v8, %v15367_v8 }
 0x14f   : > { %v690_v60 = vadd.f32 %v689_v49, %v688_v50  ;;  %v722_v41 = vadd.f32 %v721_v27, %v673_v7  ;;  %v706_v50 = vadd.f32 %v705_v30, %v660_v19  ;;  %v700_v63 = vrot.slane %v699_v54, 2 }
 0x150   : > { %v15375_v30 = vsub.f32 %v15197_v9, %v15241_v43 }
 0x151   : > { %v730_v11 = vmul.f32 0.015625, %v690_v60  ;;  %v723_v36 = vadd.f32 %v722_v41, %v677_v29  ;;  %v701_v49 = vadd.f32 %v700_v63, %v699_v54  ;;  %v707_v6 = vadd.f32 %v706_v50, %v664_v23  ;;  %v15401_v23 = vpop.permute.xlu0 %775 }
 0x152   : > { %v668_v60 = vmul.f32 %v15361_v37, %v15361_v37  ;;  %v676_v9 = vmul.f32 %v15375_v30, %v15375_v30 }
 0x153   : > { %v734_v31 = vadd.f32 1e-06, %v730_v11  ;;  %v724_v57 = vrot.slane %v723_v36, 4  ;;  %v702_v52 = vrot.slane %v701_v49, 1 }
 0x154   : > { %v708_v21 = vadd.f32 %v707_v6, %v668_v60 }
 0x155   : > { %14573 = vrsqrt.f32 %v734_v31  ;;  %v725_v55 = vadd.f32 %v724_v57, %v723_v36  ;;  %v703_v35 = vadd.f32 %v702_v52, %v701_v49  ;;  %v15379_v31 = vpop.permute.xlu1 %799 }
 0x156   : > { %v709_v27 = vadd.f32 %v708_v21, %v672_v25 }
 0x157   : > { %v726_v33 = vrot.slane %v725_v55, 2  ;;  %v731_v15 = vmul.f32 0.015625, %v703_v35 }
 0x159   : > { %v727_v11 = vadd.f32 %v726_v33, %v725_v55  ;;  %v735_v7 = vadd.f32 1e-06, %v731_v15  ;;  %v15410_v6 = vpop.permute.xlu1 %839 }
 0x15b   : > { %v728_v44 = vrot.slane %v727_v11, 1  ;;  %14575 = vrsqrt.f32 %v735_v7 }
 0x15d   : > { %v729_v54 = vadd.f32 %v728_v44, %v727_v11  ;;  %v15414_v33 = vpop.permute.xlu1 %847 }
 0x15f   : > { %v733_v41 = vmul.f32 0.015625, %v729_v54 }
 0x162   : > { %v15381_v19 = vpop.eup %14573 }
 0x163   : > { %v15385_v29 = vmul.f32 %v15381_v19, %v15237_v38  ;;  %v15391_v43 = vmul.f32 %v15381_v19, %v15223_v2  ;;  %v742_v50 = vmul.f32 %v15381_v19, %v15207_v62  ;;  %v15397_v63 = vmul.f32 %v15381_v19, %v15233_v28 }
 0x164   : > { %v754_v36 = vmul.f32 %v15381_v19, %v15216_v10  ;;  %v710_v38 = vadd.f32 %v709_v27, %v676_v9  ;;  %v15405_v49 = vmul.f32 %v15381_v19, %v15228_v22  ;;  %v737_v2 = vadd.f32 1e-06, %v733_v41 }
 0x165   : > { %v750_v57 = vmul.f32 %v15381_v19, %v15213_v5  ;;  %v806_v62 = vmul.f32 %v15401_v23, %v742_v50 }
 0x166   : > { %14577 = vrsqrt.f32 %v737_v2  ;;  %v711_v28 = vrot.slane %v710_v38, 4 }
 0x167   : > { %v870_v52 = vadd.f32 %v15410_v6, %v806_v62  ;;  %v814_v10 = vmul.f32 %v15357_v42, %v750_v57 }
 0x168   : > { %v712_v60 = vadd.f32 %v711_v28, %v710_v38  ;;  %v14576_v22 = vpop.eup %14575 }
 0x169   : > { %v934_v55 = vmul.f32 %v870_v52, %v870_v52  ;;  %v878_v21 = vadd.f32 %v15414_v33, %v814_v10  ;;  %v15418_v5 = vmul.f32 %v14576_v22, %v15313_v18  ;;  %v15421_v15 = vmul.f32 %v14576_v22, %v15247_v39 }
 0x16a   : > { %v15424_v11 = vmul.f32 %v14576_v22, %v15250_v48  ;;  %v15427_v25 = vmul.f32 %v14576_v22, %v15255_v53  ;;  %v15430_v7 = vmul.f32 %v14576_v22, %v15244_v47  ;;  %v15433_v44 = vmul.f32 %v14576_v22, %v15258_v56 }
 0x16b   : > { %v966_v35 = vmul.f32 %v934_v55, %v870_v52  ;;  %v15436_v27 = vmul.f32 %v14576_v22, %v15267_v59  ;;  %v713_v18 = vrot.slane %v712_v60, 2  ;;  %v15439_v39 = vmul.f32 %v14576_v22, %v15292_v3 }
 0x16c   : > { %v942_v48 = vmul.f32 %v878_v21, %v878_v21 }
 0x16d   : > { %v998_v54 = vmul.f32 0.044715, %v966_v35  ;;  %v714_v50 = vadd.f32 %v713_v18, %v712_v60  ;;  %v902_v35 = vmul.f32 0.5, %v870_v52 }
 0x16f   : > { %v1030_v9 = vadd.f32 %v998_v54, %v870_v52  ;;  %v715_v62 = vrot.slane %v714_v50, 1 }
 0x171   : > { %v1062_v53 = vmul.f32 0.7978846, %v1030_v9  ;;  %v716_v28 = vadd.f32 %v715_v62, %v714_v50  ;;  %v910_v9 = vmul.f32 0.5, %v878_v21 }
 0x173   : > { %v14578_v41 = vpop.eup %14577  ;;  %14579 = vtanh.f32 %v1062_v53  ;;  %v732_v55 = vmul.f32 0.015625, %v716_v28 }
 0x174   : > { %v15442_v38 = vmul.f32 %v14578_v41, %v15343_v51  ;;  %v15445_v47 = vmul.f32 %v14578_v41, %v15283_v17  ;;  %v15448_v56 = vmul.f32 %v14578_v41, %v15286_v61  ;;  %v15451_v59 = vmul.f32 %v14578_v41, %v15289_v45 }
 0x175   : > { %v15454_v2 = vmul.f32 %v14578_v41, %v15276_v12  ;;  %v15457_v3 = vmul.f32 %v14578_v41, %v15297_v46  ;;  %v15460_v57 = vmul.f32 %v14578_v41, %v15310_v58  ;;  %v974_v51 = vmul.f32 %v942_v48, %v878_v21  ;;  %v15467_v58 = vpop.permute.xlu1 %851 }
 0x176   : > { %23434 = vst [vmem:[#allocation12_spill] sm:$0xff] %v15442_v38  ;;  %23435 = vst [vmem:[#allocation13_spill] sm:$0xff] %v15445_v47  ;;  %v15463_v17 = vmul.f32 %v14578_v41, %v15326_v14  ;;  %v736_v12 = vadd.f32 1e-06, %v732_v55  ;;  %v15471_v14 = vpop.permute.xlu0 %787  ;;  %v830_v55 = vmul.f32 %v15379_v31, %v15397_v63 }
 0x177   : > { %23436 = vst [vmem:[#allocation14_spill] sm:$0xff] %v15448_v56  ;;  %23437 = vst [vmem:[#allocation15_spill] sm:$0xff] %v15451_v59  ;;  %v1006_v61 = vmul.f32 0.044715, %v974_v51  ;;  %v818_v18 = vmul.f32 %v15471_v14, %v754_v36  ;;  %v746_v36 = vmul.f32 %v15381_v19, %v15210_v1 }
 0x178   : > { %23438 = vst [vmem:[#allocation16_spill] sm:$0xff] %v15457_v3  ;;  %23439 = vst [vmem:[#allocation17_spill] sm:$0xff] %v15460_v57 }
 0x179   : > { %23440 = vst [vmem:[#allocation18_spill] sm:$0xff] %v15463_v17  ;;  %v1038_v10 = vadd.f32 %v1006_v61, %v878_v21  ;;  %v15474_v41 = vpop.permute.xlu1 %863  ;;  %v15481_v53 = vadd.f32 %v15467_v58, %v818_v18 }
 0x17a   : > { %v15476_v52 = vpop.permute.xlu0 %795 }
 0x17b   : > { %v1070_v45 = vmul.f32 0.7978846, %v1038_v10  ;;  %v826_v51 = vmul.f32 %v15476_v52, %v15405_v49  ;;  %v946_v21 = vmul.f32 %v15481_v53, %v15481_v53  ;;  %v810_v49 = vmul.f32 %v15340_v40, %v746_v36 }
 0x17d   : > { %14581 = vtanh.f32 %v1070_v45  ;;  %v15491_v61 = vpop.permute.xlu1 %859 }
 0x17e   : > { %14583 = vrsqrt.f32 %v736_v12  ;;  %v15494_v28 = vadd.f32 %v15491_v61, %v826_v51  ;;  %v15497_v45 = vpop.permute.xlu0 %803  ;;  %v978_v12 = vmul.f32 %v946_v21, %v15481_v53 }
 0x180   : > { %v14580_v60 = vpop.eup %14579  ;;  %v954_v1 = vmul.f32 %v15494_v28, %v15494_v28  ;;  %v1010_v63 = vmul.f32 0.044715, %v978_v12  ;;  %v822_v12 = vmul.f32 %v15371_v20, %v15391_v43 }
 0x181   : > { %v1126_v46 = vadd.f32 1.0, %v14580_v60 }
 0x183   : > { %v15465_v22 = vmul.f32 %v1126_v46, %v902_v35  ;;  %v15507_v35 = vpop.permute.xlu0 %843 }
 0x184   : > { %v15513_v46 = vadd.f32 %v15507_v35, %v810_v49 }
 0x185   : > { %23441 = vst [vmem:[#allocation19_spill] sm:$0xff] %v15465_v22  ;;  %1190 = vrot.lane.b32.xlu0 %v15465_v22, %s14888_s16 }
 0x186   : > { %v938_v36 = vmul.f32 %v15513_v46, %v15513_v46 }
 0x187   : > { %v15547_v24 = vpop.permute.xlu0 %855 }
 0x18a   : > { %v14582_v54 = vpop.eup %14581 }
 0x18b   : > { %v1134_v48 = vadd.f32 1.0, %v14582_v54  ;;  %v14584_v62 = vpop.eup %14583  ;;  %v986_v54 = vmul.f32 %v954_v1, %v15494_v28 }
 0x18c   : > { %v744_v10 = vmul.f32 %v14584_v62, %v15271_v13  ;;  %v752_v19 = vmul.f32 %v14584_v62, %v15321_v4  ;;  %v15510_v13 = vadd.f32 %v15474_v41, %v830_v55  ;;  %v748_v18 = vmul.f32 %v14584_v62, %v15280_v16 }
 0x18d   : > { %v15478_v50 = vmul.f32 %v1134_v48, %v910_v9  ;;  %v756_v4 = vmul.f32 %v14584_v62, %v15336_v34  ;;  %v760_v16 = vmul.f32 %v14584_v62, %v15351_v32  ;;  %v1018_v49 = vmul.f32 0.044715, %v986_v54 }
 0x18e   : > { %v808_v60 = vmul.f32 %v15401_v23, %v744_v10  ;;  %v816_v9 = vmul.f32 %v15357_v42, %v752_v19  ;;  %v958_v51 = vmul.f32 %v15510_v13, %v15510_v13  ;;  %v812_v21 = vmul.f32 %v15340_v40, %v748_v18 }
 0x18f   : > { %23442 = vst [vmem:[#allocation20_spill] sm:$0xff] %v15478_v50  ;;  %1194 = vrot.lane.b32.xlu0 %v15478_v50, %s14888_s16  ;;  %v1042_v10 = vadd.f32 %v1010_v63, %v15481_v53  ;;  %v970_v55 = vmul.f32 %v938_v36, %v15513_v46  ;;  %v820_v19 = vmul.f32 %v15471_v14, %v756_v4 }
 0x190   : > { %v15519_v48 = vadd.f32 %v15410_v6, %v808_v60  ;;  %v15535_v1 = vadd.f32 %v15414_v33, %v816_v9  ;;  %v990_v60 = vmul.f32 %v958_v51, %v15510_v13  ;;  %v824_v32 = vmul.f32 %v15371_v20, %v760_v16 }
 0x191   : > { %v1002_v18 = vmul.f32 0.044715, %v970_v55  ;;  %v768_v63 = vmul.f32 %v14584_v62, %v15367_v8  ;;  %v1074_v54 = vmul.f32 0.7978846, %v1042_v10  ;;  %v15542_v36 = vadd.f32 %v15507_v35, %v812_v21 }
 0x192   : > { %v936_v34 = vmul.f32 %v15519_v48, %v15519_v48  ;;  %v764_v43 = vmul.f32 %v14584_v62, %v15361_v37  ;;  %v1050_v26 = vadd.f32 %v1018_v49, %v15494_v28  ;;  %v944_v51 = vmul.f32 %v15535_v1, %v15535_v1 }
 0x193   : > { %v1034_v9 = vadd.f32 %v1002_v18, %v15513_v46  ;;  %v15553_v16 = vadd.f32 %v15547_v24, %v822_v12  ;;  %v15556_v8 = vadd.f32 %v15467_v58, %v820_v19  ;;  %v1022_v21 = vmul.f32 0.044715, %v990_v60 }
 0x194   : > { %v968_v4 = vmul.f32 %v936_v34, %v15519_v48  ;;  %v832_v37 = vmul.f32 %v15379_v31, %v768_v63  ;;  %14585 = vtanh.f32 %v1074_v54  ;;  %v940_v49 = vmul.f32 %v15542_v36, %v15542_v36 }
 0x195   : > { %v1066_v10 = vmul.f32 0.7978846, %v1034_v9  ;;  %v15562_v55 = vadd.f32 %v15547_v24, %v824_v32  ;;  %v772_v34 = vmul.f32 %v14584_v62, %v15375_v30  ;;  %v828_v18 = vmul.f32 %v15476_v52, %v764_v43  ;;  %v15581_v9 = vpop.permute.xlu0 %867 }
 0x196   : > { %v1082_v12 = vmul.f32 0.7978846, %v1050_v26  ;;  %v1000_v0 = vmul.f32 0.044715, %v968_v4  ;;  %v976_v19 = vmul.f32 %v944_v51, %v15535_v1  ;;  %v950_v60 = vmul.f32 %v15553_v16, %v15553_v16  ;;  %23443 = vst [vmem:[#allocation21_spill] sm:$0xff] %v15581_v9 }
 0x197   : > { %14587 = vtanh.f32 %v1066_v10  ;;  %v834_v63 = vmul.f32 %v15497_v45, %v15385_v29  ;;  %v948_v54 = vmul.f32 %v15556_v8, %v15556_v8  ;;  %v1054_v32 = vadd.f32 %v1022_v21, %v15510_v13 }
 0x198   : > { %v15575_v30 = vadd.f32 %v15474_v41, %v832_v37  ;;  %v972_v26 = vmul.f32 %v940_v49, %v15542_v36  ;;  %v952_v62 = vmul.f32 %v15562_v55, %v15562_v55  ;;  %v982_v43 = vmul.f32 %v950_v60, %v15553_v16 }
 0x199   : > { %v836_v4 = vmul.f32 %v15497_v45, %v772_v34  ;;  %v15585_v29 = vadd.f32 %v15491_v61, %v828_v18  ;;  %14589 = vtanh.f32 %v1082_v12  ;;  %v1032_v51 = vadd.f32 %v1000_v0, %v15519_v48 }
 0x19a   : > { %v1008_v21 = vmul.f32 0.044715, %v976_v19  ;;  %v1014_v10 = vmul.f32 0.044715, %v982_v43  ;;  %v980_v37 = vmul.f32 %v948_v54, %v15556_v8  ;;  %v1086_v49 = vmul.f32 0.7978846, %v1054_v32 }
 0x19b   : > { %v15590_v38 = vadd.f32 %v15581_v9, %v834_v63  ;;  %v960_v60 = vmul.f32 %v15575_v30, %v15575_v30  ;;  %v1004_v17 = vmul.f32 0.044715, %v972_v26  ;;  %v984_v34 = vmul.f32 %v952_v62, %v15562_v55 }
 0x19c   : > { %v1046_v18 = vadd.f32 %v1014_v10, %v15553_v16  ;;  %v956_v12 = vmul.f32 %v15585_v29, %v15585_v29  ;;  %v15599_v0 = vadd.f32 %v15581_v9, %v836_v4  ;;  %v1064_v19 = vmul.f32 0.7978846, %v1032_v51 }
 0x19d   : > { %v1040_v54 = vadd.f32 %v1008_v21, %v15535_v1  ;;  %v1012_v63 = vmul.f32 0.044715, %v980_v37  ;;  %14591 = vtanh.f32 %v1086_v49  ;;  %v962_v43 = vmul.f32 %v15590_v38, %v15590_v38 }
 0x19e   : > { %v1078_v32 = vmul.f32 0.7978846, %v1046_v18  ;;  %v992_v26 = vmul.f32 %v960_v60, %v15575_v30  ;;  %v1036_v62 = vadd.f32 %v1004_v17, %v15542_v36  ;;  %v1016_v10 = vmul.f32 0.044715, %v984_v34 }
 0x19f   : > { %v988_v59 = vmul.f32 %v956_v12, %v15585_v29  ;;  %v964_v4 = vmul.f32 %v15599_v0, %v15599_v0  ;;  %v994_v51 = vmul.f32 %v962_v43, %v15590_v38  ;;  %v1072_v37 = vmul.f32 0.7978846, %v1040_v54 }
 0x1a0   : > { %14593 = vtanh.f32 %v1078_v32  ;;  %v1044_v49 = vadd.f32 %v1012_v63, %v15556_v8  ;;  %v906_v18 = vmul.f32 0.5, %v15513_v46  ;;  %v1024_v34 = vmul.f32 0.044715, %v992_v26 }
 0x1a1   : > { %v14586_v3 = vpop.eup %14585  ;;  %14595 = vtanh.f32 %v1064_v19  ;;  %v1026_v57 = vmul.f32 0.044715, %v994_v51  ;;  %v1068_v32 = vmul.f32 0.7978846, %v1036_v62  ;;  %v1048_v9 = vadd.f32 %v1016_v10, %v15562_v55 }
 0x1a2   : > { %v1138_v17 = vadd.f32 1.0, %v14586_v3  ;;  %v1020_v12 = vmul.f32 0.044715, %v988_v59  ;;  %v996_v56 = vmul.f32 %v964_v4, %v15599_v0  ;;  %v914_v54 = vmul.f32 0.5, %v15481_v53 }
 0x1a3   : > { %v1058_v43 = vadd.f32 %v1026_v57, %v15590_v38  ;;  %14597 = vtanh.f32 %v1072_v37  ;;  %v1076_v63 = vmul.f32 0.7978846, %v1044_v49  ;;  %v1056_v26 = vadd.f32 %v1024_v34, %v15575_v30 }
 0x1a4   : > { %v14588_v21 = vpop.eup %14587  ;;  %v15620_v3 = vmul.f32 %v1138_v17, %v914_v54  ;;  %14599 = vtanh.f32 %v1068_v32  ;;  %v1080_v59 = vmul.f32 0.7978846, %v1048_v9  ;;  %v1052_v62 = vadd.f32 %v1020_v12, %v15585_v29 }
 0x1a5   : > { %v1130_v60 = vadd.f32 1.0, %v14588_v21  ;;  %v1090_v46 = vmul.f32 0.7978846, %v1058_v43  ;;  %v1028_v4 = vmul.f32 0.044715, %v996_v56  ;;  %v922_v57 = vmul.f32 0.5, %v15494_v28 }
 0x1a6   : > { %v14590_v19 = vpop.eup %14589  ;;  %23445 = vst [vmem:[#allocation23_spill] sm:$0xff] %v15620_v3  ;;  %v1088_v51 = vmul.f32 0.7978846, %v1056_v26  ;;  %v1084_v37 = vmul.f32 0.7978846, %v1052_v62  ;;  %v926_v32 = vmul.f32 0.5, %v15510_v13 }
 0x1a7   : > { %v15613_v47 = vmul.f32 %v1130_v60, %v906_v18  ;;  %v1146_v10 = vadd.f32 1.0, %v14590_v19  ;;  %14601 = vtanh.f32 %v1090_v46  ;;  %v1060_v9 = vadd.f32 %v1028_v4, %v15599_v0 }
 0x1a8   : > { %14603 = vtanh.f32 %v1080_v59  ;;  %v918_v18 = vmul.f32 0.5, %v15553_v16  ;;  %v930_v46 = vmul.f32 0.5, %v15590_v38 }
 0x1a9   : > { %23444 = vst [vmem:[#allocation22_spill] sm:$0xff] %v15613_v47  ;;  %1192 = vrot.lane.b32.xlu1 %v15613_v47, %s14888_s16  ;;  %14605 = vtanh.f32 %v1076_v63  ;;  %v15627_v49 = vmul.f32 %v1146_v10, %v922_v57  ;;  %v1092_v34 = vmul.f32 0.7978846, %v1060_v9  ;;  %v904_v63 = vmul.f32 0.5, %v15519_v48 }
 0x1aa   : > { %v14592_v53 = vpop.eup %14591  ;;  %14607 = vtanh.f32 %v1088_v51  ;;  %v908_v48 = vmul.f32 0.5, %v15542_v36 }
 0x1ab   : > { %23446 = vst [vmem:[#allocation24_spill] sm:$0xff] %v15627_v49  ;;  %v1150_v28 = vadd.f32 1.0, %v14592_v53  ;;  %14609 = vtanh.f32 %v1084_v37  ;;  %v912_v53 = vmul.f32 0.5, %v15535_v1  ;;  %v916_v1 = vmul.f32 0.5, %v15556_v8 }
 0x1ac   : > { %14611 = vtanh.f32 %v1092_v34 }
 0x1ad   : > { %1196 = vrot.lane.b32.xlu1 %v15620_v3, %s14888_s16  ;;  %v14594_v21 = vpop.eup %14593  ;;  %v15638_v19 = vmul.f32 %v1150_v28, %v926_v32 }
 0x1ae   : > { %v1142_v60 = vadd.f32 1.0, %v14594_v21  ;;  %v14596_v56 = vpop.eup %14595 }
 0x1af   : > { %v1128_v43 = vadd.f32 1.0, %v14596_v56  ;;  %23448 = vst [vmem:[#allocation26_spill] sm:$0xff] %v15638_v19 }
 0x1b0   : > { %v15633_v17 = vmul.f32 %v1142_v60, %v918_v18  ;;  %v14598_v12 = vpop.eup %14597  ;;  %v920_v60 = vmul.f32 0.5, %v15562_v55  ;;  %v924_v55 = vmul.f32 0.5, %v15585_v29  ;;  %v807_v29 = vmul.f32 %v15401_v23, %v15430_v7 }
 0x1b1   : > { %1200 = vrot.lane.b32.xlu1 %v15627_v49, %s14888_s16  ;;  %v14600_v16 = vpop.eup %14599  ;;  %v15644_v59 = vmul.f32 %v1128_v43, %v904_v63  ;;  %v1136_v13 = vadd.f32 1.0, %v14598_v12  ;;  %v928_v12 = vmul.f32 0.5, %v15575_v30  ;;  %v819_v7 = vmul.f32 %v15471_v14, %v15436_v27 }
 0x1b2   : > { %23447 = vst [vmem:[#allocation25_spill] sm:$0xff] %v15633_v17  ;;  %1198 = vrot.lane.b32.xlu0 %v15633_v17, %s14888_s16  ;;  %v1132_v10 = vadd.f32 1.0, %v14600_v16  ;;  %v15766_v63 = vadd.f32 %v15410_v6, %v807_v29 }
 0x1b3   : > { %23449 = vst [vmem:[#allocation27_spill] sm:$0xff] %v15644_v59  ;;  %v15654_v38 = vmul.f32 %v1136_v13, %v912_v53 }
 0x1b4   : > { %v14602_v54 = vpop.eup %14601  ;;  %v15656_v9 = vmul.f32 %v1132_v10, %v908_v48  ;;  %v935_v13 = vmul.f32 %v15766_v63, %v15766_v63  ;;  %v15793_v10 = vadd.f32 %v15467_v58, %v819_v7 }
 0x1b5   : > { %v1154_v26 = vadd.f32 1.0, %v14602_v54  ;;  %v14604_v62 = vpop.eup %14603  ;;  %23451 = vst [vmem:[#allocation29_spill] sm:$0xff] %v15654_v38  ;;  %v932_v54 = vmul.f32 0.5, %v15599_v0  ;;  %v815_v0 = vmul.f32 %v15357_v42, %v15424_v11  ;;  %v823_v11 = vmul.f32 %v15371_v20, %v15427_v25 }
 0x1b6   : > { %1202 = vrot.lane.b32.xlu0 %v15638_v19, %s14888_s16  ;;  %v14606_v57 = vpop.eup %14605  ;;  %v1144_v51 = vadd.f32 1.0, %v14604_v62  ;;  %23452 = vst [vmem:[#allocation30_spill] sm:$0xff] %v15656_v9  ;;  %v967_v53 = vmul.f32 %v935_v13, %v15766_v63 }
 0x1b7   : > { %v15646_v4 = vmul.f32 %v1154_v26, %v930_v46  ;;  %v14608_v21 = vpop.eup %14607  ;;  %v1140_v37 = vadd.f32 1.0, %v14606_v57  ;;  %v811_v46 = vmul.f32 %v15340_v40, %v15421_v15  ;;  %v15775_v26 = vadd.f32 %v15414_v33, %v815_v0 }
 0x1b8   : > { %v14610_v18 = vpop.eup %14609  ;;  %v1152_v36 = vadd.f32 1.0, %v14608_v21  ;;  %v15664_v56 = vmul.f32 %v1144_v51, %v920_v60  ;;  %v831_v57 = vmul.f32 %v15379_v31, %v15433_v44  ;;  %v15803_v48 = vadd.f32 %v15547_v24, %v823_v11 }
 0x1b9   : > { %23450 = vst [vmem:[#allocation28_spill] sm:$0xff] %v15646_v4  ;;  %1204 = vrot.lane.b32.xlu1 %v15646_v4, %s14888_s16  ;;  %v15666_v28 = vmul.f32 %v1140_v37, %v916_v1  ;;  %v1148_v34 = vadd.f32 1.0, %v14610_v18  ;;  %v14612_v32 = vpop.eup %14611  ;;  %v15786_v15 = vadd.f32 %v15507_v35, %v811_v46  ;;  %v943_v27 = vmul.f32 %v15775_v26, %v15775_v26 }
 0x1ba   : > { %1222 = vrot.lane.b32.xlu0 %v15644_v59, %s14888_s16  ;;  %23453 = vst [vmem:[#allocation31_spill] sm:$0xff] %v15664_v56  ;;  %v15674_v8 = vmul.f32 %v1152_v36, %v928_v12  ;;  %v1156_v16 = vadd.f32 1.0, %v14612_v32  ;;  %v827_v51 = vmul.f32 %v15476_v52, %v15439_v39  ;;  %v809_v37 = vmul.f32 %v15401_v23, %v15454_v2  ;;  %v23461_v12 = vld [vmem:[#allocation14_spill] sm:$0xff] }
 0x1bb   : > { %23454 = vst [vmem:[#allocation32_spill] sm:$0xff] %v15666_v28  ;;  %v15676_v43 = vmul.f32 %v1148_v34, %v924_v55  ;;  %v939_v21 = vmul.f32 %v15786_v15, %v15786_v15  ;;  %v975_v44 = vmul.f32 %v943_v27, %v15775_v26  ;;  %v947_v60 = vmul.f32 %v15793_v10, %v15793_v10  ;;  %v23464_v27 = vld [vmem:[#allocation21_spill] sm:$0xff] }
 0x1bc   : > { %23455 = vst [vmem:[#allocation33_spill] sm:$0xff] %v15674_v8  ;;  %v15683_v30 = vmul.f32 %v1156_v16, %v932_v54  ;;  %v999_v39 = vmul.f32 0.044715, %v967_v53  ;;  %v15821_v1 = vadd.f32 %v15474_v41, %v831_v57  ;;  %v951_v23 = vmul.f32 %v15803_v48, %v15803_v48 }
 0x1bd   : > { %1224 = vrot.lane.b32.xlu1 %v15656_v9, %s14888_s16  ;;  %23456 = vst [vmem:[#allocation34_spill] sm:$0xff] %v15676_v43  ;;  %v835_v2 = vmul.f32 %v15497_v45, %v15418_v5  ;;  %v15828_v36 = vadd.f32 %v15491_v61, %v827_v51  ;;  %v971_v34 = vmul.f32 %v939_v21, %v15786_v15  ;;  %v1007_v54 = vmul.f32 0.044715, %v975_v44  ;;  %v23465_v21 = vld [vmem:[#allocation17_spill] sm:$0xff] }
 0x1be   : > { %1226 = vrot.lane.b32.xlu0 %v15654_v38, %s14888_s16  ;;  %23457 = vst [vmem:[#allocation35_spill] sm:$0xff] %v15683_v30  ;;  %v817_v55 = vmul.f32 %v15357_v42, %v23461_v12  ;;  %v15836_v16 = vadd.f32 %v15410_v6, %v809_v37  ;;  %v979_v29 = vmul.f32 %v947_v60, %v15793_v10  ;;  %v23463_v6 = vld [vmem:[#allocation13_spill] sm:$0xff] }
 0x1bf   : > { %v1031_v5 = vadd.f32 %v999_v39, %v15766_v63  ;;  %v959_v0 = vmul.f32 %v15821_v1, %v15821_v1  ;;  %v983_v46 = vmul.f32 %v951_v23, %v15803_v48  ;;  %v813_v7 = vmul.f32 %v15340_v40, %v23463_v6  ;;  %v23467_v39 = vld [vmem:[#allocation15_spill] sm:$0xff]  ;;  %v23468_v6 = vld [vmem:[#allocation16_spill] sm:$0xff] }
 0x1c0   : > { %v955_v11 = vmul.f32 %v15828_v36, %v15828_v36  ;;  %v1003_v13 = vmul.f32 0.044715, %v971_v34  ;;  %v15854_v57 = vadd.f32 %v23464_v27, %v835_v2  ;;  %v937_v53 = vmul.f32 %v15836_v16, %v15836_v16 }
 0x1c1   : > { %1228 = vrot.lane.b32.xlu1 %v15666_v28, %s14888_s16  ;;  %v15859_v51 = vadd.f32 %v15414_v33, %v817_v55  ;;  %v821_v37 = vmul.f32 %v15471_v14, %v23465_v21  ;;  %v1039_v40 = vadd.f32 %v1007_v54, %v15775_v26  ;;  %v1011_v44 = vmul.f32 0.044715, %v979_v29 }
 0x1c2   : > { %1230 = vrot.lane.b32.xlu0 %v15664_v56, %s14888_s16  ;;  %v825_v23 = vmul.f32 %v15371_v20, %v23467_v39  ;;  %v1063_v2 = vmul.f32 0.7978846, %v1031_v5  ;;  %v991_v33 = vmul.f32 %v959_v0, %v15821_v1  ;;  %v1015_v34 = vmul.f32 0.044715, %v983_v46  ;;  %v23469_v0 = vld [vmem:[#allocation18_spill] sm:$0xff] }
 0x1c3   : > { %v987_v55 = vmul.f32 %v955_v11, %v15828_v36  ;;  %v15877_v14 = vadd.f32 %v15507_v35, %v813_v7  ;;  %v1035_v54 = vadd.f32 %v1003_v13, %v15786_v15  ;;  %v963_v29 = vmul.f32 %v15854_v57, %v15854_v57 }
 0x1c4   : > { %v833_v21 = vmul.f32 %v15379_v31, %v23468_v6  ;;  %v969_v20 = vmul.f32 %v937_v53, %v15836_v16  ;;  %v945_v5 = vmul.f32 %v15859_v51, %v15859_v51  ;;  %v829_v35 = vmul.f32 %v15476_v52, %v23469_v0 }
 0x1c5   : > { %1232 = vrot.lane.b32.xlu1 %v15676_v43, %s14888_s16  ;;  %v1071_v46 = vmul.f32 0.7978846, %v1039_v40  ;;  %v15892_v7 = vadd.f32 %v15467_v58, %v821_v37  ;;  %v1043_v11 = vadd.f32 %v1011_v44, %v15793_v10  ;;  %14613 = vtanh.f32 %v1063_v2 }
 0x1c6   : > { %1234 = vrot.lane.b32.xlu0 %v15674_v8, %s14888_s16  ;;  %v1023_v31 = vmul.f32 0.044715, %v991_v33  ;;  %v15898_v13 = vadd.f32 %v15547_v24, %v825_v23  ;;  %v1047_v53 = vadd.f32 %v1015_v34, %v15803_v48  ;;  %v1019_v6 = vmul.f32 0.044715, %v987_v55  ;;  %v23470_v33 = vld [vmem:[#allocation12_spill] sm:$0xff] }
 0x1c7   : > { %v941_v52 = vmul.f32 %v15877_v14, %v15877_v14  ;;  %v1067_v58 = vmul.f32 0.7978846, %v1035_v54  ;;  %v995_v37 = vmul.f32 %v963_v29, %v15854_v57  ;;  %v1001_v44 = vmul.f32 0.044715, %v969_v20 }
 0x1c8   : > { %v977_v2 = vmul.f32 %v945_v5, %v15859_v51  ;;  %v837_v24 = vmul.f32 %v15497_v45, %v23470_v33  ;;  %14615 = vtanh.f32 %v1071_v46  ;;  %v949_v23 = vmul.f32 %v15892_v7, %v15892_v7 }
 0x1c9   : > { %1236 = vrot.lane.b32.xlu1 %v15683_v30, %s14888_s16  ;;  %v1075_v34 = vmul.f32 0.7978846, %v1043_v11  ;;  %v15916_v55 = vadd.f32 %v15474_v41, %v833_v21  ;;  %v1055_v54 = vadd.f32 %v1023_v31, %v15821_v1  ;;  %v15922_v29 = vadd.f32 %v15491_v61, %v829_v35 }
 0x1ca   : > { %1455 = vrot.lane.b32.xlu0 %v15465_v22, %s14889_s18  ;;  %v953_v45 = vmul.f32 %v15898_v13, %v15898_v13  ;;  %v1079_v20 = vmul.f32 0.7978846, %v1047_v53  ;;  %v1051_v0 = vadd.f32 %v1019_v6, %v15828_v36  ;;  %v973_v46 = vmul.f32 %v941_v52, %v15877_v14 }
 0x1cb   : > { %14617 = vtanh.f32 %v1067_v58  ;;  %v1027_v41 = vmul.f32 0.044715, %v995_v37  ;;  %v1009_v11 = vmul.f32 0.044715, %v977_v2  ;;  %v1033_v61 = vadd.f32 %v1001_v44, %v15836_v16 }
 0x1cc   : > { %v981_v35 = vmul.f32 %v949_v23, %v15892_v7  ;;  %14619 = vtanh.f32 %v1075_v34  ;;  %v961_v31 = vmul.f32 %v15916_v55, %v15916_v55  ;;  %v1087_v53 = vmul.f32 0.7978846, %v1055_v54 }
 0x1cd   : > { %1457 = vrot.lane.b32.xlu1 %v15613_v47, %s14889_s18  ;;  %v957_v6 = vmul.f32 %v15922_v29, %v15922_v29  ;;  %v985_v52 = vmul.f32 %v953_v45, %v15898_v13  ;;  %14621 = vtanh.f32 %v1079_v20  ;;  %v1083_v37 = vmul.f32 0.7978846, %v1051_v0 }
 0x1ce   : > { %1459 = vrot.lane.b32.xlu0 %v15478_v50, %s14889_s18  ;;  %v1005_v44 = vmul.f32 0.044715, %v973_v46  ;;  %v15946_v2 = vadd.f32 %v23464_v27, %v837_v24  ;;  %v1059_v33 = vadd.f32 %v1027_v41, %v15854_v57  ;;  %v1065_v34 = vmul.f32 0.7978846, %v1033_v61 }
 0x1cf   : > { %v1041_v54 = vadd.f32 %v1009_v11, %v15859_v51  ;;  %v993_v45 = vmul.f32 %v961_v31, %v15916_v55  ;;  %14623 = vtanh.f32 %v1087_v53  ;;  %v989_v27 = vmul.f32 %v957_v6, %v15922_v29 }
 0x1d0   : > { %v1017_v24 = vmul.f32 0.044715, %v985_v52  ;;  %14625 = vtanh.f32 %v1083_v37  ;;  %v1037_v46 = vadd.f32 %v1005_v44, %v15877_v14  ;;  %v965_v41 = vmul.f32 %v15946_v2, %v15946_v2 }
 0x1d1   : > { %1461 = vrot.lane.b32.xlu1 %v15620_v3, %s14889_s18  ;;  %v1091_v11 = vmul.f32 0.7978846, %v1059_v33  ;;  %14627 = vtanh.f32 %v1065_v34  ;;  %v1025_v52 = vmul.f32 0.044715, %v993_v45  ;;  %v1021_v33 = vmul.f32 0.044715, %v989_v27 }
 0x1d2   : > { %1463 = vrot.lane.b32.xlu0 %v15633_v17, %s14889_s18  ;;  %v14614_v0 = vpop.eup %14613  ;;  %v1049_v37 = vadd.f32 %v1017_v24, %v15898_v13 }
 0x1d3   : > { %v1127_v6 = vadd.f32 1.0, %v14614_v0  ;;  %14629 = vtanh.f32 %v1091_v11  ;;  %v1057_v0 = vadd.f32 %v1025_v52, %v15916_v55 }
 0x1d5   : > { %1465 = vrot.lane.b32.xlu1 %v15627_v49, %s14889_s18  ;;  %v14616_v53 = vpop.eup %14615  ;;  %v1089_v52 = vmul.f32 0.7978846, %v1057_v0 }
 0x1d6   : > { %1467 = vrot.lane.b32.xlu0 %v15638_v19, %s14889_s18  ;;  %v1135_v27 = vadd.f32 1.0, %v14616_v53  ;;  %v907_v53 = vmul.f32 0.5, %v15786_v15 }
 0x1d9   : > { %1469 = vrot.lane.b32.xlu1 %v15646_v4, %s14889_s18 }
 0x1da   : > { %2595 = vrot.lane.b32.xlu0 %v15638_v19, %s14890_s20 }
 0x1dd   : > { %2597 = vrot.lane.b32.xlu1 %v15646_v4, %s14890_s20 }
 0x1de   : > { %2627 = vrot.lane.b32.xlu0 %v15674_v8, %s14890_s20 }
 0x1e1   : > { %2629 = vrot.lane.b32.xlu1 %v15683_v30, %s14890_s20 }
 0x1e2   : > { %2591 = vrot.lane.b32.xlu0 %v15633_v17, %s14890_s20 }
 0x1e5   : > { %2593 = vrot.lane.b32.xlu1 %v15627_v49, %s14890_s20 }
 0x1e6   : > { %2623 = vrot.lane.b32.xlu0 %v15664_v56, %s14890_s20 }
 0x1e9   : > { %2625 = vrot.lane.b32.xlu1 %v15676_v43, %s14890_s20 }
 0x1ea   : > { %2587 = vrot.lane.b32.xlu0 %v15478_v50, %s14890_s20 }
 0x1ed   : > { %2589 = vrot.lane.b32.xlu1 %v15620_v3, %s14890_s20 }
 0x1ee   : > { %2619 = vrot.lane.b32.xlu0 %v15654_v38, %s14890_s20 }
 0x1f1   : > { %2621 = vrot.lane.b32.xlu1 %v15666_v28, %s14890_s20 }
 0x1f2   : > { %2583 = vrot.lane.b32.xlu0 %v15465_v22, %s14890_s20 }
 0x1f5   : > { %2585 = vrot.lane.b32.xlu1 %v15613_v47, %s14890_s20 }
 0x1f6   : > { %2615 = vrot.lane.b32.xlu0 %v15644_v59, %s14890_s20 }
 0x1f7   : > { %v15783_v62 = vpop.permute.xlu0 %1190 }
 0x1f9   : > { %2617 = vrot.lane.b32.xlu1 %v15656_v9, %s14890_s20 }
 0x1fa   : > { %2331 = vrot.lane.b32.xlu0 %v15638_v19, %s14891_s21 }
 0x1fd   : > { %2333 = vrot.lane.b32.xlu1 %v15646_v4, %s14891_s21 }
 0x1fe   : > { %2363 = vrot.lane.b32.xlu0 %v15674_v8, %s14891_s21 }
 0x201   : > { %2365 = vrot.lane.b32.xlu1 %v15683_v30, %s14891_s21  ;;  %v15813_v18 = vpop.permute.xlu0 %1194 }
 0x202   : > { %2327 = vrot.lane.b32.xlu0 %v15633_v17, %s14891_s21  ;;  %23459 = vst [vmem:[#allocation37_spill] sm:$0xff] %v15813_v18 }
 0x205   : > { %2329 = vrot.lane.b32.xlu1 %v15627_v49, %s14891_s21 }
 0x206   : > { %2359 = vrot.lane.b32.xlu0 %v15664_v56, %s14891_s21 }
 0x209   : > { %2361 = vrot.lane.b32.xlu1 %v15676_v43, %s14891_s21 }
 0x20a   : > { %2323 = vrot.lane.b32.xlu0 %v15478_v50, %s14891_s21 }
 0x20d   : > { %2325 = vrot.lane.b32.xlu1 %v15620_v3, %s14891_s21 }
 0x20e   : > { %2355 = vrot.lane.b32.xlu0 %v15654_v38, %s14891_s21 }
 0x211   : > { %2357 = vrot.lane.b32.xlu1 %v15666_v28, %s14891_s21 }
 0x212   : > { %2319 = vrot.lane.b32.xlu0 %v15465_v22, %s14891_s21 }
 0x215   : > { %2321 = vrot.lane.b32.xlu1 %v15613_v47, %s14891_s21 }
 0x216   : > { %2351 = vrot.lane.b32.xlu0 %v15644_v59, %s14891_s21 }
 0x219   : > { %2353 = vrot.lane.b32.xlu1 %v15656_v9, %s14891_s21 }
 0x21a   : > { %3123 = vrot.lane.b32.xlu0 %v15638_v19, %s14892_s22 }
 0x21b   : > { %v15797_v25 = vpop.permute.xlu1 %1192 }
 0x21c   : > { %23458 = vst [vmem:[#allocation36_spill] sm:$0xff] %v15797_v25 }
 0x21d   : > { %3125 = vrot.lane.b32.xlu1 %v15646_v4, %s14892_s22 }
 0x21e   : > { %3155 = vrot.lane.b32.xlu0 %v15674_v8, %s14892_s22 }
 0x21f   : > { %v15831_v32 = vpop.permute.xlu1 %1196 }
 0x220   : > { %23460 = vst [vmem:[#allocation38_spill] sm:$0xff] %v15831_v32 }
 0x221   : > { %3157 = vrot.lane.b32.xlu1 %v15683_v30, %s14892_s22 }
 0x222   : > { %3119 = vrot.lane.b32.xlu0 %v15633_v17, %s14892_s22 }
 0x223   : > { %v15868_v60 = vpop.permute.xlu1 %1200 }
 0x224   : > { %v15847_v42 = vpop.permute.xlu0 %1198  ;;  %23466 = vst [vmem:[#allocation13_spill] sm:$0xff] %v15868_v60 }
 0x225   : > { %23462 = vst [vmem:[#allocation14_spill] sm:$0xff] %v15847_v42  ;;  %3121 = vrot.lane.b32.xlu1 %v15627_v49, %s14892_s22 }
 0x226   : > { %3151 = vrot.lane.b32.xlu0 %v15664_v56, %s14892_s22 }
 0x228   : > { %v15873_v12 = vpop.permute.xlu0 %1202 }
 0x229   : > { %3153 = vrot.lane.b32.xlu1 %v15676_v43, %s14892_s22 }
 0x22a   : > { %3115 = vrot.lane.b32.xlu0 %v15478_v50, %s14892_s22 }
 0x22b   : > { %v15906_v40 = vpop.permute.xlu1 %1204 }
 0x22c   : > { %v15901_v39 = vpop.permute.xlu0 %1222 }
 0x22d   : > { %3117 = vrot.lane.b32.xlu1 %v15620_v3, %s14892_s22 }
 0x22e   : > { %3147 = vrot.lane.b32.xlu0 %v15654_v38, %s14892_s22 }
 0x22f   : > { %v15930_v21 = vpop.permute.xlu1 %1224 }
 0x230   : > { %v15926_v5 = vpop.permute.xlu0 %1226 }
 0x231   : > { %3149 = vrot.lane.b32.xlu1 %v15666_v28, %s14892_s22 }
 0x232   : > { %3111 = vrot.lane.b32.xlu0 %v15465_v22, %s14892_s22  ;;  %v1013_v22 = vmul.f32 0.044715, %v981_v35  ;;  %v1073_v35 = vmul.f32 0.7978846, %v1041_v54  ;;  %v14618_v54 = vpop.eup %14617 }
 0x233   : > { %v15949_v23 = vpop.permute.xlu1 %1228  ;;  %v14620_v45 = vpop.eup %14619 }
 0x234   : > { %v15943_v58 = vpop.permute.xlu0 %1230  ;;  %v1045_v31 = vadd.f32 %v1013_v22, %v15892_v7  ;;  %v903_v22 = vmul.f32 0.5, %v15766_v63  ;;  %14631 = vtanh.f32 %v1073_v35  ;;  %v14622_v11 = vpop.eup %14621  ;;  %v1053_v63 = vadd.f32 %v1021_v33, %v15922_v29 }
 0x235   : > { %3113 = vrot.lane.b32.xlu1 %v15613_v47, %s14892_s22  ;;  %v997_v47 = vmul.f32 %v965_v41, %v15946_v2  ;;  %v1139_v33 = vadd.f32 1.0, %v14620_v45 }
 0x236   : > { %3143 = vrot.lane.b32.xlu0 %v15644_v59, %s14892_s22  ;;  %v1069_v59 = vmul.f32 0.7978846, %v1037_v46  ;;  %v1077_v34 = vmul.f32 0.7978846, %v1045_v31  ;;  %v15981_v24 = vmul.f32 %v1127_v6, %v903_v22  ;;  %v1081_v46 = vmul.f32 0.7978846, %v1049_v37 }
 0x237   : > { %v15963_v61 = vpop.permute.xlu1 %1232  ;;  %v911_v31 = vmul.f32 0.5, %v15775_v26 }
 0x238   : > { %v15958_v20 = vpop.permute.xlu0 %1234  ;;  %23472 = vst [vmem:[#allocation17_spill] sm:$0xff] %v15981_v24  ;;  %14633 = vtanh.f32 %v1069_v59  ;;  %v1143_v59 = vadd.f32 1.0, %v14622_v11 }
 0x239   : > { %3145 = vrot.lane.b32.xlu1 %v15656_v9, %s14892_s22  ;;  %14635 = vtanh.f32 %v1077_v34  ;;  %v15995_v6 = vmul.f32 %v1135_v27, %v911_v31  ;;  %v915_v27 = vmul.f32 0.5, %v15793_v10  ;;  %v927_v10 = vmul.f32 0.5, %v15821_v1 }
 0x23a   : > { %2859 = vrot.lane.b32.xlu0 %v15638_v19, %s14893_s23  ;;  %14637 = vtanh.f32 %v1081_v46 }
 0x23b   : > { %v15974_v19 = vpop.permute.xlu1 %1236  ;;  %23475 = vst [vmem:[#allocation18_spill] sm:$0xff] %v15995_v6  ;;  %14639 = vtanh.f32 %v1089_v52  ;;  %v16014_v46 = vmul.f32 %v1139_v33, %v915_v27 }
 0x23c   : > { %v15971_v44 = vpop.permute.xlu0 %1455 }
 0x23d   : > { %23471 = vst [vmem:[#allocation21_spill] sm:$0xff] %v15971_v44  ;;  %2861 = vrot.lane.b32.xlu1 %v15646_v4, %s14893_s23  ;;  %v1131_v44 = vadd.f32 1.0, %v14618_v54  ;;  %v1085_v54 = vmul.f32 0.7978846, %v1053_v63  ;;  %23481 = vst [vmem:[#allocation43_spill] sm:$0xff] %v16014_v46 }
 0x23e   : > { %2891 = vrot.lane.b32.xlu0 %v15674_v8, %s14893_s23  ;;  %v1029_v8 = vmul.f32 0.044715, %v997_v47  ;;  %v14624_v47 = vpop.eup %14623 }
 0x23f   : > { %v15987_v35 = vpop.permute.xlu1 %1457  ;;  %v15999_v26 = vmul.f32 %v1131_v44, %v907_v53  ;;  %v14626_v15 = vpop.eup %14625  ;;  %v1151_v45 = vadd.f32 1.0, %v14624_v47  ;;  %14641 = vtanh.f32 %v1085_v54  ;;  %v923_v53 = vmul.f32 0.5, %v15828_v36 }
 0x240   : > { %v15984_v41 = vpop.permute.xlu0 %1459  ;;  %23474 = vst [vmem:[#allocation16_spill] sm:$0xff] %v15987_v35  ;;  %v1061_v22 = vadd.f32 %v1029_v8, %v15946_v2  ;;  %v919_v35 = vmul.f32 0.5, %v15803_v48  ;;  %v14628_v8 = vpop.eup %14627  ;;  %v1147_v11 = vadd.f32 1.0, %v14626_v15  ;;  %v905_v15 = vmul.f32 0.5, %v15836_v16 }
 0x241   : > { %23473 = vst [vmem:[#allocation15_spill] sm:$0xff] %v15984_v41  ;;  %2893 = vrot.lane.b32.xlu1 %v15683_v30, %s14893_s23  ;;  %23477 = vst [vmem:[#allocation39_spill] sm:$0xff] %v15999_v26  ;;  %v14630_v31 = vpop.eup %14629  ;;  %v1129_v52 = vadd.f32 1.0, %v14628_v8  ;;  %v931_v36 = vmul.f32 0.5, %v15854_v57  ;;  %v913_v16 = vmul.f32 0.5, %v15859_v51  ;;  %v909_v57 = vmul.f32 0.5, %v15877_v14 }
 0x242   : > { %1206 = vrot.lane.b32.xlu0 %v15981_v24, %s14888_s16  ;;  %v16010_v0 = vmul.f32 %v1143_v59, %v919_v35  ;;  %v1093_v48 = vmul.f32 0.7978846, %v1061_v22  ;;  %v14632_v35 = vpop.eup %14631  ;;  %v16024_v59 = vmul.f32 %v1151_v45, %v927_v10  ;;  %v16028_v33 = vmul.f32 %v1147_v11, %v923_v53 }
 0x243   : > { %v16002_v34 = vpop.permute.xlu1 %1461  ;;  %v1155_v54 = vadd.f32 1.0, %v14630_v31  ;;  %v16038_v45 = vmul.f32 %v1129_v52, %v905_v15  ;;  %v1137_v8 = vadd.f32 1.0, %v14632_v35  ;;  %v921_v41 = vmul.f32 0.5, %v15898_v13 }
 0x244   : > { %v15997_v37 = vpop.permute.xlu0 %1463  ;;  %23478 = vst [vmem:[#allocation40_spill] sm:$0xff] %v16002_v34  ;;  %23479 = vst [vmem:[#allocation41_spill] sm:$0xff] %v16010_v0  ;;  %14643 = vtanh.f32 %v1093_v48  ;;  %v917_v14 = vmul.f32 0.5, %v15892_v7  ;;  %v929_v13 = vmul.f32 0.5, %v15916_v55  ;;  %v925_v7 = vmul.f32 0.5, %v15922_v29 }
 0x245   : > { %23476 = vst [vmem:[#allocation12_spill] sm:$0xff] %v15997_v37  ;;  %1208 = vrot.lane.b32.xlu1 %v15999_v26, %s14888_s16  ;;  %23483 = vst [vmem:[#allocation45_spill] sm:$0xff] %v16024_v59  ;;  %v14634_v1 = vpop.eup %14633  ;;  %v16042_v10 = vmul.f32 %v1155_v54, %v931_v36  ;;  %v16052_v52 = vmul.f32 %v1137_v8, %v913_v16  ;;  %v933_v55 = vmul.f32 0.5, %v15946_v2 }
 0x246   : > { %1210 = vrot.lane.b32.xlu0 %v15995_v6, %s14888_s16  ;;  %23484 = vst [vmem:[#allocation46_spill] sm:$0xff] %v16028_v33  ;;  %v14636_v27 = vpop.eup %14635  ;;  %23486 = vst [vmem:[#allocation48_spill] sm:$0xff] %v16038_v45  ;;  %v1133_v31 = vadd.f32 1.0, %v14634_v1 }
 0x247   : > { %v16016_v63 = vpop.permute.xlu1 %1465  ;;  %v14638_v48 = vpop.eup %14637  ;;  %23487 = vst [vmem:[#allocation49_spill] sm:$0xff] %v16042_v10  ;;  %23488 = vst [vmem:[#allocation50_spill] sm:$0xff] %v16052_v52  ;;  %v1141_v54 = vadd.f32 1.0, %v14636_v27 }
 0x248   : > { %v16012_v44 = vpop.permute.xlu0 %1467  ;;  %23482 = vst [vmem:[#allocation44_spill] sm:$0xff] %v16016_v63  ;;  %v1145_v35 = vadd.f32 1.0, %v14638_v48  ;;  %v14640_v1 = vpop.eup %14639  ;;  %v16056_v36 = vmul.f32 %v1133_v31, %v909_v57 }
 0x249   : > { %23480 = vst [vmem:[#allocation42_spill] sm:$0xff] %v16012_v44  ;;  %1212 = vrot.lane.b32.xlu1 %v16014_v46, %s14888_s16  ;;  %v1153_v8 = vadd.f32 1.0, %v14640_v1  ;;  %v16070_v27 = vmul.f32 %v1141_v54, %v917_v14 }
 0x24a   : > { %1214 = vrot.lane.b32.xlu0 %v16010_v0, %s14888_s16  ;;  %23489 = vst [vmem:[#allocation51_spill] sm:$0xff] %v16056_v36  ;;  %v16066_v48 = vmul.f32 %v1145_v35, %v921_v41 }
 0x24b   : > { %v16030_v22 = vpop.permute.xlu1 %1469  ;;  %23492 = vst [vmem:[#allocation54_spill] sm:$0xff] %v16070_v27  ;;  %v16080_v41 = vmul.f32 %v1153_v8, %v929_v13 }
 0x24c   : > { %v16026_v47 = vpop.permute.xlu0 %2595  ;;  %23485 = vst [vmem:[#allocation47_spill] sm:$0xff] %v16030_v22  ;;  %v14642_v51 = vpop.eup %14641  ;;  %23490 = vst [vmem:[#allocation52_spill] sm:$0xff] %v16066_v48 }
 0x24d   : > { %1216 = vrot.lane.b32.xlu1 %v16028_v33, %s14888_s16  ;;  %v1149_v31 = vadd.f32 1.0, %v14642_v51  ;;  %23494 = vst [vmem:[#allocation56_spill] sm:$0xff] %v16080_v41 }
 0x24e   : > { %1218 = vrot.lane.b32.xlu0 %v16024_v59, %s14888_s16 }
 0x24f   : > { %v16044_v53 = vpop.permute.xlu1 %2597  ;;  %v16084_v1 = vmul.f32 %v1149_v31, %v925_v7 }
 0x250   : > { %v16040_v11 = vpop.permute.xlu0 %2627 }
 0x251   : > { %1220 = vrot.lane.b32.xlu1 %v16042_v10, %s14888_s16  ;;  %v14644_v63 = vpop.eup %14643  ;;  %23496 = vst [vmem:[#allocation58_spill] sm:$0xff] %v16084_v1 }
 0x252   : > { %1238 = vrot.lane.b32.xlu0 %v16038_v45, %s14888_s16  ;;  %v1157_v54 = vadd.f32 1.0, %v14644_v63 }
 0x253   : > { %v16058_v34 = vpop.permute.xlu1 %2629 }
 0x254   : > { %v16054_v15 = vpop.permute.xlu0 %2591  ;;  %v16095_v14 = vmul.f32 %v1157_v54, %v933_v55 }
 0x255   : > { %1240 = vrot.lane.b32.xlu1 %v16056_v36, %s14888_s16 }
 0x256   : > { %1242 = vrot.lane.b32.xlu0 %v16052_v52, %s14888_s16  ;;  %23499 = vst [vmem:[#allocation61_spill] sm:$0xff] %v16095_v14 }
 0x257   : > { %v16072_v57 = vpop.permute.xlu1 %2593 }
 0x258   : > { %v16068_v16 = vpop.permute.xlu0 %2623  ;;  %23493 = vst [vmem:[#allocation55_spill] sm:$0xff] %v16072_v57 }
 0x259   : > { %23491 = vst [vmem:[#allocation53_spill] sm:$0xff] %v16068_v16  ;;  %1244 = vrot.lane.b32.xlu1 %v16070_v27, %s14888_s16 }
 0x25a   : > { %1246 = vrot.lane.b32.xlu0 %v16066_v48, %s14888_s16 }
 0x25b   : > { %v16086_v51 = vpop.permute.xlu1 %2625 }
 0x25c   : > { %v16082_v35 = vpop.permute.xlu0 %2587  ;;  %23497 = vst [vmem:[#allocation59_spill] sm:$0xff] %v16086_v51 }
 0x25d   : > { %23495 = vst [vmem:[#allocation57_spill] sm:$0xff] %v16082_v35  ;;  %1248 = vrot.lane.b32.xlu1 %v16084_v1, %s14888_s16  ;;  %v2417_v35 = vld [vmem:[#allocation3 + $0x4] ss:$8 sm:$0xf] }
 0x25e   : > { %1250 = vrot.lane.b32.xlu0 %v16080_v41, %s14888_s16 }
 0x25f   : > { %v16097_v8 = vpop.permute.xlu1 %2589 }
 0x260   : > { %v16093_v29 = vpop.permute.xlu0 %2619  ;;  %23500 = vst [vmem:[#allocation62_spill] sm:$0xff] %v16097_v8 }
 0x261   : > { %23498 = vst [vmem:[#allocation60_spill] sm:$0xff] %v16093_v29  ;;  %1252 = vrot.lane.b32.xlu1 %v16095_v14, %s14888_s16  ;;  %s14901_s16 = smov 121  }
 0x262   : > { %2611 = vrot.lane.b32.xlu0 %v16024_v59, %s14890_s20 }
 0x263   : > { %v16105_v31 = vpop.permute.xlu1 %2621 }
 0x264   : > { %v16103_v63 = vpop.permute.xlu0 %2583  ;;  %23502 = vst [vmem:[#allocation64_spill] sm:$0xff] %v16105_v31 }
 0x265   : > { %23501 = vst [vmem:[#allocation63_spill] sm:$0xff] %v16103_v63  ;;  %2613 = vrot.lane.b32.xlu1 %v16042_v10, %s14890_s20 }
 0x266   : > { %2643 = vrot.lane.b32.xlu0 %v16080_v41, %s14890_s20 }
 0x267   : > { %v16113_v13 = vpop.permute.xlu1 %2585 }
 0x268   : > { %v16111_v2 = vpop.permute.xlu0 %2615  ;;  %23504 = vst [vmem:[#allocation66_spill] sm:$0xff] %v16113_v13 }
 0x269   : > { %23503 = vst [vmem:[#allocation65_spill] sm:$0xff] %v16111_v2  ;;  %2645 = vrot.lane.b32.xlu1 %v16095_v14, %s14890_s20 }
 0x26a   : > { %2607 = vrot.lane.b32.xlu0 %v16010_v0, %s14890_s20 }
 0x26b   : > { %v16121_v54 = vpop.permute.xlu1 %2617 }
 0x26c   : > { %v16119_v7 = vpop.permute.xlu0 %2331  ;;  %23506 = vst [vmem:[#allocation68_spill] sm:$0xff] %v16121_v54 }
 0x26d   : > { %23505 = vst [vmem:[#allocation67_spill] sm:$0xff] %v16119_v7  ;;  %2609 = vrot.lane.b32.xlu1 %v16028_v33, %s14890_s20 }
 0x26e   : > { %2639 = vrot.lane.b32.xlu0 %v16066_v48, %s14890_s20 }
 0x26f   : > { %v16129_v37 = vpop.permute.xlu1 %2333 }
 0x270   : > { %v16127_v55 = vpop.permute.xlu0 %2363  ;;  %23508 = vst [vmem:[#allocation70_spill] sm:$0xff] %v16129_v37 }
 0x271   : > { %23507 = vst [vmem:[#allocation69_spill] sm:$0xff] %v16127_v55  ;;  %2641 = vrot.lane.b32.xlu1 %v16084_v1, %s14890_s20 }
 0x272   : > { %2603 = vrot.lane.b32.xlu0 %v15995_v6, %s14890_s20 }
 0x273   : > { %v16137_v44 = vpop.permute.xlu1 %2365 }
 0x274   : > { %v16135_v22 = vpop.permute.xlu0 %2327  ;;  %23510 = vst [vmem:[#allocation72_spill] sm:$0xff] %v16137_v44 }
 0x275   : > { %23509 = vst [vmem:[#allocation71_spill] sm:$0xff] %v16135_v22  ;;  %2605 = vrot.lane.b32.xlu1 %v16014_v46, %s14890_s20 }
 0x276   : > { %2635 = vrot.lane.b32.xlu0 %v16052_v52, %s14890_s20 }
 0x277   : > { %v16145_v30 = vpop.permute.xlu1 %2329 }
 0x278   : > { %v16143_v4 = vpop.permute.xlu0 %2359  ;;  %23512 = vst [vmem:[#allocation74_spill] sm:$0xff] %v16145_v30 }
 0x279   : > { %23511 = vst [vmem:[#allocation73_spill] sm:$0xff] %v16143_v4  ;;  %2637 = vrot.lane.b32.xlu1 %v16070_v27, %s14890_s20 }
 0x27a   : > { %2599 = vrot.lane.b32.xlu0 %v15981_v24, %s14890_s20 }
 0x27b   : > { %v16153_v22 = vpop.permute.xlu1 %2361 }
 0x27c   : > { %v16151_v37 = vpop.permute.xlu0 %2323  ;;  %23514 = vst [vmem:[#allocation76_spill] sm:$0xff] %v16153_v22 }
 0x27d   : > { %23513 = vst [vmem:[#allocation75_spill] sm:$0xff] %v16151_v37  ;;  %2601 = vrot.lane.b32.xlu1 %v15999_v26, %s14890_s20 }
 0x27e   : > { %2631 = vrot.lane.b32.xlu0 %v16038_v45, %s14890_s20 }
 0x27f   : > { %v16161_v4 = vpop.permute.xlu1 %2325 }
 0x280   : > { %v16159_v44 = vpop.permute.xlu0 %2355  ;;  %23516 = vst [vmem:[#allocation78_spill] sm:$0xff] %v16161_v4 }
 0x281   : > { %23515 = vst [vmem:[#allocation77_spill] sm:$0xff] %v16159_v44  ;;  %2633 = vrot.lane.b32.xlu1 %v16056_v36, %s14890_s20  ;;  %s14903_s20 = smov 119  }
 0x282   : > { %2347 = vrot.lane.b32.xlu0 %v16024_v59, %s14891_s21 }
 0x283   : > { %v16169_v37 = vpop.permute.xlu1 %2357 }
 0x284   : > { %v16167_v30 = vpop.permute.xlu0 %2319  ;;  %23518 = vst [vmem:[#allocation80_spill] sm:$0xff] %v16169_v37 }
 0x285   : > { %23517 = vst [vmem:[#allocation79_spill] sm:$0xff] %v16167_v30  ;;  %2349 = vrot.lane.b32.xlu1 %v16042_v10, %s14891_s21 }
 0x286   : > { %2379 = vrot.lane.b32.xlu0 %v16080_v41, %s14891_s21 }
 0x287   : > { %v16177_v44 = vpop.permute.xlu1 %2321 }
 0x288   : > { %v16175_v22 = vpop.permute.xlu0 %2351  ;;  %23520 = vst [vmem:[#allocation82_spill] sm:$0xff] %v16177_v44 }
 0x289   : > { %23519 = vst [vmem:[#allocation81_spill] sm:$0xff] %v16175_v22  ;;  %2381 = vrot.lane.b32.xlu1 %v16095_v14, %s14891_s21 }
 0x28a   : > { %2343 = vrot.lane.b32.xlu0 %v16010_v0, %s14891_s21 }
 0x28b   : > { %v16185_v30 = vpop.permute.xlu1 %2353 }
 0x28c   : > { %v16183_v4 = vpop.permute.xlu0 %3123  ;;  %23522 = vst [vmem:[#allocation84_spill] sm:$0xff] %v16185_v30 }
 0x28d   : > { %23521 = vst [vmem:[#allocation83_spill] sm:$0xff] %v16183_v4  ;;  %2345 = vrot.lane.b32.xlu1 %v16028_v33, %s14891_s21 }
 0x28e   : > { %2375 = vrot.lane.b32.xlu0 %v16066_v48, %s14891_s21 }
 0x28f   : > { %v16193_v22 = vpop.permute.xlu1 %3125 }
 0x290   : > { %v16191_v37 = vpop.permute.xlu0 %3155  ;;  %23524 = vst [vmem:[#allocation86_spill] sm:$0xff] %v16193_v22 }
 0x291   : > { %23523 = vst [vmem:[#allocation85_spill] sm:$0xff] %v16191_v37  ;;  %2377 = vrot.lane.b32.xlu1 %v16084_v1, %s14891_s21 }
 0x292   : > { %2339 = vrot.lane.b32.xlu0 %v15995_v6, %s14891_s21 }
 0x293   : > { %v16201_v4 = vpop.permute.xlu1 %3157 }
 0x294   : > { %v16199_v44 = vpop.permute.xlu0 %3119  ;;  %23526 = vst [vmem:[#allocation88_spill] sm:$0xff] %v16201_v4 }
 0x295   : > { %23525 = vst [vmem:[#allocation87_spill] sm:$0xff] %v16199_v44  ;;  %2341 = vrot.lane.b32.xlu1 %v16014_v46, %s14891_s21 }
 0x296   : > { %2371 = vrot.lane.b32.xlu0 %v16052_v52, %s14891_s21 }
 0x297   : > { %v16209_v37 = vpop.permute.xlu1 %3121 }
 0x298   : > { %v16207_v30 = vpop.permute.xlu0 %3151  ;;  %23528 = vst [vmem:[#allocation90_spill] sm:$0xff] %v16209_v37 }
 0x299   : > { %23527 = vst [vmem:[#allocation89_spill] sm:$0xff] %v16207_v30  ;;  %2373 = vrot.lane.b32.xlu1 %v16070_v27, %s14891_s21 }
 0x29a   : > { %2335 = vrot.lane.b32.xlu0 %v15981_v24, %s14891_s21 }
 0x29b   : > { %v16217_v44 = vpop.permute.xlu1 %3153 }
 0x29c   : > { %v16215_v22 = vpop.permute.xlu0 %3115  ;;  %23530 = vst [vmem:[#allocation92_spill] sm:$0xff] %v16217_v44 }
 0x29d   : > { %23529 = vst [vmem:[#allocation91_spill] sm:$0xff] %v16215_v22  ;;  %2337 = vrot.lane.b32.xlu1 %v15999_v26, %s14891_s21 }
 0x29e   : > { %2367 = vrot.lane.b32.xlu0 %v16038_v45, %s14891_s21 }
 0x29f   : > { %v16225_v30 = vpop.permute.xlu1 %3117 }
 0x2a0   : > { %v16223_v4 = vpop.permute.xlu0 %3147  ;;  %23532 = vst [vmem:[#allocation94_spill] sm:$0xff] %v16225_v30  ;;  %v1254_v30 = vlaneseq }
 0x2a1   : > { %23531 = vst [vmem:[#allocation93_spill] sm:$0xff] %v16223_v4  ;;  %2369 = vrot.lane.b32.xlu1 %v16056_v36, %s14891_s21  ;;  %s14904_s21 = smov 120  }
 0x2a2   : > { %3139 = vrot.lane.b32.xlu0 %v16024_v59, %s14892_s22  ;;  %v1292_v55 = vshrl.u32 %v1254_v30, 7 }
 0x2a3   : > { %v16233_v22 = vpop.permute.xlu1 %3149 }
 0x2a4   : > { %v16231_v37 = vpop.permute.xlu0 %3111  ;;  %23534 = vst [vmem:[#allocation96_spill] sm:$0xff] %v16233_v22  ;;  %v16261_v7 = vsub.s32 0, %v1292_v55 }
 0x2a5   : > { %23533 = vst [vmem:[#allocation95_spill] sm:$0xff] %v16231_v37  ;;  %3141 = vrot.lane.b32.xlu1 %v16042_v10, %s14892_s22 }
 0x2a6   : > { %3171 = vrot.lane.b32.xlu0 %v16080_v41, %s14892_s22  ;;  %23541 = vst [vmem:[#allocation103_spill] sm:$0xff] %v16261_v7 }
 0x2a7   : > { %v16241_v4 = vpop.permute.xlu1 %3113 }
 0x2a8   : > { %v16239_v44 = vpop.permute.xlu0 %3143  ;;  %23536 = vst [vmem:[#allocation98_spill] sm:$0xff] %v16241_v4 }
 0x2a9   : > { %23535 = vst [vmem:[#allocation97_spill] sm:$0xff] %v16239_v44  ;;  %3173 = vrot.lane.b32.xlu1 %v16095_v14, %s14892_s22  ;;  %v16255_v44 = vand.u32 127, %v1254_v30 }
 0x2aa   : > { %3135 = vrot.lane.b32.xlu0 %v16010_v0, %s14892_s22 }
 0x2ab   : > { %v16249_v22 = vpop.permute.xlu1 %3145  ;;  %vm1256_vm1 = vcmp.lt.s32.totalorder %v16255_v44, 73  ;;  %vm2647_vm2 = vcmp.lt.s32.totalorder %v16255_v44, 63  ;;  %vm2383_vm3 = vcmp.lt.s32.totalorder %v16255_v44, 64  ;;  %vm3175_vm4 = vcmp.lt.s32.totalorder %v16255_v44, 56 }
 0x2ac   : > { %v16247_v37 = vpop.permute.xlu0 %2859  ;;  %23538 = vst [vmem:[#allocation100_spill] sm:$0xff] %v16249_v22  ;;  %vm2911_vm5 = vcmp.lt.s32.totalorder %v16255_v44, 57  ;;  %vm1519_vm6 = vcmp.lt.s32.totalorder %v16255_v44, 72  ;;  %vm2047_vm7 = vcmp.lt.s32.totalorder %v16255_v44, 65  ;;  %vm1783_vm8 = vcmp.lt.s32.totalorder %v16255_v44, 71 }
 0x2ad   : > { %23537 = vst [vmem:[#allocation99_spill] sm:$0xff] %v16247_v37  ;;  %3137 = vrot.lane.b32.xlu1 %v16028_v33, %s14892_s22  ;;  %v8168_v37 = vld [vmem:[#allocation3 + $0x42] ss:$8 sm:$0xf]  ;;  %vm4787_vm9 = vcmp.lt.s32.totalorder %v16255_v44, 9  ;;  %vm4523_vm10 = vcmp.lt.s32.totalorder %v16255_v44, 55 }
 0x2ae   : > { %3167 = vrot.lane.b32.xlu0 %v16066_v48, %s14892_s22  ;;  %v8173_v30 = vrot.slane %v8168_v37, %v16261_v7  ;;  %vm5315_vm11 = vcmp.lt.s32.totalorder %v16255_v44, 7  ;;  %vm5051_vm12 = vcmp.lt.s32.totalorder %v16255_v44, 8  ;;  %vm6189_vm13 = vcmp.lt.s32.totalorder %v16255_v44, 1 }
 0x2af   : > { %v16259_v9 = vpop.permute.xlu1 %2861  ;;  %vm6829_vm14 = vcmp.lt.s32.totalorder %v16255_v44, 121  ;;  %vm6565_vm15 = vcmp.lt.s32.totalorder %v16255_v44, 127  ;;  %vm7967_vm0 = vcmp.lt.s32.totalorder %v16255_v44, 119 }
 0x2b0   : > { %v16257_v4 = vpop.permute.xlu0 %2891  ;;  %23540 = vst [vmem:[#allocation102_spill] sm:$0xff] %v16259_v9 }
 0x2b1   : > { %23539 = vst [vmem:[#allocation101_spill] sm:$0xff] %v16257_v4  ;;  %3169 = vrot.lane.b32.xlu1 %v16084_v1, %s14892_s22 }
 0x2b2   : > { %3131 = vrot.lane.b32.xlu0 %v15995_v6, %s14892_s22 }
 0x2b3   : > { %v16270_v54 = vpop.permute.xlu1 %2893 }
 0x2b4   : > { %v16268_v22 = vpop.permute.xlu0 %1206  ;;  %23542 = vst [vmem:[#allocation104_spill] sm:$0xff] %v16270_v54 }
 0x2b5   : > { %v16277_v9 = vsel %vm1256_vm1, %v15783_v62, %v16268_v22  ;;  %3133 = vrot.lane.b32.xlu1 %v16014_v46, %s14892_s22 }
 0x2b6   : > { %23543 = vst [vmem:[#allocation105_spill] sm:$0xff] %v16277_v9  ;;  %3163 = vrot.lane.b32.xlu0 %v16052_v52, %s14892_s22  ;;  %v16288_v54 = vmul.f32 %v8173_v30, %v16277_v9 }
 0x2b7   : > { %v16285_v13 = vpop.permute.xlu1 %1208 }
 0x2b8   : > { %v16283_v4 = vpop.permute.xlu0 %1210  ;;  %23544 = vst [vmem:[#allocation106_spill] sm:$0xff] %v16288_v54  ;;  %v16294_v2 = vsel %vm1256_vm1, %v15797_v25, %v16285_v13 }
 0x2b9   : > { %23545 = vst [vmem:[#allocation107_spill] sm:$0xff] %v16294_v2  ;;  %v16300_v63 = vsel %vm1256_vm1, %v15813_v18, %v16283_v4  ;;  %v16305_v31 = vmul.f32 %v8173_v30, %v16294_v2  ;;  %3165 = vrot.lane.b32.xlu1 %v16070_v27, %s14892_s22  ;;  %v2681_v27 = vld [vmem:[#allocation3 + $0x5] ss:$8 sm:$0xf] }
 0x2ba   : > { %23546 = vst [vmem:[#allocation108_spill] sm:$0xff] %v16300_v63  ;;  %3127 = vrot.lane.b32.xlu0 %v15981_v24, %s14892_s22  ;;  %v16316_v29 = vmul.f32 %v8173_v30, %v16300_v63 }
 0x2bb   : > { %23547 = vst [vmem:[#allocation109_spill] sm:$0xff] %v16305_v31  ;;  %v16313_v25 = vpop.permute.xlu1 %1212  ;;  %v16360_v31 = vsub.s32 1, %v1292_v55 }
 0x2bc   : > { %v16309_v9 = vpop.permute.xlu0 %1214  ;;  %23548 = vst [vmem:[#allocation110_spill] sm:$0xff] %v16316_v29  ;;  %v16322_v24 = vsel %vm1256_vm1, %v15831_v32, %v16313_v25  ;;  %v16362_v29 = vsub.s32 2, %v1292_v55 }
 0x2bd   : > { %23549 = vst [vmem:[#allocation111_spill] sm:$0xff] %v16322_v24  ;;  %v16328_v2 = vsel %vm1256_vm1, %v15847_v42, %v16309_v9  ;;  %v16333_v8 = vmul.f32 %v8173_v30, %v16322_v24  ;;  %3129 = vrot.lane.b32.xlu1 %v15999_v26, %s14892_s22  ;;  %23555 = vst [vmem:[#allocation117_spill] sm:$0xff] %v16360_v31 }
 0x2be   : > { %23550 = vst [vmem:[#allocation112_spill] sm:$0xff] %v16328_v2  ;;  %3159 = vrot.lane.b32.xlu0 %v16038_v45, %s14892_s22  ;;  %v16344_v32 = vmul.f32 %v8173_v30, %v16328_v2  ;;  %23556 = vst [vmem:[#allocation118_spill] sm:$0xff] %v16362_v29  ;;  %v16369_v2 = vsub.s32 3, %v1292_v55  ;;  %v16381_v52 = vrot.slane %v8168_v37, %v16362_v29 }
 0x2bf   : > { %23551 = vst [vmem:[#allocation113_spill] sm:$0xff] %v16333_v8  ;;  %v16341_v63 = vpop.permute.xlu1 %1216 }
 0x2c0   : > { %v16337_v54 = vpop.permute.xlu0 %1218  ;;  %23552 = vst [vmem:[#allocation114_spill] sm:$0xff] %v16344_v32  ;;  %v16350_v45 = vsel %vm1256_vm1, %v15868_v60, %v16341_v63  ;;  %23558 = vst [vmem:[#allocation120_spill] sm:$0xff] %v16369_v2  ;;  %v16398_v32 = vrot.slane %v8168_v37, %v16360_v31  ;;  %v16434_v57 = vrot.slane %v2681_v27, %v16369_v2 }
 0x2c1   : > { %23553 = vst [vmem:[#allocation115_spill] sm:$0xff] %v16350_v45  ;;  %v16356_v24 = vsel %vm1256_vm1, %v15873_v12, %v16337_v54  ;;  %v16365_v8 = vmul.f32 %v8173_v30, %v16350_v45  ;;  %3161 = vrot.lane.b32.xlu1 %v16056_v36, %s14892_s22  ;;  %v9613_v45 = vld [vmem:[#allocation3 + $0x47] ss:$8 sm:$0xf]  ;;  %v16409_v36 = vrot.slane %v2681_v27, %v16360_v31 }
 0x2c2   : > { %23554 = vst [vmem:[#allocation116_spill] sm:$0xff] %v16356_v24  ;;  %2875 = vrot.lane.b32.xlu0 %v16024_v59, %s14893_s23  ;;  %v16378_v59 = vmul.f32 %v8173_v30, %v16356_v24  ;;  %v16406_v24 = vrot.slane %v8168_v37, %v16369_v2  ;;  %v16417_v42 = vrot.slane %v9613_v45, %v16261_v7  ;;  %v9446_v37 = vld [vmem:[#allocation3 + $0x46] ss:$8 sm:$0xf] }
 0x2c3   : > { %23557 = vst [vmem:[#allocation119_spill] sm:$0xff] %v16365_v8  ;;  %v16375_v28 = vpop.permute.xlu1 %1220  ;;  %v16437_v18 = vrot.slane %v9613_v45, %v16362_v29 }
 0x2c4   : > { %v16371_v26 = vpop.permute.xlu0 %1238  ;;  %23559 = vst [vmem:[#allocation121_spill] sm:$0xff] %v16378_v59  ;;  %v16387_v55 = vsel %vm1256_vm1, %v15906_v40, %v16375_v28  ;;  %v16457_v59 = vrot.slane %v2417_v35, %v16360_v31 }
 0x2c5   : > { %23560 = vst [vmem:[#allocation122_spill] sm:$0xff] %v16387_v55  ;;  %v16393_v60 = vsel %vm1256_vm1, %v15901_v39, %v16371_v26  ;;  %v16401_v8 = vmul.f32 %v8173_v30, %v16387_v55  ;;  %2877 = vrot.lane.b32.xlu1 %v16042_v10, %s14893_s23  ;;  %v16420_v30 = vrot.slane %v9613_v45, %v16360_v31 }
 0x2c6   : > { %23561 = vst [vmem:[#allocation123_spill] sm:$0xff] %v16393_v60  ;;  %2907 = vrot.lane.b32.xlu0 %v16080_v41, %s14893_s23  ;;  %v16414_v41 = vrot.slane %v2681_v27, %v16362_v29  ;;  %v16423_v55 = vrot.slane %v2681_v27, %v16261_v7  ;;  %v16431_v38 = vmul.f32 %v16381_v52, %v16393_v60  ;;  %23570 = vst [vmem:[#allocation132_spill] sm:$0xff] %v16457_v59 }
 0x2c7   : > { %23562 = vst [vmem:[#allocation124_spill] sm:$0xff] %v16401_v8  ;;  %23564 = vst [vmem:[#allocation126_spill] sm:$0xff] %v16420_v30  ;;  %v16427_v46 = vpop.permute.xlu1 %1240  ;;  %v16454_v27 = vrot.slane %v9613_v45, %v16369_v2  ;;  %v3209_v8 = vld [vmem:[#allocation3 + $0x7] ss:$8 sm:$0xf]  ;;  %v16473_v45 = vrot.slane %v9446_v37, %v16360_v31 }
 0x2c8   : > { %v16411_v51 = vpop.permute.xlu0 %1242  ;;  %23565 = vst [vmem:[#allocation127_spill] sm:$0xff] %v16427_v46  ;;  %23566 = vst [vmem:[#allocation128_spill] sm:$0xff] %v16431_v38  ;;  %v16443_v30 = vsel %vm1256_vm1, %v15930_v21, %v16427_v46  ;;  %v16467_v46 = vrot.slane %v2417_v35, %v16362_v29 }
 0x2c9   : > { %23563 = vst [vmem:[#allocation125_spill] sm:$0xff] %v16411_v51  ;;  %23567 = vst [vmem:[#allocation129_spill] sm:$0xff] %v16443_v30  ;;  %v16449_v10 = vsel %vm1256_vm1, %v15926_v5, %v16411_v51  ;;  %v16461_v60 = vmul.f32 %v16381_v52, %v16443_v30  ;;  %2909 = vrot.lane.b32.xlu1 %v16095_v14, %s14893_s23  ;;  %v16478_v30 = vrot.slane %v2417_v35, %v16261_v7 }
 0x2ca   : > { %23568 = vst [vmem:[#allocation130_spill] sm:$0xff] %v16449_v10  ;;  %2855 = vrot.lane.b32.xlu0 %v15633_v17, %s14893_s23  ;;  %23569 = vst [vmem:[#allocation131_spill] sm:$0xff] %v16454_v27  ;;  %v16470_v17 = vrot.slane %v9446_v37, %v16261_v7  ;;  %v10557_v27 = vld [vmem:[#allocation3 + $0x61] ss:$8 sm:$0xf]  ;;  %v16481_v51 = vrot.slane %v2417_v35, %v16369_v2  ;;  %v16484_v14 = vrot.slane %v9446_v37, %v16362_v29 }
 0x2cb   : > { %23571 = vst [vmem:[#allocation133_spill] sm:$0xff] %v16461_v60  ;;  %23572 = vst [vmem:[#allocation134_spill] sm:$0xff] %v16467_v46  ;;  %v16487_v46 = vrot.slane %v9446_v37, %v16369_v2  ;;  %v16491_v16 = vpop.permute.xlu1 %1244  ;;  %v16501_v35 = vrot.slane %v3209_v8, %v16362_v29  ;;  %v16518_v38 = vrot.slane %v10557_v27, %v16261_v7 }
 0x2cc   : > { %23573 = vst [vmem:[#allocation135_spill] sm:$0xff] %v16470_v17  ;;  %23574 = vst [vmem:[#allocation136_spill] sm:$0xff] %v16473_v45  ;;  %v16475_v59 = vpop.permute.xlu0 %1246  ;;  %v16495_v45 = vmul.f32 %v16381_v52, %v16449_v10  ;;  %v16507_v37 = vsel %vm1256_vm1, %v15949_v23, %v16491_v16  ;;  %v16521_v60 = vrot.slane %v10557_v27, %v16360_v31 }
 0x2cd   : > { %23575 = vst [vmem:[#allocation137_spill] sm:$0xff] %v16478_v30  ;;  %v16498_v30 = vrot.slane %v3209_v8, %v16360_v31  ;;  %23578 = vst [vmem:[#allocation140_spill] sm:$0xff] %v16501_v35  ;;  %v16513_v17 = vsel %vm1256_vm1, %v15943_v58, %v16475_v59  ;;  %v16527_v10 = vsel %vm1256_vm1, %v16268_v22, %v15901_v39  ;;  %2857 = vrot.lane.b32.xlu1 %v15627_v49, %s14893_s23 }
 0x2ce   : > { %23576 = vst [vmem:[#allocation138_spill] sm:$0xff] %v16495_v45  ;;  %23579 = vst [vmem:[#allocation141_spill] sm:$0xff] %v16507_v37  ;;  %2871 = vrot.lane.b32.xlu0 %v16010_v0, %s14893_s23  ;;  %v16531_v35 = vmul.f32 %v16381_v52, %v16507_v37  ;;  %v16551_v39 = vsel %vm1256_vm1, %v16283_v4, %v15926_v5  ;;  %v16554_v37 = vrot.slane %v10557_v27, %v16362_v29 }
 0x2cf   : > { %23577 = vst [vmem:[#allocation139_spill] sm:$0xff] %v16498_v30  ;;  %23580 = vst [vmem:[#allocation142_spill] sm:$0xff] %v16513_v17  ;;  %v16536_v30 = vrot.slane %v3209_v8, %v16261_v7  ;;  %v16557_v49 = vrot.slane %v10557_v27, %v16369_v2  ;;  %v16573_v5 = vpop.permute.xlu1 %1248  ;;  %v2945_v27 = vld [vmem:[#allocation3 + $0x6] ss:$8 sm:$0xf] }
 0x2d0   : > { %23581 = vst [vmem:[#allocation143_spill] sm:$0xff] %v16518_v38  ;;  %23582 = vst [vmem:[#allocation144_spill] sm:$0xff] %v16521_v60  ;;  %v16539_v38 = vrot.slane %v3209_v8, %v16369_v2  ;;  %v16545_v60 = vsel %vm1256_vm1, %v16285_v13, %v15930_v21  ;;  %v1251_v22 = vpop.permute.xlu0 %1250  ;;  %v16563_v8 = vsel %vm1256_vm1, %v16375_v28, %v15974_v19 }
 0x2d1   : > { %23583 = vst [vmem:[#allocation145_spill] sm:$0xff] %v16527_v10  ;;  %23584 = vst [vmem:[#allocation146_spill] sm:$0xff] %v16531_v35  ;;  %v16569_v21 = vsel %vm1256_vm1, %v16337_v54, %v15958_v20  ;;  %v16577_v13 = vmul.f32 %v16381_v52, %v16513_v17  ;;  %v16581_v28 = vmul.f32 %v16398_v32, %v16527_v10  ;;  %2873 = vrot.lane.b32.xlu1 %v16028_v33, %s14893_s23  ;;  %v16622_v17 = vld [vmem:[#allocation3 + $0x60] ss:$8 sm:$0xf] }
 0x2d2   : > { %23585 = vst [vmem:[#allocation147_spill] sm:$0xff] %v16545_v60  ;;  %23586 = vst [vmem:[#allocation148_spill] sm:$0xff] %v16551_v39  ;;  %v16587_v54 = vsel %vm1256_vm1, %v16313_v25, %v15949_v23  ;;  %v16593_v4 = vsel %vm1256_vm1, %v15963_v61, %v16573_v5  ;;  %v16598_v45 = vsel %vm1256_vm1, %v15958_v20, %v1251_v22  ;;  %2887 = vrot.lane.b32.xlu0 %v15664_v56, %s14893_s23 }
 0x2d3   : > { %23587 = vst [vmem:[#allocation149_spill] sm:$0xff] %v16554_v37  ;;  %23588 = vst [vmem:[#allocation150_spill] sm:$0xff] %v16557_v49  ;;  %v16604_v35 = vmul.f32 %v16398_v32, %v16545_v60  ;;  %v16608_v25 = vmul.f32 %v16398_v32, %v16551_v39  ;;  %v16614_v23 = vsel %vm1256_vm1, %v16309_v9, %v15943_v58  ;;  %v23666_v37 = vld [vmem:[#allocation65_spill] sm:$0xff] }
 0x2d4   : > { %23589 = vst [vmem:[#allocation151_spill] sm:$0xff] %v16563_v8  ;;  %23590 = vst [vmem:[#allocation152_spill] sm:$0xff] %v16569_v21  ;;  %v16618_v20 = vmul.f32 %v16381_v52, %v16593_v4  ;;  %v16628_v39 = vsel %vm1256_vm1, %v16341_v63, %v15963_v61  ;;  %v16632_v60 = vmul.f32 %v16398_v32, %v16563_v8  ;;  %v2612_v58 = vpop.permute.xlu0 %2611  ;;  %v1253_v63 = vpop.permute.xlu1 %1252 }
 0x2d5   : > { %23591 = vst [vmem:[#allocation153_spill] sm:$0xff] %v16577_v13  ;;  %23592 = vst [vmem:[#allocation154_spill] sm:$0xff] %v16581_v28  ;;  %v16636_v9 = vmul.f32 %v16398_v32, %v16569_v21  ;;  %v16643_v10 = vmul.f32 %v16398_v32, %v16587_v54  ;;  %v16649_v8 = vmul.f32 %v16381_v52, %v16598_v45  ;;  %2889 = vrot.lane.b32.xlu1 %v15676_v43, %s14893_s23 }
 0x2d6   : > { %23593 = vst [vmem:[#allocation155_spill] sm:$0xff] %v16587_v54  ;;  %23594 = vst [vmem:[#allocation156_spill] sm:$0xff] %v16593_v4  ;;  %v16639_v4 = vrot.slane %v2945_v27, %v16360_v31  ;;  %v16656_v21 = vmul.f32 %v16398_v32, %v16614_v23  ;;  %v16661_v54 = vsel %vm1256_vm1, %v15974_v19, %v1253_v63  ;;  %2903 = vrot.lane.b32.xlu0 %v16066_v48, %s14893_s23 }
 0x2d7   : > { %23595 = vst [vmem:[#allocation157_spill] sm:$0xff] %v16598_v45  ;;  %23596 = vst [vmem:[#allocation158_spill] sm:$0xff] %v16604_v35  ;;  %v16652_v35 = vrot.slane %v2945_v27, %v16362_v29  ;;  %v2670_v61 = vsel %vm2647_vm2, %v16026_v47, %v2612_v58  ;;  %v16670_v13 = vrot.slane %v16622_v17, %v16261_v7 }
 0x2d8   : > { %23597 = vst [vmem:[#allocation159_spill] sm:$0xff] %v16608_v25  ;;  %23598 = vst [vmem:[#allocation160_spill] sm:$0xff] %v16614_v23  ;;  %v16680_v19 = vsel %vm1256_vm1, %v16371_v26, %v15783_v62  ;;  %v16684_v45 = vmul.f32 %v16381_v52, %v16661_v54  ;;  %v16690_v23 = vrot.slane %v16622_v17, %v16360_v31  ;;  %v2644_v26 = vpop.permute.xlu0 %2643  ;;  %v2614_v31 = vpop.permute.xlu1 %2613 }
 0x2d9   : > { %23599 = vst [vmem:[#allocation161_spill] sm:$0xff] %v16618_v20  ;;  %23600 = vst [vmem:[#allocation162_spill] sm:$0xff] %v16628_v39  ;;  %v16674_v20 = vmul.f32 %v16398_v32, %v16628_v39  ;;  %v16695_v32 = vsel %vm1256_vm1, %v1253_v63, %v15906_v40  ;;  %v16700_v62 = vsel %vm1256_vm1, %v1251_v22, %v15873_v12  ;;  %2905 = vrot.lane.b32.xlu1 %v16084_v1, %s14893_s23 }
 0x2da   : > { %23601 = vst [vmem:[#allocation163_spill] sm:$0xff] %v16632_v60  ;;  %23602 = vst [vmem:[#allocation164_spill] sm:$0xff] %v16636_v9  ;;  %v16703_v52 = vrot.slane %v2945_v27, %v16261_v7  ;;  %v2728_v28 = vmul.f32 %v16409_v36, %v2670_v61  ;;  %v16711_v40 = vmul.f32 %v16417_v42, %v2670_v61  ;;  %2851 = vrot.lane.b32.xlu0 %v15478_v50, %s14893_s23 }
 0x2db   : > { %23603 = vst [vmem:[#allocation165_spill] sm:$0xff] %v16639_v4  ;;  %23604 = vst [vmem:[#allocation166_spill] sm:$0xff] %v16643_v10  ;;  %v16716_v12 = vsel %vm2647_vm2, %v2644_v26, %v16026_v47  ;;  %v16720_v22 = vmul.f32 %v16406_v24, %v16680_v19  ;;  %v2671_v63 = vsel %vm2647_vm2, %v16044_v53, %v2614_v31 }
 0x2dc   : > { %23605 = vst [vmem:[#allocation167_spill] sm:$0xff] %v16649_v8  ;;  %23606 = vst [vmem:[#allocation168_spill] sm:$0xff] %v16652_v35  ;;  %v2654_v39 = vsel %vm2647_vm2, %v16040_v11, %v2644_v26  ;;  %v16731_v61 = vrot.slane %v2945_v27, %v16369_v2  ;;  %v16735_v47 = vmul.f32 %v16406_v24, %v16700_v62  ;;  %v2608_v9 = vpop.permute.xlu0 %2607  ;;  %v2646_v60 = vpop.permute.xlu1 %2645 }
 0x2dd   : > { %23607 = vst [vmem:[#allocation169_spill] sm:$0xff] %v16656_v21  ;;  %23608 = vst [vmem:[#allocation170_spill] sm:$0xff] %v16661_v54  ;;  %v2732_v54 = vmul.f32 %v16409_v36, %v2671_v63  ;;  %v16739_v8 = vmul.f32 %v16417_v42, %v2671_v63  ;;  %v16750_v27 = vmul.f32 %v16406_v24, %v16695_v32  ;;  %2853 = vrot.lane.b32.xlu1 %v15620_v3, %s14893_s23 }
 0x2de   : > { %23609 = vst [vmem:[#allocation171_spill] sm:$0xff] %v16670_v13  ;;  %23610 = vst [vmem:[#allocation172_spill] sm:$0xff] %v16674_v20  ;;  %v16755_v26 = vsel %vm2647_vm2, %v2614_v31, %v16058_v34  ;;  %v2727_v63 = vmul.f32 %v16423_v55, %v16716_v12  ;;  %v2655_v7 = vsel %vm2647_vm2, %v16058_v34, %v2646_v60  ;;  %2867 = vrot.lane.b32.xlu0 %v15995_v6, %s14893_s23  ;;  %v23647_v13 = vld [vmem:[#allocation60_spill] sm:$0xff] }
 0x2df   : > { %23611 = vst [vmem:[#allocation173_spill] sm:$0xff] %v16680_v19  ;;  %23612 = vst [vmem:[#allocation174_spill] sm:$0xff] %v16684_v45  ;;  %v16744_v45 = vsel %vm2647_vm2, %v2612_v58, %v16040_v11  ;;  %v13968_v19 = vpack.c.bf16 %v2732_v54, %v2728_v28  ;;  %v16775_v11 = vsel %vm2647_vm2, %v2646_v60, %v16044_v53 }
 0x2e0   : > { %23613 = vst [vmem:[#allocation175_spill] sm:$0xff] %v16690_v23  ;;  %23614 = vst [vmem:[#allocation176_spill] sm:$0xff] %v16695_v32  ;;  %v16765_v32 = vmul.f32 %v16437_v18, %v2654_v39  ;;  %v2729_v31 = vmul.f32 %v16414_v41, %v16744_v45  ;;  %v2668_v58 = vsel %vm2647_vm2, %v16054_v15, %v2608_v9  ;;  %v2610_v50 = vpop.permute.xlu1 %2609  ;;  %v23629_v23 = vld [vmem:[#allocation125_spill] sm:$0xff] }
 0x2e1   : > { %23615 = vst [vmem:[#allocation177_spill] sm:$0xff] %v16700_v62  ;;  %23616 = vst [vmem:[#allocation178_spill] sm:$0xff] %v16703_v52  ;;  %v2730_v62 = vmul.f32 %v16434_v57, %v2654_v39  ;;  %v2733_v39 = vmul.f32 %v16414_v41, %v16755_v26  ;;  %v2731_v28 = vmul.f32 %v16423_v55, %v16775_v11  ;;  %3807 = vmatprep.subr.bf16.mxu0 %v13968_v19  ;;  %v23627_v19 = vld [vmem:[#allocation53_spill] sm:$0xff] }
 0x2e2   : > { %23617 = vst [vmem:[#allocation179_spill] sm:$0xff] %v16711_v40  ;;  %23618 = vst [vmem:[#allocation180_spill] sm:$0xff] %v16720_v22  ;;  %v2734_v34 = vmul.f32 %v16434_v57, %v2655_v7  ;;  %v16788_v54 = vmul.f32 %v16437_v18, %v2655_v7  ;;  %v2720_v60 = vmul.f32 %v16409_v36, %v2668_v58  ;;  %v2640_v40 = vpop.permute.xlu0 %2639 }
 0x2e3   : > { %23619 = vst [vmem:[#allocation181_spill] sm:$0xff] %v16731_v61  ;;  %23620 = vst [vmem:[#allocation182_spill] sm:$0xff] %v16735_v47  ;;  %v16794_v53 = vmul.f32 %v16417_v42, %v2668_v58  ;;  %v13967_v20 = vpack.c.bf16 %v2731_v28, %v2727_v63  ;;  %v2652_v22 = vsel %vm2647_vm2, %v23627_v19, %v2640_v40  ;;  %v23628_v58 = vld [vmem:[#allocation37_spill] sm:$0xff] }
 0x2e4   : > { %23621 = vst [vmem:[#allocation183_spill] sm:$0xff] %v16739_v8  ;;  %23622 = vst [vmem:[#allocation184_spill] sm:$0xff] %v16750_v27  ;;  %v16798_v8 = vrot.slane %v16622_v17, %v16362_v29  ;;  %v13970_v3 = vpack.c.bf16 %v2734_v34, %v2730_v62  ;;  %v16811_v35 = vsel %vm1256_vm1, %v23629_v23, %v23628_v58  ;;  %v23631_v29 = vld [vmem:[#allocation55_spill] sm:$0xff]  ;;  %v23632_v62 = vld [vmem:[#allocation29_spill] sm:$0xff] }
 0x2e5   : > { %23623 = vst [vmem:[#allocation185_spill] sm:$0xff] %v16765_v32  ;;  %23624 = vst [vmem:[#allocation186_spill] sm:$0xff] %v16788_v54  ;;  %v2669_v21 = vsel %vm2647_vm2, %v23631_v29, %v2610_v50  ;;  %v16819_v63 = vsel %vm2647_vm2, %v2640_v40, %v16054_v15  ;;  %2883 = vrot.lane.b32.xlu0 %v23632_v62, %s14893_s23  ;;  %v16825_v28 = vrot.slane %v16622_v17, %v16369_v2  ;;  %v23635_v15 = vld [vmem:[#allocation43_spill] sm:$0xff]  ;;  %v23636_v40 = vld [vmem:[#allocation14_spill] sm:$0xff]  ;;  %v2642_v32 = vpop.permute.xlu1 %2641 }
 0x2e6   : > { %23625 = vst [vmem:[#allocation187_spill] sm:$0xff] %v16794_v53  ;;  %23626 = vst [vmem:[#allocation188_spill] sm:$0xff] %v16798_v8  ;;  %v13969_v34 = vpack.c.bf16 %v2733_v39, %v2729_v31  ;;  %v2724_v23 = vmul.f32 %v16409_v36, %v2669_v21  ;;  %v16829_v58 = vmul.f32 %v16417_v42, %v2669_v21  ;;  %2869 = vrot.lane.b32.xlu1 %v23635_v15, %s14893_s23  ;;  %v23638_v31 = vld [vmem:[#allocation59_spill] sm:$0xff] }
 0x2e7   : > { %23630 = vst [vmem:[#allocation53_spill] sm:$0xff] %v16811_v35  ;;  %23633 = vst [vmem:[#allocation37_spill] sm:$0xff] %v16825_v28  ;;  %v16834_v7 = vsel %vm2647_vm2, %v2608_v9, %v23627_v19  ;;  %v16842_v17 = vsel %vm1256_vm1, %v16475_v59, %v23636_v40  ;;  %v16847_v39 = vsel %vm2647_vm2, %v2610_v50, %v23638_v31  ;;  %3808 = vmatpush1.bf16.msra.mxu0 %v13967_v20  ;;  %v2604_v9 = vpop.permute.xlu0 %2603 }
 0x2e8   : > { %23634 = vst [vmem:[#allocation125_spill] sm:$0xff] %v16829_v58  ;;  %23637 = vst [vmem:[#allocation55_spill] sm:$0xff] %v16842_v17  ;;  %3880 = vmatprep.subr.bf16.mxu1 %v13970_v3  ;;  %v2722_v21 = vmul.f32 %v16434_v57, %v2652_v22  ;;  %v2719_v54 = vmul.f32 %v16423_v55, %v16819_v63  ;;  %v16855_v59 = vmul.f32 %v16437_v18, %v2652_v22  ;;  %v23641_v22 = vld [vmem:[#allocation50_spill] sm:$0xff] }
 0x2e9   : > { %3881 = vmatpush1.bf16.msra.mxu1 %v13969_v34  ;;  %v13964_v40 = vpack.c.bf16 %v2724_v23, %v2720_v60  ;;  %v2721_v50 = vmul.f32 %v16414_v41, %v16834_v7  ;;  %v2653_v3 = vsel %vm2647_vm2, %v23638_v31, %v2642_v32  ;;  %v16865_v20 = vsel %vm2647_vm2, %v2642_v32, %v23631_v29  ;;  %v23640_v34 = vld [vmem:[#allocation57_spill] sm:$0xff]  ;;  %v23643_v29 = vld [vmem:[#allocation32_spill] sm:$0xff]  ;;  %v2606_v52 = vpop.permute.xlu1 %2605 }
 0x2ea   : > { %23639 = vst [vmem:[#allocation14_spill] sm:$0xff] %v16855_v59  ;;  %v2666_v19 = vsel %vm2647_vm2, %v23640_v34, %v2604_v9  ;;  %2899 = vrot.lane.b32.xlu0 %v23641_v22, %s14893_s23  ;;  %v2725_v60 = vmul.f32 %v16414_v41, %v16847_v39  ;;  %v2723_v23 = vmul.f32 %v16423_v55, %v16865_v20  ;;  %v23644_v32 = vld [vmem:[#allocation13_spill] sm:$0xff]  ;;  %v23655_v59 = vld [vmem:[#allocation54_spill] sm:$0xff] }
 0x2eb   : > { %v2726_v31 = vmul.f32 %v16434_v57, %v2653_v3  ;;  %v16878_v53 = vmul.f32 %v16437_v18, %v2653_v3  ;;  %2885 = vrot.lane.b32.xlu1 %v23643_v29, %s14893_s23  ;;  %v16886_v58 = vsel %vm1256_vm1, %v16573_v5, %v23644_v32  ;;  %3809 = vmatprep.subr.bf16.mxu0 %v13964_v40  ;;  %v2636_v2 = vpop.permute.xlu0 %2635  ;;  %v23648_v40 = vld [vmem:[#allocation36_spill] sm:$0xff]  ;;  %v23649_v32 = vld [vmem:[#allocation127_spill] sm:$0xff] }
 0x2ec   : > { %23645 = vst [vmem:[#allocation57_spill] sm:$0xff] %v16886_v58  ;;  %v2712_v47 = vmul.f32 %v16409_v36, %v2666_v19  ;;  %v16890_v27 = vmul.f32 %v16417_v42, %v2666_v19  ;;  %v13963_v28 = vpack.c.bf16 %v2723_v23, %v2719_v54  ;;  %v2650_v5 = vsel %vm2647_vm2, %v23647_v13, %v2636_v2  ;;  %v23652_v54 = vld [vmem:[#allocation62_spill] sm:$0xff] }
 0x2ed   : > { %23642 = vst [vmem:[#allocation59_spill] sm:$0xff] %v16878_v53  ;;  %v13966_v61 = vpack.c.bf16 %v2726_v31, %v2722_v21  ;;  %v16903_v19 = vsel %vm1256_vm1, %v23649_v32, %v23648_v40  ;;  %v16907_v4 = vmul.f32 %v16406_v24, %v16842_v17  ;;  %v2667_v23 = vsel %vm2647_vm2, %v23652_v54, %v2606_v52  ;;  %v23653_v31 = vld [vmem:[#allocation19_spill] sm:$0xff] }
 0x2ee   : > { %23646 = vst [vmem:[#allocation13_spill] sm:$0xff] %v16890_v27  ;;  %23650 = vst [vmem:[#allocation60_spill] sm:$0xff] %v16903_v19  ;;  %v16915_v21 = vsel %vm2647_vm2, %v2636_v2, %v23640_v34  ;;  %2847 = vrot.lane.b32.xlu0 %v23653_v31, %s14893_s23  ;;  %v13965_v8 = vpack.c.bf16 %v2725_v60, %v2721_v50  ;;  %v2716_v40 = vmul.f32 %v16409_v36, %v2667_v23  ;;  %v23657_v34 = vld [vmem:[#allocation64_spill] sm:$0xff] }
 0x2ef   : > { %23651 = vst [vmem:[#allocation36_spill] sm:$0xff] %v16907_v4  ;;  %v16921_v32 = vmul.f32 %v16417_v42, %v2667_v23  ;;  %v16926_v3 = vsel %vm2647_vm2, %v2604_v9, %v23647_v13  ;;  %2901 = vrot.lane.b32.xlu1 %v23655_v59, %s14893_s23  ;;  %v16932_v2 = vmul.f32 %v16406_v24, %v16886_v58  ;;  %v2600_v23 = vpop.permute.xlu0 %2599  ;;  %v2638_v9 = vpop.permute.xlu1 %2637 }
 0x2f0   : > { %v16937_v50 = vsel %vm2647_vm2, %v2606_v52, %v23657_v34  ;;  %3810 = vmatpush1.bf16.msra.mxu0 %v13963_v28  ;;  %3882 = vmatprep.subr.bf16.mxu1 %v13966_v61  ;;  %v2714_v60 = vmul.f32 %v16434_v57, %v2650_v5  ;;  %v2711_v53 = vmul.f32 %v16423_v55, %v16915_v21 }
 0x2f1   : > { %23654 = vst [vmem:[#allocation127_spill] sm:$0xff] %v16921_v32  ;;  %23656 = vst [vmem:[#allocation62_spill] sm:$0xff] %v16932_v2  ;;  %3883 = vmatpush1.bf16.msra.mxu1 %v13965_v8  ;;  %v16946_v25 = vmul.f32 %v16437_v18, %v2650_v5  ;;  %v13960_v52 = vpack.c.bf16 %v2716_v40, %v2712_v47  ;;  %v2713_v61 = vmul.f32 %v16414_v41, %v16926_v3  ;;  %v23659_v8 = vld [vmem:[#allocation63_spill] sm:$0xff]  ;;  %v23660_v5 = vld [vmem:[#allocation17_spill] sm:$0xff] }
 0x2f2   : > { %v2651_v28 = vsel %vm2647_vm2, %v23657_v34, %v2638_v9  ;;  %v16956_v13 = vsel %vm2647_vm2, %v2638_v9, %v23652_v54  ;;  %v2664_v27 = vsel %vm2647_vm2, %v23659_v8, %v2600_v23  ;;  %2863 = vrot.lane.b32.xlu0 %v23660_v5, %s14893_s23  ;;  %v2717_v47 = vmul.f32 %v16414_v41, %v16937_v50  ;;  %v23662_v54 = vld [vmem:[#allocation22_spill] sm:$0xff] }
 0x2f3   : > { %23658 = vst [vmem:[#allocation64_spill] sm:$0xff] %v16946_v25  ;;  %v2715_v40 = vmul.f32 %v16423_v55, %v16956_v13  ;;  %v2718_v34 = vmul.f32 %v16434_v57, %v2651_v28  ;;  %v16969_v32 = vmul.f32 %v16437_v18, %v2651_v28  ;;  %2849 = vrot.lane.b32.xlu1 %v23662_v54, %s14893_s23  ;;  %v23663_v9 = vld [vmem:[#allocation38_spill] sm:$0xff]  ;;  %v2632_v31 = vpop.permute.xlu0 %2631  ;;  %v2602_v59 = vpop.permute.xlu1 %2601 }
 0x2f4   : > { %v16977_v10 = vsel %vm1256_vm1, %v16491_v16, %v23663_v9  ;;  %3811 = vmatprep.subr.bf16.mxu0 %v13960_v52  ;;  %v2704_v58 = vmul.f32 %v16409_v36, %v2664_v27  ;;  %v16981_v17 = vmul.f32 %v16417_v42, %v2664_v27  ;;  %v2648_v16 = vsel %vm2647_vm2, %v23666_v37, %v2632_v31  ;;  %v23669_v9 = vld [vmem:[#allocation66_spill] sm:$0xff] }
 0x2f5   : > { %23661 = vst [vmem:[#allocation63_spill] sm:$0xff] %v16969_v32  ;;  %23664 = vst [vmem:[#allocation38_spill] sm:$0xff] %v16977_v10  ;;  %v13959_v49 = vpack.c.bf16 %v2715_v40, %v2711_v53  ;;  %v13962_v5 = vpack.c.bf16 %v2718_v34, %v2714_v60  ;;  %v16992_v52 = vmul.f32 %v16406_v24, %v16903_v19  ;;  %v23670_v40 = vld [vmem:[#allocation27_spill] sm:$0xff]  ;;  %vm7703_vm1 = vcmp.lt.s32.totalorder %v16255_v44, 120 }
 0x2f6   : > { %23665 = vst [vmem:[#allocation189_spill] sm:$0xff] %v16981_v17  ;;  %v16996_v27 = vmul.f32 %v16406_v24, %v16811_v35  ;;  %v2665_v53 = vsel %vm2647_vm2, %v23669_v9, %v2602_v59  ;;  %v17004_v60 = vsel %vm2647_vm2, %v2632_v31, %v23659_v8  ;;  %2879 = vrot.lane.b32.xlu0 %v23670_v40, %s14893_s23  ;;  %v23672_v32 = vld [vmem:[#allocation39_spill] sm:$0xff]  ;;  %v23674_v8 = vld [vmem:[#allocation68_spill] sm:$0xff] }
 0x2f7   : > { %23667 = vst [vmem:[#allocation65_spill] sm:$0xff] %v16992_v52  ;;  %v13961_v34 = vpack.c.bf16 %v2717_v47, %v2713_v61  ;;  %v2708_v54 = vmul.f32 %v16409_v36, %v2665_v53  ;;  %v17010_v28 = vmul.f32 %v16417_v42, %v2665_v53  ;;  %v17015_v25 = vsel %vm2647_vm2, %v2600_v23, %v23666_v37  ;;  %v2348_v36 = vpop.permute.xlu0 %2347  ;;  %v2634_v23 = vpop.permute.xlu1 %2633  ;;  %v23686_v52 = vld [vmem:[#allocation69_spill] sm:$0xff] }
 0x2f8   : > { %23668 = vst [vmem:[#allocation190_spill] sm:$0xff] %v16996_v27  ;;  %2865 = vrot.lane.b32.xlu1 %v23672_v32, %s14893_s23  ;;  %v17021_v31 = vmul.f32 %v16406_v24, %v16977_v10  ;;  %v17026_v61 = vsel %vm2647_vm2, %v2602_v59, %v23674_v8  ;;  %3812 = vmatpush1.bf16.msra.mxu0 %v13959_v49 }
 0x2f9   : > { %23671 = vst [vmem:[#allocation66_spill] sm:$0xff] %v17010_v28  ;;  %3884 = vmatprep.subr.bf16.mxu1 %v13962_v5  ;;  %v2706_v42 = vmul.f32 %v16434_v57, %v2648_v16  ;;  %v2703_v47 = vmul.f32 %v16423_v55, %v17004_v60  ;;  %v17034_v24 = vmul.f32 %v16437_v18, %v2648_v16  ;;  %v23677_v16 = vld [vmem:[#allocation48_spill] sm:$0xff] }
 0x2fa   : > { %23673 = vst [vmem:[#allocation191_spill] sm:$0xff] %v17021_v31  ;;  %3885 = vmatpush1.bf16.msra.mxu1 %v13961_v34  ;;  %v13956_v53 = vpack.c.bf16 %v2708_v54, %v2704_v58  ;;  %v2705_v59 = vmul.f32 %v16414_v41, %v17015_v25  ;;  %v2649_v49 = vsel %vm2647_vm2, %v23674_v8, %v2634_v23  ;;  %v23676_v34 = vld [vmem:[#allocation67_spill] sm:$0xff] }
 0x2fb   : > { %23675 = vst [vmem:[#allocation68_spill] sm:$0xff] %v17034_v24  ;;  %v17044_v5 = vsel %vm2647_vm2, %v2634_v23, %v23669_v9  ;;  %v2406_v37 = vsel %vm2383_vm3, %v23676_v34, %v2348_v36  ;;  %2895 = vrot.lane.b32.xlu0 %v23677_v16, %s14893_s23  ;;  %v2709_v58 = vmul.f32 %v16414_v41, %v17026_v61  ;;  %v23679_v9 = vld [vmem:[#allocation30_spill] sm:$0xff]  ;;  %v23683_v41 = vld [vmem:[#allocation132_spill] sm:$0xff]  ;;  %v2350_v19 = vpop.permute.xlu1 %2349  ;;  %v23693_v24 = vld [vmem:[#allocation51_spill] sm:$0xff]  ;;  %vm11222_vm2 = vcmask 523264  }
 0x2fc   : > { %v2707_v54 = vmul.f32 %v16423_v55, %v17044_v5  ;;  %v2710_v8 = vmul.f32 %v16434_v57, %v2649_v49  ;;  %v17057_v17 = vmul.f32 %v16437_v18, %v2649_v49  ;;  %2881 = vrot.lane.b32.xlu1 %v23679_v9, %s14893_s23  ;;  %v23680_v23 = vld [vmem:[#allocation126_spill] sm:$0xff]  ;;  %3813 = vmatprep.subr.bf16.mxu0 %v13956_v53  ;;  %v23684_v55 = vld [vmem:[#allocation135_spill] sm:$0xff]  ;;  %v2380_v57 = vpop.permute.xlu0 %2379 }
 0x2fd   : > { %v17063_v28 = vmul.f32 %v23680_v23, %v16755_v26  ;;  %v17067_v4 = vmul.f32 %v23680_v23, %v16744_v45  ;;  %v2464_v2 = vmul.f32 %v23683_v41, %v2406_v37  ;;  %v17071_v10 = vmul.f32 %v23684_v55, %v2406_v37  ;;  %v23687_v45 = vld [vmem:[#allocation131_spill] sm:$0xff]  ;;  %v23690_v37 = vld [vmem:[#allocation70_spill] sm:$0xff] }
 0x2fe   : > { %23678 = vst [vmem:[#allocation67_spill] sm:$0xff] %v17057_v17  ;;  %v13955_v18 = vpack.c.bf16 %v2707_v54, %v2703_v47  ;;  %v13958_v35 = vpack.c.bf16 %v2710_v8, %v2706_v42  ;;  %v2390_v26 = vsel %vm2383_vm3, %v23686_v52, %v2380_v57  ;;  %v17084_v53 = vmul.f32 %v23687_v45, %v16716_v12  ;;  %v23691_v54 = vld [vmem:[#allocation45_spill] sm:$0xff] }
 0x2ff   : > { %23681 = vst [vmem:[#allocation126_spill] sm:$0xff] %v17063_v28  ;;  %23682 = vst [vmem:[#allocation192_spill] sm:$0xff] %v17067_v4  ;;  %v17080_v28 = vmul.f32 %v23687_v45, %v16775_v11  ;;  %v2407_v47 = vsel %vm2383_vm3, %v23690_v37, %v2350_v19  ;;  %v17092_v42 = vsel %vm2383_vm3, %v2380_v57, %v23676_v34  ;;  %1483 = vrot.lane.b32.xlu0 %v23691_v54, %s14889_s18  ;;  %v23695_v57 = vld [vmem:[#allocation72_spill] sm:$0xff]  ;;  %v23696_v17 = vld [vmem:[#allocation137_spill] sm:$0xff] }
 0x300   : > { %23685 = vst [vmem:[#allocation132_spill] sm:$0xff] %v17071_v10  ;;  %23689 = vst [vmem:[#allocation69_spill] sm:$0xff] %v17084_v53  ;;  %v13957_v8 = vpack.c.bf16 %v2709_v58, %v2705_v59  ;;  %v2468_v11 = vmul.f32 %v23683_v41, %v2407_v47  ;;  %v17098_v49 = vmul.f32 %v23684_v55, %v2407_v47  ;;  %2897 = vrot.lane.b32.xlu1 %v23693_v24, %s14893_s23  ;;  %v2344_v47 = vpop.permute.xlu0 %2343  ;;  %v23706_v24 = vld [vmem:[#allocation73_spill] sm:$0xff] }
 0x301   : > { %23688 = vst [vmem:[#allocation135_spill] sm:$0xff] %v17080_v28  ;;  %v17103_v12 = vsel %vm2383_vm3, %v2348_v36, %v23686_v52  ;;  %v17109_v34 = vmul.f32 %v23680_v23, %v16834_v7  ;;  %v17114_v59 = vsel %vm2383_vm3, %v2350_v19, %v23695_v57  ;;  %3814 = vmatpush1.bf16.msra.mxu0 %v13955_v18  ;;  %v2382_v36 = vpop.permute.xlu1 %2381  ;;  %v23698_v19 = vld [vmem:[#allocation134_spill] sm:$0xff] }
 0x302   : > { %23692 = vst [vmem:[#allocation131_spill] sm:$0xff] %v17098_v49  ;;  %3886 = vmatprep.subr.bf16.mxu1 %v13958_v35  ;;  %v2466_v58 = vmul.f32 %v16481_v51, %v2390_v26  ;;  %v2463_v28 = vmul.f32 %v23696_v17, %v17092_v42  ;;  %v17122_v7 = vmul.f32 %v16484_v14, %v2390_v26  ;;  %v23700_v26 = vld [vmem:[#allocation33_spill] sm:$0xff] }
 0x303   : > { %23694 = vst [vmem:[#allocation70_spill] sm:$0xff] %v17109_v34  ;;  %3887 = vmatpush1.bf16.msra.mxu1 %v13957_v8  ;;  %v13952_v53 = vpack.c.bf16 %v2468_v11, %v2464_v2  ;;  %v2465_v34 = vmul.f32 %v23698_v19, %v17103_v12  ;;  %v2391_v35 = vsel %vm2383_vm3, %v23695_v57, %v2382_v36  ;;  %v23699_v8 = vld [vmem:[#allocation71_spill] sm:$0xff] }
 0x304   : > { %23697 = vst [vmem:[#allocation72_spill] sm:$0xff] %v17122_v7  ;;  %v17132_v18 = vsel %vm2383_vm3, %v2382_v36, %v23690_v37  ;;  %v2404_v52 = vsel %vm2383_vm3, %v23699_v8, %v2344_v47  ;;  %1499 = vrot.lane.b32.xlu0 %v23700_v26, %s14889_s18  ;;  %v2469_v2 = vmul.f32 %v23698_v19, %v17114_v59  ;;  %v23702_v37 = vld [vmem:[#allocation49_spill] sm:$0xff]  ;;  %v2376_v27 = vpop.permute.xlu0 %2375  ;;  %v23712_v7 = vld [vmem:[#allocation35_spill] sm:$0xff] }
 0x305   : > { %v2467_v11 = vmul.f32 %v23696_v17, %v17132_v18  ;;  %v2470_v57 = vmul.f32 %v16481_v51, %v2391_v35  ;;  %v17145_v10 = vmul.f32 %v16484_v14, %v2391_v35  ;;  %1485 = vrot.lane.b32.xlu1 %v23702_v37, %s14889_s18  ;;  %v17151_v36 = vmul.f32 %v23680_v23, %v16847_v39  ;;  %v2346_v37 = vpop.permute.xlu1 %2345 }
 0x306   : > { %v17155_v49 = vmul.f32 %v23687_v45, %v16819_v63  ;;  %3815 = vmatprep.subr.bf16.mxu0 %v13952_v53  ;;  %v2456_v4 = vmul.f32 %v23683_v41, %v2404_v52  ;;  %v17159_v31 = vmul.f32 %v23684_v55, %v2404_v52  ;;  %v2388_v39 = vsel %vm2383_vm3, %v23706_v24, %v2376_v27  ;;  %v23709_v52 = vld [vmem:[#allocation74_spill] sm:$0xff] }
 0x307   : > { %23701 = vst [vmem:[#allocation137_spill] sm:$0xff] %v17145_v10  ;;  %23703 = vst [vmem:[#allocation134_spill] sm:$0xff] %v17151_v36  ;;  %v13951_v35 = vpack.c.bf16 %v2467_v11, %v2463_v28  ;;  %v13954_v54 = vpack.c.bf16 %v2470_v57, %v2466_v58  ;;  %v17168_v63 = vmul.f32 %v23687_v45, %v16865_v20  ;;  %v23710_v11 = vld [vmem:[#allocation56_spill] sm:$0xff] }
 0x308   : > { %23704 = vst [vmem:[#allocation71_spill] sm:$0xff] %v17155_v49  ;;  %23705 = vst [vmem:[#allocation193_spill] sm:$0xff] %v17159_v31  ;;  %v17172_v53 = vmul.f32 %v23680_v23, %v16926_v3  ;;  %v2405_v28 = vsel %vm2383_vm3, %v23709_v52, %v2346_v37  ;;  %v17180_v58 = vsel %vm2383_vm3, %v2376_v27, %v23699_v8  ;;  %1515 = vrot.lane.b32.xlu0 %v23710_v11, %s14889_s18  ;;  %v23714_v8 = vld [vmem:[#allocation76_spill] sm:$0xff] }
 0x309   : > { %23707 = vst [vmem:[#allocation73_spill] sm:$0xff] %v17168_v63  ;;  %v13953_v57 = vpack.c.bf16 %v2469_v2, %v2465_v34  ;;  %v2460_v20 = vmul.f32 %v23683_v41, %v2405_v28  ;;  %v17186_v26 = vmul.f32 %v23684_v55, %v2405_v28  ;;  %v17191_v3 = vsel %vm2383_vm3, %v2344_v47, %v23706_v24  ;;  %v2340_v28 = vpop.permute.xlu0 %2339  ;;  %v2378_v47 = vpop.permute.xlu1 %2377  ;;  %v17212_v49 = vld [vmem:[#allocation6 + $0xc] ss:$56 sps:$4 sm:$0xff]  }
 0x30a   : > { %23708 = vst [vmem:[#allocation194_spill] sm:$0xff] %v17172_v53  ;;  %1501 = vrot.lane.b32.xlu1 %v23712_v7, %s14889_s18  ;;  %v17197_v27 = vmul.f32 %v23680_v23, %v16937_v50  ;;  %v17202_v34 = vsel %vm2383_vm3, %v2346_v37, %v23714_v8  ;;  %3816 = vmatpush1.bf16.msra.mxu0 %v13951_v35  ;;  %v23722_v7 = vld [vmem:[#allocation77_spill] sm:$0xff] }
 0x30b   : > { %23711 = vst [vmem:[#allocation74_spill] sm:$0xff] %v17186_v26  ;;  %3888 = vmatprep.subr.bf16.mxu1 %v13954_v54  ;;  %v2458_v2 = vmul.f32 %v16481_v51, %v2388_v39  ;;  %v2455_v10 = vmul.f32 %v23696_v17, %v17180_v58  ;;  %v17210_v50 = vmul.f32 %v16484_v14, %v2388_v39 }
 0x30c   : > { %23713 = vst [vmem:[#allocation195_spill] sm:$0xff] %v17197_v27  ;;  %3889 = vmatpush1.bf16.msra.mxu1 %v13953_v57  ;;  %v13948_v63 = vpack.c.bf16 %v2460_v20, %v2456_v4  ;;  %v2457_v54 = vmul.f32 %v23698_v19, %v17191_v3  ;;  %v2389_v37 = vsel %vm2383_vm3, %v23714_v8, %v2378_v47  ;;  %v23716_v57 = vld [vmem:[#allocation75_spill] sm:$0xff] }
 0x30d   : > { %23715 = vst [vmem:[#allocation76_spill] sm:$0xff] %v17210_v50  ;;  %v17222_v35 = vsel %vm2383_vm3, %v2378_v47, %v23709_v52  ;;  %v2402_v39 = vsel %vm2383_vm3, %v23716_v57, %v2340_v28  ;;  %1479 = vrot.lane.b32.xlu0 %v16010_v0, %s14889_s18  ;;  %v2461_v4 = vmul.f32 %v23698_v19, %v17202_v34  ;;  %v23718_v52 = vld [vmem:[#allocation61_spill] sm:$0xff]  ;;  %v2372_v53 = vpop.permute.xlu0 %2371  ;;  %v2342_v0 = vpop.permute.xlu1 %2341 }
 0x30e   : > { %v2459_v20 = vmul.f32 %v23696_v17, %v17222_v35  ;;  %v2462_v8 = vmul.f32 %v16481_v51, %v2389_v37  ;;  %v17235_v24 = vmul.f32 %v16484_v14, %v2389_v37  ;;  %1517 = vrot.lane.b32.xlu1 %v23718_v52, %s14889_s18  ;;  %v17241_v47 = vmul.f32 %v23687_v45, %v16956_v13 }
 0x30f   : > { %v17245_v31 = vmul.f32 %v23687_v45, %v16915_v21  ;;  %3817 = vmatprep.subr.bf16.mxu0 %v13948_v63  ;;  %v2448_v26 = vmul.f32 %v23683_v41, %v2402_v39  ;;  %v17249_v27 = vmul.f32 %v23684_v55, %v2402_v39  ;;  %v2386_v13 = vsel %vm2383_vm3, %v23722_v7, %v2372_v53 }
 0x310   : > { %23717 = vst [vmem:[#allocation75_spill] sm:$0xff] %v17235_v24  ;;  %23719 = vst [vmem:[#allocation196_spill] sm:$0xff] %v17241_v47  ;;  %v13947_v37 = vpack.c.bf16 %v2459_v20, %v2455_v10  ;;  %v13950_v52 = vpack.c.bf16 %v2462_v8, %v2458_v2  ;;  %3839 = vmatprep.mubr.bf16.mxu0 %v17212_v49  ;;  %v17259_v21 = vmul.f32 %v23680_v23, %v17026_v61  ;;  %v23725_v10 = vld [vmem:[#allocation78_spill] sm:$0xff]  ;;  %v23736_v47 = vld [vmem:[#allocation81_spill] sm:$0xff] }
 0x311   : > { %23720 = vst [vmem:[#allocation197_spill] sm:$0xff] %v17245_v31  ;;  %23721 = vst [vmem:[#allocation198_spill] sm:$0xff] %v17249_v27  ;;  %v17263_v63 = vmul.f32 %v23680_v23, %v17015_v25  ;;  %v2403_v39 = vsel %vm2383_vm3, %v23725_v10, %v2342_v0  ;;  %v17271_v2 = vsel %vm2383_vm3, %v2372_v53, %v23716_v57  ;;  %1495 = vrot.lane.b32.xlu0 %v15664_v56, %s14889_s18  ;;  %v23728_v53 = vld [vmem:[#allocation80_spill] sm:$0xff] }
 0x312   : > { %23723 = vst [vmem:[#allocation77_spill] sm:$0xff] %v17259_v21  ;;  %v13949_v20 = vpack.c.bf16 %v2461_v4, %v2457_v54  ;;  %v2452_v61 = vmul.f32 %v23683_v41, %v2403_v39  ;;  %v17277_v8 = vmul.f32 %v23684_v55, %v2403_v39  ;;  %v17282_v25 = vsel %vm2383_vm3, %v2340_v28, %v23722_v7  ;;  %v2336_v4 = vpop.permute.xlu0 %2335  ;;  %v2374_v28 = vpop.permute.xlu1 %2373 }
 0x313   : > { %23724 = vst [vmem:[#allocation199_spill] sm:$0xff] %v17263_v63  ;;  %1481 = vrot.lane.b32.xlu1 %v16028_v33, %s14889_s18  ;;  %v17288_v23 = vmul.f32 %v23687_v45, %v17004_v60  ;;  %v17293_v54 = vsel %vm2383_vm3, %v2342_v0, %v23728_v53  ;;  %3818 = vmatpush1.bf16.msra.mxu0 %v13947_v37 }
 0x314   : > { %23726 = vst [vmem:[#allocation78_spill] sm:$0xff] %v17277_v8  ;;  %3890 = vmatprep.subr.bf16.mxu1 %v13950_v52  ;;  %v2450_v57 = vmul.f32 %v16481_v51, %v2386_v13  ;;  %v2447_v60 = vmul.f32 %v23696_v17, %v17271_v2  ;;  %v17302_v39 = vmul.f32 %v16484_v14, %v2386_v13 }
 0x315   : > { %23727 = vst [vmem:[#allocation200_spill] sm:$0xff] %v17288_v23  ;;  %3891 = vmatpush1.bf16.msra.mxu1 %v13949_v20  ;;  %v13944_v0 = vpack.c.bf16 %v2452_v61, %v2448_v26  ;;  %v2449_v52 = vmul.f32 %v23698_v19, %v17282_v25  ;;  %v2387_v37 = vsel %vm2383_vm3, %v23728_v53, %v2374_v28  ;;  %v23730_v20 = vld [vmem:[#allocation79_spill] sm:$0xff] }
 0x316   : > { %23729 = vst [vmem:[#allocation80_spill] sm:$0xff] %v17302_v39  ;;  %v17312_v36 = vsel %vm2383_vm3, %v2374_v28, %v23725_v10  ;;  %v2400_v7 = vsel %vm2383_vm3, %v23730_v20, %v2336_v4  ;;  %1511 = vrot.lane.b32.xlu0 %v16066_v48, %s14889_s18  ;;  %v2453_v26 = vmul.f32 %v23698_v19, %v17293_v54  ;;  %v23733_v28 = vld [vmem:[#allocation136_spill] sm:$0xff]  ;;  %v2368_v8 = vpop.permute.xlu0 %2367 }
 0x317   : > { %v2451_v13 = vmul.f32 %v23696_v17, %v17312_v36  ;;  %v2454_v61 = vmul.f32 %v16481_v51, %v2387_v37  ;;  %v17325_v53 = vmul.f32 %v16484_v14, %v2387_v37  ;;  %1497 = vrot.lane.b32.xlu1 %v15676_v43, %s14889_s18  ;;  %v17331_v10 = vmul.f32 %v23687_v45, %v17044_v5  ;;  %v2338_v43 = vpop.permute.xlu1 %2337 }
 0x318   : > { %v17335_v50 = vmul.f32 %v23733_v28, %v17103_v12  ;;  %3819 = vmatprep.subr.bf16.mxu0 %v13944_v0  ;;  %v2440_v24 = vmul.f32 %v23683_v41, %v2400_v7  ;;  %v17339_v27 = vmul.f32 %v23684_v55, %v2400_v7  ;;  %v2384_v5 = vsel %vm2383_vm3, %v23736_v47, %v2368_v8  ;;  %v23739_v7 = vld [vmem:[#allocation82_spill] sm:$0xff] }
 0x319   : > { %23731 = vst [vmem:[#allocation79_spill] sm:$0xff] %v17325_v53  ;;  %23732 = vst [vmem:[#allocation201_spill] sm:$0xff] %v17331_v10  ;;  %v13943_v37 = vpack.c.bf16 %v2451_v13, %v2447_v60  ;;  %v13946_v23 = vpack.c.bf16 %v2454_v61, %v2450_v57  ;;  %3912 = vmatprep.mubr.bf16.mxu1 %v17212_v49  ;;  %v17349_v45 = vmul.f32 %v23733_v28, %v17114_v59  ;;  %v23751_v53 = vld [vmem:[#allocation85_spill] sm:$0xff] }
 0x31a   : > { %23734 = vst [vmem:[#allocation136_spill] sm:$0xff] %v17335_v50  ;;  %23735 = vst [vmem:[#allocation202_spill] sm:$0xff] %v17339_v27  ;;  %v17353_v12 = vmul.f32 %v16487_v46, %v17092_v42  ;;  %v2401_v60 = vsel %vm2383_vm3, %v23739_v7, %v2338_v43  ;;  %v17361_v57 = vsel %vm2383_vm3, %v2368_v8, %v23730_v20  ;;  %1475 = vrot.lane.b32.xlu0 %v15995_v6, %s14889_s18  ;;  %v23742_v20 = vld [vmem:[#allocation84_spill] sm:$0xff] }
 0x31b   : > { %23737 = vst [vmem:[#allocation81_spill] sm:$0xff] %v17349_v45  ;;  %v13945_v49 = vpack.c.bf16 %v2453_v26, %v2449_v52  ;;  %v2444_v59 = vmul.f32 %v23683_v41, %v2401_v60  ;;  %v17367_v0 = vmul.f32 %v23684_v55, %v2401_v60  ;;  %v17372_v42 = vsel %vm2383_vm3, %v2336_v4, %v23736_v47  ;;  %v3140_v55 = vpop.permute.xlu0 %3139  ;;  %v2370_v4 = vpop.permute.xlu1 %2369  ;;  %v23916_v45 = vld [vmem:[#allocation45_spill] sm:$0xff] }
 0x31c   : > { %23738 = vst [vmem:[#allocation203_spill] sm:$0xff] %v17353_v12  ;;  %1513 = vrot.lane.b32.xlu1 %v16084_v1, %s14889_s18  ;;  %v17378_v8 = vmul.f32 %v16487_v46, %v17132_v18  ;;  %v17383_v52 = vsel %vm2383_vm3, %v2338_v43, %v23742_v20  ;;  %3820 = vmatpush1.bf16.msra.mxu0 %v13943_v37  ;;  %v23744_v37 = vld [vmem:[#allocation83_spill] sm:$0xff] }
 0x31d   : > { %23740 = vst [vmem:[#allocation82_spill] sm:$0xff] %v17367_v0  ;;  %3892 = vmatprep.subr.bf16.mxu1 %v13946_v23  ;;  %v2442_v41 = vmul.f32 %v16481_v51, %v2384_v5  ;;  %v2439_v26 = vmul.f32 %v23696_v17, %v17361_v57  ;;  %v17391_v18 = vmul.f32 %v16484_v14, %v2384_v5 }
 0x31e   : > { %23741 = vst [vmem:[#allocation204_spill] sm:$0xff] %v17378_v8  ;;  %3893 = vmatpush1.bf16.msra.mxu1 %v13945_v49  ;;  %v13940_v13 = vpack.c.bf16 %v2444_v59, %v2440_v24  ;;  %v2441_v43 = vmul.f32 %v23698_v19, %v17372_v42  ;;  %v2385_v23 = vsel %vm2383_vm3, %v23742_v20, %v2370_v4 }
 0x31f   : > { %23743 = vst [vmem:[#allocation84_spill] sm:$0xff] %v17391_v18  ;;  %v17401_v61 = vsel %vm2383_vm3, %v2370_v4, %v23739_v7  ;;  %v3198_v60 = vsel %vm3175_vm4, %v23744_v37, %v3140_v55  ;;  %1491 = vrot.lane.b32.xlu0 %v23632_v62, %s14889_s18  ;;  %v2445_v24 = vmul.f32 %v23698_v19, %v17383_v52  ;;  %v23748_v19 = vld [vmem:[#allocation139_spill] sm:$0xff]  ;;  %v3142_v47 = vpop.permute.xlu1 %3141  ;;  %v23768_v62 = vld [vmem:[#allocation89_spill] sm:$0xff] }
 0x320   : > { %v2443_v5 = vmul.f32 %v23696_v17, %v17401_v61  ;;  %v2446_v49 = vmul.f32 %v16481_v51, %v2385_v23  ;;  %v17414_v59 = vmul.f32 %v16484_v14, %v2385_v23  ;;  %1477 = vrot.lane.b32.xlu1 %v23635_v15, %s14889_s18  ;;  %v17420_v7 = vmul.f32 %v23733_v28, %v17202_v34  ;;  %v23749_v17 = vld [vmem:[#allocation143_spill] sm:$0xff]  ;;  %v3172_v51 = vpop.permute.xlu0 %3171 }
 0x321   : > { %v17424_v20 = vmul.f32 %v23733_v28, %v17191_v3  ;;  %3821 = vmatprep.subr.bf16.mxu0 %v13940_v13  ;;  %v3256_v4 = vmul.f32 %v23748_v19, %v3198_v60  ;;  %v17428_v48 = vmul.f32 %v23749_v17, %v3198_v60  ;;  %v3182_v34 = vsel %vm3175_vm4, %v23751_v53, %v3172_v51  ;;  %v23754_v60 = vld [vmem:[#allocation86_spill] sm:$0xff] }
 0x322   : > { %23745 = vst [vmem:[#allocation83_spill] sm:$0xff] %v17414_v59  ;;  %23746 = vst [vmem:[#allocation205_spill] sm:$0xff] %v17420_v7  ;;  %v13939_v14 = vpack.c.bf16 %v2443_v5, %v2439_v26  ;;  %v13942_v39 = vpack.c.bf16 %v2446_v49, %v2442_v41  ;;  %v17437_v3 = vmul.f32 %v16487_v46, %v17222_v35 }
 0x323   : > { %23747 = vst [vmem:[#allocation206_spill] sm:$0xff] %v17424_v20  ;;  %23750 = vst [vmem:[#allocation139_spill] sm:$0xff] %v17428_v48  ;;  %v17441_v13 = vmul.f32 %v16487_v46, %v17180_v58  ;;  %v3199_v26 = vsel %vm3175_vm4, %v23754_v60, %v3142_v47  ;;  %v17449_v41 = vsel %vm3175_vm4, %v3172_v51, %v23744_v37  ;;  %1507 = vrot.lane.b32.xlu0 %v23641_v22, %s14889_s18  ;;  %v23757_v51 = vld [vmem:[#allocation88_spill] sm:$0xff] }
 0x324   : > { %23752 = vst [vmem:[#allocation143_spill] sm:$0xff] %v17437_v3  ;;  %v13941_v5 = vpack.c.bf16 %v2445_v24, %v2441_v43  ;;  %v3260_v35 = vmul.f32 %v23748_v19, %v3199_v26  ;;  %v17455_v49 = vmul.f32 %v23749_v17, %v3199_v26  ;;  %v17460_v58 = vsel %vm3175_vm4, %v3140_v55, %v23751_v53  ;;  %v3136_v26 = vpop.permute.xlu0 %3135  ;;  %v3174_v55 = vpop.permute.xlu1 %3173  ;;  %v23913_v3 = vld [vmem:[#allocation42_spill] sm:$0xff] }
 0x325   : > { %23753 = vst [vmem:[#allocation85_spill] sm:$0xff] %v17441_v13  ;;  %1493 = vrot.lane.b32.xlu1 %v23643_v29, %s14889_s18  ;;  %v17466_v37 = vmul.f32 %v23733_v28, %v17282_v25  ;;  %v17471_v43 = vsel %vm3175_vm4, %v3142_v47, %v23757_v51  ;;  %3822 = vmatpush1.bf16.msra.mxu0 %v13939_v14  ;;  %v23758_v25 = vld [vmem:[#allocation149_spill] sm:$0xff]  ;;  %v23760_v47 = vld [vmem:[#allocation140_spill] sm:$0xff] }
 0x326   : > { %23755 = vst [vmem:[#allocation86_spill] sm:$0xff] %v17455_v49  ;;  %3894 = vmatprep.subr.bf16.mxu1 %v13942_v39  ;;  %v3258_v24 = vmul.f32 %v16539_v38, %v3182_v34  ;;  %v3255_v23 = vmul.f32 %v16536_v30, %v17449_v41  ;;  %v17479_v18 = vmul.f32 %v23758_v25, %v3182_v34  ;;  %v23762_v34 = vld [vmem:[#allocation17_spill] sm:$0xff] }
 0x327   : > { %23756 = vst [vmem:[#allocation207_spill] sm:$0xff] %v17466_v37  ;;  %3895 = vmatpush1.bf16.msra.mxu1 %v13941_v5  ;;  %v14000_v59 = vpack.c.bf16 %v3260_v35, %v3256_v4  ;;  %v3257_v27 = vmul.f32 %v23760_v47, %v17460_v58  ;;  %v3183_v39 = vsel %vm3175_vm4, %v23757_v51, %v3174_v55  ;;  %v23761_v5 = vld [vmem:[#allocation87_spill] sm:$0xff] }
 0x328   : > { %23759 = vst [vmem:[#allocation88_spill] sm:$0xff] %v17479_v18  ;;  %v17489_v14 = vsel %vm3175_vm4, %v3174_v55, %v23754_v60  ;;  %v3196_v53 = vsel %vm3175_vm4, %v23761_v5, %v3136_v26  ;;  %1471 = vrot.lane.b32.xlu0 %v23762_v34, %s14889_s18  ;;  %v3261_v4 = vmul.f32 %v23760_v47, %v17471_v43  ;;  %v23764_v60 = vld [vmem:[#allocation54_spill] sm:$0xff]  ;;  %v3168_v29 = vpop.permute.xlu0 %3167 }
 0x329   : > { %v3259_v35 = vmul.f32 %v16536_v30, %v17489_v14  ;;  %v3262_v51 = vmul.f32 %v16539_v38, %v3183_v39  ;;  %v17502_v48 = vmul.f32 %v23758_v25, %v3183_v39  ;;  %1509 = vrot.lane.b32.xlu1 %v23764_v60, %s14889_s18  ;;  %v17508_v55 = vmul.f32 %v23733_v28, %v17293_v54  ;;  %v3138_v60 = vpop.permute.xlu1 %3137 }
 0x32a   : > { %v17512_v49 = vmul.f32 %v16487_v46, %v17271_v2  ;;  %3823 = vmatprep.subr.bf16.mxu0 %v14000_v59  ;;  %v3248_v0 = vmul.f32 %v23748_v19, %v3196_v53  ;;  %v17516_v34 = vmul.f32 %v23749_v17, %v3196_v53  ;;  %v3180_v54 = vsel %vm3175_vm4, %v23768_v62, %v3168_v29  ;;  %v23771_v53 = vld [vmem:[#allocation90_spill] sm:$0xff] }
 0x32b   : > { %23763 = vst [vmem:[#allocation149_spill] sm:$0xff] %v17502_v48  ;;  %23765 = vst [vmem:[#allocation140_spill] sm:$0xff] %v17508_v55  ;;  %v13999_v39 = vpack.c.bf16 %v3259_v35, %v3255_v23  ;;  %v14002_v15 = vpack.c.bf16 %v3262_v51, %v3258_v24  ;;  %v17525_v2 = vmul.f32 %v16487_v46, %v17312_v36 }
 0x32c   : > { %23766 = vst [vmem:[#allocation87_spill] sm:$0xff] %v17512_v49  ;;  %23767 = vst [vmem:[#allocation208_spill] sm:$0xff] %v17516_v34  ;;  %v17529_v59 = vmul.f32 %v23733_v28, %v17372_v42  ;;  %v3197_v23 = vsel %vm3175_vm4, %v23771_v53, %v3138_v60  ;;  %v17537_v24 = vsel %vm3175_vm4, %v3168_v29, %v23761_v5  ;;  %1487 = vrot.lane.b32.xlu0 %v23670_v40, %s14889_s18  ;;  %v23774_v5 = vld [vmem:[#allocation92_spill] sm:$0xff] }
 0x32d   : > { %23769 = vst [vmem:[#allocation89_spill] sm:$0xff] %v17525_v2  ;;  %v14001_v35 = vpack.c.bf16 %v3261_v4, %v3257_v27  ;;  %v3252_v36 = vmul.f32 %v23748_v19, %v3197_v23  ;;  %v17543_v51 = vmul.f32 %v23749_v17, %v3197_v23  ;;  %v17548_v42 = vsel %vm3175_vm4, %v3136_v26, %v23768_v62  ;;  %v3132_v23 = vpop.permute.xlu0 %3131  ;;  %v3170_v26 = vpop.permute.xlu1 %3169 }
 0x32e   : > { %23770 = vst [vmem:[#allocation209_spill] sm:$0xff] %v17529_v59  ;;  %1473 = vrot.lane.b32.xlu1 %v23672_v32, %s14889_s18  ;;  %v17554_v29 = vmul.f32 %v23733_v28, %v17383_v52  ;;  %v17559_v27 = vsel %vm3175_vm4, %v3138_v60, %v23774_v5  ;;  %3824 = vmatpush2.bf16.msra.mxu0 %v13999_v39  ;;  %v23781_v32 = vld [vmem:[#allocation93_spill] sm:$0xff] }
 0x32f   : > { %23772 = vst [vmem:[#allocation90_spill] sm:$0xff] %v17543_v51  ;;  %3896 = vmatprep.subr.bf16.mxu1 %v14002_v15  ;;  %v3250_v4 = vmul.f32 %v16539_v38, %v3180_v54  ;;  %v3247_v22 = vmul.f32 %v16536_v30, %v17537_v24  ;;  %v17567_v28 = vmul.f32 %v23758_v25, %v3180_v54 }
 0x330   : > { %23773 = vst [vmem:[#allocation210_spill] sm:$0xff] %v17554_v29  ;;  %3897 = vmatpush2.bf16.msra.mxu1 %v14001_v35  ;;  %v13996_v52 = vpack.c.bf16 %v3252_v36, %v3248_v0  ;;  %v3249_v60 = vmul.f32 %v23760_v47, %v17548_v42  ;;  %v3181_v15 = vsel %vm3175_vm4, %v23774_v5, %v3170_v26  ;;  %v23776_v35 = vld [vmem:[#allocation91_spill] sm:$0xff] }
 0x331   : > { %23775 = vst [vmem:[#allocation92_spill] sm:$0xff] %v17567_v28  ;;  %v17577_v39 = vsel %vm3175_vm4, %v3170_v26, %v23771_v53  ;;  %v3194_v62 = vsel %vm3175_vm4, %v23776_v35, %v3132_v23  ;;  %1503 = vrot.lane.b32.xlu0 %v23677_v16, %s14889_s18  ;;  %v3253_v0 = vmul.f32 %v23760_v47, %v17559_v27  ;;  %v3164_v34 = vpop.permute.xlu0 %3163  ;;  %v23788_v28 = vld [vmem:[#allocation51_spill] sm:$0xff] }
 0x332   : > { %v3251_v54 = vmul.f32 %v16536_v30, %v17577_v39  ;;  %v3254_v36 = vmul.f32 %v16539_v38, %v3181_v15  ;;  %v17590_v5 = vmul.f32 %v23758_v25, %v3181_v15  ;;  %1489 = vrot.lane.b32.xlu1 %v23679_v9, %s14889_s18  ;;  %v17596_v53 = vmul.f32 %v16487_v46, %v17401_v61  ;;  %v3134_v9 = vpop.permute.xlu1 %3133 }
 0x333   : > { %v17600_v26 = vmul.f32 %v16487_v46, %v17361_v57  ;;  %3825 = vmatprep.subr.bf16.mxu0 %v13996_v52  ;;  %v3240_v18 = vmul.f32 %v23748_v19, %v3194_v62  ;;  %v17604_v48 = vmul.f32 %v23749_v17, %v3194_v62  ;;  %v3178_v61 = vsel %vm3175_vm4, %v23781_v32, %v3164_v34  ;;  %v23782_v46 = vld [vmem:[#allocation144_spill] sm:$0xff]  ;;  %v23785_v62 = vld [vmem:[#allocation94_spill] sm:$0xff] }
 0x334   : > { %23777 = vst [vmem:[#allocation91_spill] sm:$0xff] %v17590_v5  ;;  %23778 = vst [vmem:[#allocation211_spill] sm:$0xff] %v17596_v53  ;;  %v13995_v15 = vpack.c.bf16 %v3251_v54, %v3247_v22  ;;  %v13998_v16 = vpack.c.bf16 %v3254_v36, %v3250_v4  ;;  %v17613_v57 = vmul.f32 %v23782_v46, %v17471_v43  ;;  %v23786_v54 = vld [vmem:[#allocation26_spill] sm:$0xff]  ;;  %v23791_v5 = vld [vmem:[#allocation96_spill] sm:$0xff] }
 0x335   : > { %23779 = vst [vmem:[#allocation212_spill] sm:$0xff] %v17600_v26  ;;  %23780 = vst [vmem:[#allocation213_spill] sm:$0xff] %v17604_v48  ;;  %v17617_v52 = vmul.f32 %v23782_v46, %v17460_v58  ;;  %v3195_v22 = vsel %vm3175_vm4, %v23785_v62, %v3134_v9  ;;  %v17625_v4 = vsel %vm3175_vm4, %v3164_v34, %v23776_v35  ;;  %1995 = vrot.lane.b32.xlu0 %v23786_v54, %s14894_s29  ;;  %v23789_v34 = vld [vmem:[#allocation150_spill] sm:$0xff] }
 0x336   : > { %23783 = vst [vmem:[#allocation93_spill] sm:$0xff] %v17613_v57  ;;  %v13997_v36 = vpack.c.bf16 %v3253_v0, %v3249_v60  ;;  %v3244_v43 = vmul.f32 %v23748_v19, %v3195_v22  ;;  %v17631_v51 = vmul.f32 %v23749_v17, %v3195_v22  ;;  %v17636_v58 = vsel %vm3175_vm4, %v3132_v23, %v23781_v32  ;;  %v3128_v22 = vpop.permute.xlu0 %3127  ;;  %v3166_v23 = vpop.permute.xlu1 %3165 }
 0x337   : > { %23784 = vst [vmem:[#allocation144_spill] sm:$0xff] %v17617_v52  ;;  %1505 = vrot.lane.b32.xlu1 %v23788_v28, %s14889_s18  ;;  %v17642_v35 = vmul.f32 %v23789_v34, %v17449_v41  ;;  %v17647_v60 = vsel %vm3175_vm4, %v3134_v9, %v23791_v5  ;;  %3826 = vmatpush2.bf16.msra.mxu0 %v13995_v15  ;;  %s14902_s18 = smov 127  }
 0x338   : > { %23787 = vst [vmem:[#allocation94_spill] sm:$0xff] %v17631_v51  ;;  %3898 = vmatprep.subr.bf16.mxu1 %v13998_v16  ;;  %v3242_v0 = vmul.f32 %v16539_v38, %v3178_v61  ;;  %v3239_v41 = vmul.f32 %v16536_v30, %v17625_v4  ;;  %v17656_v28 = vmul.f32 %v23758_v25, %v3178_v61  ;;  %v23794_v61 = vld [vmem:[#allocation45_spill] sm:$0xff] }
 0x339   : > { %23790 = vst [vmem:[#allocation150_spill] sm:$0xff] %v17642_v35  ;;  %3899 = vmatpush2.bf16.msra.mxu1 %v13997_v36  ;;  %v13992_v9 = vpack.c.bf16 %v3244_v43, %v3240_v18  ;;  %v3241_v16 = vmul.f32 %v23760_v47, %v17636_v58  ;;  %v3179_v15 = vsel %vm3175_vm4, %v23791_v5, %v3166_v23  ;;  %v23793_v36 = vld [vmem:[#allocation95_spill] sm:$0xff] }
 0x33a   : > { %23792 = vst [vmem:[#allocation96_spill] sm:$0xff] %v17656_v28  ;;  %v17666_v32 = vsel %vm3175_vm4, %v3166_v23, %v23785_v62  ;;  %v3192_v48 = vsel %vm3175_vm4, %v23793_v36, %v3128_v22  ;;  %2011 = vrot.lane.b32.xlu0 %v23794_v61, %s14894_s29  ;;  %v3245_v18 = vmul.f32 %v23760_v47, %v17647_v60  ;;  %v23796_v62 = vld [vmem:[#allocation28_spill] sm:$0xff]  ;;  %v23798_v61 = vld [vmem:[#allocation97_spill] sm:$0xff]  ;;  %v3130_v57 = vpop.permute.xlu1 %3129 }
 0x33b   : > { %v3243_v43 = vmul.f32 %v16536_v30, %v17666_v32  ;;  %v3246_v5 = vmul.f32 %v16539_v38, %v3179_v15  ;;  %v17679_v51 = vmul.f32 %v23758_v25, %v3179_v15  ;;  %1997 = vrot.lane.b32.xlu1 %v23796_v62, %s14894_s29  ;;  %v17685_v23 = vmul.f32 %v23789_v34, %v17489_v14  ;;  %v3160_v15 = vpop.permute.xlu0 %3159  ;;  %v23806_v28 = vld [vmem:[#allocation49_spill] sm:$0xff] }
 0x33c   : > { %3827 = vmatprep.subr.bf16.mxu0 %v13992_v9  ;;  %v17690_v54 = vsel %vm3175_vm4, %v3128_v22, %v23798_v61  ;;  %v3232_v40 = vmul.f32 %v23748_v19, %v3192_v48  ;;  %v17694_v6 = vmul.f32 %v23749_v17, %v3192_v48  ;;  %v3176_v14 = vsel %vm3175_vm4, %v23798_v61, %v3160_v15  ;;  %v23802_v48 = vld [vmem:[#allocation98_spill] sm:$0xff] }
 0x33d   : > { %23795 = vst [vmem:[#allocation95_spill] sm:$0xff] %v17679_v51  ;;  %23797 = vst [vmem:[#allocation214_spill] sm:$0xff] %v17685_v23  ;;  %v13991_v35 = vpack.c.bf16 %v3243_v43, %v3239_v41  ;;  %v13994_v52 = vpack.c.bf16 %v3246_v5, %v3242_v0  ;;  %v17703_v22 = vmul.f32 %v23782_v46, %v17559_v27  ;;  %v23803_v43 = vld [vmem:[#allocation33_spill] sm:$0xff]  ;;  %v23804_v5 = vld [vmem:[#allocation100_spill] sm:$0xff] }
 0x33e   : > { %23799 = vst [vmem:[#allocation97_spill] sm:$0xff] %v17694_v6  ;;  %v17707_v9 = vmul.f32 %v23782_v46, %v17548_v42  ;;  %v3193_v41 = vsel %vm3175_vm4, %v23802_v48, %v3130_v57  ;;  %v17715_v0 = vsel %vm3175_vm4, %v3160_v15, %v23793_v36  ;;  %2027 = vrot.lane.b32.xlu0 %v23803_v43, %s14894_s29  ;;  %v23820_v43 = vld [vmem:[#allocation102_spill] sm:$0xff] }
 0x33f   : > { %23800 = vst [vmem:[#allocation215_spill] sm:$0xff] %v17703_v22  ;;  %v13993_v61 = vpack.c.bf16 %v3245_v18, %v3241_v16  ;;  %v17722_v27 = vsel %vm3175_vm4, %v3130_v57, %v23804_v5  ;;  %v3236_v42 = vmul.f32 %v23748_v19, %v3193_v41  ;;  %v17726_v62 = vmul.f32 %v23749_v17, %v3193_v41  ;;  %v2876_v18 = vpop.permute.xlu0 %2875  ;;  %v3162_v17 = vpop.permute.xlu1 %3161 }
 0x340   : > { %23801 = vst [vmem:[#allocation216_spill] sm:$0xff] %v17707_v9  ;;  %2013 = vrot.lane.b32.xlu1 %v23806_v28, %s14894_s29  ;;  %v17732_v36 = vmul.f32 %v23789_v34, %v17537_v24  ;;  %v3233_v16 = vmul.f32 %v23760_v47, %v17690_v54  ;;  %3828 = vmatpush2.bf16.msra.mxu0 %v13991_v35  ;;  %v23818_v28 = vld [vmem:[#allocation101_spill] sm:$0xff]  ;;  %v23900_v9 = vld [vmem:[#allocation27_spill] sm:$0xff] }
 0x341   : > { %23805 = vst [vmem:[#allocation98_spill] sm:$0xff] %v17726_v62  ;;  %3900 = vmatprep.subr.bf16.mxu1 %v13994_v52  ;;  %v3234_v57 = vmul.f32 %v16539_v38, %v3176_v14  ;;  %v3231_v15 = vmul.f32 %v16536_v30, %v17715_v0  ;;  %v17742_v41 = vmul.f32 %v23758_v25, %v3176_v14 }
 0x342   : > { %23807 = vst [vmem:[#allocation100_spill] sm:$0xff] %v17732_v36  ;;  %3901 = vmatpush2.bf16.msra.mxu1 %v13993_v61  ;;  %v13988_v24 = vpack.c.bf16 %v3236_v42, %v3232_v40  ;;  %v3237_v51 = vmul.f32 %v23760_v47, %v17722_v27  ;;  %v3177_v52 = vsel %vm3175_vm4, %v23804_v5, %v3162_v17  ;;  %v23809_v61 = vld [vmem:[#allocation99_spill] sm:$0xff] }
 0x343   : > { %23808 = vst [vmem:[#allocation217_spill] sm:$0xff] %v17742_v41  ;;  %v3201_v35 = vsel %vm3175_vm4, %v3162_v17, %v23802_v48  ;;  %v2934_v19 = vsel %vm2911_vm5, %v23809_v61, %v2876_v18  ;;  %2043 = vrot.lane.b32.xlu0 %v23710_v11, %s14894_s29  ;;  %v17759_v40 = vmul.f32 %v23789_v34, %v17577_v39  ;;  %v23812_v48 = vld [vmem:[#allocation35_spill] sm:$0xff]  ;;  %v23815_v39 = vld [vmem:[#allocation165_spill] sm:$0xff] }
 0x344   : > { %v3235_v47 = vmul.f32 %v16536_v30, %v3201_v35  ;;  %v3238_v14 = vmul.f32 %v16539_v38, %v3177_v52  ;;  %v17764_v5 = vmul.f32 %v23758_v25, %v3177_v52  ;;  %2029 = vrot.lane.b32.xlu1 %v23812_v48, %s14894_s29  ;;  %v17770_v42 = vmul.f32 %v23782_v46, %v17647_v60  ;;  %v23816_v30 = vld [vmem:[#allocation171_spill] sm:$0xff]  ;;  %v2908_v38 = vpop.permute.xlu0 %2907  ;;  %v2878_v48 = vpop.permute.xlu1 %2877 }
 0x345   : > { %23810 = vst [vmem:[#allocation99_spill] sm:$0xff] %v17759_v40  ;;  %v17774_v17 = vmul.f32 %v23782_v46, %v17636_v58  ;;  %3829 = vmatprep.subr.bf16.mxu0 %v13988_v24  ;;  %v2992_v6 = vmul.f32 %v23815_v39, %v2934_v19  ;;  %v17778_v62 = vmul.f32 %v23816_v30, %v2934_v19  ;;  %v23887_v40 = vld [vmem:[#allocation43_spill] sm:$0xff] }
 0x346   : > { %23811 = vst [vmem:[#allocation218_spill] sm:$0xff] %v17764_v5  ;;  %23813 = vst [vmem:[#allocation219_spill] sm:$0xff] %v17770_v42  ;;  %v13987_v25 = vpack.c.bf16 %v3235_v47, %v3231_v15  ;;  %v13990_v11 = vpack.c.bf16 %v3238_v14, %v3234_v57  ;;  %v2918_v60 = vsel %vm2911_vm5, %v23818_v28, %v2908_v38  ;;  %v23821_v47 = vld [vmem:[#allocation25_spill] sm:$0xff]  ;;  %v23822_v57 = vld [vmem:[#allocation104_spill] sm:$0xff] }
 0x347   : > { %23814 = vst [vmem:[#allocation220_spill] sm:$0xff] %v17774_v17  ;;  %23817 = vst [vmem:[#allocation165_spill] sm:$0xff] %v17778_v62  ;;  %v17787_v58 = vmul.f32 %v23789_v34, %v17625_v4  ;;  %v13989_v24 = vpack.c.bf16 %v3237_v51, %v3233_v16  ;;  %v2935_v19 = vsel %vm2911_vm5, %v23820_v43, %v2878_v48  ;;  %1991 = vrot.lane.b32.xlu0 %v23821_v47, %s14894_s29  ;;  %v23824_v16 = vld [vmem:[#allocation61_spill] sm:$0xff]  ;;  %v23828_v5 = vld [vmem:[#allocation178_spill] sm:$0xff] }
 0x348   : > { %v2942_v15 = vsel %vm2911_vm5, %v2908_v38, %v23809_v61  ;;  %v2927_v14 = vsel %vm2911_vm5, %v2878_v48, %v23822_v57  ;;  %v2996_v52 = vmul.f32 %v23815_v39, %v2935_v19  ;;  %v17802_v4 = vmul.f32 %v23816_v30, %v2935_v19  ;;  %2045 = vrot.lane.b32.xlu1 %v23824_v16, %s14894_s29  ;;  %v23827_v48 = vld [vmem:[#allocation181_spill] sm:$0xff]  ;;  %v17818_v41 = vpop.permute.xlu0 %2855  ;;  %v23829_v47 = vld [vmem:[#allocation188_spill] sm:$0xff] }
 0x349   : > { %23819 = vst [vmem:[#allocation171_spill] sm:$0xff] %v17787_v58  ;;  %v2926_v51 = vsel %vm2911_vm5, %v2876_v18, %v23818_v28  ;;  %v17811_v61 = vmul.f32 %v23789_v34, %v17666_v32  ;;  %v17815_v38 = vmul.f32 %v23782_v46, %v17690_v54  ;;  %3830 = vmatpush2.bf16.msra.mxu0 %v13987_v25  ;;  %v2910_v18 = vpop.permute.xlu1 %2909  ;;  %v23831_v58 = vld [vmem:[#allocation168_spill] sm:$0xff]  ;;  %v23886_v42 = vld [vmem:[#allocation29_spill] sm:$0xff] }
 0x34a   : > { %23823 = vst [vmem:[#allocation101_spill] sm:$0xff] %v17802_v4  ;;  %3902 = vmatprep.subr.bf16.mxu1 %v13990_v11  ;;  %v2994_v19 = vmul.f32 %v23827_v48, %v2918_v60  ;;  %v2991_v16 = vmul.f32 %v23828_v5, %v2942_v15  ;;  %v17824_v32 = vmul.f32 %v23829_v47, %v2918_v60 }
 0x34b   : > { %23825 = vst [vmem:[#allocation102_spill] sm:$0xff] %v17811_v61  ;;  %23826 = vst [vmem:[#allocation104_spill] sm:$0xff] %v17815_v38  ;;  %3903 = vmatpush2.bf16.msra.mxu1 %v13989_v24  ;;  %v13984_v61 = vpack.c.bf16 %v2996_v52, %v2992_v6  ;;  %v2997_v54 = vmul.f32 %v23831_v58, %v2927_v14  ;;  %v2993_v25 = vmul.f32 %v23831_v58, %v2926_v51  ;;  %v23832_v24 = vld [vmem:[#allocation41_spill] sm:$0xff] }
 0x34c   : > { %23830 = vst [vmem:[#allocation181_spill] sm:$0xff] %v17824_v32  ;;  %v2919_v11 = vsel %vm2911_vm5, %v23822_v57, %v2910_v18  ;;  %v2943_v28 = vsel %vm2911_vm5, %v2910_v18, %v23820_v43  ;;  %2007 = vrot.lane.b32.xlu0 %v23832_v24, %s14894_s29  ;;  %v17838_v60 = vmul.f32 %v23782_v46, %v17722_v27  ;;  %v23835_v57 = vld [vmem:[#allocation24_spill] sm:$0xff]  ;;  %v23838_v18 = vld [vmem:[#allocation175_spill] sm:$0xff]  ;;  %v2872_v24 = vpop.permute.xlu0 %2871 }
 0x34d   : > { %v2995_v6 = vmul.f32 %v23828_v5, %v2943_v28  ;;  %v2998_v52 = vmul.f32 %v23827_v48, %v2919_v11  ;;  %v17843_v62 = vmul.f32 %v23829_v47, %v2919_v11  ;;  %1993 = vrot.lane.b32.xlu1 %v23835_v57, %s14894_s29  ;;  %v17848_v4 = vmul.f32 %v23789_v34, %v3201_v35  ;;  %v17862_v57 = vpop.permute.xlu1 %2857 }
 0x34e   : > { %23833 = vst [vmem:[#allocation178_spill] sm:$0xff] %v17838_v60  ;;  %v17852_v43 = vmul.f32 %v23789_v34, %v17715_v0  ;;  %v17855_v46 = vmul.f32 %v23838_v18, %v2927_v14  ;;  %v17858_v27 = vmul.f32 %v23838_v18, %v2926_v51  ;;  %3831 = vmatprep.subr.bf16.mxu0 %v13984_v61  ;;  %v23860_v61 = vld [vmem:[#allocation37_spill] sm:$0xff]  ;;  %v23862_v60 = vld [vmem:[#allocation52_spill] sm:$0xff] }
 0x34f   : > { %23834 = vst [vmem:[#allocation188_spill] sm:$0xff] %v17843_v62  ;;  %23836 = vst [vmem:[#allocation168_spill] sm:$0xff] %v17848_v4  ;;  %v13983_v11 = vpack.c.bf16 %v2995_v6, %v2991_v16  ;;  %v13986_v35 = vpack.c.bf16 %v2998_v52, %v2994_v19  ;;  %v2932_v34 = vsel %vm2911_vm5, %v17818_v41, %v2872_v24  ;;  %v23922_v4 = vld [vmem:[#allocation33_spill] sm:$0xff] }
 0x350   : > { %23837 = vst [vmem:[#allocation221_spill] sm:$0xff] %v17852_v43  ;;  %23839 = vst [vmem:[#allocation175_spill] sm:$0xff] %v17855_v46  ;;  %v13985_v0 = vpack.c.bf16 %v2997_v54, %v2993_v25  ;;  %v2984_v14 = vmul.f32 %v23815_v39, %v2932_v34  ;;  %2023 = vrot.lane.b32.xlu0 %v15664_v56, %s14894_s29  ;;  %v2888_v56 = vpop.permute.xlu0 %2887  ;;  %v17891_v25 = vmul.f32 %v23816_v30, %v2932_v34  ;;  %v23933_v46 = vld [vmem:[#allocation12_spill] sm:$0xff] }
 0x351   : > { %23840 = vst [vmem:[#allocation222_spill] sm:$0xff] %v17858_v27  ;;  %2009 = vrot.lane.b32.xlu1 %v16028_v33, %s14894_s29  ;;  %3832 = vmatpush2.bf16.msra.mxu0 %v13983_v11  ;;  %v2874_v19 = vpop.permute.xlu1 %2873  ;;  %v17900_v43 = vmul.f32 %v23860_v61, %v2942_v15  ;;  %v2924_v34 = vsel %vm2911_vm5, %v2872_v24, %v2888_v56  ;;  %v23864_v15 = vld [vmem:[#allocation34_spill] sm:$0xff] }
 0x352   : > { %3904 = vmatprep.subr.bf16.mxu1 %v13986_v35  ;;  %23857 = vst [vmem:[#allocation223_spill] sm:$0xff] %v17891_v25  ;;  %v17937_v27 = vmul.f32 %v23860_v61, %v2943_v28  ;;  %v2985_v20 = vmul.f32 %v23831_v58, %v2924_v34  ;;  %v17943_v26 = vmul.f32 %v23838_v18, %v2924_v34 }
 0x353   : > { %3905 = vmatpush2.bf16.msra.mxu1 %v13985_v0  ;;  %23861 = vst [vmem:[#allocation37_spill] sm:$0xff] %v17900_v43  ;;  %v2933_v0 = vsel %vm2911_vm5, %v17862_v57, %v2874_v19 }
 0x354   : > { %2039 = vrot.lane.b32.xlu0 %v23862_v60, %s14894_s29  ;;  %v2988_v51 = vmul.f32 %v23815_v39, %v2933_v0  ;;  %v17913_v16 = vmul.f32 %v23816_v30, %v2933_v0  ;;  %v2904_v38 = vpop.permute.xlu0 %2903  ;;  %23865 = vst [vmem:[#allocation225_spill] sm:$0xff] %v17937_v27  ;;  %23866 = vst [vmem:[#allocation226_spill] sm:$0xff] %v17943_v26  ;;  %v23893_v27 = vld [vmem:[#allocation54_spill] sm:$0xff] }
 0x355   : > { %2025 = vrot.lane.b32.xlu1 %v23864_v15, %s14894_s29  ;;  %v2890_v11 = vpop.permute.xlu1 %2889  ;;  %v2916_v24 = vsel %vm2911_vm5, %v2888_v56, %v2904_v38  ;;  %v2940_v10 = vsel %vm2911_vm5, %v2904_v38, %v17818_v41 }
 0x356   : > { %23863 = vst [vmem:[#allocation224_spill] sm:$0xff] %v17913_v16  ;;  %v13980_v12 = vpack.c.bf16 %v2988_v51, %v2984_v14  ;;  %v2925_v0 = vsel %vm2911_vm5, %v2874_v19, %v2890_v11  ;;  %v23867_v14 = vld [vmem:[#allocation20_spill] sm:$0xff]  ;;  %v2983_v56 = vmul.f32 %v23828_v5, %v2940_v10  ;;  %v2986_v41 = vmul.f32 %v23827_v48, %v2916_v24  ;;  %v23877_v16 = vld [vmem:[#allocation18_spill] sm:$0xff] }
 0x357   : > { %v17952_v38 = vmul.f32 %v23829_v47, %v2916_v24  ;;  %v17963_v53 = vmul.f32 %v23838_v18, %v2925_v0  ;;  %v2989_v29 = vmul.f32 %v23831_v58, %v2925_v0  ;;  %v17998_v17 = vmul.f32 %v23860_v61, %v2940_v10 }
 0x358   : > { %1987 = vrot.lane.b32.xlu0 %v23867_v14, %s14894_s29  ;;  %3833 = vmatprep.subr.bf16.mxu0 %v13980_v12  ;;  %v2852_v28 = vpop.permute.xlu0 %2851 }
 0x359   : > { %2041 = vrot.lane.b32.xlu1 %v16084_v1, %s14894_s29  ;;  %23868 = vst [vmem:[#allocation227_spill] sm:$0xff] %v17952_v38  ;;  %23872 = vst [vmem:[#allocation228_spill] sm:$0xff] %v17963_v53  ;;  %v2906_v49 = vpop.permute.xlu1 %2905  ;;  %v23889_v38 = vld [vmem:[#allocation50_spill] sm:$0xff] }
 0x35a   : > { %v2917_v34 = vsel %vm2911_vm5, %v2890_v11, %v2906_v49  ;;  %v2941_v12 = vsel %vm2911_vm5, %v2906_v49, %v17862_v57  ;;  %v23883_v49 = vld [vmem:[#allocation23_spill] sm:$0xff]  ;;  %23885 = vst [vmem:[#allocation231_spill] sm:$0xff] %v17998_v17 }
 0x35b   : > { %v2987_v19 = vmul.f32 %v23828_v5, %v2941_v12  ;;  %v2990_v7 = vmul.f32 %v23827_v48, %v2917_v34  ;;  %v17986_v11 = vmul.f32 %v23829_v47, %v2917_v34  ;;  %v17995_v36 = vmul.f32 %v23860_v61, %v2941_v12 }
 0x35c   : > { %2003 = vrot.lane.b32.xlu0 %v23877_v16, %s14894_s29  ;;  %v2868_v57 = vpop.permute.xlu0 %2867 }
 0x35d   : > { %23882 = vst [vmem:[#allocation229_spill] sm:$0xff] %v17986_v11  ;;  %1989 = vrot.lane.b32.xlu1 %v23883_v49, %s14894_s29  ;;  %v13979_v25 = vpack.c.bf16 %v2987_v19, %v2983_v56  ;;  %v2854_v24 = vpop.permute.xlu1 %2853  ;;  %v13982_v0 = vpack.c.bf16 %v2990_v7, %v2986_v41  ;;  %23884 = vst [vmem:[#allocation230_spill] sm:$0xff] %v17995_v36  ;;  %v2930_v34 = vsel %vm2911_vm5, %v2852_v28, %v2868_v57 }
 0x35e   : > { %v13981_v19 = vpack.c.bf16 %v2989_v29, %v2985_v20  ;;  %v2976_v10 = vmul.f32 %v23815_v39, %v2930_v34  ;;  %v18010_v12 = vmul.f32 %v23816_v30, %v2930_v34 }
 0x35f   : > { %3834 = vmatpush2.bf16.msra.mxu0 %v13979_v25  ;;  %3906 = vmatprep.subr.bf16.mxu1 %v13982_v0  ;;  %v23891_v0 = vld [vmem:[#allocation32_spill] sm:$0xff] }
 0x360   : > { %2019 = vrot.lane.b32.xlu0 %v23886_v42, %s14894_s29  ;;  %v2884_v7 = vpop.permute.xlu0 %2883  ;;  %3907 = vmatpush2.bf16.msra.mxu1 %v13981_v19  ;;  %23888 = vst [vmem:[#allocation232_spill] sm:$0xff] %v18010_v12 }
 0x361   : > { %2005 = vrot.lane.b32.xlu1 %v23887_v40, %s14894_s29  ;;  %v2870_v41 = vpop.permute.xlu1 %2869  ;;  %v2922_v43 = vsel %vm2911_vm5, %v2868_v57, %v2884_v7 }
 0x362   : > { %v2931_v51 = vsel %vm2911_vm5, %v2854_v24, %v2870_v41 }
 0x363   : > { %v2980_v29 = vmul.f32 %v23815_v39, %v2931_v51  ;;  %v18020_v25 = vmul.f32 %v23816_v30, %v2931_v51  ;;  %v23892_v51 = vld [vmem:[#allocation19_spill] sm:$0xff] }
 0x364   : > { %2035 = vrot.lane.b32.xlu0 %v23889_v38, %s14894_s29  ;;  %v2900_v19 = vpop.permute.xlu0 %2899 }
 0x365   : > { %23890 = vst [vmem:[#allocation233_spill] sm:$0xff] %v18020_v25  ;;  %2021 = vrot.lane.b32.xlu1 %v23891_v0, %s14894_s29  ;;  %v2886_v56 = vpop.permute.xlu1 %2885  ;;  %v13976_v11 = vpack.c.bf16 %v2980_v29, %v2976_v10  ;;  %v2914_v20 = vsel %vm2911_vm5, %v2884_v7, %v2900_v19  ;;  %v2938_v17 = vsel %vm2911_vm5, %v2900_v19, %v2852_v28  ;;  %v23897_v25 = vld [vmem:[#allocation17_spill] sm:$0xff] }
 0x366   : > { %v2923_v36 = vsel %vm2911_vm5, %v2870_v41, %v2886_v56  ;;  %v2977_v29 = vmul.f32 %v23831_v58, %v2922_v43  ;;  %v2975_v34 = vmul.f32 %v23828_v5, %v2938_v17  ;;  %v2978_v7 = vmul.f32 %v23827_v48, %v2914_v20 }
 0x367   : > { %3835 = vmatprep.subr.bf16.mxu0 %v13976_v11  ;;  %v18042_v28 = vmul.f32 %v23829_v47, %v2914_v20  ;;  %v18045_v19 = vmul.f32 %v23838_v18, %v2923_v36  ;;  %v18048_v41 = vmul.f32 %v23838_v18, %v2922_v43  ;;  %v2981_v26 = vmul.f32 %v23831_v58, %v2923_v36  ;;  %v23899_v43 = vld [vmem:[#allocation22_spill] sm:$0xff] }
 0x368   : > { %1983 = vrot.lane.b32.xlu0 %v23892_v51, %s14894_s29  ;;  %v2848_v10 = vpop.permute.xlu0 %2847 }
 0x369   : > { %2037 = vrot.lane.b32.xlu1 %v23893_v27, %s14894_s29  ;;  %v2902_v57 = vpop.permute.xlu1 %2901  ;;  %23894 = vst [vmem:[#allocation234_spill] sm:$0xff] %v18042_v28  ;;  %23895 = vst [vmem:[#allocation235_spill] sm:$0xff] %v18045_v19  ;;  %v13977_v22 = vpack.c.bf16 %v2981_v26, %v2977_v29  ;;  %v1553_v19 = vld [vmem:[#allocation3 + $0x1] ss:$8 sm:$0xf] }
 0x36a   : > { %23896 = vst [vmem:[#allocation236_spill] sm:$0xff] %v18048_v41  ;;  %v2915_v11 = vsel %vm2911_vm5, %v2886_v56, %v2902_v57  ;;  %v2939_v12 = vsel %vm2911_vm5, %v2902_v57, %v2854_v24 }
 0x36b   : > { %v2979_v20 = vmul.f32 %v23828_v5, %v2939_v12  ;;  %v2982_v53 = vmul.f32 %v23827_v48, %v2915_v11  ;;  %v18060_v2 = vmul.f32 %v23829_v47, %v2915_v11  ;;  %v18073_v13 = vmul.f32 %v23860_v61, %v2939_v12  ;;  %v23905_v12 = vld [vmem:[#allocation48_spill] sm:$0xff] }
 0x36c   : > { %1999 = vrot.lane.b32.xlu0 %v23897_v25, %s14894_s29  ;;  %v2864_v59 = vpop.permute.xlu0 %2863 }
 0x36d   : > { %23898 = vst [vmem:[#allocation237_spill] sm:$0xff] %v18060_v2  ;;  %1985 = vrot.lane.b32.xlu1 %v23899_v43, %s14894_s29  ;;  %v13975_v56 = vpack.c.bf16 %v2979_v20, %v2975_v34  ;;  %v2850_v57 = vpop.permute.xlu1 %2849  ;;  %v13978_v23 = vpack.c.bf16 %v2982_v53, %v2978_v7  ;;  %v2928_v36 = vsel %vm2911_vm5, %v2848_v10, %v2864_v59  ;;  %23901 = vst [vmem:[#allocation238_spill] sm:$0xff] %v18073_v13  ;;  %v23903_v20 = vld [vmem:[#allocation39_spill] sm:$0xff] }
 0x36e   : > { %v18076_v34 = vmul.f32 %v23860_v61, %v2938_v17  ;;  %v2968_v24 = vmul.f32 %v23815_v39, %v2928_v36  ;;  %v18082_v28 = vmul.f32 %v23816_v30, %v2928_v36 }
 0x36f   : > { %3836 = vmatpush2.bf16.msra.mxu0 %v13975_v56  ;;  %3908 = vmatprep.subr.bf16.mxu1 %v13978_v23  ;;  %v23907_v23 = vld [vmem:[#allocation30_spill] sm:$0xff] }
 0x370   : > { %2015 = vrot.lane.b32.xlu0 %v23900_v9, %s14894_s29  ;;  %23902 = vst [vmem:[#allocation239_spill] sm:$0xff] %v18076_v34  ;;  %v2880_v53 = vpop.permute.xlu0 %2879  ;;  %3909 = vmatpush2.bf16.msra.mxu1 %v13977_v22  ;;  %23904 = vst [vmem:[#allocation240_spill] sm:$0xff] %v18082_v28  ;;  %v23908_v22 = vld [vmem:[#allocation26_spill] sm:$0xff]  ;;  %v23911_v28 = vld [vmem:[#allocation103_spill] sm:$0xff] }
 0x371   : > { %2001 = vrot.lane.b32.xlu1 %v23903_v20, %s14894_s29  ;;  %v2866_v7 = vpop.permute.xlu1 %2865  ;;  %v2920_v2 = vsel %vm2911_vm5, %v2864_v59, %v2880_v53  ;;  %v23909_v59 = vld [vmem:[#allocation51_spill] sm:$0xff] }
 0x372   : > { %v2929_v26 = vsel %vm2911_vm5, %v2850_v57, %v2866_v7  ;;  %v18130_v55 = vmul.f32 %v23838_v18, %v2920_v2 }
 0x373   : > { %v2972_v17 = vmul.f32 %v23815_v39, %v2929_v26  ;;  %v18090_v29 = vmul.f32 %v23816_v30, %v2929_v26  ;;  %v8335_v39 = vld [vmem:[#allocation3 + $0x43] ss:$8 sm:$0xf] }
 0x374   : > { %2031 = vrot.lane.b32.xlu0 %v23905_v12, %s14894_s29  ;;  %v2896_v56 = vpop.permute.xlu0 %2895  ;;  %23915 = vst [vmem:[#allocation243_spill] sm:$0xff] %v18130_v55 }
 0x375   : > { %23906 = vst [vmem:[#allocation241_spill] sm:$0xff] %v18090_v29  ;;  %2017 = vrot.lane.b32.xlu1 %v23907_v23, %s14894_s29  ;;  %v2882_v11 = vpop.permute.xlu1 %2881  ;;  %v13972_v41 = vpack.c.bf16 %v2972_v17, %v2968_v24  ;;  %v2912_v30 = vsel %vm2911_vm5, %v2880_v53, %v2896_v56  ;;  %v2936_v26 = vsel %vm2911_vm5, %v2896_v56, %v2848_v10  ;;  %v23910_v17 = vld [vmem:[#allocation117_spill] sm:$0xff] }
 0x376   : > { %v2921_v36 = vsel %vm2911_vm5, %v2866_v7, %v2882_v11  ;;  %v2969_v24 = vmul.f32 %v23831_v58, %v2920_v2  ;;  %v18113_v53 = vrot.slane %v1553_v19, %v23910_v17  ;;  %v18116_v10 = vrot.slane %v8335_v39, %v23911_v28  ;;  %v23918_v2 = vld [vmem:[#allocation28_spill] sm:$0xff] }
 0x377   : > { %3837 = vmatprep.subr.bf16.mxu0 %v13972_v41  ;;  %v2967_v34 = vmul.f32 %v23828_v5, %v2936_v26  ;;  %v2970_v13 = vmul.f32 %v23827_v48, %v2912_v30  ;;  %v18121_v7 = vmul.f32 %v23829_v47, %v2912_v30  ;;  %v18127_v37 = vmul.f32 %v23838_v18, %v2921_v36 }
 0x378   : > { %1731 = vrot.lane.b32.xlu0 %v23908_v22, %s14895_s8  ;;  %v1484_v56 = vpop.permute.xlu0 %1483  ;;  %v2973_v30 = vmul.f32 %v23831_v58, %v2921_v36  ;;  %v23921_v36 = vld [vmem:[#allocation47_spill] sm:$0xff] }
 0x379   : > { %2033 = vrot.lane.b32.xlu1 %v23909_v59, %s14894_s29  ;;  %v2898_v29 = vpop.permute.xlu1 %2897  ;;  %23912 = vst [vmem:[#allocation242_spill] sm:$0xff] %v18121_v7  ;;  %v1542_v41 = vsel %vm1519_vm6, %v23913_v3, %v1484_v56  ;;  %23914 = vst [vmem:[#allocation42_spill] sm:$0xff] %v18127_v37  ;;  %v18180_v7 = vmul.f32 %v23860_v61, %v2936_v26 }
 0x37a   : > { %v2913_v8 = vsel %vm2911_vm5, %v2882_v11, %v2898_v29  ;;  %v2937_v50 = vsel %vm2911_vm5, %v2898_v29, %v2850_v57  ;;  %v1600_v18 = vmul.f32 %v18113_v53, %v1542_v41  ;;  %v23919_v11 = vld [vmem:[#allocation118_spill] sm:$0xff]  ;;  %v18151_v57 = vrot.slane %v8335_v39, %v23910_v17 }
 0x37b   : > { %v2971_v31 = vmul.f32 %v23828_v5, %v2937_v50  ;;  %v2974_v35 = vmul.f32 %v23827_v48, %v2913_v8  ;;  %v18142_v63 = vmul.f32 %v23829_v47, %v2913_v8  ;;  %v18148_v21 = vrot.slane %v1553_v19, %v23919_v11  ;;  %23926 = vst [vmem:[#allocation247_spill] sm:$0xff] %v18180_v7 }
 0x37c   : > { %1747 = vrot.lane.b32.xlu0 %v23916_v45, %s14895_s8  ;;  %v1500_v29 = vpop.permute.xlu0 %1499  ;;  %v18156_v8 = vmul.f32 %v18116_v10, %v1542_v41  ;;  %v13973_v5 = vpack.c.bf16 %v2973_v30, %v2969_v24  ;;  %v18186_v24 = vrot.slane %v8335_v39, %v23919_v11 }
 0x37d   : > { %23917 = vst [vmem:[#allocation244_spill] sm:$0xff] %v18142_v63  ;;  %1733 = vrot.lane.b32.xlu1 %v23918_v2, %s14895_s8  ;;  %v13971_v58 = vpack.c.bf16 %v2971_v31, %v2967_v34  ;;  %v1486_v48 = vpop.permute.xlu1 %1485  ;;  %v13974_v47 = vpack.c.bf16 %v2974_v35, %v2970_v13  ;;  %v1534_v33 = vsel %vm1519_vm6, %v1484_v56, %v1500_v29  ;;  %v23924_v35 = vld [vmem:[#allocation49_spill] sm:$0xff]  ;;  %v23927_v63 = vld [vmem:[#allocation120_spill] sm:$0xff] }
 0x37e   : > { %23920 = vst [vmem:[#allocation245_spill] sm:$0xff] %v18156_v8  ;;  %v1543_v6 = vsel %vm1519_vm6, %v23921_v36, %v1486_v48  ;;  %v18166_v31 = vrot.slane %v1553_v19, %v23911_v28  ;;  %v18177_v56 = vmul.f32 %v23860_v61, %v2937_v50  ;;  %v18183_v62 = vrot.slane %v1553_v19, %v23927_v63 }
 0x37f   : > { %v1604_v41 = vmul.f32 %v18113_v53, %v1543_v6  ;;  %v18172_v13 = vmul.f32 %v18116_v10, %v1543_v6  ;;  %3838 = vmatpush2.bf16.msra.mxu0 %v13971_v58  ;;  %3910 = vmatprep.subr.bf16.mxu1 %v13974_v47  ;;  %v14488_v6 = vld [vmem:[#allocation6 + $0x8] ss:$56 sps:$4 sm:$0xff]   ;;  %v18191_v50 = vmul.f32 %v18151_v57, %v1534_v33 }
 0x380   : > { %1763 = vrot.lane.b32.xlu0 %v23922_v4, %s14895_s8  ;;  %23925 = vst [vmem:[#allocation246_spill] sm:$0xff] %v18177_v56  ;;  %v1516_v30 = vpop.permute.xlu0 %1515  ;;  %3911 = vmatpush2.bf16.msra.mxu1 %v13973_v5  ;;  %v18199_v26 = vrot.slane %v8335_v39, %v23927_v63  ;;  %v23929_v5 = vld [vmem:[#allocation56_spill] sm:$0xff] }
 0x381   : > { %23923 = vst [vmem:[#allocation47_spill] sm:$0xff] %v18172_v13  ;;  %1749 = vrot.lane.b32.xlu1 %v23924_v35, %s14895_s8  ;;  %v1502_v58 = vpop.permute.xlu1 %1501  ;;  %23928 = vst [vmem:[#allocation120_spill] sm:$0xff] %v18191_v50  ;;  %v14032_v55 = vpack.c.bf16 %v1604_v41, %v1600_v18  ;;  %v1550_v61 = vsel %vm1519_vm6, %v1516_v30, %v23913_v3  ;;  %v1526_v47 = vsel %vm1519_vm6, %v1500_v29, %v1516_v30  ;;  %v23931_v18 = vld [vmem:[#allocation35_spill] sm:$0xff] }
 0x382   : > { %v1535_v19 = vsel %vm1519_vm6, %v1486_v48, %v1502_v58  ;;  %v1601_v3 = vmul.f32 %v18148_v21, %v1534_v33  ;;  %v1599_v48 = vmul.f32 %v18166_v31, %v1550_v61  ;;  %3840 = vmatmul.mubr.bf16.vlgmr.msra.gmra.mxu0 %v14488_v6  ;;  %v1602_v30 = vmul.f32 %v18183_v62, %v1526_v47 }
 0x383   : > { %v18206_v34 = vmul.f32 %v18151_v57, %v1535_v19  ;;  %4313 = vmatprep.subr.bf16.mxu0 %v14032_v55  ;;  %3913 = vmatmul.mubr.bf16.vlgmr.msra.gmra.mxu1 %v14488_v6  ;;  %v18216_v37 = vmul.f32 %v18186_v24, %v1526_v47  ;;  %v1605_v32 = vmul.f32 %v18148_v21, %v1535_v19  ;;  %v23935_v47 = vld [vmem:[#allocation25_spill] sm:$0xff] }
 0x384   : > { %1779 = vrot.lane.b32.xlu0 %v23929_v5, %s14895_s8  ;;  %v1480_v41 = vpop.permute.xlu0 %1479  ;;  %v18230_v7 = vmul.f32 %v18199_v26, %v1550_v61 }
 0x385   : > { %23930 = vst [vmem:[#allocation248_spill] sm:$0xff] %v18206_v34  ;;  %1765 = vrot.lane.b32.xlu1 %v23931_v18, %s14895_s8  ;;  %v1518_v29 = vpop.permute.xlu1 %1517  ;;  %23932 = vst [vmem:[#allocation249_spill] sm:$0xff] %v18216_v37  ;;  %v1540_v55 = vsel %vm1519_vm6, %v23933_v46, %v1480_v41  ;;  %v1289_v37 = vld [vmem:[#allocation3] ss:$8 sm:$0xf] }
 0x386   : > { %v1527_v6 = vsel %vm1519_vm6, %v1502_v58, %v1518_v29  ;;  %v1551_v39 = vsel %vm1519_vm6, %v1518_v29, %v23921_v36  ;;  %23934 = vst [vmem:[#allocation12_spill] sm:$0xff] %v18230_v7  ;;  %v23938_v58 = vld [vmem:[#allocation61_spill] sm:$0xff]  ;;  %v1592_v36 = vmul.f32 %v18113_v53, %v1540_v55  ;;  %v18248_v13 = vmul.f32 %v18116_v10, %v1540_v55  ;;  %v23949_v7 = vld [vmem:[#allocation15_spill] sm:$0xff]  ;;  %v23958_v18 = vld [vmem:[#allocation40_spill] sm:$0xff] }
 0x387   : > { %v1603_v56 = vmul.f32 %v18166_v31, %v1551_v39  ;;  %v1606_v54 = vmul.f32 %v18183_v62, %v1527_v6  ;;  %v18237_v33 = vmul.f32 %v18186_v24, %v1527_v6  ;;  %v18240_v19 = vmul.f32 %v18199_v26, %v1551_v39  ;;  %v23940_v6 = vld [vmem:[#allocation44_spill] sm:$0xff] }
 0x388   : > { %1727 = vrot.lane.b32.xlu0 %v23935_v47, %s14895_s8  ;;  %v1496_v61 = vpop.permute.xlu0 %1495  ;;  %23939 = vst [vmem:[#allocation252_spill] sm:$0xff] %v18248_v13  ;;  %v23941_v47 = vld [vmem:[#allocation41_spill] sm:$0xff] }
 0x389   : > { %23936 = vst [vmem:[#allocation250_spill] sm:$0xff] %v18237_v33  ;;  %23937 = vst [vmem:[#allocation251_spill] sm:$0xff] %v18240_v19  ;;  %1781 = vrot.lane.b32.xlu1 %v23938_v58, %s14895_s8  ;;  %v14031_v29 = vpack.c.bf16 %v1603_v56, %v1599_v48  ;;  %v1482_v8 = vpop.permute.xlu1 %1481  ;;  %v14034_v50 = vpack.c.bf16 %v1606_v54, %v1602_v30  ;;  %v1532_v34 = vsel %vm1519_vm6, %v1480_v41, %v1496_v61  ;;  %v23943_v54 = vld [vmem:[#allocation24_spill] sm:$0xff]  ;;  %v23947_v41 = vld [vmem:[#allocation46_spill] sm:$0xff] }
 0x38a   : > { %v1541_v39 = vsel %vm1519_vm6, %v23940_v6, %v1482_v8  ;;  %v14033_v48 = vpack.c.bf16 %v1605_v32, %v1601_v3  ;;  %v18268_v56 = vmul.f32 %v18151_v57, %v1532_v34 }
 0x38b   : > { %v1596_v52 = vmul.f32 %v18113_v53, %v1541_v39  ;;  %v18261_v55 = vmul.f32 %v18116_v10, %v1541_v39  ;;  %4314 = vmatpush1.bf16.msra.mxu0 %v14031_v29  ;;  %4386 = vmatprep.subr.bf16.mxu1 %v14034_v50  ;;  %v23945_v29 = vld [vmem:[#allocation31_spill] sm:$0xff] }
 0x38c   : > { %1743 = vrot.lane.b32.xlu0 %v23941_v47, %s14895_s8  ;;  %v1512_v30 = vpop.permute.xlu0 %1511  ;;  %4387 = vmatpush1.bf16.msra.mxu1 %v14033_v48  ;;  %23944 = vst [vmem:[#allocation253_spill] sm:$0xff] %v18268_v56 }
 0x38d   : > { %23942 = vst [vmem:[#allocation44_spill] sm:$0xff] %v18261_v55  ;;  %1729 = vrot.lane.b32.xlu1 %v23943_v54, %s14895_s8  ;;  %v1498_v33 = vpop.permute.xlu1 %1497  ;;  %v14028_v32 = vpack.c.bf16 %v1596_v52, %v1592_v36  ;;  %v1548_v3 = vsel %vm1519_vm6, %v1512_v30, %v23933_v46  ;;  %v1524_v50 = vsel %vm1519_vm6, %v1496_v61, %v1512_v30 }
 0x38e   : > { %v1533_v39 = vsel %vm1519_vm6, %v1482_v8, %v1498_v33  ;;  %v18285_v52 = vrot.slane %v1289_v37, %v23910_v17  ;;  %v18288_v46 = vrot.slane %v1289_v37, %v23919_v11  ;;  %v1593_v8 = vmul.f32 %v18148_v21, %v1532_v34 }
 0x38f   : > { %v18280_v48 = vmul.f32 %v18151_v57, %v1533_v39  ;;  %4315 = vmatprep.subr.bf16.mxu0 %v14028_v32  ;;  %v1591_v36 = vmul.f32 %v18166_v31, %v1548_v3  ;;  %v1594_v13 = vmul.f32 %v18183_v62, %v1524_v50  ;;  %v18294_v55 = vmul.f32 %v18186_v24, %v1524_v50 }
 0x390   : > { %1759 = vrot.lane.b32.xlu0 %v23945_v29, %s14895_s8  ;;  %v1476_v61 = vpop.permute.xlu0 %1475  ;;  %v1597_v29 = vmul.f32 %v18148_v21, %v1533_v39  ;;  %v18308_v47 = vmul.f32 %v18199_v26, %v1548_v3  ;;  %v18327_v3 = vrot.slane %v1289_v37, %v23911_v28 }
 0x391   : > { %23946 = vst [vmem:[#allocation254_spill] sm:$0xff] %v18280_v48  ;;  %1745 = vrot.lane.b32.xlu1 %v23947_v41, %s14895_s8  ;;  %v1514_v30 = vpop.permute.xlu1 %1513  ;;  %23948 = vst [vmem:[#allocation255_spill] sm:$0xff] %v18294_v55  ;;  %v1538_v32 = vsel %vm1519_vm6, %v23949_v7, %v1476_v61  ;;  %v23963_v55 = vld [vmem:[#allocation108_spill] sm:$0xff] }
 0x392   : > { %v1525_v34 = vsel %vm1519_vm6, %v1498_v33, %v1514_v30  ;;  %v1549_v41 = vsel %vm1519_vm6, %v1514_v30, %v23940_v6  ;;  %23950 = vst [vmem:[#allocation15_spill] sm:$0xff] %v18308_v47  ;;  %v23953_v33 = vld [vmem:[#allocation145_spill] sm:$0xff]  ;;  %v18330_v30 = vrot.slane %v1289_v37, %v23927_v63  ;;  %v1584_v56 = vmul.f32 %v18113_v53, %v1538_v32  ;;  %v23967_v47 = vld [vmem:[#allocation107_spill] sm:$0xff] }
 0x393   : > { %v1595_v50 = vmul.f32 %v18166_v31, %v1549_v41  ;;  %v1598_v54 = vmul.f32 %v18183_v62, %v1525_v34  ;;  %v18315_v19 = vmul.f32 %v18186_v24, %v1525_v34  ;;  %v18318_v39 = vmul.f32 %v18199_v26, %v1549_v41 }
 0x394   : > { %1775 = vrot.lane.b32.xlu0 %v23862_v60, %s14895_s8  ;;  %v18324_v6 = vmul.f32 %v18288_v46, %v23953_v33  ;;  %v1492_v34 = vpop.permute.xlu0 %1491  ;;  %v23956_v33 = vld [vmem:[#allocation147_spill] sm:$0xff] }
 0x395   : > { %23951 = vst [vmem:[#allocation256_spill] sm:$0xff] %v18315_v19  ;;  %23952 = vst [vmem:[#allocation257_spill] sm:$0xff] %v18318_v39  ;;  %1761 = vrot.lane.b32.xlu1 %v23864_v15, %s14895_s8  ;;  %v14027_v48 = vpack.c.bf16 %v1595_v50, %v1591_v36  ;;  %v1478_v60 = vpop.permute.xlu1 %1477  ;;  %v18336_v15 = vmul.f32 %v18116_v10, %v1538_v32  ;;  %v14030_v58 = vpack.c.bf16 %v1598_v54, %v1594_v13  ;;  %v23960_v50 = vld [vmem:[#allocation105_spill] sm:$0xff] }
 0x396   : > { %23954 = vst [vmem:[#allocation145_spill] sm:$0xff] %v18324_v6  ;;  %v18340_v5 = vmul.f32 %v18288_v46, %v23956_v33  ;;  %v1539_v37 = vsel %vm1519_vm6, %v23958_v18, %v1478_v60  ;;  %v1530_v4 = vsel %vm1519_vm6, %v1476_v61, %v1492_v34  ;;  %v14029_v32 = vpack.c.bf16 %v1597_v29, %v1593_v8  ;;  %v23961_v61 = vld [vmem:[#allocation155_spill] sm:$0xff]  ;;  %v23964_v8 = vld [vmem:[#allocation148_spill] sm:$0xff] }
 0x397   : > { %23955 = vst [vmem:[#allocation258_spill] sm:$0xff] %v18336_v15  ;;  %v1588_v13 = vmul.f32 %v18113_v53, %v1539_v37  ;;  %v18353_v54 = vmul.f32 %v18116_v10, %v1539_v37  ;;  %4316 = vmatpush1.bf16.msra.mxu0 %v14027_v48  ;;  %v18359_v33 = vmul.f32 %v18285_v52, %v23960_v50 }
 0x398   : > { %23957 = vst [vmem:[#allocation147_spill] sm:$0xff] %v18340_v5  ;;  %1723 = vrot.lane.b32.xlu0 %v23867_v14, %s14895_s8  ;;  %v18363_v41 = vmul.f32 %v18288_v46, %v23961_v61  ;;  %v18367_v29 = vmul.f32 %v18285_v52, %v23963_v55  ;;  %v18371_v37 = vmul.f32 %v18288_v46, %v23964_v8  ;;  %v1508_v36 = vpop.permute.xlu0 %1507  ;;  %v24180_v44 = vld [vmem:[#allocation254_spill] sm:$0xff] }
 0x399   : > { %23959 = vst [vmem:[#allocation40_spill] sm:$0xff] %v18353_v54  ;;  %1777 = vrot.lane.b32.xlu1 %v16084_v1, %s14895_s8  ;;  %4388 = vmatprep.subr.bf16.mxu1 %v14030_v58  ;;  %v1494_v50 = vpop.permute.xlu1 %1493  ;;  %v18376_v19 = vmul.f32 %v18151_v57, %v1530_v4  ;;  %v14024_v61 = vpack.c.bf16 %v1588_v13, %v1584_v56  ;;  %v23968_v56 = vld [vmem:[#allocation112_spill] sm:$0xff] }
 0x39a   : > { %23962 = vst [vmem:[#allocation105_spill] sm:$0xff] %v18363_v41  ;;  %23965 = vst [vmem:[#allocation155_spill] sm:$0xff] %v18371_v37  ;;  %4389 = vmatpush1.bf16.msra.mxu1 %v14029_v32  ;;  %v1546_v55 = vsel %vm1519_vm6, %v1508_v36, %v23949_v7  ;;  %v18383_v39 = vmul.f32 %v18285_v52, %v23967_v47  ;;  %v1531_v8 = vsel %vm1519_vm6, %v1478_v60, %v1494_v50  ;;  %v23969_v7 = vld [vmem:[#allocation160_spill] sm:$0xff]  ;;  %v23971_v60 = vld [vmem:[#allocation111_spill] sm:$0xff] }
 0x39b   : > { %23966 = vst [vmem:[#allocation108_spill] sm:$0xff] %v18376_v19  ;;  %v1522_v32 = vsel %vm1519_vm6, %v1492_v34, %v1508_v36  ;;  %v18395_v13 = vmul.f32 %v18285_v52, %v23968_v56  ;;  %v18399_v47 = vmul.f32 %v18288_v46, %v23969_v7  ;;  %v18402_v48 = vmul.f32 %v18151_v57, %v1531_v8  ;;  %v23979_v19 = vld [vmem:[#allocation152_spill] sm:$0xff]  ;;  %v23981_v37 = vld [vmem:[#allocation151_spill] sm:$0xff] }
 0x39c   : > { %1739 = vrot.lane.b32.xlu0 %v23877_v16, %s14895_s8  ;;  %4317 = vmatprep.subr.bf16.mxu0 %v14024_v61  ;;  %v18408_v34 = vmul.f32 %v18285_v52, %v23971_v60  ;;  %v1585_v56 = vmul.f32 %v18148_v21, %v1530_v4  ;;  %v1583_v58 = vmul.f32 %v18166_v31, %v1546_v55  ;;  %v1472_v7 = vpop.permute.xlu0 %1471  ;;  %v23982_v41 = vld [vmem:[#allocation16_spill] sm:$0xff] }
 0x39d   : > { %23970 = vst [vmem:[#allocation148_spill] sm:$0xff] %v18402_v48  ;;  %1725 = vrot.lane.b32.xlu1 %v23883_v49, %s14895_s8  ;;  %v1510_v15 = vpop.permute.xlu1 %1509  ;;  %v1586_v54 = vmul.f32 %v18183_v62, %v1522_v32  ;;  %v18416_v16 = vmul.f32 %v18186_v24, %v1522_v32  ;;  %v23973_v49 = vld [vmem:[#allocation21_spill] sm:$0xff]  ;;  %v1589_v36 = vmul.f32 %v18148_v21, %v1531_v8 }
 0x39e   : > { %v1536_v61 = vsel %vm1519_vm6, %v23973_v49, %v1472_v7  ;;  %v1523_v4 = vsel %vm1519_vm6, %v1494_v50, %v1510_v15  ;;  %v1547_v14 = vsel %vm1519_vm6, %v1510_v15, %v23958_v18  ;;  %v18430_v1 = vmul.f32 %v18199_v26, %v1546_v55  ;;  %v23977_v15 = vld [vmem:[#allocation162_spill] sm:$0xff]  ;;  %v23978_v50 = vld [vmem:[#allocation116_spill] sm:$0xff] }
 0x39f   : > { %23972 = vst [vmem:[#allocation107_spill] sm:$0xff] %v18416_v16  ;;  %v1587_v32 = vmul.f32 %v18166_v31, %v1547_v14  ;;  %v1590_v6 = vmul.f32 %v18183_v62, %v1523_v4  ;;  %v18437_v60 = vmul.f32 %v18186_v24, %v1523_v4  ;;  %v18440_v8 = vmul.f32 %v18199_v26, %v1547_v14 }
 0x3a0   : > { %23974 = vst [vmem:[#allocation112_spill] sm:$0xff] %v18430_v1  ;;  %1755 = vrot.lane.b32.xlu0 %v23886_v42, %s14895_s8  ;;  %v18446_v18 = vmul.f32 %v18288_v46, %v23977_v15  ;;  %v18450_v55 = vmul.f32 %v18285_v52, %v23978_v50  ;;  %v18454_v48 = vmul.f32 %v18288_v46, %v23979_v19  ;;  %v1488_v42 = vpop.permute.xlu0 %1487 }
 0x3a1   : > { %23975 = vst [vmem:[#allocation160_spill] sm:$0xff] %v18437_v60  ;;  %23976 = vst [vmem:[#allocation111_spill] sm:$0xff] %v18440_v8  ;;  %1741 = vrot.lane.b32.xlu1 %v23887_v40, %s14895_s8  ;;  %v1576_v4 = vmul.f32 %v18113_v53, %v1536_v61  ;;  %v14023_v14 = vpack.c.bf16 %v1587_v32, %v1583_v58  ;;  %v1474_v40 = vpop.permute.xlu1 %1473  ;;  %v18460_v35 = vmul.f32 %v18116_v10, %v1536_v61  ;;  %v23985_v32 = vld [vmem:[#allocation173_spill] sm:$0xff]  ;;  %v14493_v60 = vld [vmem:[#allocation6 + $0x78] ss:$56 sps:$4 sm:$0xff]  }
 0x3a2   : > { %v14026_v15 = vpack.c.bf16 %v1590_v6, %v1586_v54  ;;  %v18464_v50 = vmul.f32 %v18288_v46, %v23981_v37  ;;  %v1537_v19 = vsel %vm1519_vm6, %v23982_v41, %v1474_v40  ;;  %v1528_v45 = vsel %vm1519_vm6, %v1472_v7, %v1488_v42  ;;  %v23984_v46 = vld [vmem:[#allocation115_spill] sm:$0xff] }
 0x3a3   : > { %23980 = vst [vmem:[#allocation21_spill] sm:$0xff] %v18460_v35  ;;  %v14025_v61 = vpack.c.bf16 %v1589_v36, %v1585_v56  ;;  %v1580_v6 = vmul.f32 %v18113_v53, %v1537_v19  ;;  %v18477_v54 = vmul.f32 %v18116_v10, %v1537_v19  ;;  %4318 = vmatpush1.bf16.msra.mxu0 %v14023_v14  ;;  %v23986_v36 = vld [vmem:[#allocation123_spill] sm:$0xff]  ;;  %v23987_v56 = vld [vmem:[#allocation122_spill] sm:$0xff] }
 0x3a4   : > { %1771 = vrot.lane.b32.xlu0 %v23889_v38, %s14895_s8  ;;  %v18483_v37 = vmul.f32 %v18285_v52, %v23984_v46  ;;  %v18489_v5 = vmul.f32 %v18327_v3, %v23985_v32  ;;  %v18493_v53 = vmul.f32 %v18330_v30, %v23986_v36  ;;  %4390 = vmatprep.subr.bf16.mxu1 %v14026_v15  ;;  %v1504_v10 = vpop.permute.xlu0 %1503 }
 0x3a5   : > { %23983 = vst [vmem:[#allocation162_spill] sm:$0xff] %v18477_v54  ;;  %1757 = vrot.lane.b32.xlu1 %v23891_v0, %s14895_s8  ;;  %v18497_v14 = vmul.f32 %v18285_v52, %v23987_v56  ;;  %4391 = vmatpush1.bf16.msra.mxu1 %v14025_v61  ;;  %v1490_v46 = vpop.permute.xlu1 %1489  ;;  %v18502_v58 = vmul.f32 %v18151_v57, %v1528_v45  ;;  %v23989_v61 = vld [vmem:[#allocation53_spill] sm:$0xff] }
 0x3a6   : > { %v14020_v32 = vpack.c.bf16 %v1580_v6, %v1576_v4  ;;  %v1529_v15 = vsel %vm1519_vm6, %v1474_v40, %v1490_v46  ;;  %v1520_v36 = vsel %vm1519_vm6, %v1488_v42, %v1504_v10  ;;  %v1544_v52 = vsel %vm1519_vm6, %v1504_v10, %v23973_v49  ;;  %v23990_v4 = vld [vmem:[#allocation130_spill] sm:$0xff]  ;;  %v23992_v42 = vld [vmem:[#allocation60_spill] sm:$0xff]  ;;  %v23993_v10 = vld [vmem:[#allocation177_spill] sm:$0xff] }
 0x3a7   : > { %23988 = vst [vmem:[#allocation116_spill] sm:$0xff] %v18502_v58  ;;  %v18517_v56 = vmul.f32 %v18327_v3, %v23989_v61  ;;  %v18521_v6 = vmul.f32 %v18330_v30, %v23990_v4  ;;  %v18524_v40 = vmul.f32 %v18151_v57, %v1529_v15  ;;  %v18530_v49 = vmul.f32 %v18327_v3, %v23992_v42  ;;  %v14491_v42 = vld [vmem:[#allocation6 + $0x7c] ss:$56 sps:$4 sm:$0xff]   ;;  %v24000_v58 = vld [vmem:[#allocation157_spill] sm:$0xff] }
 0x3a8   : > { %1719 = vrot.lane.b32.xlu0 %v23892_v51, %s14895_s8  ;;  %4319 = vmatprep.subr.bf16.mxu0 %v14020_v32  ;;  %v18534_v19 = vmul.f32 %v18327_v3, %v23993_v10  ;;  %v1577_v61 = vmul.f32 %v18148_v21, %v1528_v45  ;;  %v18537_v7 = vpop.permute.xlu0 %1995  ;;  %v1575_v4 = vmul.f32 %v18166_v31, %v1544_v52 }
 0x3a9   : > { %23991 = vst [vmem:[#allocation152_spill] sm:$0xff] %v18524_v40  ;;  %1773 = vrot.lane.b32.xlu1 %v23893_v27, %s14895_s8  ;;  %v1506_v57 = vpop.permute.xlu1 %1505  ;;  %v1578_v16 = vmul.f32 %v18183_v62, %v1520_v36  ;;  %v18543_v32 = vmul.f32 %v18186_v24, %v1520_v36  ;;  %v1581_v35 = vmul.f32 %v18148_v21, %v1529_v15  ;;  %v18558_v36 = vld [vmem:[#allocation3 + $0x45] ss:$8 sm:$0xf] }
 0x3aa   : > { %v1521_v45 = vsel %vm1519_vm6, %v1490_v46, %v1506_v57  ;;  %v1545_v54 = vsel %vm1519_vm6, %v1506_v57, %v23982_v41  ;;  %v18554_v1 = vmul.f32 %v18199_v26, %v1544_v52  ;;  %v23998_v41 = vld [vmem:[#allocation176_spill] sm:$0xff]  ;;  %v23999_v52 = vld [vmem:[#allocation170_spill] sm:$0xff]  ;;  %3849 = vmatprep.mubr.bf16.mxu0 %v14491_v42  ;;  %3922 = vmatprep.mubr.bf16.mxu1 %v14491_v42 }
 0x3ab   : > { %23994 = vst [vmem:[#allocation151_spill] sm:$0xff] %v18543_v32  ;;  %v1579_v8 = vmul.f32 %v18166_v31, %v1545_v54  ;;  %v1582_v10 = vmul.f32 %v18183_v62, %v1521_v45  ;;  %v18563_v21 = vmul.f32 %v18186_v24, %v1521_v45  ;;  %v18566_v46 = vmul.f32 %v18199_v26, %v1545_v54  ;;  %v24003_v24 = vld [vmem:[#allocation142_spill] sm:$0xff] }
 0x3ac   : > { %23995 = vst [vmem:[#allocation16_spill] sm:$0xff] %v18554_v1  ;;  %1735 = vrot.lane.b32.xlu0 %v23897_v25, %s14895_s8  ;;  %v1339_v15 = vmul.f32 %v18327_v3, %v23998_v41  ;;  %v1342_v57 = vmul.f32 %v18330_v30, %v23999_v52  ;;  %v1338_v31 = vmul.f32 %v18330_v30, %v24000_v58  ;;  %v2012_v40 = vpop.permute.xlu0 %2011  ;;  %v14494_v41 = vld [vmem:[#allocation6 + $0xec] ss:$56 sps:$4 sm:$0xff]  }
 0x3ad   : > { %23996 = vst [vmem:[#allocation115_spill] sm:$0xff] %v18563_v21  ;;  %23997 = vst [vmem:[#allocation173_spill] sm:$0xff] %v18566_v46  ;;  %1721 = vrot.lane.b32.xlu1 %v23899_v43, %s14895_s8  ;;  %v14019_v62 = vpack.c.bf16 %v1579_v8, %v1575_v4  ;;  %v18578_v26 = vpop.permute.xlu1 %1997  ;;  %v14022_v54 = vpack.c.bf16 %v1582_v10, %v1578_v16  ;;  %v18582_v45 = vrot.slane %v18558_v36, %v23911_v28  ;;  %v24001_v8 = vld [vmem:[#allocation55_spill] sm:$0xff]  ;;  %v24004_v21 = vld [vmem:[#allocation57_spill] sm:$0xff] }
 0x3ae   : > { %3850 = vmatmul.mubr.bf16.gmra.mxu0 %v14493_v60  ;;  %v14016_v52 = vpack.c.bf16 %v18497_v14, %v18450_v55  ;;  %v18589_v58 = vsel %vm2047_vm7, %v18537_v7, %v2012_v40  ;;  %3923 = vmatmul.mubr.bf16.gmra.mxu1 %v14493_v60  ;;  %v1327_v4 = vmul.f32 %v18327_v3, %v24001_v8  ;;  %v24002_v14 = vld [vmem:[#allocation156_spill] sm:$0xff] }
 0x3af   : > { %v14021_v42 = vpack.c.bf16 %v1581_v35, %v1577_v61  ;;  %4320 = vmatpush1.bf16.msra.mxu0 %v14019_v62  ;;  %v14012_v55 = vpack.c.bf16 %v18483_v37, %v18395_v13  ;;  %v1334_v10 = vmul.f32 %v18330_v30, %v24002_v14  ;;  %v1330_v60 = vmul.f32 %v18330_v30, %v24003_v24  ;;  %v24006_v37 = vld [vmem:[#allocation38_spill] sm:$0xff]  ;;  %v24007_v24 = vld [vmem:[#allocation141_spill] sm:$0xff] }
 0x3b0   : > { %1751 = vrot.lane.b32.xlu0 %v23900_v9, %s14895_s8  ;;  %4392 = vmatprep.subr.bf16.mxu1 %v14022_v54  ;;  %v14018_v16 = vpack.c.bf16 %v1342_v57, %v1338_v31  ;;  %v2028_v32 = vpop.permute.xlu0 %2027  ;;  %v1331_v35 = vmul.f32 %v18327_v3, %v24004_v21  ;;  %v14015_v61 = vpack.c.bf16 %v1339_v15, %v18534_v19  ;;  %v24008_v19 = vld [vmem:[#allocation129_spill] sm:$0xff] }
 0x3b1   : > { %1737 = vrot.lane.b32.xlu1 %v23903_v20, %s14895_s8  ;;  %4321 = vmatprep.subr.bf16.mxu0 %v14016_v52  ;;  %v18610_v13 = vmul.f32 %v18582_v45, %v18589_v58  ;;  %v1323_v8 = vmul.f32 %v18327_v3, %v24006_v37  ;;  %v1326_v54 = vmul.f32 %v18330_v30, %v24007_v24  ;;  %v2081_v31 = vld [vmem:[#allocation3 + $0x3] ss:$8 sm:$0xf] }
 0x3b2   : > { %4393 = vmatpush1.bf16.msra.mxu1 %v14021_v42  ;;  %v2014_v62 = vpop.permute.xlu1 %2013  ;;  %3859 = vmatprep.mubr.bf16.mxu0 %v14494_v41  ;;  %v18623_v21 = vmul.f32 %v18330_v30, %v24008_v19  ;;  %v14003_v15 = vpack.c.bf16 %v18530_v49, %v18489_v5  ;;  %v14014_v52 = vpack.c.bf16 %v1334_v10, %v1330_v60  ;;  %v14502_v49 = vld [vmem:[#allocation6 + $0x4] ss:$56 sps:$4 sm:$0xff]  }
 0x3b3   : > { %24005 = vst [vmem:[#allocation123_spill] sm:$0xff] %v18610_v13  ;;  %v2071_v57 = vsel %vm2047_vm7, %v18578_v26, %v2014_v62  ;;  %4394 = vmatprep.subr.bf16.mxu1 %v14018_v16  ;;  %4322 = vmatpush1.bf16.msra.mxu0 %v14015_v61  ;;  %v14008_v16 = vpack.c.bf16 %v18408_v34, %v18367_v29  ;;  %v14496_v34 = vld [vmem:[#allocation6 + $0xe8] ss:$56 sps:$4 sm:$0xff]  }
 0x3b4   : > { %1767 = vrot.lane.b32.xlu0 %v23905_v12, %s14895_s8  ;;  %v18628_v3 = vmul.f32 %v18582_v45, %v2071_v57  ;;  %4323 = vmatprep.subr.bf16.mxu0 %v14012_v55  ;;  %v14004_v30 = vpack.c.bf16 %v18383_v39, %v18359_v33  ;;  %v14011_v14 = vpack.c.bf16 %v1331_v35, %v1327_v4 }
 0x3b5   : > { %1753 = vrot.lane.b32.xlu1 %v23907_v23, %s14895_s8  ;;  %v2044_v42 = vpop.permute.xlu0 %2043  ;;  %3932 = vmatprep.mubr.bf16.mxu1 %v14494_v41  ;;  %v24010_v24 = vpack.c.bf16 %v18464_v50, %v18454_v48  ;;  %v18643_v55 = vrot.slane %v18558_v36, %v23910_v17  ;;  %v18647_v29 = vrot.slane %v18558_v36, %v23919_v11 }
 0x3b6   : > { %24009 = vst [vmem:[#allocation122_spill] sm:$0xff] %v18628_v3  ;;  %v2030_v10 = vpop.permute.xlu1 %2029  ;;  %v14007_v39 = vpack.c.bf16 %v1323_v8, %v18517_v56  ;;  %v2062_v33 = vsel %vm2047_vm7, %v2012_v40, %v2028_v32  ;;  %v14010_v41 = vpack.c.bf16 %v1326_v54, %v18521_v6  ;;  %v2054_v48 = vsel %vm2047_vm7, %v2028_v32, %v2044_v42 }
 0x3b7   : > { %4395 = vmatpush1.bf16.msra.mxu1 %v24010_v24  ;;  %v18656_v50 = vrot.slane %v2081_v31, %v23910_v17  ;;  %v2063_v4 = vsel %vm2047_vm7, %v2014_v62, %v2030_v10  ;;  %4324 = vmatpush1.bf16.msra.mxu0 %v14011_v14  ;;  %v14006_v56 = vpack.c.bf16 %v18623_v21, %v18493_v53  ;;  %v24025_v24 = vld [vmem:[#allocation145_spill] sm:$0xff] }
 0x3b8   : > { %4396 = vmatprep.subr.bf16.mxu1 %v14014_v52  ;;  %v18665_v40 = vrot.slane %v2081_v31, %v23919_v11  ;;  %4325 = vmatprep.subr.bf16.mxu0 %v14008_v16  ;;  %v18668_v6 = vrot.slane %v2081_v31, %v23911_v28  ;;  %v18671_v32 = vrot.slane %v2081_v31, %v23927_v63 }
 0x3b9   : > { %1769 = vrot.lane.b32.xlu1 %v23909_v59, %s14895_s8  ;;  %4735 = vrot.lane.b32.xlu0 %v23908_v22, %s14896_s9  ;;  %v18675_v60 = vpop.permute.xlu0 %1991  ;;  %v18678_v35 = vmul.f32 %v18643_v55, %v2062_v33  ;;  %v24012_v53 = vpack.c.bf16 %v18446_v18, %v18399_v47  ;;  %v18685_v61 = vrot.slane %v18558_v36, %v23927_v63  ;;  %v14497_v18 = vld [vmem:[#allocation6 + $0x15c] ss:$56 sps:$4 sm:$0xff]  }
 0x3ba   : > { %v2046_v62 = vpop.permute.xlu1 %2045  ;;  %v18688_v8 = vmul.f32 %v18647_v29, %v2054_v48  ;;  %3860 = vmatmul.mubr.bf16.gmra.mxu0 %v14496_v34  ;;  %v18691_v54 = vmul.f32 %v18643_v55, %v2063_v4  ;;  %v2078_v47 = vsel %vm2047_vm7, %v2044_v42, %v18537_v7  ;;  %3933 = vmatmul.mubr.bf16.gmra.mxu1 %v14496_v34  ;;  %v24018_v34 = vld [vmem:[#allocation155_spill] sm:$0xff] }
 0x3bb   : > { %24011 = vst [vmem:[#allocation53_spill] sm:$0xff] %v18678_v35  ;;  %4397 = vmatpush1.bf16.msra.mxu1 %v24012_v53  ;;  %v2055_v19 = vsel %vm2047_vm7, %v2030_v10, %v2046_v62  ;;  %v2132_v36 = vmul.f32 %v18656_v50, %v2071_v57  ;;  %v2128_v21 = vmul.f32 %v18656_v50, %v18589_v58  ;;  %v24016_v57 = vld [vmem:[#allocation45_spill] sm:$0xff]  ;;  %v24053_v35 = vld [vmem:[#allocation23_spill] sm:$0xff] }
 0x3bc   : > { %24013 = vst [vmem:[#allocation130_spill] sm:$0xff] %v18688_v8  ;;  %24014 = vst [vmem:[#allocation60_spill] sm:$0xff] %v18691_v54  ;;  %4398 = vmatprep.subr.bf16.mxu1 %v14010_v41  ;;  %v2079_v31 = vsel %vm2047_vm7, %v2046_v62, %v18578_v26  ;;  %v18705_v52 = vmul.f32 %v18647_v29, %v2055_v19  ;;  %v2129_v16 = vmul.f32 %v18665_v40, %v2062_v33  ;;  %v24017_v10 = vld [vmem:[#allocation105_spill] sm:$0xff]  ;;  %v24037_v8 = vld [vmem:[#allocation24_spill] sm:$0xff] }
 0x3bd   : > { %4737 = vrot.lane.b32.xlu1 %v23918_v2, %s14896_s9  ;;  %v2134_v7 = vmul.f32 %v18671_v32, %v2055_v19  ;;  %v2130_v42 = vmul.f32 %v18671_v32, %v2054_v48  ;;  %4326 = vmatpush1.bf16.msra.mxu0 %v14007_v39  ;;  %v2133_v14 = vmul.f32 %v18665_v40, %v2063_v4  ;;  %v14499_v4 = vld [vmem:[#allocation6 + $0x158] ss:$56 sps:$4 sm:$0xff]   ;;  %v24022_v19 = vld [vmem:[#allocation49_spill] sm:$0xff] }
 0x3be   : > { %24015 = vst [vmem:[#allocation177_spill] sm:$0xff] %v18705_v52  ;;  %4751 = vrot.lane.b32.xlu0 %v24016_v57, %s14896_s9  ;;  %v2008_v58 = vpop.permute.xlu0 %2007  ;;  %v2127_v26 = vmul.f32 %v18668_v6, %v2078_v47  ;;  %4327 = vmatprep.subr.bf16.mxu0 %v14004_v30  ;;  %v24019_v33 = vpack.c.bf16 %v24017_v10, %v24018_v34  ;;  %v24023_v34 = vld [vmem:[#allocation33_spill] sm:$0xff] }
 0x3bf   : > { %v1994_v41 = vpop.permute.xlu1 %1993  ;;  %v2131_v48 = vmul.f32 %v18668_v6, %v2079_v31  ;;  %v2068_v39 = vsel %vm2047_vm7, %v18675_v60, %v2008_v58  ;;  %3869 = vmatprep.mubr.bf16.mxu0 %v14497_v18  ;;  %v18728_v62 = vmul.f32 %v18685_v61, %v2079_v31  ;;  %v18731_v30 = vmul.f32 %v18685_v61, %v2078_v47  ;;  %v24024_v31 = vld [vmem:[#allocation147_spill] sm:$0xff] }
 0x3c0   : > { %4399 = vmatpush1.bf16.msra.mxu1 %v24019_v33  ;;  %v14064_v10 = vpack.c.bf16 %v2132_v36, %v2128_v21  ;;  %3942 = vmatprep.mubr.bf16.mxu1 %v14497_v18  ;;  %v24026_v37 = vpack.c.bf16 %v24024_v31, %v24025_v24  ;;  %v2120_v53 = vmul.f32 %v18656_v50, %v2068_v39  ;;  %v24031_v31 = vld [vmem:[#allocation61_spill] sm:$0xff] }
 0x3c1   : > { %4400 = vmatprep.subr.bf16.mxu1 %v14006_v56  ;;  %24020 = vst [vmem:[#allocation176_spill] sm:$0xff] %v18728_v62  ;;  %24021 = vst [vmem:[#allocation170_spill] sm:$0xff] %v18731_v30  ;;  %4753 = vrot.lane.b32.xlu1 %v24022_v19, %s14896_s9  ;;  %v14066_v56 = vpack.c.bf16 %v2134_v7, %v2130_v42  ;;  %v18745_v36 = vmul.f32 %v18582_v45, %v2068_v39 }
 0x3c2   : > { %4328 = vmatpush1.bf16.msra.mxu0 %v14003_v15  ;;  %4767 = vrot.lane.b32.xlu0 %v24023_v34, %s14896_s9  ;;  %v2024_v33 = vpop.permute.xlu0 %2023  ;;  %v14065_v18 = vpack.c.bf16 %v2133_v14, %v2129_v16  ;;  %v14063_v21 = vpack.c.bf16 %v2131_v48, %v2127_v26  ;;  %v24030_v16 = vld [vmem:[#allocation56_spill] sm:$0xff] }
 0x3c3   : > { %4329 = vmatprep.subr.bf16.mxu0 %v14064_v10  ;;  %v2010_v47 = vpop.permute.xlu1 %2009  ;;  %24027 = vst [vmem:[#allocation157_spill] sm:$0xff] %v18745_v36  ;;  %3870 = vmatmul.mubr.bf16.gmra.mxu0 %v14499_v4  ;;  %v2060_v39 = vsel %vm2047_vm7, %v2008_v58, %v2024_v33 }
 0x3c4   : > { %4401 = vmatpush1.bf16.msra.mxu1 %v24026_v37  ;;  %v2069_v5 = vsel %vm2047_vm7, %v1994_v41, %v2010_v47  ;;  %v24029_v37 = vld [vmem:[#allocation35_spill] sm:$0xff]  ;;  %4345 = vmatprep.mubr.bf16.mxu0 %v14502_v49  ;;  %v2121_v58 = vmul.f32 %v18665_v40, %v2060_v39 }
 0x3c5   : > { %4402 = vmatprep.subr.bf16.mxu1 %v14066_v56  ;;  %v2124_v15 = vmul.f32 %v18656_v50, %v2069_v5  ;;  %v18751_v7 = vmul.f32 %v18582_v45, %v2069_v5  ;;  %4769 = vrot.lane.b32.xlu1 %v24029_v37, %s14896_s9 }
 0x3c6   : > { %3943 = vmatmul.mubr.bf16.gmra.mxu1 %v14499_v4  ;;  %4330 = vmatpush2.bf16.msra.mxu0 %v14063_v21  ;;  %v2040_v14 = vpop.permute.xlu0 %2039 }
 0x3c7   : > { %24028 = vst [vmem:[#allocation55_spill] sm:$0xff] %v18751_v7  ;;  %4783 = vrot.lane.b32.xlu0 %v24030_v16, %s14896_s9  ;;  %v2026_v24 = vpop.permute.xlu1 %2025  ;;  %v14060_v48 = vpack.c.bf16 %v2124_v15, %v2120_v53  ;;  %v2052_v4 = vsel %vm2047_vm7, %v2024_v33, %v2040_v14  ;;  %v2076_v10 = vsel %vm2047_vm7, %v2040_v14, %v18675_v60  ;;  %v24032_v53 = vld [vmem:[#allocation25_spill] sm:$0xff] }
 0x3c8   : > { %4403 = vmatpush2.bf16.msra.mxu1 %v14065_v18  ;;  %v2061_v56 = vsel %vm2047_vm7, %v2010_v47, %v2026_v24  ;;  %4418 = vmatprep.mubr.bf16.mxu1 %v14502_v49  ;;  %v2119_v21 = vmul.f32 %v18668_v6, %v2076_v10  ;;  %v2122_v60 = vmul.f32 %v18671_v32, %v2052_v4 }
 0x3c9   : > { %4785 = vrot.lane.b32.xlu1 %v24031_v31, %s14896_s9  ;;  %4331 = vmatprep.subr.bf16.mxu0 %v14060_v48  ;;  %v18778_v5 = vmul.f32 %v18647_v29, %v2052_v4  ;;  %v18781_v47 = vmul.f32 %v18643_v55, %v2061_v56  ;;  %v18784_v15 = vmul.f32 %v18643_v55, %v2060_v39  ;;  %v24038_v39 = vld [vmem:[#allocation41_spill] sm:$0xff] }
 0x3ca   : > { %v1988_v18 = vpop.permute.xlu0 %1987  ;;  %v2125_v48 = vmul.f32 %v18665_v40, %v2061_v56  ;;  %v18806_v7 = vmul.f32 %v18685_v61, %v2076_v10 }
 0x3cb   : > { %4731 = vrot.lane.b32.xlu0 %v24032_v53, %s14896_s9  ;;  %v2042_v33 = vpop.permute.xlu1 %2041  ;;  %24033 = vst [vmem:[#allocation156_spill] sm:$0xff] %v18778_v5  ;;  %24034 = vst [vmem:[#allocation142_spill] sm:$0xff] %v18781_v47 }
 0x3cc   : > { %24035 = vst [vmem:[#allocation57_spill] sm:$0xff] %v18784_v15  ;;  %v2053_v14 = vsel %vm2047_vm7, %v2026_v24, %v2042_v33  ;;  %v2077_v49 = vsel %vm2047_vm7, %v2042_v33, %v1994_v41  ;;  %24040 = vst [vmem:[#allocation129_spill] sm:$0xff] %v18806_v7  ;;  %v14061_v62 = vpack.c.bf16 %v2125_v48, %v2121_v58  ;;  %v24047_v15 = vld [vmem:[#allocation58_spill] sm:$0xff] }
 0x3cd   : > { %v2123_v26 = vmul.f32 %v18668_v6, %v2077_v49  ;;  %v2126_v42 = vmul.f32 %v18671_v32, %v2053_v14  ;;  %v18794_v4 = vmul.f32 %v18647_v29, %v2053_v14  ;;  %4733 = vrot.lane.b32.xlu1 %v24037_v8, %s14896_s9  ;;  %v18803_v36 = vmul.f32 %v18685_v61, %v2077_v49 }
 0x3ce   : > { %v2004_v52 = vpop.permute.xlu0 %2003 }
 0x3cf   : > { %24036 = vst [vmem:[#allocation38_spill] sm:$0xff] %v18794_v4  ;;  %4747 = vrot.lane.b32.xlu0 %v24038_v39, %s14896_s9  ;;  %v14059_v24 = vpack.c.bf16 %v2123_v26, %v2119_v21  ;;  %v1990_v33 = vpop.permute.xlu1 %1989  ;;  %v14062_v56 = vpack.c.bf16 %v2126_v42, %v2122_v60  ;;  %24039 = vst [vmem:[#allocation141_spill] sm:$0xff] %v18803_v36  ;;  %v2066_v14 = vsel %vm2047_vm7, %v1988_v18, %v2004_v52  ;;  %v24041_v26 = vld [vmem:[#allocation46_spill] sm:$0xff]  ;;  %v24042_v42 = vld [vmem:[#allocation31_spill] sm:$0xff] }
 0x3d0   : > { %v2112_v10 = vmul.f32 %v18656_v50, %v2066_v14  ;;  %v18818_v49 = vmul.f32 %v18582_v45, %v2066_v14  ;;  %v24048_v14 = vld [vmem:[#allocation20_spill] sm:$0xff] }
 0x3d1   : > { %4749 = vrot.lane.b32.xlu1 %v24041_v26, %s14896_s9  ;;  %4332 = vmatpush2.bf16.msra.mxu0 %v14059_v24 }
 0x3d2   : > { %4404 = vmatprep.subr.bf16.mxu1 %v14062_v56  ;;  %v2020_v21 = vpop.permute.xlu0 %2019  ;;  %24043 = vst [vmem:[#allocation105_spill] sm:$0xff] %v18818_v49  ;;  %v24045_v56 = vld [vmem:[#allocation34_spill] sm:$0xff] }
 0x3d3   : > { %4763 = vrot.lane.b32.xlu0 %v24042_v42, %s14896_s9  ;;  %4405 = vmatpush2.bf16.msra.mxu1 %v14061_v62  ;;  %v2006_v60 = vpop.permute.xlu1 %2005  ;;  %v24046_v62 = vld [vmem:[#allocation52_spill] sm:$0xff]  ;;  %v2058_v58 = vsel %vm2047_vm7, %v2004_v52, %v2020_v21 }
 0x3d4   : > { %v2067_v41 = vsel %vm2047_vm7, %v1990_v33, %v2006_v60 }
 0x3d5   : > { %v2116_v48 = vmul.f32 %v18656_v50, %v2067_v41  ;;  %v18826_v24 = vmul.f32 %v18582_v45, %v2067_v41  ;;  %4765 = vrot.lane.b32.xlu1 %v24045_v56, %s14896_s9 }
 0x3d6   : > { %v2036_v30 = vpop.permute.xlu0 %2035 }
 0x3d7   : > { %24044 = vst [vmem:[#allocation155_spill] sm:$0xff] %v18826_v24  ;;  %4779 = vrot.lane.b32.xlu0 %v24046_v62, %s14896_s9  ;;  %v2022_v5 = vpop.permute.xlu1 %2021  ;;  %v14056_v4 = vpack.c.bf16 %v2116_v48, %v2112_v10  ;;  %v2050_v7 = vsel %vm2047_vm7, %v2020_v21, %v2036_v30  ;;  %v2074_v41 = vsel %vm2047_vm7, %v2036_v30, %v1988_v18 }
 0x3d8   : > { %v2059_v36 = vsel %vm2047_vm7, %v2006_v60, %v2022_v5  ;;  %v2113_v48 = vmul.f32 %v18665_v40, %v2058_v58  ;;  %v2111_v49 = vmul.f32 %v18668_v6, %v2074_v41  ;;  %v2114_v21 = vmul.f32 %v18671_v32, %v2050_v7 }
 0x3d9   : > { %4781 = vrot.lane.b32.xlu1 %v24047_v15, %s14896_s9  ;;  %4333 = vmatprep.subr.bf16.mxu0 %v14056_v4  ;;  %v18850_v30 = vmul.f32 %v18647_v29, %v2050_v7  ;;  %v18853_v18 = vmul.f32 %v18643_v55, %v2059_v36  ;;  %v18856_v60 = vmul.f32 %v18643_v55, %v2058_v58  ;;  %v24054_v58 = vld [vmem:[#allocation18_spill] sm:$0xff] }
 0x3da   : > { %v1984_v10 = vpop.permute.xlu0 %1983  ;;  %v2117_v47 = vmul.f32 %v18665_v40, %v2059_v36  ;;  %v18878_v46 = vmul.f32 %v18685_v61, %v2074_v41 }
 0x3db   : > { %4727 = vrot.lane.b32.xlu0 %v24048_v14, %s14896_s9  ;;  %v2038_v52 = vpop.permute.xlu1 %2037  ;;  %24049 = vst [vmem:[#allocation49_spill] sm:$0xff] %v18850_v30  ;;  %24050 = vst [vmem:[#allocation33_spill] sm:$0xff] %v18853_v18 }
 0x3dc   : > { %24051 = vst [vmem:[#allocation147_spill] sm:$0xff] %v18856_v60  ;;  %v2051_v4 = vsel %vm2047_vm7, %v2022_v5, %v2038_v52  ;;  %v2075_v24 = vsel %vm2047_vm7, %v2038_v52, %v1990_v33  ;;  %24056 = vst [vmem:[#allocation56_spill] sm:$0xff] %v18878_v46 }
 0x3dd   : > { %v2115_v13 = vmul.f32 %v18668_v6, %v2075_v24  ;;  %v2118_v3 = vmul.f32 %v18671_v32, %v2051_v4  ;;  %v18866_v7 = vmul.f32 %v18647_v29, %v2051_v4  ;;  %4729 = vrot.lane.b32.xlu1 %v24053_v35, %s14896_s9  ;;  %v18875_v1 = vmul.f32 %v18685_v61, %v2075_v24 }
 0x3de   : > { %v2000_v54 = vpop.permute.xlu0 %1999 }
 0x3df   : > { %24052 = vst [vmem:[#allocation145_spill] sm:$0xff] %v18866_v7  ;;  %4743 = vrot.lane.b32.xlu0 %v24054_v58, %s14896_s9  ;;  %v14055_v5 = vpack.c.bf16 %v2115_v13, %v2111_v49  ;;  %v1986_v52 = vpop.permute.xlu1 %1985  ;;  %v14058_v36 = vpack.c.bf16 %v2118_v3, %v2114_v21  ;;  %24055 = vst [vmem:[#allocation35_spill] sm:$0xff] %v18875_v1  ;;  %v2064_v4 = vsel %vm2047_vm7, %v1984_v10, %v2000_v54  ;;  %v24057_v13 = vld [vmem:[#allocation43_spill] sm:$0xff]  ;;  %v24058_v3 = vld [vmem:[#allocation29_spill] sm:$0xff] }
 0x3e0   : > { %v14057_v58 = vpack.c.bf16 %v2117_v47, %v2113_v48  ;;  %v2104_v41 = vmul.f32 %v18656_v50, %v2064_v4  ;;  %v18890_v21 = vmul.f32 %v18582_v45, %v2064_v4 }
 0x3e1   : > { %4745 = vrot.lane.b32.xlu1 %v24057_v13, %s14896_s9  ;;  %4334 = vmatpush2.bf16.msra.mxu0 %v14055_v5 }
 0x3e2   : > { %4406 = vmatprep.subr.bf16.mxu1 %v14058_v36  ;;  %v2016_v49 = vpop.permute.xlu0 %2015  ;;  %24059 = vst [vmem:[#allocation61_spill] sm:$0xff] %v18890_v21  ;;  %v9112_v21 = vld [vmem:[#allocation3 + $0x44] ss:$8 sm:$0xf] }
 0x3e3   : > { %4759 = vrot.lane.b32.xlu0 %v24058_v3, %s14896_s9  ;;  %4407 = vmatpush2.bf16.msra.mxu1 %v14057_v58  ;;  %v2002_v24 = vpop.permute.xlu1 %2001  ;;  %v2056_v47 = vsel %vm2047_vm7, %v2000_v54, %v2016_v49 }
 0x3e4   : > { %v2065_v33 = vsel %vm2047_vm7, %v1986_v52, %v2002_v24  ;;  %v2105_v54 = vmul.f32 %v18665_v40, %v2056_v47 }
 0x3e5   : > { %v2108_v48 = vmul.f32 %v18656_v50, %v2065_v33  ;;  %v18898_v5 = vmul.f32 %v18582_v45, %v2065_v33  ;;  %4761 = vrot.lane.b32.xlu1 %v23891_v0, %s14896_s9 }
 0x3e6   : > { %v2032_v58 = vpop.permute.xlu0 %2031 }
 0x3e7   : > { %24060 = vst [vmem:[#allocation25_spill] sm:$0xff] %v18898_v5  ;;  %4775 = vrot.lane.b32.xlu0 %v23889_v38, %s14896_s9  ;;  %v2018_v4 = vpop.permute.xlu1 %2017  ;;  %v14052_v35 = vpack.c.bf16 %v2108_v48, %v2104_v41  ;;  %v2048_v50 = vsel %vm2047_vm7, %v2016_v49, %v2032_v58  ;;  %v2072_v45 = vsel %vm2047_vm7, %v2032_v58, %v1984_v10 }
 0x3e8   : > { %v2057_v33 = vsel %vm2047_vm7, %v2002_v24, %v2018_v4  ;;  %v2103_v49 = vmul.f32 %v18668_v6, %v2072_v45  ;;  %v2106_v10 = vmul.f32 %v18671_v32, %v2048_v50  ;;  %v18923_v58 = vmul.f32 %v18647_v29, %v2048_v50  ;;  %v1817_v24 = vld [vmem:[#allocation3 + $0x2] ss:$8 sm:$0xf] }
 0x3e9   : > { %4777 = vrot.lane.b32.xlu1 %v23893_v27, %s14896_s9  ;;  %4335 = vmatprep.subr.bf16.mxu0 %v14052_v35  ;;  %v18926_v36 = vmul.f32 %v18643_v55, %v2057_v33  ;;  %v18929_v35 = vmul.f32 %v18643_v55, %v2056_v47  ;;  %v2109_v5 = vmul.f32 %v18665_v40, %v2057_v33 }
 0x3ea   : > { %v1732_v41 = vpop.permute.xlu0 %1731  ;;  %24061 = vst [vmem:[#allocation24_spill] sm:$0xff] %v18923_v58  ;;  %v18946_v55 = vrot.slane %v1817_v24, %v23910_v17  ;;  %v18998_v58 = vrot.slane %v9112_v21, %v23910_v17 }
 0x3eb   : > { %4723 = vrot.lane.b32.xlu0 %v23892_v51, %s14896_s9  ;;  %v2034_v48 = vpop.permute.xlu1 %2033  ;;  %24062 = vst [vmem:[#allocation41_spill] sm:$0xff] %v18926_v36  ;;  %24063 = vst [vmem:[#allocation259_spill] sm:$0xff] %v18929_v35  ;;  %v14053_v33 = vpack.c.bf16 %v2109_v5, %v2105_v54  ;;  %v18995_v54 = vrot.slane %v9112_v21, %v23919_v11 }
 0x3ec   : > { %v2049_v30 = vsel %vm2047_vm7, %v2018_v4, %v2034_v48  ;;  %v2073_v7 = vsel %vm2047_vm7, %v2034_v48, %v1986_v52 }
 0x3ed   : > { %v2107_v46 = vmul.f32 %v18668_v6, %v2073_v7  ;;  %v2110_v50 = vmul.f32 %v18671_v32, %v2049_v30  ;;  %v18939_v1 = vmul.f32 %v18647_v29, %v2049_v30  ;;  %4725 = vrot.lane.b32.xlu1 %v23899_v43, %s14896_s9  ;;  %v18951_v32 = vrot.slane %v9112_v21, %v23911_v28 }
 0x3ee   : > { %v1748_v52 = vpop.permute.xlu0 %1747  ;;  %v18958_v48 = vmul.f32 %v18685_v61, %v2073_v7  ;;  %v18992_v30 = vrot.slane %v1817_v24, %v23927_v63 }
 0x3ef   : > { %24064 = vst [vmem:[#allocation260_spill] sm:$0xff] %v18939_v1  ;;  %4739 = vrot.lane.b32.xlu0 %v23897_v25, %s14896_s9  ;;  %v14051_v47 = vpack.c.bf16 %v2107_v46, %v2103_v49  ;;  %v1734_v6 = vpop.permute.xlu1 %1733  ;;  %v14054_v4 = vpack.c.bf16 %v2110_v50, %v2106_v10  ;;  %v1806_v29 = vsel %vm1783_vm8, %v1732_v41, %v1748_v52 }
 0x3f0   : > { %24065 = vst [vmem:[#allocation261_spill] sm:$0xff] %v18958_v48  ;;  %v18961_v46 = vmul.f32 %v18685_v61, %v2072_v45  ;;  %v1864_v50 = vmul.f32 %v18946_v55, %v1806_v29  ;;  %v18969_v5 = vmul.f32 %v18951_v32, %v1806_v29 }
 0x3f1   : > { %4741 = vrot.lane.b32.xlu1 %v23903_v20, %s14896_s9  ;;  %4336 = vmatpush2.bf16.msra.mxu0 %v14051_v47  ;;  %v18982_v47 = vrot.slane %v1817_v24, %v23919_v11 }
 0x3f2   : > { %24066 = vst [vmem:[#allocation262_spill] sm:$0xff] %v18961_v46  ;;  %4408 = vmatprep.subr.bf16.mxu1 %v14054_v4  ;;  %v1764_v49 = vpop.permute.xlu0 %1763  ;;  %24067 = vst [vmem:[#allocation263_spill] sm:$0xff] %v18969_v5  ;;  %v18987_v4 = vrot.slane %v1817_v24, %v23911_v28  ;;  %v19011_v24 = vrot.slane %v9112_v21, %v23927_v63 }
 0x3f3   : > { %4755 = vrot.lane.b32.xlu0 %v23900_v9, %s14896_s9  ;;  %4409 = vmatpush2.bf16.msra.mxu1 %v14053_v33  ;;  %v1750_v10 = vpop.permute.xlu1 %1749  ;;  %v1798_v1 = vsel %vm1783_vm8, %v1748_v52, %v1764_v49 }
 0x3f4   : > { %v1807_v61 = vsel %vm1783_vm8, %v1734_v6, %v1750_v10  ;;  %v19025_v21 = vmul.f32 %v18998_v58, %v1798_v1 }
 0x3f5   : > { %v1868_v7 = vmul.f32 %v18946_v55, %v1807_v61  ;;  %v18975_v45 = vmul.f32 %v18951_v32, %v1807_v61  ;;  %4757 = vrot.lane.b32.xlu1 %v23907_v23, %s14896_s9 }
 0x3f6   : > { %v1780_v29 = vpop.permute.xlu0 %1779  ;;  %24071 = vst [vmem:[#allocation267_spill] sm:$0xff] %v19025_v21 }
 0x3f7   : > { %24068 = vst [vmem:[#allocation264_spill] sm:$0xff] %v18975_v45  ;;  %4771 = vrot.lane.b32.xlu0 %v23905_v12, %s14896_s9  ;;  %v1766_v61 = vpop.permute.xlu1 %1765  ;;  %v14048_v40 = vpack.c.bf16 %v1868_v7, %v1864_v50  ;;  %v1790_v46 = vsel %vm1783_vm8, %v1764_v49, %v1780_v29  ;;  %v1814_v33 = vsel %vm1783_vm8, %v1780_v29, %v1732_v41 }
 0x3f8   : > { %v1799_v50 = vsel %vm1783_vm8, %v1750_v10, %v1766_v61  ;;  %v1865_v49 = vmul.f32 %v18982_v47, %v1798_v1  ;;  %v1863_v41 = vmul.f32 %v18987_v4, %v1814_v33  ;;  %v1866_v29 = vmul.f32 %v18992_v30, %v1790_v46 }
 0x3f9   : > { %4773 = vrot.lane.b32.xlu1 %v23909_v59, %s14896_s9  ;;  %4337 = vmatprep.subr.bf16.mxu0 %v14048_v40  ;;  %v19019_v10 = vmul.f32 %v18995_v54, %v1790_v46  ;;  %v19022_v40 = vmul.f32 %v18998_v58, %v1799_v50  ;;  %v1869_v48 = vmul.f32 %v18982_v47, %v1799_v50  ;;  %s14908_s9 = smov [#allocation8]  }
 0x3fa   : > { %v1728_v52 = vpop.permute.xlu0 %1727  ;;  %v19047_v18 = vmul.f32 %v19011_v24, %v1814_v33 }
 0x3fb   : > { %4471 = vrot.lane.b32.xlu0 %v23908_v22, %s14897_s14  ;;  %v1782_v7 = vpop.permute.xlu1 %1781  ;;  %24069 = vst [vmem:[#allocation265_spill] sm:$0xff] %v19019_v10  ;;  %24070 = vst [vmem:[#allocation266_spill] sm:$0xff] %v19022_v40 }
 0x3fc   : > { %v1791_v5 = vsel %vm1783_vm8, %v1766_v61, %v1782_v7  ;;  %v1815_v45 = vsel %vm1783_vm8, %v1782_v7, %v1734_v6  ;;  %24074 = vst [vmem:[#allocation270_spill] sm:$0xff] %v19047_v18 }
 0x3fd   : > { %v1867_v35 = vmul.f32 %v18987_v4, %v1815_v45  ;;  %v1870_v36 = vmul.f32 %v18992_v30, %v1791_v5  ;;  %v19035_v46 = vmul.f32 %v18995_v54, %v1791_v5  ;;  %4473 = vrot.lane.b32.xlu1 %v23918_v2, %s14897_s14  ;;  %v19044_v60 = vmul.f32 %v19011_v24, %v1815_v45 }
 0x3fe   : > { %v1744_v1 = vpop.permute.xlu0 %1743 }
 0x3ff   : > { %24072 = vst [vmem:[#allocation268_spill] sm:$0xff] %v19035_v46  ;;  %4487 = vrot.lane.b32.xlu0 %v24016_v57, %s14897_s14  ;;  %v14047_v61 = vpack.c.bf16 %v1867_v35, %v1863_v41  ;;  %v1730_v7 = vpop.permute.xlu1 %1729  ;;  %v14050_v50 = vpack.c.bf16 %v1870_v36, %v1866_v29  ;;  %24073 = vst [vmem:[#allocation269_spill] sm:$0xff] %v19044_v60  ;;  %v1804_v5 = vsel %vm1783_vm8, %v1728_v52, %v1744_v1 }
 0x400   : > { %v14049_v57 = vpack.c.bf16 %v1869_v48, %v1865_v49  ;;  %v1856_v45 = vmul.f32 %v18946_v55, %v1804_v5  ;;  %v19059_v33 = vmul.f32 %v18951_v32, %v1804_v5 }
 0x401   : > { %4489 = vrot.lane.b32.xlu1 %v24022_v19, %s14897_s14  ;;  %4338 = vmatpush2.bf16.msra.mxu0 %v14047_v61 }
 0x402   : > { %4410 = vmatprep.subr.bf16.mxu1 %v14050_v50  ;;  %v1760_v36 = vpop.permute.xlu0 %1759  ;;  %24075 = vst [vmem:[#allocation271_spill] sm:$0xff] %v19059_v33 }
 0x403   : > { %4503 = vrot.lane.b32.xlu0 %v24023_v34, %s14897_s14  ;;  %4411 = vmatpush2.bf16.msra.mxu1 %v14049_v57  ;;  %v1746_v35 = vpop.permute.xlu1 %1745  ;;  %v1796_v6 = vsel %vm1783_vm8, %v1744_v1, %v1760_v36 }
 0x404   : > { %v1805_v41 = vsel %vm1783_vm8, %v1730_v7, %v1746_v35 }
 0x405   : > { %v1860_v49 = vmul.f32 %v18946_v55, %v1805_v41  ;;  %v19067_v29 = vmul.f32 %v18951_v32, %v1805_v41  ;;  %4505 = vrot.lane.b32.xlu1 %v24029_v37, %s14897_s14 }
 0x406   : > { %v1776_v57 = vpop.permute.xlu0 %1775 }
 0x407   : > { %24076 = vst [vmem:[#allocation272_spill] sm:$0xff] %v19067_v29  ;;  %4519 = vrot.lane.b32.xlu0 %v24030_v16, %s14897_s14  ;;  %v1762_v50 = vpop.permute.xlu1 %1761  ;;  %v14044_v5 = vpack.c.bf16 %v1860_v49, %v1856_v45  ;;  %v1788_v48 = vsel %vm1783_vm8, %v1760_v36, %v1776_v57  ;;  %v1812_v41 = vsel %vm1783_vm8, %v1776_v57, %v1728_v52 }
 0x408   : > { %v1797_v2 = vsel %vm1783_vm8, %v1746_v35, %v1762_v50  ;;  %v1857_v49 = vmul.f32 %v18982_v47, %v1796_v6  ;;  %v1855_v61 = vmul.f32 %v18987_v4, %v1812_v41  ;;  %v1858_v36 = vmul.f32 %v18992_v30, %v1788_v48 }
 0x409   : > { %4521 = vrot.lane.b32.xlu1 %v24031_v31, %s14897_s14  ;;  %4339 = vmatprep.subr.bf16.mxu0 %v14044_v5  ;;  %v19091_v52 = vmul.f32 %v18995_v54, %v1788_v48  ;;  %v19094_v35 = vmul.f32 %v18998_v58, %v1797_v2  ;;  %v19097_v57 = vmul.f32 %v18998_v58, %v1796_v6 }
 0x40a   : > { %v1724_v45 = vpop.permute.xlu0 %1723  ;;  %v1861_v46 = vmul.f32 %v18982_v47, %v1797_v2  ;;  %v19119_v60 = vmul.f32 %v19011_v24, %v1812_v41 }
 0x40b   : > { %4467 = vrot.lane.b32.xlu0 %v24032_v53, %s14897_s14  ;;  %v1778_v1 = vpop.permute.xlu1 %1777  ;;  %24077 = vst [vmem:[#allocation273_spill] sm:$0xff] %v19091_v52  ;;  %24078 = vst [vmem:[#allocation274_spill] sm:$0xff] %v19094_v35 }
 0x40c   : > { %24079 = vst [vmem:[#allocation275_spill] sm:$0xff] %v19097_v57  ;;  %v1789_v5 = vsel %vm1783_vm8, %v1762_v50, %v1778_v1  ;;  %v1813_v10 = vsel %vm1783_vm8, %v1778_v1, %v1730_v7  ;;  %24082 = vst [vmem:[#allocation278_spill] sm:$0xff] %v19119_v60  ;;  %v14045_v40 = vpack.c.bf16 %v1861_v46, %v1857_v49  ;;  %v24089_v60 = vld [vmem:[#allocation23_spill] sm:$0xff] }
 0x40d   : > { %v1859_v33 = vmul.f32 %v18987_v4, %v1813_v10  ;;  %v1862_v29 = vmul.f32 %v18992_v30, %v1789_v5  ;;  %v19107_v48 = vmul.f32 %v18995_v54, %v1789_v5  ;;  %4469 = vrot.lane.b32.xlu1 %v24037_v8, %s14897_s14  ;;  %v19116_v18 = vmul.f32 %v19011_v24, %v1813_v10 }
 0x40e   : > { %v1740_v6 = vpop.permute.xlu0 %1739 }
 0x40f   : > { %24080 = vst [vmem:[#allocation276_spill] sm:$0xff] %v19107_v48  ;;  %4483 = vrot.lane.b32.xlu0 %v24038_v39, %s14897_s14  ;;  %v14043_v50 = vpack.c.bf16 %v1859_v33, %v1855_v61  ;;  %v1726_v1 = vpop.permute.xlu1 %1725  ;;  %v14046_v2 = vpack.c.bf16 %v1862_v29, %v1858_v36  ;;  %24081 = vst [vmem:[#allocation277_spill] sm:$0xff] %v19116_v18  ;;  %v1802_v5 = vsel %vm1783_vm8, %v1724_v45, %v1740_v6 }
 0x410   : > { %v1848_v29 = vmul.f32 %v18946_v55, %v1802_v5  ;;  %v19131_v61 = vmul.f32 %v18951_v32, %v1802_v5 }
 0x411   : > { %4485 = vrot.lane.b32.xlu1 %v24041_v26, %s14897_s14  ;;  %4340 = vmatpush2.bf16.msra.mxu0 %v14043_v50 }
 0x412   : > { %4412 = vmatprep.subr.bf16.mxu1 %v14046_v2  ;;  %v1756_v10 = vpop.permute.xlu0 %1755  ;;  %24083 = vst [vmem:[#allocation279_spill] sm:$0xff] %v19131_v61 }
 0x413   : > { %4499 = vrot.lane.b32.xlu0 %v24042_v42, %s14897_s14  ;;  %4413 = vmatpush2.bf16.msra.mxu1 %v14045_v40  ;;  %v1742_v33 = vpop.permute.xlu1 %1741  ;;  %v1794_v7 = vsel %vm1783_vm8, %v1740_v6, %v1756_v10 }
 0x414   : > { %v1803_v41 = vsel %vm1783_vm8, %v1726_v1, %v1742_v33 }
 0x415   : > { %v1852_v49 = vmul.f32 %v18946_v55, %v1803_v41  ;;  %v19139_v36 = vmul.f32 %v18951_v32, %v1803_v41  ;;  %4501 = vrot.lane.b32.xlu1 %v24045_v56, %s14897_s14 }
 0x416   : > { %v1772_v40 = vpop.permute.xlu0 %1771 }
 0x417   : > { %24084 = vst [vmem:[#allocation280_spill] sm:$0xff] %v19139_v36  ;;  %4515 = vrot.lane.b32.xlu0 %v24046_v62, %s14897_s14  ;;  %v1758_v2 = vpop.permute.xlu1 %1757  ;;  %v14040_v5 = vpack.c.bf16 %v1852_v49, %v1848_v29  ;;  %v1786_v46 = vsel %vm1783_vm8, %v1756_v10, %v1772_v40  ;;  %v1810_v41 = vsel %vm1783_vm8, %v1772_v40, %v1724_v45 }
 0x418   : > { %v1795_v21 = vsel %vm1783_vm8, %v1742_v33, %v1758_v2  ;;  %v1849_v49 = vmul.f32 %v18982_v47, %v1794_v7  ;;  %v1847_v50 = vmul.f32 %v18987_v4, %v1810_v41  ;;  %v1850_v10 = vmul.f32 %v18992_v30, %v1786_v46 }
 0x419   : > { %4517 = vrot.lane.b32.xlu1 %v24047_v15, %s14897_s14  ;;  %4341 = vmatprep.subr.bf16.mxu0 %v14040_v5  ;;  %v19163_v45 = vmul.f32 %v18995_v54, %v1786_v46  ;;  %v19166_v33 = vmul.f32 %v18998_v58, %v1795_v21  ;;  %v19169_v40 = vmul.f32 %v18998_v58, %v1794_v7  ;;  %v24090_v7 = vld [vmem:[#allocation18_spill] sm:$0xff] }
 0x41a   : > { %v1720_v29 = vpop.permute.xlu0 %1719  ;;  %v1853_v48 = vmul.f32 %v18982_v47, %v1795_v21  ;;  %v19191_v35 = vmul.f32 %v19011_v24, %v1810_v41 }
 0x41b   : > { %4463 = vrot.lane.b32.xlu0 %v24048_v14, %s14897_s14  ;;  %v1774_v6 = vpop.permute.xlu1 %1773  ;;  %24085 = vst [vmem:[#allocation281_spill] sm:$0xff] %v19163_v45  ;;  %24086 = vst [vmem:[#allocation282_spill] sm:$0xff] %v19166_v33 }
 0x41c   : > { %24087 = vst [vmem:[#allocation283_spill] sm:$0xff] %v19169_v40  ;;  %v1787_v5 = vsel %vm1783_vm8, %v1758_v2, %v1774_v6  ;;  %v1811_v52 = vsel %vm1783_vm8, %v1774_v6, %v1726_v1  ;;  %24092 = vst [vmem:[#allocation286_spill] sm:$0xff] %v19191_v35 }
 0x41d   : > { %v1851_v61 = vmul.f32 %v18987_v4, %v1811_v52  ;;  %v1854_v36 = vmul.f32 %v18992_v30, %v1787_v5  ;;  %v19179_v46 = vmul.f32 %v18995_v54, %v1787_v5  ;;  %4465 = vrot.lane.b32.xlu1 %v24089_v60, %s14897_s14  ;;  %v19188_v57 = vmul.f32 %v19011_v24, %v1811_v52  ;;  %v4821_v60 = vld [vmem:[#allocation3 + $0x21] ss:$8 sm:$0xf] }
 0x41e   : > { %v1736_v18 = vpop.permute.xlu0 %1735 }
 0x41f   : > { %24088 = vst [vmem:[#allocation284_spill] sm:$0xff] %v19179_v46  ;;  %4479 = vrot.lane.b32.xlu0 %v24090_v7, %s14897_s14  ;;  %v14039_v2 = vpack.c.bf16 %v1851_v61, %v1847_v50  ;;  %v1722_v6 = vpop.permute.xlu1 %1721  ;;  %v14042_v21 = vpack.c.bf16 %v1854_v36, %v1850_v10  ;;  %24091 = vst [vmem:[#allocation285_spill] sm:$0xff] %v19188_v57  ;;  %v1800_v5 = vsel %vm1783_vm8, %v1720_v29, %v1736_v18 }
 0x420   : > { %v14041_v7 = vpack.c.bf16 %v1853_v48, %v1849_v49  ;;  %v1840_v36 = vmul.f32 %v18946_v55, %v1800_v5  ;;  %v19203_v50 = vmul.f32 %v18951_v32, %v1800_v5 }
 0x421   : > { %4481 = vrot.lane.b32.xlu1 %v24057_v13, %s14897_s14  ;;  %4342 = vmatpush2.bf16.msra.mxu0 %v14039_v2 }
 0x422   : > { %4414 = vmatprep.subr.bf16.mxu1 %v14042_v21  ;;  %v1752_v52 = vpop.permute.xlu0 %1751  ;;  %24093 = vst [vmem:[#allocation287_spill] sm:$0xff] %v19203_v50 }
 0x423   : > { %4495 = vrot.lane.b32.xlu0 %v24058_v3, %s14897_s14  ;;  %4415 = vmatpush2.bf16.msra.mxu1 %v14041_v7  ;;  %v1738_v61 = vpop.permute.xlu1 %1737  ;;  %v1792_v1 = vsel %vm1783_vm8, %v1736_v18, %v1752_v52 }
 0x424   : > { %v1801_v41 = vsel %vm1783_vm8, %v1722_v6, %v1738_v61 }
 0x425   : > { %v1844_v49 = vmul.f32 %v18946_v55, %v1801_v41  ;;  %v19211_v10 = vmul.f32 %v18951_v32, %v1801_v41  ;;  %4497 = vrot.lane.b32.xlu1 %v23891_v0, %s14897_s14 }
 0x426   : > { %v1768_v7 = vpop.permute.xlu0 %1767 }
 0x427   : > { %24094 = vst [vmem:[#allocation288_spill] sm:$0xff] %v19211_v10  ;;  %4511 = vrot.lane.b32.xlu0 %v23889_v38, %s14897_s14  ;;  %v1754_v21 = vpop.permute.xlu1 %1753  ;;  %v14036_v5 = vpack.c.bf16 %v1844_v49, %v1840_v36  ;;  %v1784_v55 = vsel %vm1783_vm8, %v1752_v52, %v1768_v7  ;;  %v1808_v32 = vsel %vm1783_vm8, %v1768_v7, %v1720_v29 }
 0x428   : > { %v1793_v41 = vsel %vm1783_vm8, %v1738_v61, %v1754_v21  ;;  %v1841_v36 = vmul.f32 %v18982_v47, %v1792_v1  ;;  %v1839_v18 = vmul.f32 %v18987_v4, %v1808_v32  ;;  %v1842_v52 = vmul.f32 %v18992_v30, %v1784_v55 }
 0x429   : > { %4513 = vrot.lane.b32.xlu1 %v23893_v27, %s14897_s14  ;;  %4343 = vmatprep.subr.bf16.mxu0 %v14036_v5  ;;  %v19235_v2 = vmul.f32 %v18995_v54, %v1784_v55  ;;  %v19238_v29 = vmul.f32 %v18998_v58, %v1793_v41  ;;  %v19241_v61 = vmul.f32 %v18998_v58, %v1792_v1 }
 0x42a   : > { %v1845_v45 = vmul.f32 %v18982_v47, %v1793_v41  ;;  %v14500_v41 = vld [vmem:[#allocation6] ss:$56 sps:$4 sm:$0xff]  }
 0x42b   : > { %4459 = vrot.lane.b32.xlu0 %v23892_v51, %s14897_s14  ;;  %v1770_v49 = vpop.permute.xlu1 %1769  ;;  %24095 = vst [vmem:[#allocation289_spill] sm:$0xff] %v19235_v2  ;;  %24096 = vst [vmem:[#allocation290_spill] sm:$0xff] %v19238_v29  ;;  %v4736_v48 = vpop.permute.xlu0 %4735  ;;  %v24101_v2 = vld [vmem:[#allocation28_spill] sm:$0xff] }
 0x42c   : > { %24097 = vst [vmem:[#allocation291_spill] sm:$0xff] %v19241_v61  ;;  %v1785_v7 = vsel %vm1783_vm8, %v1754_v21, %v1770_v49  ;;  %v1809_v5 = vsel %vm1783_vm8, %v1770_v49, %v1722_v6 }
 0x42d   : > { %v1843_v46 = vmul.f32 %v18987_v4, %v1809_v5  ;;  %v1846_v55 = vmul.f32 %v18992_v30, %v1785_v7  ;;  %v19251_v50 = vmul.f32 %v18995_v54, %v1785_v7  ;;  %4461 = vrot.lane.b32.xlu1 %v23899_v43, %s14897_s14  ;;  %v19261_v4 = vrot.slane %v4821_v60, %v23910_v17 }
 0x42e   : > { %v19264_v30 = vmul.f32 %v19011_v24, %v1809_v5  ;;  %v19267_v54 = vmul.f32 %v19011_v24, %v1808_v32 }
 0x42f   : > { %24098 = vst [vmem:[#allocation292_spill] sm:$0xff] %v19251_v50  ;;  %4475 = vrot.lane.b32.xlu0 %v23897_v25, %s14897_s14  ;;  %v14035_v58 = vpack.c.bf16 %v1843_v46, %v1839_v18  ;;  %v4738_v47 = vpop.permute.xlu1 %4737  ;;  %v14038_v6 = vpack.c.bf16 %v1846_v55, %v1842_v52  ;;  %v14037_v46 = vpack.c.bf16 %v1845_v45, %v1841_v36 }
 0x430   : > { %24099 = vst [vmem:[#allocation293_spill] sm:$0xff] %v19264_v30  ;;  %24100 = vst [vmem:[#allocation294_spill] sm:$0xff] %v19267_v54  ;;  %v4752_v21 = vpop.permute.xlu0 %4751 }
 0x431   : > { %4477 = vrot.lane.b32.xlu1 %v23903_v20, %s14897_s14  ;;  %4344 = vmatpush2.bf16.msra.mxu0 %v14035_v58  ;;  %v4810_v18 = vsel %vm4787_vm9, %v4736_v48, %v4752_v21  ;;  %v19288_v58 = vrot.slane %v4821_v60, %v23911_v28 }
 0x432   : > { %4416 = vmatprep.subr.bf16.mxu1 %v14038_v6  ;;  %v4868_v32 = vmul.f32 %v19261_v4, %v4810_v18  ;;  %v19291_v6 = vrot.slane %v4821_v60, %v23927_v63  ;;  %v19294_v18 = vrot.slane %v4821_v60, %v23919_v11 }
 0x433   : > { %4491 = vrot.lane.b32.xlu0 %v23900_v9, %s14897_s14  ;;  %4417 = vmatpush2.bf16.msra.mxu1 %v14037_v46  ;;  %v4754_v24 = vpop.permute.xlu1 %4753 }
 0x434   : > { %v4811_v52 = vsel %vm4787_vm9, %v4738_v47, %v4754_v24  ;;  %v4768_v7 = vpop.permute.xlu0 %4767  ;;  %4346 = vmatmul.mubr.bf16.vlgmr.msra.gmra.mxu0 %v14500_v41 }
 0x435   : > { %v4872_v36 = vmul.f32 %v19261_v4, %v4811_v52  ;;  %4493 = vrot.lane.b32.xlu1 %v23907_v23, %s14897_s14 }
 0x436   : > { %4419 = vmatmul.mubr.bf16.vlgmr.msra.gmra.mxu1 %v14500_v41 }
 0x437   : > { %4507 = vrot.lane.b32.xlu0 %v23905_v12, %s14897_s14  ;;  %v4770_v5 = vpop.permute.xlu1 %4769  ;;  %v14096_v55 = vpack.c.bf16 %v4872_v36, %v4868_v32  ;;  %v4802_v36 = vsel %vm4787_vm9, %v4752_v21, %v4768_v7 }
 0x438   : > { %v4803_v32 = vsel %vm4787_vm9, %v4754_v24, %v4770_v5  ;;  %v4869_v21 = vmul.f32 %v19294_v18, %v4802_v36 }
 0x439   : > { %v4784_v46 = vpop.permute.xlu0 %4783  ;;  %4509 = vrot.lane.b32.xlu1 %v23909_v59, %s14897_s14  ;;  %5947 = vmatprep.subr.bf16.mxu0 %v14096_v55  ;;  %v4873_v24 = vmul.f32 %v19294_v18, %v4803_v32  ;;  %s14813_s14 = sshll.u32 %s14908_s9, 4  ;;  %s14814_s14 = int_to_ptr.vmem [resolvable:$false] %s14813_s14 }
 0x43a   : > { %v4794_v52 = vsel %vm4787_vm9, %v4768_v7, %v4784_v46  ;;  %v4818_v41 = vsel %vm4787_vm9, %v4784_v46, %v4736_v48 }
 0x43b   : > { %5263 = vrot.lane.b32.xlu0 %v23908_v22, %s14898_s17  ;;  %v4786_v60 = vpop.permute.xlu1 %4785  ;;  %v4867_v1 = vmul.f32 %v19288_v58, %v4818_v41  ;;  %v4870_v55 = vmul.f32 %v19291_v6, %v4794_v52  ;;  %v24102_v52 = vld [vmem:[#allocation45_spill] sm:$0xff] }
 0x43c   : > { %v4795_v45 = vsel %vm4787_vm9, %v4770_v5, %v4786_v60  ;;  %v4819_v48 = vsel %vm4787_vm9, %v4786_v60, %v4738_v47  ;;  %v14097_v47 = vpack.c.bf16 %v4873_v24, %v4869_v21 }
 0x43d   : > { %v4732_v46 = vpop.permute.xlu0 %4731  ;;  %v4871_v7 = vmul.f32 %v19288_v58, %v4819_v48  ;;  %v4874_v49 = vmul.f32 %v19291_v6, %v4795_v45  ;;  %5265 = vrot.lane.b32.xlu1 %v24101_v2, %s14898_s17 }
 0x43f   : > { %5279 = vrot.lane.b32.xlu0 %v24102_v52, %s14898_s17  ;;  %v14095_v41 = vpack.c.bf16 %v4871_v7, %v4867_v1  ;;  %v4734_v5 = vpop.permute.xlu1 %4733  ;;  %v14098_v50 = vpack.c.bf16 %v4874_v49, %v4870_v55 }
 0x441   : > { %v4748_v54 = vpop.permute.xlu0 %4747  ;;  %5281 = vrot.lane.b32.xlu1 %v24022_v19, %s14898_s17  ;;  %5948 = vmatpush1.bf16.msra.mxu0 %v14095_v41 }
 0x442   : > { %v4808_v32 = vsel %vm4787_vm9, %v4732_v46, %v4748_v54  ;;  %6020 = vmatprep.subr.bf16.mxu1 %v14098_v50 }
 0x443   : > { %5295 = vrot.lane.b32.xlu0 %v24023_v34, %s14898_s17  ;;  %6021 = vmatpush1.bf16.msra.mxu1 %v14097_v47  ;;  %v4750_v45 = vpop.permute.xlu1 %4749  ;;  %v4860_v36 = vmul.f32 %v19261_v4, %v4808_v32 }
 0x444   : > { %v4809_v1 = vsel %vm4787_vm9, %v4734_v5, %v4750_v45 }
 0x445   : > { %v4764_v49 = vpop.permute.xlu0 %4763  ;;  %v4864_v60 = vmul.f32 %v19261_v4, %v4809_v1  ;;  %5297 = vrot.lane.b32.xlu1 %v24029_v37, %s14898_s17 }
 0x446   : > { %v4800_v41 = vsel %vm4787_vm9, %v4748_v54, %v4764_v49 }
 0x447   : > { %5311 = vrot.lane.b32.xlu0 %v24030_v16, %s14898_s17  ;;  %v4766_v50 = vpop.permute.xlu1 %4765  ;;  %v14092_v55 = vpack.c.bf16 %v4864_v60, %v4860_v36 }
 0x448   : > { %v4801_v7 = vsel %vm4787_vm9, %v4750_v45, %v4766_v50 }
 0x449   : > { %v4780_v48 = vpop.permute.xlu0 %4779  ;;  %5313 = vrot.lane.b32.xlu1 %v24031_v31, %s14898_s17  ;;  %5949 = vmatprep.subr.bf16.mxu0 %v14092_v55  ;;  %v4865_v45 = vmul.f32 %v19294_v18, %v4801_v7  ;;  %v4861_v55 = vmul.f32 %v19294_v18, %v4800_v41 }
 0x44a   : > { %v4792_v24 = vsel %vm4787_vm9, %v4764_v49, %v4780_v48  ;;  %v4816_v21 = vsel %vm4787_vm9, %v4780_v48, %v4732_v46 }
 0x44b   : > { %5259 = vrot.lane.b32.xlu0 %v24032_v53, %s14898_s17  ;;  %v4782_v47 = vpop.permute.xlu1 %4781  ;;  %v4859_v32 = vmul.f32 %v19288_v58, %v4816_v21  ;;  %v4862_v36 = vmul.f32 %v19291_v6, %v4792_v24 }
 0x44c   : > { %v4793_v1 = vsel %vm4787_vm9, %v4766_v50, %v4782_v47  ;;  %v4817_v46 = vsel %vm4787_vm9, %v4782_v47, %v4734_v5  ;;  %v14093_v5 = vpack.c.bf16 %v4865_v45, %v4861_v55 }
 0x44d   : > { %v4728_v60 = vpop.permute.xlu0 %4727  ;;  %v4863_v54 = vmul.f32 %v19288_v58, %v4817_v46  ;;  %v4866_v49 = vmul.f32 %v19291_v6, %v4793_v1  ;;  %5261 = vrot.lane.b32.xlu1 %v24037_v8, %s14898_s17 }
 0x44f   : > { %5275 = vrot.lane.b32.xlu0 %v24038_v39, %s14898_s17  ;;  %v14091_v48 = vpack.c.bf16 %v4863_v54, %v4859_v32  ;;  %v4730_v50 = vpop.permute.xlu1 %4729  ;;  %v14094_v24 = vpack.c.bf16 %v4866_v49, %v4862_v36 }
 0x451   : > { %v4744_v21 = vpop.permute.xlu0 %4743  ;;  %5277 = vrot.lane.b32.xlu1 %v24041_v26, %s14898_s17  ;;  %5950 = vmatpush1.bf16.msra.mxu0 %v14091_v48 }
 0x452   : > { %v4806_v7 = vsel %vm4787_vm9, %v4728_v60, %v4744_v21  ;;  %6022 = vmatprep.subr.bf16.mxu1 %v14094_v24 }
 0x453   : > { %5291 = vrot.lane.b32.xlu0 %v24042_v42, %s14898_s17  ;;  %6023 = vmatpush1.bf16.msra.mxu1 %v14093_v5  ;;  %v4746_v41 = vpop.permute.xlu1 %4745  ;;  %v4852_v47 = vmul.f32 %v19261_v4, %v4806_v7 }
 0x454   : > { %v4807_v32 = vsel %vm4787_vm9, %v4730_v50, %v4746_v41 }
 0x455   : > { %v4760_v36 = vpop.permute.xlu0 %4759  ;;  %v4856_v1 = vmul.f32 %v19261_v4, %v4807_v32  ;;  %5293 = vrot.lane.b32.xlu1 %v24045_v56, %s14898_s17 }
 0x456   : > { %v4798_v24 = vsel %vm4787_vm9, %v4744_v21, %v4760_v36 }
 0x457   : > { %5307 = vrot.lane.b32.xlu0 %v24046_v62, %s14898_s17  ;;  %v4762_v46 = vpop.permute.xlu1 %4761  ;;  %v14088_v45 = vpack.c.bf16 %v4856_v1, %v4852_v47 }
 0x458   : > { %v4799_v48 = vsel %vm4787_vm9, %v4746_v41, %v4762_v46 }
 0x459   : > { %v4776_v55 = vpop.permute.xlu0 %4775  ;;  %5309 = vrot.lane.b32.xlu1 %v24047_v15, %s14898_s17  ;;  %5951 = vmatprep.subr.bf16.mxu0 %v14088_v45  ;;  %v4857_v41 = vmul.f32 %v19294_v18, %v4799_v48  ;;  %v4853_v45 = vmul.f32 %v19294_v18, %v4798_v24 }
 0x45a   : > { %v4790_v54 = vsel %vm4787_vm9, %v4760_v36, %v4776_v55  ;;  %v4814_v49 = vsel %vm4787_vm9, %v4776_v55, %v4728_v60  ;;  %v24103_v55 = vld [vmem:[#allocation23_spill] sm:$0xff] }
 0x45b   : > { %5255 = vrot.lane.b32.xlu0 %v24048_v14, %s14898_s17  ;;  %v4778_v5 = vpop.permute.xlu1 %4777  ;;  %v4851_v7 = vmul.f32 %v19288_v58, %v4814_v49  ;;  %v4854_v47 = vmul.f32 %v19291_v6, %v4790_v54  ;;  %v24104_v54 = vld [vmem:[#allocation18_spill] sm:$0xff] }
 0x45c   : > { %v4791_v32 = vsel %vm4787_vm9, %v4762_v46, %v4778_v5  ;;  %v4815_v60 = vsel %vm4787_vm9, %v4778_v5, %v4730_v50  ;;  %v14089_v50 = vpack.c.bf16 %v4857_v41, %v4853_v45 }
 0x45d   : > { %v4724_v1 = vpop.permute.xlu0 %4723  ;;  %v4855_v21 = vmul.f32 %v19288_v58, %v4815_v60  ;;  %v4858_v36 = vmul.f32 %v19291_v6, %v4791_v32  ;;  %5257 = vrot.lane.b32.xlu1 %v24103_v55, %s14898_s17 }
 0x45f   : > { %5271 = vrot.lane.b32.xlu0 %v24104_v54, %s14898_s17  ;;  %v14087_v49 = vpack.c.bf16 %v4855_v21, %v4851_v7  ;;  %v4726_v46 = vpop.permute.xlu1 %4725  ;;  %v14090_v30 = vpack.c.bf16 %v4858_v36, %v4854_v47 }
 0x461   : > { %v4740_v10 = vpop.permute.xlu0 %4739  ;;  %5273 = vrot.lane.b32.xlu1 %v24057_v13, %s14898_s17  ;;  %5952 = vmatpush1.bf16.msra.mxu0 %v14087_v49 }
 0x462   : > { %v4804_v48 = vsel %vm4787_vm9, %v4724_v1, %v4740_v10  ;;  %6024 = vmatprep.subr.bf16.mxu1 %v14090_v30 }
 0x463   : > { %5287 = vrot.lane.b32.xlu0 %v24058_v3, %s14898_s17  ;;  %6025 = vmatpush1.bf16.msra.mxu1 %v14089_v50  ;;  %v4742_v24 = vpop.permute.xlu1 %4741  ;;  %v4844_v5 = vmul.f32 %v19261_v4, %v4804_v48 }
 0x464   : > { %v4805_v7 = vsel %vm4787_vm9, %v4726_v46, %v4742_v24 }
 0x465   : > { %v4756_v47 = vpop.permute.xlu0 %4755  ;;  %v4848_v32 = vmul.f32 %v19261_v4, %v4805_v7  ;;  %5289 = vrot.lane.b32.xlu1 %v23891_v0, %s14898_s17 }
 0x466   : > { %v4796_v36 = vsel %vm4787_vm9, %v4740_v10, %v4756_v47 }
 0x467   : > { %5303 = vrot.lane.b32.xlu0 %v23889_v38, %s14898_s17  ;;  %v4758_v30 = vpop.permute.xlu1 %4757  ;;  %v14084_v60 = vpack.c.bf16 %v4848_v32, %v4844_v5  ;;  %v4557_v32 = vld [vmem:[#allocation3 + $0x20] ss:$8 sm:$0xf]  ;;  %v4845_v10 = vmul.f32 %v19294_v18, %v4796_v36 }
 0x468   : > { %v4797_v4 = vsel %vm4787_vm9, %v4742_v24, %v4758_v30  ;;  %v10724_v24 = vld [vmem:[#allocation3 + $0x62] ss:$8 sm:$0xf] }
 0x469   : > { %v4772_v41 = vpop.permute.xlu0 %4771  ;;  %5305 = vrot.lane.b32.xlu1 %v23893_v27, %s14898_s17  ;;  %5953 = vmatprep.subr.bf16.mxu0 %v14084_v60  ;;  %v4849_v60 = vmul.f32 %v19294_v18, %v4797_v4  ;;  %v19447_v18 = vrot.slane %v10724_v24, %v23911_v28 }
 0x46a   : > { %v4788_v45 = vsel %vm4787_vm9, %v4756_v47, %v4772_v41  ;;  %v4812_v21 = vsel %vm4787_vm9, %v4772_v41, %v4724_v1 }
 0x46b   : > { %5251 = vrot.lane.b32.xlu0 %v23892_v51, %s14898_s17  ;;  %v4774_v49 = vpop.permute.xlu1 %4773  ;;  %v4843_v50 = vmul.f32 %v19288_v58, %v4812_v21  ;;  %v4846_v48 = vmul.f32 %v19291_v6, %v4788_v45  ;;  %v19444_v21 = vrot.slane %v4557_v32, %v23910_v17  ;;  %v14085_v4 = vpack.c.bf16 %v4849_v60, %v4845_v10 }
 0x46c   : > { %v4789_v5 = vsel %vm4787_vm9, %v4758_v30, %v4774_v49  ;;  %v4813_v1 = vsel %vm4787_vm9, %v4774_v49, %v4726_v46  ;;  %v19468_v10 = vrot.slane %v4557_v32, %v23919_v11 }
 0x46d   : > { %v4472_v7 = vpop.permute.xlu0 %4471  ;;  %v4847_v47 = vmul.f32 %v19288_v58, %v4813_v1  ;;  %v4850_v41 = vmul.f32 %v19291_v6, %v4789_v5  ;;  %5253 = vrot.lane.b32.xlu1 %v23899_v43, %s14898_s17 }
 0x46f   : > { %5267 = vrot.lane.b32.xlu0 %v23897_v25, %s14898_s17  ;;  %v14083_v46 = vpack.c.bf16 %v4847_v47, %v4843_v50  ;;  %v4474_v30 = vpop.permute.xlu1 %4473  ;;  %v14086_v45 = vpack.c.bf16 %v4850_v41, %v4846_v48  ;;  %v19473_v47 = vrot.slane %v4557_v32, %v23911_v28 }
 0x471   : > { %v4488_v58 = vpop.permute.xlu0 %4487  ;;  %5269 = vrot.lane.b32.xlu1 %v23903_v20, %s14898_s17  ;;  %5954 = vmatpush1.bf16.msra.mxu0 %v14083_v46 }
 0x472   : > { %v4546_v6 = vsel %vm4523_vm10, %v4472_v7, %v4488_v58  ;;  %6026 = vmatprep.subr.bf16.mxu1 %v14086_v45 }
 0x473   : > { %5283 = vrot.lane.b32.xlu0 %v23900_v9, %s14898_s17  ;;  %6027 = vmatpush1.bf16.msra.mxu1 %v14085_v4  ;;  %v4490_v36 = vpop.permute.xlu1 %4489  ;;  %v4604_v49 = vmul.f32 %v19444_v21, %v4546_v6  ;;  %v19457_v50 = vmul.f32 %v19447_v18, %v4546_v6  ;;  %v19478_v4 = vrot.slane %v4557_v32, %v23927_v63 }
 0x474   : > { %v4547_v48 = vsel %vm4523_vm10, %v4474_v30, %v4490_v36  ;;  %v19481_v6 = vrot.slane %v10724_v24, %v23919_v11 }
 0x475   : > { %24105 = vst [vmem:[#allocation45_spill] sm:$0xff] %v19457_v50  ;;  %v4504_v5 = vpop.permute.xlu0 %4503  ;;  %v4608_v1 = vmul.f32 %v19444_v21, %v4547_v48  ;;  %v19463_v60 = vmul.f32 %v19447_v18, %v4547_v48  ;;  %5285 = vrot.lane.b32.xlu1 %v23907_v23, %s14898_s17  ;;  %v19484_v48 = vrot.slane %v10724_v24, %v23910_v17 }
 0x476   : > { %v4538_v35 = vsel %vm4523_vm10, %v4488_v58, %v4504_v5 }
 0x477   : > { %24106 = vst [vmem:[#allocation295_spill] sm:$0xff] %v19463_v60  ;;  %5299 = vrot.lane.b32.xlu0 %v23905_v12, %s14898_s17  ;;  %v4506_v46 = vpop.permute.xlu1 %4505  ;;  %v14080_v45 = vpack.c.bf16 %v4608_v1, %v4604_v49  ;;  %v19495_v49 = vrot.slane %v10724_v24, %v23927_v63  ;;  %v4605_v58 = vmul.f32 %v19468_v10, %v4538_v35 }
 0x478   : > { %v4539_v61 = vsel %vm4523_vm10, %v4490_v36, %v4506_v46 }
 0x479   : > { %v4520_v57 = vpop.permute.xlu0 %4519  ;;  %5301 = vrot.lane.b32.xlu1 %v23909_v59, %s14898_s17  ;;  %5955 = vmatprep.subr.bf16.mxu0 %v14080_v45  ;;  %v19508_v24 = vmul.f32 %v19484_v48, %v4539_v61  ;;  %v4609_v29 = vmul.f32 %v19468_v10, %v4539_v61  ;;  %s14815_s17 = scalar_lea.vmem %s14814_s14, 2048 }
 0x47a   : > { %v4530_v32 = vsel %vm4523_vm10, %v4504_v5, %v4520_v57  ;;  %v4554_v1 = vsel %vm4523_vm10, %v4520_v57, %v4472_v7  ;;  %v19511_v5 = vmul.f32 %v19484_v48, %v4538_v35 }
 0x47b   : > { %4999 = vrot.lane.b32.xlu0 %v23908_v22, %s14899_s13  ;;  %v4522_v36 = vpop.permute.xlu1 %4521  ;;  %v4603_v41 = vmul.f32 %v19473_v47, %v4554_v1  ;;  %v4606_v45 = vmul.f32 %v19478_v4, %v4530_v32  ;;  %v19505_v50 = vmul.f32 %v19481_v6, %v4530_v32  ;;  %24108 = vst [vmem:[#allocation297_spill] sm:$0xff] %v19508_v24 }
 0x47c   : > { %24109 = vst [vmem:[#allocation298_spill] sm:$0xff] %v19511_v5  ;;  %v4531_v57 = vsel %vm4523_vm10, %v4506_v46, %v4522_v36  ;;  %v4555_v7 = vsel %vm4523_vm10, %v4522_v36, %v4474_v30  ;;  %v19533_v22 = vmul.f32 %v19495_v49, %v4554_v1 }
 0x47d   : > { %24107 = vst [vmem:[#allocation296_spill] sm:$0xff] %v19505_v50  ;;  %v4468_v60 = vpop.permute.xlu0 %4467  ;;  %v4607_v40 = vmul.f32 %v19473_v47, %v4555_v7  ;;  %v4610_v32 = vmul.f32 %v19478_v4, %v4531_v57  ;;  %v19521_v33 = vmul.f32 %v19481_v6, %v4531_v57  ;;  %5001 = vrot.lane.b32.xlu1 %v24101_v2, %s14899_s13 }
 0x47e   : > { %v19530_v61 = vmul.f32 %v19495_v49, %v4555_v7  ;;  %24112 = vst [vmem:[#allocation301_spill] sm:$0xff] %v19533_v22  ;;  %v14081_v2 = vpack.c.bf16 %v4609_v29, %v4605_v58 }
 0x47f   : > { %24110 = vst [vmem:[#allocation299_spill] sm:$0xff] %v19521_v33  ;;  %5015 = vrot.lane.b32.xlu0 %v24102_v52, %s14899_s13  ;;  %v14079_v35 = vpack.c.bf16 %v4607_v40, %v4603_v41  ;;  %v4470_v46 = vpop.permute.xlu1 %4469  ;;  %v14082_v36 = vpack.c.bf16 %v4610_v32, %v4606_v45 }
 0x480   : > { %24111 = vst [vmem:[#allocation300_spill] sm:$0xff] %v19530_v61 }
 0x481   : > { %v4484_v57 = vpop.permute.xlu0 %4483  ;;  %5017 = vrot.lane.b32.xlu1 %v24022_v19, %s14899_s13  ;;  %5956 = vmatpush1.bf16.msra.mxu0 %v14079_v35 }
 0x482   : > { %v4544_v40 = vsel %vm4523_vm10, %v4468_v60, %v4484_v57  ;;  %6028 = vmatprep.subr.bf16.mxu1 %v14082_v36 }
 0x483   : > { %5031 = vrot.lane.b32.xlu0 %v24023_v34, %s14899_s13  ;;  %6029 = vmatpush1.bf16.msra.mxu1 %v14081_v2  ;;  %v4486_v41 = vpop.permute.xlu1 %4485  ;;  %v4596_v1 = vmul.f32 %v19444_v21, %v4544_v40  ;;  %v19545_v45 = vmul.f32 %v19447_v18, %v4544_v40 }
 0x484   : > { %v4545_v29 = vsel %vm4523_vm10, %v4470_v46, %v4486_v41 }
 0x485   : > { %24113 = vst [vmem:[#allocation302_spill] sm:$0xff] %v19545_v45  ;;  %v4500_v58 = vpop.permute.xlu0 %4499  ;;  %v4600_v32 = vmul.f32 %v19444_v21, %v4545_v29  ;;  %v19553_v35 = vmul.f32 %v19447_v18, %v4545_v29  ;;  %5033 = vrot.lane.b32.xlu1 %v24029_v37, %s14899_s13 }
 0x486   : > { %v4536_v30 = vsel %vm4523_vm10, %v4484_v57, %v4500_v58 }
 0x487   : > { %24114 = vst [vmem:[#allocation303_spill] sm:$0xff] %v19553_v35  ;;  %5047 = vrot.lane.b32.xlu0 %v24030_v16, %s14899_s13  ;;  %v4502_v36 = vpop.permute.xlu1 %4501  ;;  %v14076_v40 = vpack.c.bf16 %v4600_v32, %v4596_v1  ;;  %v4597_v1 = vmul.f32 %v19468_v10, %v4536_v30 }
 0x488   : > { %v4537_v59 = vsel %vm4523_vm10, %v4486_v41, %v4502_v36 }
 0x489   : > { %v4516_v7 = vpop.permute.xlu0 %4515  ;;  %5049 = vrot.lane.b32.xlu1 %v24031_v31, %s14899_s13  ;;  %5957 = vmatprep.subr.bf16.mxu0 %v14076_v40  ;;  %v19580_v40 = vmul.f32 %v19484_v48, %v4537_v59  ;;  %v4601_v45 = vmul.f32 %v19468_v10, %v4537_v59 }
 0x48a   : > { %v4528_v29 = vsel %vm4523_vm10, %v4500_v58, %v4516_v7  ;;  %v4552_v50 = vsel %vm4523_vm10, %v4516_v7, %v4468_v60  ;;  %v19583_v58 = vmul.f32 %v19484_v48, %v4536_v30 }
 0x48b   : > { %4995 = vrot.lane.b32.xlu0 %v24032_v53, %s14899_s13  ;;  %v4518_v57 = vpop.permute.xlu1 %4517  ;;  %v4595_v32 = vmul.f32 %v19473_v47, %v4552_v50  ;;  %v4598_v41 = vmul.f32 %v19478_v4, %v4528_v29  ;;  %v19577_v2 = vmul.f32 %v19481_v6, %v4528_v29  ;;  %24116 = vst [vmem:[#allocation305_spill] sm:$0xff] %v19580_v40  ;;  %v14505_v40 = vld [vmem:[#allocation6 + $0x70] ss:$56 sps:$4 sm:$0xff]  }
 0x48c   : > { %24117 = vst [vmem:[#allocation306_spill] sm:$0xff] %v19583_v58  ;;  %v4529_v60 = vsel %vm4523_vm10, %v4502_v36, %v4518_v57  ;;  %v4553_v7 = vsel %vm4523_vm10, %v4518_v57, %v4470_v46  ;;  %v19605_v61 = vmul.f32 %v19495_v49, %v4552_v50  ;;  %v14077_v24 = vpack.c.bf16 %v4601_v45, %v4597_v1 }
 0x48d   : > { %24115 = vst [vmem:[#allocation304_spill] sm:$0xff] %v19577_v2  ;;  %v4464_v33 = vpop.permute.xlu0 %4463  ;;  %v4599_v35 = vmul.f32 %v19473_v47, %v4553_v7  ;;  %v4602_v29 = vmul.f32 %v19478_v4, %v4529_v60  ;;  %v19593_v22 = vmul.f32 %v19481_v6, %v4529_v60  ;;  %4997 = vrot.lane.b32.xlu1 %v24037_v8, %s14899_s13 }
 0x48e   : > { %v19602_v59 = vmul.f32 %v19495_v49, %v4553_v7  ;;  %24120 = vst [vmem:[#allocation309_spill] sm:$0xff] %v19605_v61 }
 0x48f   : > { %24118 = vst [vmem:[#allocation307_spill] sm:$0xff] %v19593_v22  ;;  %5011 = vrot.lane.b32.xlu0 %v24038_v39, %s14899_s13  ;;  %v14075_v30 = vpack.c.bf16 %v4599_v35, %v4595_v32  ;;  %v4466_v36 = vpop.permute.xlu1 %4465  ;;  %v14078_v57 = vpack.c.bf16 %v4602_v29, %v4598_v41 }
 0x490   : > { %24119 = vst [vmem:[#allocation308_spill] sm:$0xff] %v19602_v59 }
 0x491   : > { %v4480_v60 = vpop.permute.xlu0 %4479  ;;  %5013 = vrot.lane.b32.xlu1 %v24041_v26, %s14899_s13  ;;  %5958 = vmatpush1.bf16.msra.mxu0 %v14075_v30 }
 0x492   : > { %v4542_v35 = vsel %vm4523_vm10, %v4464_v33, %v4480_v60  ;;  %6030 = vmatprep.subr.bf16.mxu1 %v14078_v57 }
 0x493   : > { %5027 = vrot.lane.b32.xlu0 %v24042_v42, %s14899_s13  ;;  %6031 = vmatpush1.bf16.msra.mxu1 %v14077_v24  ;;  %v4482_v32 = vpop.permute.xlu1 %4481  ;;  %v4588_v50 = vmul.f32 %v19444_v21, %v4542_v35  ;;  %v19617_v41 = vmul.f32 %v19447_v18, %v4542_v35 }
 0x494   : > { %v4543_v45 = vsel %vm4523_vm10, %v4466_v36, %v4482_v32 }
 0x495   : > { %24121 = vst [vmem:[#allocation310_spill] sm:$0xff] %v19617_v41  ;;  %v4496_v1 = vpop.permute.xlu0 %4495  ;;  %v4592_v29 = vmul.f32 %v19444_v21, %v4543_v45  ;;  %v19625_v30 = vmul.f32 %v19447_v18, %v4543_v45  ;;  %5029 = vrot.lane.b32.xlu1 %v24045_v56, %s14899_s13 }
 0x496   : > { %v4534_v46 = vsel %vm4523_vm10, %v4480_v60, %v4496_v1 }
 0x497   : > { %24122 = vst [vmem:[#allocation311_spill] sm:$0xff] %v19625_v30  ;;  %5043 = vrot.lane.b32.xlu0 %v24046_v62, %s14899_s13  ;;  %v4498_v57 = vpop.permute.xlu1 %4497  ;;  %v14072_v35 = vpack.c.bf16 %v4592_v29, %v4588_v50  ;;  %v4589_v50 = vmul.f32 %v19468_v10, %v4534_v46 }
 0x498   : > { %v4535_v5 = vsel %vm4523_vm10, %v4482_v32, %v4498_v57 }
 0x499   : > { %v4512_v7 = vpop.permute.xlu0 %4511  ;;  %5045 = vrot.lane.b32.xlu1 %v24047_v15, %s14899_s13  ;;  %5959 = vmatprep.subr.bf16.mxu0 %v14072_v35  ;;  %v19652_v35 = vmul.f32 %v19484_v48, %v4535_v5  ;;  %v4593_v41 = vmul.f32 %v19468_v10, %v4535_v5  ;;  %v14503_v5 = vld [vmem:[#allocation6 + $0x74] ss:$56 sps:$4 sm:$0xff]  }
 0x49a   : > { %v4526_v45 = vsel %vm4523_vm10, %v4496_v1, %v4512_v7  ;;  %v4550_v2 = vsel %vm4523_vm10, %v4512_v7, %v4464_v33  ;;  %v19655_v1 = vmul.f32 %v19484_v48, %v4534_v46  ;;  %4355 = vmatprep.mubr.bf16.mxu0 %v14503_v5  ;;  %4428 = vmatprep.mubr.bf16.mxu1 %v14503_v5 }
 0x49b   : > { %4991 = vrot.lane.b32.xlu0 %v24048_v14, %s14899_s13  ;;  %v4514_v60 = vpop.permute.xlu1 %4513  ;;  %v4587_v29 = vmul.f32 %v19473_v47, %v4550_v2  ;;  %v4590_v32 = vmul.f32 %v19478_v4, %v4526_v45  ;;  %v19649_v24 = vmul.f32 %v19481_v6, %v4526_v45  ;;  %24124 = vst [vmem:[#allocation313_spill] sm:$0xff] %v19652_v35 }
 0x49c   : > { %24125 = vst [vmem:[#allocation314_spill] sm:$0xff] %v19655_v1  ;;  %v4527_v33 = vsel %vm4523_vm10, %v4498_v57, %v4514_v60  ;;  %v4551_v7 = vsel %vm4523_vm10, %v4514_v60, %v4466_v36  ;;  %v19677_v58 = vmul.f32 %v19495_v49, %v4550_v2  ;;  %v14073_v14 = vpack.c.bf16 %v4593_v41, %v4589_v50 }
 0x49d   : > { %24123 = vst [vmem:[#allocation312_spill] sm:$0xff] %v19649_v24  ;;  %v4460_v22 = vpop.permute.xlu0 %4459  ;;  %v4591_v30 = vmul.f32 %v19473_v47, %v4551_v7  ;;  %v4594_v45 = vmul.f32 %v19478_v4, %v4527_v33  ;;  %v19665_v61 = vmul.f32 %v19481_v6, %v4527_v33  ;;  %4993 = vrot.lane.b32.xlu1 %v24103_v55, %s14899_s13  ;;  %v5349_v55 = vld [vmem:[#allocation3 + $0x23] ss:$8 sm:$0xf] }
 0x49e   : > { %v19674_v59 = vmul.f32 %v19495_v49, %v4551_v7  ;;  %24128 = vst [vmem:[#allocation317_spill] sm:$0xff] %v19677_v58  ;;  %4356 = vmatmul.mubr.bf16.gmra.mxu0 %v14505_v40  ;;  %4429 = vmatmul.mubr.bf16.gmra.mxu1 %v14505_v40 }
 0x49f   : > { %24126 = vst [vmem:[#allocation315_spill] sm:$0xff] %v19665_v61  ;;  %5007 = vrot.lane.b32.xlu0 %v24104_v54, %s14899_s13  ;;  %v14071_v46 = vpack.c.bf16 %v4591_v30, %v4587_v29  ;;  %v4462_v57 = vpop.permute.xlu1 %4461  ;;  %v14074_v60 = vpack.c.bf16 %v4594_v45, %v4590_v32 }
 0x4a0   : > { %24127 = vst [vmem:[#allocation316_spill] sm:$0xff] %v19674_v59 }
 0x4a1   : > { %v4476_v33 = vpop.permute.xlu0 %4475  ;;  %5009 = vrot.lane.b32.xlu1 %v24057_v13, %s14899_s13  ;;  %5960 = vmatpush1.bf16.msra.mxu0 %v14071_v46  ;;  %v14506_v46 = vld [vmem:[#allocation6 + $0xe4] ss:$56 sps:$4 sm:$0xff]  }
 0x4a2   : > { %v4540_v30 = vsel %vm4523_vm10, %v4460_v22, %v4476_v33  ;;  %6032 = vmatprep.subr.bf16.mxu1 %v14074_v60  ;;  %4365 = vmatprep.mubr.bf16.mxu0 %v14506_v46 }
 0x4a3   : > { %5023 = vrot.lane.b32.xlu0 %v24058_v3, %s14899_s13  ;;  %6033 = vmatpush1.bf16.msra.mxu1 %v14073_v14  ;;  %v4478_v2 = vpop.permute.xlu1 %4477  ;;  %v4580_v29 = vmul.f32 %v19444_v21, %v4540_v30  ;;  %v19689_v32 = vmul.f32 %v19447_v18, %v4540_v30 }
 0x4a4   : > { %v4541_v41 = vsel %vm4523_vm10, %v4462_v57, %v4478_v2  ;;  %4438 = vmatprep.mubr.bf16.mxu1 %v14506_v46 }
 0x4a5   : > { %24129 = vst [vmem:[#allocation318_spill] sm:$0xff] %v19689_v32  ;;  %v4492_v50 = vpop.permute.xlu0 %4491  ;;  %v4584_v45 = vmul.f32 %v19444_v21, %v4541_v41  ;;  %v19697_v14 = vmul.f32 %v19447_v18, %v4541_v41  ;;  %5025 = vrot.lane.b32.xlu1 %v23891_v0, %s14899_s13  ;;  %v14508_v41 = vld [vmem:[#allocation6 + $0xe0] ss:$56 sps:$4 sm:$0xff]  }
 0x4a6   : > { %v4532_v21 = vsel %vm4523_vm10, %v4476_v33, %v4492_v50  ;;  %4366 = vmatmul.mubr.bf16.gmra.mxu0 %v14508_v41  ;;  %4439 = vmatmul.mubr.bf16.gmra.mxu1 %v14508_v41 }
 0x4a7   : > { %24130 = vst [vmem:[#allocation319_spill] sm:$0xff] %v19697_v14  ;;  %5039 = vrot.lane.b32.xlu0 %v23889_v38, %s14899_s13  ;;  %v4494_v5 = vpop.permute.xlu1 %4493  ;;  %v14068_v30 = vpack.c.bf16 %v4584_v45, %v4580_v29  ;;  %v4581_v33 = vmul.f32 %v19468_v10, %v4532_v21 }
 0x4a8   : > { %v4533_v36 = vsel %vm4523_vm10, %v4478_v2, %v4494_v5 }
 0x4a9   : > { %v4508_v18 = vpop.permute.xlu0 %4507  ;;  %5041 = vrot.lane.b32.xlu1 %v23893_v27, %s14899_s13  ;;  %5961 = vmatprep.subr.bf16.mxu0 %v14068_v30  ;;  %v19724_v30 = vmul.f32 %v19484_v48, %v4533_v36  ;;  %v4585_v24 = vmul.f32 %v19468_v10, %v4533_v36 }
 0x4aa   : > { %v4524_v40 = vsel %vm4523_vm10, %v4492_v50, %v4508_v18  ;;  %v4548_v29 = vsel %vm4523_vm10, %v4508_v18, %v4460_v22  ;;  %v19727_v50 = vmul.f32 %v19484_v48, %v4532_v21 }
 0x4ab   : > { %4987 = vrot.lane.b32.xlu0 %v23892_v51, %s14899_s13  ;;  %v4510_v45 = vpop.permute.xlu1 %4509  ;;  %v4579_v46 = vmul.f32 %v19473_v47, %v4548_v29  ;;  %v4582_v2 = vmul.f32 %v19478_v4, %v4524_v40  ;;  %v19721_v60 = vmul.f32 %v19481_v6, %v4524_v40  ;;  %24132 = vst [vmem:[#allocation321_spill] sm:$0xff] %v19724_v30 }
 0x4ac   : > { %24133 = vst [vmem:[#allocation322_spill] sm:$0xff] %v19727_v50  ;;  %v4525_v22 = vsel %vm4523_vm10, %v4494_v5, %v4510_v45  ;;  %v4549_v18 = vsel %vm4523_vm10, %v4510_v45, %v4462_v57  ;;  %v19753_v5 = vmul.f32 %v19495_v49, %v4548_v29  ;;  %v14511_v45 = vld [vmem:[#allocation6 + $0x150] ss:$56 sps:$4 sm:$0xff]  }
 0x4ad   : > { %24131 = vst [vmem:[#allocation320_spill] sm:$0xff] %v19721_v60  ;;  %v5264_v7 = vpop.permute.xlu0 %5263  ;;  %v4583_v40 = vmul.f32 %v19473_v47, %v4549_v18  ;;  %v4586_v61 = vmul.f32 %v19478_v4, %v4525_v22  ;;  %v19737_v32 = vmul.f32 %v19481_v6, %v4525_v22  ;;  %4989 = vrot.lane.b32.xlu1 %v23899_v43, %s14899_s13  ;;  %v14509_v6 = vld [vmem:[#allocation6 + $0x154] ss:$56 sps:$4 sm:$0xff]  }
 0x4ae   : > { %v19747_v4 = vrot.slane %v5349_v55, %v23910_v17  ;;  %v19750_v57 = vmul.f32 %v19495_v49, %v4549_v18  ;;  %24136 = vst [vmem:[#allocation325_spill] sm:$0xff] %v19753_v5  ;;  %4375 = vmatprep.mubr.bf16.mxu0 %v14509_v6  ;;  %4448 = vmatprep.mubr.bf16.mxu1 %v14509_v6  ;;  %v14514_v18 = vld [vmem:[#allocation6 + $0x14] ss:$56 sps:$4 sm:$0xff]  }
 0x4af   : > { %24134 = vst [vmem:[#allocation323_spill] sm:$0xff] %v19737_v32  ;;  %5003 = vrot.lane.b32.xlu0 %v23897_v25, %s14899_s13  ;;  %v14067_v48 = vpack.c.bf16 %v4583_v40, %v4579_v46  ;;  %v5266_v36 = vpop.permute.xlu1 %5265  ;;  %v14070_v47 = vpack.c.bf16 %v4586_v61, %v4582_v2  ;;  %v14069_v46 = vpack.c.bf16 %v4585_v24, %v4581_v33  ;;  %v24139_v32 = vld [vmem:[#allocation28_spill] sm:$0xff] }
 0x4b0   : > { %24135 = vst [vmem:[#allocation324_spill] sm:$0xff] %v19750_v57  ;;  %4376 = vmatmul.mubr.bf16.gmra.mxu0 %v14511_v45  ;;  %4449 = vmatmul.mubr.bf16.gmra.mxu1 %v14511_v45  ;;  %v19777_v6 = vrot.slane %v5349_v55, %v23927_v63  ;;  %v24141_v57 = vld [vmem:[#allocation23_spill] sm:$0xff] }
 0x4b1   : > { %v5280_v21 = vpop.permute.xlu0 %5279  ;;  %5005 = vrot.lane.b32.xlu1 %v23903_v20, %s14899_s13  ;;  %5962 = vmatpush1.bf16.msra.mxu0 %v14067_v48 }
 0x4b2   : > { %v5338_v61 = vsel %vm5315_vm11, %v5264_v7, %v5280_v21  ;;  %6034 = vmatprep.subr.bf16.mxu1 %v14070_v47  ;;  %v19774_v47 = vrot.slane %v5349_v55, %v23911_v28  ;;  %5979 = vmatprep.mubr.bf16.mxu0 %v14514_v18 }
 0x4b3   : > { %5019 = vrot.lane.b32.xlu0 %v23900_v9, %s14899_s13  ;;  %6035 = vmatpush1.bf16.msra.mxu1 %v14069_v46  ;;  %v5282_v49 = vpop.permute.xlu1 %5281  ;;  %v5396_v29 = vmul.f32 %v19747_v4, %v5338_v61  ;;  %v19780_v61 = vrot.slane %v5349_v55, %v23919_v11  ;;  %v24138_v55 = vld [vmem:[#allocation26_spill] sm:$0xff] }
 0x4b4   : > { %v5339_v2 = vsel %vm5315_vm11, %v5266_v36, %v5282_v49  ;;  %6052 = vmatprep.mubr.bf16.mxu1 %v14514_v18 }
 0x4b5   : > { %v5296_v24 = vpop.permute.xlu0 %5295  ;;  %v5400_v22 = vmul.f32 %v19747_v4, %v5339_v2  ;;  %5021 = vrot.lane.b32.xlu1 %v23907_v23, %s14899_s13  ;;  %v24137_v2 = vld [vmem:[#allocation51_spill] sm:$0xff] }
 0x4b6   : > { %v5330_v18 = vsel %vm5315_vm11, %v5280_v21, %v5296_v24 }
 0x4b7   : > { %5035 = vrot.lane.b32.xlu0 %v23905_v12, %s14899_s13  ;;  %v5298_v40 = vpop.permute.xlu1 %5297  ;;  %v14128_v48 = vpack.c.bf16 %v5400_v22, %v5396_v29  ;;  %v5397_v21 = vmul.f32 %v19780_v61, %v5330_v18 }
 0x4b8   : > { %v5331_v22 = vsel %vm5315_vm11, %v5282_v49, %v5298_v40 }
 0x4b9   : > { %v5312_v46 = vpop.permute.xlu0 %5311  ;;  %5037 = vrot.lane.b32.xlu1 %v24137_v2, %s14899_s13  ;;  %5963 = vmatprep.subr.bf16.mxu0 %v14128_v48  ;;  %v5401_v49 = vmul.f32 %v19780_v61, %v5331_v22 }
 0x4ba   : > { %v5322_v45 = vsel %vm5315_vm11, %v5296_v24, %v5312_v46  ;;  %v5346_v29 = vsel %vm5315_vm11, %v5312_v46, %v5264_v7 }
 0x4bb   : > { %6137 = vrot.lane.b32.xlu0 %v24138_v55, %s14900_s15  ;;  %v5314_v10 = vpop.permute.xlu1 %5313  ;;  %v5395_v33 = vmul.f32 %v19774_v47, %v5346_v29  ;;  %v5398_v48 = vmul.f32 %v19777_v6, %v5322_v45 }
 0x4bc   : > { %v5323_v41 = vsel %vm5315_vm11, %v5298_v40, %v5314_v10  ;;  %v5347_v7 = vsel %vm5315_vm11, %v5314_v10, %v5266_v36  ;;  %v14129_v10 = vpack.c.bf16 %v5401_v49, %v5397_v21 }
 0x4bd   : > { %v5260_v46 = vpop.permute.xlu0 %5259  ;;  %v5399_v24 = vmul.f32 %v19774_v47, %v5347_v7  ;;  %v5402_v60 = vmul.f32 %v19777_v6, %v5323_v41  ;;  %6139 = vrot.lane.b32.xlu1 %v24139_v32, %s14900_s15 }
 0x4bf   : > { %6153 = vrot.lane.b32.xlu0 %v24102_v52, %s14900_s15  ;;  %v14127_v45 = vpack.c.bf16 %v5399_v24, %v5395_v33  ;;  %v5262_v40 = vpop.permute.xlu1 %5261  ;;  %v14130_v29 = vpack.c.bf16 %v5402_v60, %v5398_v48 }
 0x4c1   : > { %v5276_v5 = vpop.permute.xlu0 %5275  ;;  %6155 = vrot.lane.b32.xlu1 %v24022_v19, %s14900_s15  ;;  %5964 = vmatpush2.bf16.msra.mxu0 %v14127_v45 }
 0x4c2   : > { %v5336_v36 = vsel %vm5315_vm11, %v5260_v46, %v5276_v5  ;;  %6036 = vmatprep.subr.bf16.mxu1 %v14130_v29 }
 0x4c3   : > { %6169 = vrot.lane.b32.xlu0 %v24023_v34, %s14900_s15  ;;  %6037 = vmatpush2.bf16.msra.mxu1 %v14129_v10  ;;  %v5278_v41 = vpop.permute.xlu1 %5277  ;;  %v5388_v22 = vmul.f32 %v19747_v4, %v5336_v36 }
 0x4c4   : > { %v5337_v60 = vsel %vm5315_vm11, %v5262_v40, %v5278_v41 }
 0x4c5   : > { %v5292_v33 = vpop.permute.xlu0 %5291  ;;  %v5392_v18 = vmul.f32 %v19747_v4, %v5337_v60  ;;  %6171 = vrot.lane.b32.xlu1 %v24029_v37, %s14900_s15 }
 0x4c6   : > { %v5328_v29 = vsel %vm5315_vm11, %v5276_v5, %v5292_v33 }
 0x4c7   : > { %6185 = vrot.lane.b32.xlu0 %v24030_v16, %s14900_s15  ;;  %v5294_v48 = vpop.permute.xlu1 %5293  ;;  %v14124_v7 = vpack.c.bf16 %v5392_v18, %v5388_v22 }
 0x4c8   : > { %v5329_v45 = vsel %vm5315_vm11, %v5278_v41, %v5294_v48 }
 0x4c9   : > { %v5308_v49 = vpop.permute.xlu0 %5307  ;;  %6187 = vrot.lane.b32.xlu1 %v24031_v31, %s14900_s15  ;;  %5965 = vmatprep.subr.bf16.mxu0 %v14124_v7  ;;  %v5393_v41 = vmul.f32 %v19780_v61, %v5329_v45  ;;  %v5389_v7 = vmul.f32 %v19780_v61, %v5328_v29 }
 0x4ca   : > { %v5320_v21 = vsel %vm5315_vm11, %v5292_v33, %v5308_v49  ;;  %v5344_v24 = vsel %vm5315_vm11, %v5308_v49, %v5260_v46 }
 0x4cb   : > { %6133 = vrot.lane.b32.xlu0 %v24032_v53, %s14900_s15  ;;  %v5310_v10 = vpop.permute.xlu1 %5309  ;;  %v5387_v36 = vmul.f32 %v19774_v47, %v5344_v24  ;;  %v5390_v22 = vmul.f32 %v19777_v6, %v5320_v21 }
 0x4cc   : > { %v5321_v60 = vsel %vm5315_vm11, %v5294_v48, %v5310_v10  ;;  %v5345_v46 = vsel %vm5315_vm11, %v5310_v10, %v5262_v40  ;;  %v14125_v40 = vpack.c.bf16 %v5393_v41, %v5389_v7 }
 0x4cd   : > { %v5256_v18 = vpop.permute.xlu0 %5255  ;;  %v5391_v5 = vmul.f32 %v19774_v47, %v5345_v46  ;;  %v5394_v33 = vmul.f32 %v19777_v6, %v5321_v60  ;;  %6135 = vrot.lane.b32.xlu1 %v24037_v8, %s14900_s15 }
 0x4cf   : > { %6149 = vrot.lane.b32.xlu0 %v24038_v39, %s14900_s15  ;;  %v14123_v49 = vpack.c.bf16 %v5391_v5, %v5387_v36  ;;  %v5258_v48 = vpop.permute.xlu1 %5257  ;;  %v14126_v21 = vpack.c.bf16 %v5394_v33, %v5390_v22 }
 0x4d1   : > { %v5272_v24 = vpop.permute.xlu0 %5271  ;;  %6151 = vrot.lane.b32.xlu1 %v24041_v26, %s14900_s15  ;;  %5966 = vmatpush2.bf16.msra.mxu0 %v14123_v49 }
 0x4d2   : > { %v5334_v45 = vsel %vm5315_vm11, %v5256_v18, %v5272_v24  ;;  %6038 = vmatprep.subr.bf16.mxu1 %v14126_v21 }
 0x4d3   : > { %6165 = vrot.lane.b32.xlu0 %v24042_v42, %s14900_s15  ;;  %6039 = vmatpush2.bf16.msra.mxu1 %v14125_v40  ;;  %v5274_v29 = vpop.permute.xlu1 %5273  ;;  %v5380_v10 = vmul.f32 %v19747_v4, %v5334_v45  ;;  %v24140_v40 = vld [vmem:[#allocation20_spill] sm:$0xff] }
 0x4d4   : > { %v5335_v36 = vsel %vm5315_vm11, %v5258_v48, %v5274_v29 }
 0x4d5   : > { %v5288_v22 = vpop.permute.xlu0 %5287  ;;  %v5384_v60 = vmul.f32 %v19747_v4, %v5335_v36  ;;  %6167 = vrot.lane.b32.xlu1 %v24045_v56, %s14900_s15 }
 0x4d6   : > { %v5326_v21 = vsel %vm5315_vm11, %v5272_v24, %v5288_v22 }
 0x4d7   : > { %6181 = vrot.lane.b32.xlu0 %v24046_v62, %s14900_s15  ;;  %v5290_v46 = vpop.permute.xlu1 %5289  ;;  %v14120_v41 = vpack.c.bf16 %v5384_v60, %v5380_v10 }
 0x4d8   : > { %v5327_v49 = vsel %vm5315_vm11, %v5274_v29, %v5290_v46 }
 0x4d9   : > { %v5304_v7 = vpop.permute.xlu0 %5303  ;;  %6183 = vrot.lane.b32.xlu1 %v24047_v15, %s14900_s15  ;;  %5967 = vmatprep.subr.bf16.mxu0 %v14120_v41  ;;  %v5385_v29 = vmul.f32 %v19780_v61, %v5327_v49 }
 0x4da   : > { %v5318_v5 = vsel %vm5315_vm11, %v5288_v22, %v5304_v7  ;;  %v5342_v33 = vsel %vm5315_vm11, %v5304_v7, %v5256_v18  ;;  %v5381_v7 = vmul.f32 %v19780_v61, %v5326_v21 }
 0x4db   : > { %6129 = vrot.lane.b32.xlu0 %v24140_v40, %s14900_s15  ;;  %v5306_v45 = vpop.permute.xlu1 %5305  ;;  %v5379_v10 = vmul.f32 %v19774_v47, %v5342_v33  ;;  %v5382_v36 = vmul.f32 %v19777_v6, %v5318_v5 }
 0x4dc   : > { %v5319_v60 = vsel %vm5315_vm11, %v5290_v46, %v5306_v45  ;;  %v5343_v18 = vsel %vm5315_vm11, %v5306_v45, %v5258_v48  ;;  %v14121_v48 = vpack.c.bf16 %v5385_v29, %v5381_v7 }
 0x4dd   : > { %v5252_v41 = vpop.permute.xlu0 %5251  ;;  %v5383_v24 = vmul.f32 %v19774_v47, %v5343_v18  ;;  %v5386_v22 = vmul.f32 %v19777_v6, %v5319_v60  ;;  %6131 = vrot.lane.b32.xlu1 %v24141_v57, %s14900_s15 }
 0x4df   : > { %6145 = vrot.lane.b32.xlu0 %v24104_v54, %s14900_s15  ;;  %v14119_v5 = vpack.c.bf16 %v5383_v24, %v5379_v10  ;;  %v5254_v46 = vpop.permute.xlu1 %5253  ;;  %v14122_v33 = vpack.c.bf16 %v5386_v22, %v5382_v36 }
 0x4e1   : > { %v5268_v14 = vpop.permute.xlu0 %5267  ;;  %6147 = vrot.lane.b32.xlu1 %v24057_v13, %s14900_s15  ;;  %5968 = vmatpush2.bf16.msra.mxu0 %v14119_v5 }
 0x4e2   : > { %v5332_v49 = vsel %vm5315_vm11, %v5252_v41, %v5268_v14  ;;  %6040 = vmatprep.subr.bf16.mxu1 %v14122_v33 }
 0x4e3   : > { %6161 = vrot.lane.b32.xlu0 %v24058_v3, %s14900_s15  ;;  %6041 = vmatpush2.bf16.msra.mxu1 %v14121_v48  ;;  %v5270_v21 = vpop.permute.xlu1 %5269  ;;  %v5372_v45 = vmul.f32 %v19747_v4, %v5332_v49 }
 0x4e4   : > { %v5333_v10 = vsel %vm5315_vm11, %v5254_v46, %v5270_v21 }
 0x4e5   : > { %v5284_v36 = vpop.permute.xlu0 %5283  ;;  %v5376_v60 = vmul.f32 %v19747_v4, %v5333_v10  ;;  %6163 = vrot.lane.b32.xlu1 %v23891_v0, %s14900_s15 }
 0x4e6   : > { %v5324_v5 = vsel %vm5315_vm11, %v5268_v14, %v5284_v36 }
 0x4e7   : > { %6177 = vrot.lane.b32.xlu0 %v23889_v38, %s14900_s15  ;;  %v5286_v18 = vpop.permute.xlu1 %5285  ;;  %v14116_v29 = vpack.c.bf16 %v5376_v60, %v5372_v45  ;;  %v5085_v60 = vld [vmem:[#allocation3 + $0x22] ss:$8 sm:$0xf]  ;;  %v5373_v14 = vmul.f32 %v19780_v61, %v5324_v5 }
 0x4e8   : > { %v5325_v4 = vsel %vm5315_vm11, %v5270_v21, %v5286_v18 }
 0x4e9   : > { %v5300_v7 = vpop.permute.xlu0 %5299  ;;  %6179 = vrot.lane.b32.xlu1 %v23893_v27, %s14900_s15  ;;  %5969 = vmatprep.subr.bf16.mxu0 %v14116_v29  ;;  %v5377_v21 = vmul.f32 %v19780_v61, %v5325_v4 }
 0x4ea   : > { %v5316_v24 = vsel %vm5315_vm11, %v5284_v36, %v5300_v7  ;;  %v5340_v22 = vsel %vm5315_vm11, %v5300_v7, %v5252_v41 }
 0x4eb   : > { %6125 = vrot.lane.b32.xlu0 %v23892_v51, %s14900_s15  ;;  %v5302_v33 = vpop.permute.xlu1 %5301  ;;  %v5371_v48 = vmul.f32 %v19774_v47, %v5340_v22  ;;  %v5374_v49 = vmul.f32 %v19777_v6, %v5316_v24  ;;  %v19930_v24 = vrot.slane %v5085_v60, %v23910_v17  ;;  %v14117_v61 = vpack.c.bf16 %v5377_v21, %v5373_v14 }
 0x4ec   : > { %v5317_v45 = vsel %vm5315_vm11, %v5286_v18, %v5302_v33  ;;  %v5341_v41 = vsel %vm5315_vm11, %v5302_v33, %v5254_v46  ;;  %v19950_v21 = vrot.slane %v5085_v60, %v23927_v63 }
 0x4ed   : > { %v5000_v10 = vpop.permute.xlu0 %4999  ;;  %v5375_v36 = vmul.f32 %v19774_v47, %v5341_v41  ;;  %v5378_v29 = vmul.f32 %v19777_v6, %v5317_v45  ;;  %6127 = vrot.lane.b32.xlu1 %v23899_v43, %s14900_s15  ;;  %v19947_v41 = vrot.slane %v5085_v60, %v23911_v28 }
 0x4ef   : > { %6141 = vrot.lane.b32.xlu0 %v23897_v25, %s14900_s15  ;;  %v14115_v18 = vpack.c.bf16 %v5375_v36, %v5371_v48  ;;  %v5002_v46 = vpop.permute.xlu1 %5001  ;;  %v14118_v7 = vpack.c.bf16 %v5378_v29, %v5374_v49  ;;  %v19953_v36 = vrot.slane %v5085_v60, %v23919_v11 }
 0x4f1   : > { %v5016_v22 = vpop.permute.xlu0 %5015  ;;  %6143 = vrot.lane.b32.xlu1 %v23903_v20, %s14900_s15  ;;  %5970 = vmatpush2.bf16.msra.mxu0 %v14115_v18 }
 0x4f2   : > { %v5074_v47 = vsel %vm5051_vm12, %v5000_v10, %v5016_v22  ;;  %6042 = vmatprep.subr.bf16.mxu1 %v14118_v7 }
 0x4f3   : > { %6157 = vrot.lane.b32.xlu0 %v23900_v9, %s14900_s15  ;;  %6043 = vmatpush2.bf16.msra.mxu1 %v14117_v61  ;;  %v5018_v6 = vpop.permute.xlu1 %5017  ;;  %v5132_v4 = vmul.f32 %v19930_v24, %v5074_v47 }
 0x4f4   : > { %v5075_v5 = vsel %vm5051_vm12, %v5002_v46, %v5018_v6 }
 0x4f5   : > { %v5032_v33 = vpop.permute.xlu0 %5031  ;;  %v5136_v48 = vmul.f32 %v19930_v24, %v5075_v5  ;;  %6159 = vrot.lane.b32.xlu1 %v23907_v23, %s14900_s15 }
 0x4f6   : > { %v5066_v61 = vsel %vm5051_vm12, %v5016_v22, %v5032_v33 }
 0x4f7   : > { %6173 = vrot.lane.b32.xlu0 %v23905_v12, %s14900_s15  ;;  %v5034_v49 = vpop.permute.xlu1 %5033  ;;  %v14112_v45 = vpack.c.bf16 %v5136_v48, %v5132_v4  ;;  %v5133_v22 = vmul.f32 %v19953_v36, %v5066_v61 }
 0x4f8   : > { %v5067_v7 = vsel %vm5051_vm12, %v5018_v6, %v5034_v49 }
 0x4f9   : > { %v5048_v14 = vpop.permute.xlu0 %5047  ;;  %6175 = vrot.lane.b32.xlu1 %v24137_v2, %s14900_s15  ;;  %5971 = vmatprep.subr.bf16.mxu0 %v14112_v45  ;;  %v5137_v6 = vmul.f32 %v19953_v36, %v5067_v7 }
 0x4fa   : > { %v5058_v29 = vsel %vm5051_vm12, %v5032_v33, %v5048_v14  ;;  %v5082_v18 = vsel %vm5051_vm12, %v5048_v14, %v5000_v10 }
 0x4fb   : > { %6777 = vrot.lane.b32.xlu0 %v24138_v55, %s14901_s16  ;;  %v5050_v60 = vpop.permute.xlu1 %5049  ;;  %v5131_v47 = vmul.f32 %v19947_v41, %v5082_v18  ;;  %v5134_v4 = vmul.f32 %v19950_v21, %v5058_v29 }
 0x4fc   : > { %v5059_v5 = vsel %vm5051_vm12, %v5034_v49, %v5050_v60  ;;  %v5083_v10 = vsel %vm5051_vm12, %v5050_v60, %v5002_v46  ;;  %v14113_v46 = vpack.c.bf16 %v5137_v6, %v5133_v22 }
 0x4fd   : > { %v4996_v48 = vpop.permute.xlu0 %4995  ;;  %v5135_v33 = vmul.f32 %v19947_v41, %v5083_v10  ;;  %v5138_v45 = vmul.f32 %v19950_v21, %v5059_v5  ;;  %6779 = vrot.lane.b32.xlu1 %v24139_v32, %s14901_s16 }
 0x4ff   : > { %6793 = vrot.lane.b32.xlu0 %v24102_v52, %s14901_s16  ;;  %v14111_v14 = vpack.c.bf16 %v5135_v33, %v5131_v47  ;;  %v4998_v49 = vpop.permute.xlu1 %4997  ;;  %v14114_v29 = vpack.c.bf16 %v5138_v45, %v5134_v4 }
 0x501   : > { %v5012_v18 = vpop.permute.xlu0 %5011  ;;  %6795 = vrot.lane.b32.xlu1 %v24022_v19, %s14901_s16  ;;  %5972 = vmatpush2.bf16.msra.mxu0 %v14111_v14 }
 0x502   : > { %v5072_v7 = vsel %vm5051_vm12, %v4996_v48, %v5012_v18  ;;  %6044 = vmatprep.subr.bf16.mxu1 %v14114_v29 }
 0x503   : > { %6809 = vrot.lane.b32.xlu0 %v24023_v34, %s14901_s16  ;;  %6045 = vmatpush2.bf16.msra.mxu1 %v14113_v46  ;;  %v5014_v61 = vpop.permute.xlu1 %5013  ;;  %v5124_v60 = vmul.f32 %v19930_v24, %v5072_v7 }
 0x504   : > { %v5073_v47 = vsel %vm5051_vm12, %v4998_v49, %v5014_v61 }
 0x505   : > { %v5028_v4 = vpop.permute.xlu0 %5027  ;;  %v5128_v5 = vmul.f32 %v19930_v24, %v5073_v47  ;;  %6811 = vrot.lane.b32.xlu1 %v24029_v37, %s14901_s16 }
 0x506   : > { %v5064_v29 = vsel %vm5051_vm12, %v5012_v18, %v5028_v4 }
 0x507   : > { %6825 = vrot.lane.b32.xlu0 %v24030_v16, %s14901_s16  ;;  %v5030_v10 = vpop.permute.xlu1 %5029  ;;  %v14108_v6 = vpack.c.bf16 %v5128_v5, %v5124_v60 }
 0x508   : > { %v5065_v14 = vsel %vm5051_vm12, %v5014_v61, %v5030_v10 }
 0x509   : > { %v5044_v22 = vpop.permute.xlu0 %5043  ;;  %6827 = vrot.lane.b32.xlu1 %v24031_v31, %s14901_s16  ;;  %5973 = vmatprep.subr.bf16.mxu0 %v14108_v6  ;;  %v5129_v61 = vmul.f32 %v19953_v36, %v5065_v14  ;;  %v5125_v6 = vmul.f32 %v19953_v36, %v5064_v29 }
 0x50a   : > { %v5056_v33 = vsel %vm5051_vm12, %v5028_v4, %v5044_v22  ;;  %v5080_v45 = vsel %vm5051_vm12, %v5044_v22, %v4996_v48 }
 0x50b   : > { %6773 = vrot.lane.b32.xlu0 %v24032_v53, %s14901_s16  ;;  %v5046_v46 = vpop.permute.xlu1 %5045  ;;  %v5123_v7 = vmul.f32 %v19947_v41, %v5080_v45  ;;  %v5126_v60 = vmul.f32 %v19950_v21, %v5056_v33 }
 0x50c   : > { %v5057_v47 = vsel %vm5051_vm12, %v5030_v10, %v5046_v46  ;;  %v5081_v48 = vsel %vm5051_vm12, %v5046_v46, %v4998_v49  ;;  %v14109_v49 = vpack.c.bf16 %v5129_v61, %v5125_v6 }
 0x50d   : > { %v4992_v5 = vpop.permute.xlu0 %4991  ;;  %v5127_v18 = vmul.f32 %v19947_v41, %v5081_v48  ;;  %v5130_v4 = vmul.f32 %v19950_v21, %v5057_v47  ;;  %6775 = vrot.lane.b32.xlu1 %v24037_v8, %s14901_s16 }
 0x50f   : > { %6789 = vrot.lane.b32.xlu0 %v24038_v39, %s14901_s16  ;;  %v14107_v22 = vpack.c.bf16 %v5127_v18, %v5123_v7  ;;  %v4994_v10 = vpop.permute.xlu1 %4993  ;;  %v14110_v33 = vpack.c.bf16 %v5130_v4, %v5126_v60 }
 0x511   : > { %v5008_v45 = vpop.permute.xlu0 %5007  ;;  %6791 = vrot.lane.b32.xlu1 %v24041_v26, %s14901_s16  ;;  %5974 = vmatpush2.bf16.msra.mxu0 %v14107_v22 }
 0x512   : > { %v5070_v14 = vsel %vm5051_vm12, %v4992_v5, %v5008_v45  ;;  %6046 = vmatprep.subr.bf16.mxu1 %v14110_v33 }
 0x513   : > { %6805 = vrot.lane.b32.xlu0 %v24042_v42, %s14901_s16  ;;  %6047 = vmatpush2.bf16.msra.mxu1 %v14109_v49  ;;  %v5010_v29 = vpop.permute.xlu1 %5009  ;;  %v5116_v46 = vmul.f32 %v19930_v24, %v5070_v14 }
 0x514   : > { %v5071_v7 = vsel %vm5051_vm12, %v4994_v10, %v5010_v29 }
 0x515   : > { %v5024_v60 = vpop.permute.xlu0 %5023  ;;  %v5120_v47 = vmul.f32 %v19930_v24, %v5071_v7  ;;  %6807 = vrot.lane.b32.xlu1 %v24045_v56, %s14901_s16 }
 0x516   : > { %v5062_v33 = vsel %vm5051_vm12, %v5008_v45, %v5024_v60 }
 0x517   : > { %6821 = vrot.lane.b32.xlu0 %v24046_v62, %s14901_s16  ;;  %v5026_v48 = vpop.permute.xlu1 %5025  ;;  %v14104_v61 = vpack.c.bf16 %v5120_v47, %v5116_v46 }
 0x518   : > { %v5063_v22 = vsel %vm5051_vm12, %v5010_v29, %v5026_v48 }
 0x519   : > { %v5040_v6 = vpop.permute.xlu0 %5039  ;;  %6823 = vrot.lane.b32.xlu1 %v24047_v15, %s14901_s16  ;;  %5975 = vmatprep.subr.bf16.mxu0 %v14104_v61  ;;  %v5121_v29 = vmul.f32 %v19953_v36, %v5063_v22  ;;  %v5117_v61 = vmul.f32 %v19953_v36, %v5062_v33 }
 0x51a   : > { %v5054_v18 = vsel %vm5051_vm12, %v5024_v60, %v5040_v6  ;;  %v5078_v4 = vsel %vm5051_vm12, %v5040_v6, %v4992_v5 }
 0x51b   : > { %6769 = vrot.lane.b32.xlu0 %v24140_v40, %s14901_s16  ;;  %v5042_v49 = vpop.permute.xlu1 %5041  ;;  %v5115_v14 = vmul.f32 %v19947_v41, %v5078_v4  ;;  %v5118_v46 = vmul.f32 %v19950_v21, %v5054_v18 }
 0x51c   : > { %v5055_v7 = vsel %vm5051_vm12, %v5026_v48, %v5042_v49  ;;  %v5079_v5 = vsel %vm5051_vm12, %v5042_v49, %v4994_v10  ;;  %v14105_v10 = vpack.c.bf16 %v5121_v29, %v5117_v61 }
 0x51d   : > { %v4988_v47 = vpop.permute.xlu0 %4987  ;;  %v5119_v45 = vmul.f32 %v19947_v41, %v5079_v5  ;;  %v5122_v60 = vmul.f32 %v19950_v21, %v5055_v7  ;;  %6771 = vrot.lane.b32.xlu1 %v24141_v57, %s14901_s16 }
 0x51f   : > { %6785 = vrot.lane.b32.xlu0 %v24104_v54, %s14901_s16  ;;  %v14103_v6 = vpack.c.bf16 %v5119_v45, %v5115_v14  ;;  %v4990_v48 = vpop.permute.xlu1 %4989  ;;  %v14106_v18 = vpack.c.bf16 %v5122_v60, %v5118_v46 }
 0x521   : > { %v5004_v4 = vpop.permute.xlu0 %5003  ;;  %6787 = vrot.lane.b32.xlu1 %v24057_v13, %s14901_s16  ;;  %5976 = vmatpush2.bf16.msra.mxu0 %v14103_v6 }
 0x522   : > { %v5068_v22 = vsel %vm5051_vm12, %v4988_v47, %v5004_v4  ;;  %6048 = vmatprep.subr.bf16.mxu1 %v14106_v18 }
 0x523   : > { %6801 = vrot.lane.b32.xlu0 %v24058_v3, %s14901_s16  ;;  %6049 = vmatpush2.bf16.msra.mxu1 %v14105_v10  ;;  %v5006_v33 = vpop.permute.xlu1 %5005  ;;  %v5108_v49 = vmul.f32 %v19930_v24, %v5068_v22 }
 0x524   : > { %v5069_v14 = vsel %vm5051_vm12, %v4990_v48, %v5006_v33 }
 0x525   : > { %v5020_v46 = vpop.permute.xlu0 %5019  ;;  %v5112_v7 = vmul.f32 %v19930_v24, %v5069_v14  ;;  %6803 = vrot.lane.b32.xlu1 %v23891_v0, %s14901_s16 }
 0x526   : > { %v5060_v6 = vsel %vm5051_vm12, %v5004_v4, %v5020_v46 }
 0x527   : > { %6817 = vrot.lane.b32.xlu0 %v23889_v38, %s14901_s16  ;;  %v5022_v5 = vpop.permute.xlu1 %5021  ;;  %v14100_v29 = vpack.c.bf16 %v5112_v7, %v5108_v49  ;;  %v5109_v4 = vmul.f32 %v19953_v36, %v5060_v6  ;;  %v6223_v6 = vld [vmem:[#allocation3 + $0x24] ss:$8 sm:$0xf] }
 0x528   : > { %v5061_v24 = vsel %vm5051_vm12, %v5006_v33, %v5022_v5  ;;  %v20168_v1 = vrot.slane %v6223_v6, %v23919_v11 }
 0x529   : > { %v5036_v61 = vpop.permute.xlu0 %5035  ;;  %6819 = vrot.lane.b32.xlu1 %v23893_v27, %s14901_s16  ;;  %5977 = vmatprep.subr.bf16.mxu0 %v14100_v29  ;;  %v5113_v33 = vmul.f32 %v19953_v36, %v5061_v24  ;;  %v14159_v36 = vpack.c.bf16 %v24139_v32, %v24138_v55 }
 0x52a   : > { %v5052_v45 = vsel %vm5051_vm12, %v5020_v46, %v5036_v61  ;;  %v5076_v60 = vsel %vm5051_vm12, %v5036_v61, %v4988_v47 }
 0x52b   : > { %6765 = vrot.lane.b32.xlu0 %v23892_v51, %s14901_s16  ;;  %v5038_v18 = vpop.permute.xlu1 %5037  ;;  %v5107_v10 = vmul.f32 %v19947_v41, %v5076_v60  ;;  %v5110_v22 = vmul.f32 %v19950_v21, %v5052_v45  ;;  %v14512_v60 = vld [vmem:[#allocation6 + $0x10] ss:$56 sps:$4 sm:$0xff]   ;;  %v14101_v24 = vpack.c.bf16 %v5113_v33, %v5109_v4  ;;  %v14155_v4 = vpack.c.bf16 %v24037_v8, %v24032_v53 }
 0x52c   : > { %v5053_v49 = vsel %vm5051_vm12, %v5022_v5, %v5038_v18  ;;  %v5077_v47 = vsel %vm5051_vm12, %v5038_v18, %v4990_v48  ;;  %v14160_v48 = vpack.c.bf16 %v24022_v19, %v24102_v52  ;;  %v14156_v18 = vpack.c.bf16 %v24041_v26, %v24038_v39 }
 0x52d   : > { %v20093_v14 = vpop.permute.xlu0 %6137  ;;  %v5111_v46 = vmul.f32 %v19947_v41, %v5077_v47  ;;  %v5114_v7 = vmul.f32 %v19950_v21, %v5053_v49  ;;  %6767 = vrot.lane.b32.xlu1 %v23899_v43, %s14901_s16  ;;  %v14162_v41 = vpack.c.bf16 %v24031_v31, %v24030_v16  ;;  %v14158_v49 = vpack.c.bf16 %v24047_v15, %v24046_v62 }
 0x52e   : > { %v20123_v47 = vrot.slane %v6223_v6, %v23910_v17 }
 0x52f   : > { %6781 = vrot.lane.b32.xlu0 %v23897_v25, %s14901_s16  ;;  %v14099_v5 = vpack.c.bf16 %v5111_v46, %v5107_v10  ;;  %v6140_v29 = vpop.permute.xlu1 %6139  ;;  %v14102_v61 = vpack.c.bf16 %v5114_v7, %v5110_v22  ;;  %v14161_v22 = vpack.c.bf16 %v24029_v37, %v24023_v34 }
 0x531   : > { %v6154_v45 = vpop.permute.xlu0 %6153  ;;  %6783 = vrot.lane.b32.xlu1 %v23903_v20, %s14901_s16  ;;  %5978 = vmatpush2.bf16.msra.mxu0 %v14099_v5  ;;  %v14152_v5 = vpack.c.bf16 %v24057_v13, %v24104_v54 }
 0x532   : > { %6050 = vmatprep.subr.bf16.mxu1 %v14102_v61  ;;  %7461 = vmatprep.subr.bf16.mxu0 %v14160_v48  ;;  %v6212_v7 = vsel %vm6189_vm13, %v20093_v14, %v6154_v45  ;;  %v14157_v48 = vpack.c.bf16 %v24045_v56, %v24042_v42 }
 0x533   : > { %6051 = vmatpush2.bf16.msra.mxu1 %v14101_v24  ;;  %v6156_v21 = vpop.permute.xlu1 %6155  ;;  %6797 = vrot.lane.b32.xlu0 %v23900_v9, %s14901_s16  ;;  %v14151_v24 = vpack.c.bf16 %v24141_v57, %v24140_v40  ;;  %v6270_v58 = vmul.f32 %v20123_v47, %v6212_v7 }
 0x534   : > { %7534 = vmatprep.subr.bf16.mxu1 %v14162_v41  ;;  %5980 = vmatmul.mubr.bf16.vlgmr.msra.gmra.mxu0 %v14512_v60  ;;  %v6213_v46 = vsel %vm6189_vm13, %v6140_v29, %v6156_v21  ;;  %v14515_v41 = vld [vmem:[#allocation6 + $0x84] ss:$56 sps:$4 sm:$0xff]  }
 0x535   : > { %v6170_v10 = vpop.permute.xlu0 %6169  ;;  %6799 = vrot.lane.b32.xlu1 %v23907_v23, %s14901_s16  ;;  %7462 = vmatpush1.bf16.msra.mxu0 %v14159_v36  ;;  %v20145_v36 = vrot.slane %v6223_v6, %v23911_v28 }
 0x536   : > { %6053 = vmatmul.mubr.bf16.vlgmr.msra.gmra.mxu1 %v14512_v60  ;;  %7463 = vmatprep.subr.bf16.mxu0 %v14156_v18  ;;  %v14154_v60 = vpack.c.bf16 %v23893_v27, %v23889_v38  ;;  %v20148_v18 = vrot.slane %v6223_v6, %v23927_v63  ;;  %v6204_v35 = vsel %vm6189_vm13, %v6154_v45, %v6170_v10 }
 0x537   : > { %7535 = vmatpush1.bf16.msra.mxu1 %v14161_v22  ;;  %v6172_v33 = vpop.permute.xlu1 %6171  ;;  %6813 = vrot.lane.b32.xlu0 %v23905_v12, %s14901_s16  ;;  %v14148_v22 = vpack.c.bf16 %v23903_v20, %v23897_v25 }
 0x538   : > { %7536 = vmatprep.subr.bf16.mxu1 %v14158_v49  ;;  %v14153_v49 = vpack.c.bf16 %v23891_v0, %v24058_v3  ;;  %5989 = vmatprep.mubr.bf16.mxu0 %v14515_v41 }
 0x539   : > { %v6186_v61 = vpop.permute.xlu0 %6185  ;;  %6815 = vrot.lane.b32.xlu1 %v24137_v2, %s14901_s16  ;;  %7464 = vmatpush1.bf16.msra.mxu0 %v14155_v4  ;;  %v6274_v4 = vmul.f32 %v20123_v47, %v6213_v46  ;;  %s299_s16 = sand.u32 1, %s14869_s25  }
 0x53a   : > { %7465 = vmatprep.subr.bf16.mxu0 %v14152_v5  ;;  %v6196_v5 = vsel %vm6189_vm13, %v6170_v10, %v6186_v61  ;;  %v6220_v46 = vsel %vm6189_vm13, %v6186_v61, %v20093_v14  ;;  %6062 = vmatprep.mubr.bf16.mxu1 %v14515_v41 }
 0x53b   : > { %7537 = vmatpush1.bf16.msra.mxu1 %v14157_v48  ;;  %v6188_v59 = vpop.permute.xlu1 %6187  ;;  %6513 = vrot.lane.b32.xlu0 %v24138_v55, %s14902_s18  ;;  %v14517_v48 = vld [vmem:[#allocation6 + $0x80] ss:$56 sps:$4 sm:$0xff]   ;;  %v6272_v61 = vmul.f32 %v20148_v18, %v6196_v5  ;;  %v6269_v45 = vmul.f32 %v20145_v36, %v6220_v46 }
 0x53c   : > { %v6197_v50 = vsel %vm6189_vm13, %v6172_v33, %v6188_v59  ;;  %v6221_v30 = vsel %vm6189_vm13, %v6188_v59, %v6140_v29  ;;  %7538 = vmatprep.subr.bf16.mxu1 %v14154_v60  ;;  %v14150_v59 = vpack.c.bf16 %v24137_v2, %v23905_v12  ;;  %v6205_v29 = vsel %vm6189_vm13, %v6156_v21, %v6172_v33 }
 0x53d   : > { %v6134_v7 = vpop.permute.xlu0 %6133  ;;  %6515 = vrot.lane.b32.xlu1 %v24139_v32, %s14902_s18  ;;  %7466 = vmatpush1.bf16.msra.mxu0 %v14151_v24  ;;  %v6276_v14 = vmul.f32 %v20148_v18, %v6197_v50  ;;  %v6273_v6 = vmul.f32 %v20145_v36, %v6221_v30  ;;  %v14147_v60 = vpack.c.bf16 %v23899_v43, %v23892_v51 }
 0x53e   : > { %7467 = vmatprep.subr.bf16.mxu0 %v14148_v22  ;;  %v14144_v21 = vpack.c.bf16 %v6274_v4, %v6270_v58  ;;  %v14149_v50 = vpack.c.bf16 %v23907_v23, %v23900_v9  ;;  %5990 = vmatmul.mubr.bf16.gmra.mxu0 %v14517_v48  ;;  %v6275_v24 = vmul.f32 %v20168_v1, %v6205_v29  ;;  %v14518_v22 = vld [vmem:[#allocation6 + $0xf4] ss:$56 sps:$4 sm:$0xff]  }
 0x53f   : > { %7539 = vmatpush1.bf16.msra.mxu1 %v14153_v49  ;;  %v6136_v10 = vpop.permute.xlu1 %6135  ;;  %6529 = vrot.lane.b32.xlu0 %v24102_v52, %s14902_s18  ;;  %v6271_v30 = vmul.f32 %v20168_v1, %v6204_v35  ;;  %v14146_v49 = vpack.c.bf16 %v6276_v14, %v6272_v61  ;;  %v14143_v58 = vpack.c.bf16 %v6273_v6, %v6269_v45 }
 0x540   : > { %7540 = vmatprep.subr.bf16.mxu1 %v14150_v59  ;;  %6063 = vmatmul.mubr.bf16.gmra.mxu1 %v14517_v48  ;;  %v14520_v59 = vld [vmem:[#allocation6 + $0xf0] ss:$56 sps:$4 sm:$0xff]  }
 0x541   : > { %v6150_v33 = vpop.permute.xlu0 %6149  ;;  %6531 = vrot.lane.b32.xlu1 %v24022_v19, %s14902_s18  ;;  %7468 = vmatpush1.bf16.msra.mxu0 %v14147_v60  ;;  %v14145_v29 = vpack.c.bf16 %v6275_v24, %v6271_v30 }
 0x542   : > { %v6210_v41 = vsel %vm6189_vm13, %v6134_v7, %v6150_v33  ;;  %7469 = vmatprep.subr.bf16.mxu0 %v14144_v21  ;;  %5999 = vmatprep.mubr.bf16.mxu0 %v14518_v22  ;;  %v14521_v21 = vld [vmem:[#allocation6 + $0x164] ss:$56 sps:$4 sm:$0xff]  }
 0x543   : > { %7541 = vmatpush1.bf16.msra.mxu1 %v14149_v50  ;;  %v6152_v4 = vpop.permute.xlu1 %6151  ;;  %v6262_v5 = vmul.f32 %v20123_v47, %v6210_v41  ;;  %6545 = vrot.lane.b32.xlu0 %v24023_v34, %s14902_s18 }
 0x544   : > { %v6211_v35 = vsel %vm6189_vm13, %v6136_v10, %v6152_v4  ;;  %7542 = vmatprep.subr.bf16.mxu1 %v14146_v49  ;;  %6072 = vmatprep.mubr.bf16.mxu1 %v14518_v22 }
 0x545   : > { %v6166_v46 = vpop.permute.xlu0 %6165  ;;  %v6266_v60 = vmul.f32 %v20123_v47, %v6211_v35  ;;  %6547 = vrot.lane.b32.xlu1 %v24029_v37, %s14902_s18  ;;  %7470 = vmatpush1.bf16.msra.mxu0 %v14143_v58 }
 0x546   : > { %6000 = vmatmul.mubr.bf16.gmra.mxu0 %v14520_v59  ;;  %v6202_v24 = vsel %vm6189_vm13, %v6150_v33, %v6166_v46 }
 0x547   : > { %7543 = vmatpush1.bf16.msra.mxu1 %v14145_v29  ;;  %v6168_v48 = vpop.permute.xlu1 %6167  ;;  %6561 = vrot.lane.b32.xlu0 %v24030_v16, %s14902_s18  ;;  %v14140_v14 = vpack.c.bf16 %v6266_v60, %v6262_v5  ;;  %v6263_v5 = vmul.f32 %v20168_v1, %v6202_v24 }
 0x548   : > { %v6203_v50 = vsel %vm6189_vm13, %v6152_v4, %v6168_v48  ;;  %6073 = vmatmul.mubr.bf16.gmra.mxu1 %v14520_v59  ;;  %6009 = vmatprep.mubr.bf16.mxu0 %v14521_v21  ;;  %v14523_v4 = vld [vmem:[#allocation6 + $0x160] ss:$56 sps:$4 sm:$0xff]  }
 0x549   : > { %v6182_v61 = vpop.permute.xlu0 %6181  ;;  %6563 = vrot.lane.b32.xlu1 %v24031_v31, %s14902_s18  ;;  %7471 = vmatprep.subr.bf16.mxu0 %v14140_v14  ;;  %v6267_v33 = vmul.f32 %v20168_v1, %v6203_v50 }
 0x54a   : > { %v6194_v6 = vsel %vm6189_vm13, %v6166_v46, %v6182_v61  ;;  %v6218_v45 = vsel %vm6189_vm13, %v6182_v61, %v6134_v7  ;;  %6082 = vmatprep.mubr.bf16.mxu1 %v14521_v21 }
 0x54b   : > { %v6184_v30 = vpop.permute.xlu1 %6183  ;;  %v6261_v41 = vmul.f32 %v20145_v36, %v6218_v45  ;;  %v6264_v22 = vmul.f32 %v20148_v18, %v6194_v6  ;;  %6509 = vrot.lane.b32.xlu0 %v24032_v53, %s14902_s18 }
 0x54c   : > { %v6195_v7 = vsel %vm6189_vm13, %v6168_v48, %v6184_v30  ;;  %v6219_v49 = vsel %vm6189_vm13, %v6184_v30, %v6136_v10  ;;  %v14141_v48 = vpack.c.bf16 %v6267_v33, %v6263_v5 }
 0x54d   : > { %v6130_v58 = vpop.permute.xlu0 %6129  ;;  %v6265_v35 = vmul.f32 %v20145_v36, %v6219_v49  ;;  %v6268_v46 = vmul.f32 %v20148_v18, %v6195_v7  ;;  %6511 = vrot.lane.b32.xlu1 %v24037_v8, %s14902_s18 }
 0x54e   : > { %6010 = vmatmul.mubr.bf16.gmra.mxu0 %v14523_v4 }
 0x54f   : > { %v14139_v59 = vpack.c.bf16 %v6265_v35, %v6261_v41  ;;  %v6132_v29 = vpop.permute.xlu1 %6131  ;;  %6525 = vrot.lane.b32.xlu0 %v24038_v39, %s14902_s18  ;;  %v14142_v10 = vpack.c.bf16 %v6268_v46, %v6264_v22 }
 0x550   : > { %6083 = vmatmul.mubr.bf16.gmra.mxu1 %v14523_v4 }
 0x551   : > { %v6146_v60 = vpop.permute.xlu0 %6145  ;;  %6527 = vrot.lane.b32.xlu1 %v24041_v26, %s14902_s18  ;;  %7472 = vmatpush1.bf16.msra.mxu0 %v14139_v59 }
 0x552   : > { %v6208_v14 = vsel %vm6189_vm13, %v6130_v58, %v6146_v60  ;;  %7544 = vmatprep.subr.bf16.mxu1 %v14142_v10 }
 0x553   : > { %7545 = vmatpush1.bf16.msra.mxu1 %v14141_v48  ;;  %v6148_v61 = vpop.permute.xlu1 %6147  ;;  %v6254_v6 = vmul.f32 %v20123_v47, %v6208_v14  ;;  %6541 = vrot.lane.b32.xlu0 %v24042_v42, %s14902_s18 }
 0x554   : > { %v6209_v45 = vsel %vm6189_vm13, %v6132_v29, %v6148_v61 }
 0x555   : > { %v6162_v21 = vpop.permute.xlu0 %6161  ;;  %v6258_v50 = vmul.f32 %v20123_v47, %v6209_v45  ;;  %6543 = vrot.lane.b32.xlu1 %v24045_v56, %s14902_s18 }
 0x556   : > { %v6200_v4 = vsel %vm6189_vm13, %v6146_v60, %v6162_v21 }
 0x557   : > { %v6164_v24 = vpop.permute.xlu1 %6163  ;;  %6557 = vrot.lane.b32.xlu0 %v24046_v62, %s14902_s18  ;;  %v14136_v30 = vpack.c.bf16 %v6258_v50, %v6254_v6  ;;  %v6255_v48 = vmul.f32 %v20168_v1, %v6200_v4 }
 0x558   : > { %v6201_v49 = vsel %vm6189_vm13, %v6148_v61, %v6164_v24 }
 0x559   : > { %v6178_v41 = vpop.permute.xlu0 %6177  ;;  %6559 = vrot.lane.b32.xlu1 %v24047_v15, %s14902_s18  ;;  %7473 = vmatprep.subr.bf16.mxu0 %v14136_v30  ;;  %v6259_v10 = vmul.f32 %v20168_v1, %v6201_v49 }
 0x55a   : > { %v6192_v22 = vsel %vm6189_vm13, %v6162_v21, %v6178_v41  ;;  %v6216_v7 = vsel %vm6189_vm13, %v6178_v41, %v6130_v58 }
 0x55b   : > { %v6180_v33 = vpop.permute.xlu1 %6179  ;;  %v6253_v5 = vmul.f32 %v20145_v36, %v6216_v7  ;;  %v6256_v35 = vmul.f32 %v20148_v18, %v6192_v22  ;;  %6505 = vrot.lane.b32.xlu0 %v24140_v40, %s14902_s18 }
 0x55c   : > { %v6193_v46 = vsel %vm6189_vm13, %v6164_v24, %v6180_v33  ;;  %v6217_v58 = vsel %vm6189_vm13, %v6180_v33, %v6132_v29  ;;  %v14137_v29 = vpack.c.bf16 %v6259_v10, %v6255_v48 }
 0x55d   : > { %v6126_v59 = vpop.permute.xlu0 %6125  ;;  %v6257_v60 = vmul.f32 %v20145_v36, %v6217_v58  ;;  %v6260_v14 = vmul.f32 %v20148_v18, %v6193_v46  ;;  %6507 = vrot.lane.b32.xlu1 %v24141_v57, %s14902_s18 }
 0x55f   : > { %v14135_v61 = vpack.c.bf16 %v6257_v60, %v6253_v5  ;;  %v6128_v6 = vpop.permute.xlu1 %6127  ;;  %6521 = vrot.lane.b32.xlu0 %v24104_v54, %s14902_s18  ;;  %v14138_v45 = vpack.c.bf16 %v6260_v14, %v6256_v35 }
 0x561   : > { %v6142_v21 = vpop.permute.xlu0 %6141  ;;  %6523 = vrot.lane.b32.xlu1 %v24057_v13, %s14902_s18  ;;  %7474 = vmatpush1.bf16.msra.mxu0 %v14135_v61 }
 0x562   : > { %v6206_v50 = vsel %vm6189_vm13, %v6126_v59, %v6142_v21  ;;  %7546 = vmatprep.subr.bf16.mxu1 %v14138_v45 }
 0x563   : > { %7547 = vmatpush1.bf16.msra.mxu1 %v14137_v29  ;;  %v6144_v24 = vpop.permute.xlu1 %6143  ;;  %v6246_v30 = vmul.f32 %v20123_v47, %v6206_v50  ;;  %6537 = vrot.lane.b32.xlu0 %v24058_v3, %s14902_s18 }
 0x564   : > { %v6207_v41 = vsel %vm6189_vm13, %v6128_v6, %v6144_v24 }
 0x565   : > { %v6158_v22 = vpop.permute.xlu0 %6157  ;;  %v6250_v7 = vmul.f32 %v20123_v47, %v6207_v41  ;;  %6539 = vrot.lane.b32.xlu1 %v23891_v0, %s14902_s18  ;;  %v14526_v41 = vld [vmem:[#allocation6 + $0x1c] ss:$56 sps:$4 sm:$0xff]  }
 0x566   : > { %v6198_v46 = vsel %vm6189_vm13, %v6142_v21, %v6158_v22  ;;  %7493 = vmatprep.mubr.bf16.mxu0 %v14526_v41  ;;  %7566 = vmatprep.mubr.bf16.mxu1 %v14526_v41 }
 0x567   : > { %v6160_v49 = vpop.permute.xlu1 %6159  ;;  %6553 = vrot.lane.b32.xlu0 %v23889_v38, %s14902_s18  ;;  %v14132_v4 = vpack.c.bf16 %v6250_v7, %v6246_v30  ;;  %v6247_v45 = vmul.f32 %v20168_v1, %v6198_v46 }
 0x568   : > { %v6199_v47 = vsel %vm6189_vm13, %v6144_v24, %v6160_v49 }
 0x569   : > { %v6174_v33 = vpop.permute.xlu0 %6173  ;;  %6555 = vrot.lane.b32.xlu1 %v23893_v27, %s14902_s18  ;;  %7475 = vmatprep.subr.bf16.mxu0 %v14132_v4  ;;  %v6251_v61 = vmul.f32 %v20168_v1, %v6199_v47  ;;  %v6863_v1 = vld [vmem:[#allocation3 + $0x27] ss:$8 sm:$0xf] }
 0x56a   : > { %v6190_v5 = vsel %vm6189_vm13, %v6158_v22, %v6174_v33  ;;  %v6214_v35 = vsel %vm6189_vm13, %v6174_v33, %v6126_v59  ;;  %v20319_v7 = vrot.slane %v6863_v1, %v23911_v28  ;;  %v20333_v46 = vrot.slane %v6863_v1, %v23919_v11 }
 0x56b   : > { %v6176_v58 = vpop.permute.xlu1 %6175  ;;  %v6245_v10 = vmul.f32 %v20145_v36, %v6214_v35  ;;  %v6248_v48 = vmul.f32 %v20148_v18, %v6190_v5  ;;  %6501 = vrot.lane.b32.xlu0 %v23892_v51, %s14902_s18  ;;  %v14133_v22 = vpack.c.bf16 %v6251_v61, %v6247_v45 }
 0x56c   : > { %v6191_v60 = vsel %vm6189_vm13, %v6160_v49, %v6176_v58  ;;  %v6215_v59 = vsel %vm6189_vm13, %v6176_v58, %v6128_v6  ;;  %v20336_v58 = vrot.slane %v6863_v1, %v23927_v63 }
 0x56d   : > { %v6778_v14 = vpop.permute.xlu0 %6777  ;;  %v6249_v21 = vmul.f32 %v20145_v36, %v6215_v59  ;;  %v6252_v29 = vmul.f32 %v20148_v18, %v6191_v60  ;;  %6503 = vrot.lane.b32.xlu1 %v23899_v43, %s14902_s18  ;;  %v20316_v18 = vrot.slane %v6863_v1, %v23910_v17 }
 0x56f   : > { %v14131_v50 = vpack.c.bf16 %v6249_v21, %v6245_v10  ;;  %v6780_v24 = vpop.permute.xlu1 %6779  ;;  %6517 = vrot.lane.b32.xlu0 %v23897_v25, %s14902_s18  ;;  %v14134_v30 = vpack.c.bf16 %v6252_v29, %v6248_v48 }
 0x571   : > { %v6794_v6 = vpop.permute.xlu0 %6793  ;;  %6519 = vrot.lane.b32.xlu1 %v23903_v20, %s14902_s18  ;;  %7476 = vmatpush1.bf16.msra.mxu0 %v14131_v50 }
 0x572   : > { %7548 = vmatprep.subr.bf16.mxu1 %v14134_v30  ;;  %v6852_v33 = vsel %vm6829_vm14, %v6778_v14, %v6794_v6 }
 0x573   : > { %7549 = vmatpush1.bf16.msra.mxu1 %v14133_v22  ;;  %v6796_v36 = vpop.permute.xlu1 %6795  ;;  %6533 = vrot.lane.b32.xlu0 %v23900_v9, %s14902_s18  ;;  %v6909_v48 = vmul.f32 %v20319_v7, %v6852_v33 }
 0x574   : > { %v6853_v4 = vsel %vm6829_vm14, %v6780_v24, %v6796_v36 }
 0x575   : > { %v6810_v49 = vpop.permute.xlu0 %6809  ;;  %6535 = vrot.lane.b32.xlu1 %v23907_v23, %s14902_s18  ;;  %v6913_v10 = vmul.f32 %v20319_v7, %v6853_v4 }
 0x576   : > { %v6844_v5 = vsel %vm6829_vm14, %v6794_v6, %v6810_v49 }
 0x577   : > { %v6812_v35 = vpop.permute.xlu1 %6811  ;;  %v6910_v47 = vmul.f32 %v20316_v18, %v6844_v5  ;;  %6549 = vrot.lane.b32.xlu0 %v23905_v12, %s14902_s18  ;;  %v14191_v6 = vpack.c.bf16 %v6913_v10, %v6909_v48 }
 0x578   : > { %v6845_v60 = vsel %vm6829_vm14, %v6796_v36, %v6812_v35 }
 0x579   : > { %v6826_v59 = vpop.permute.xlu0 %6825  ;;  %v6914_v61 = vmul.f32 %v20316_v18, %v6845_v60  ;;  %6551 = vrot.lane.b32.xlu1 %v24137_v2, %s14902_s18  ;;  %s12554_s18 = sshll.u32 %s299_s16, 6 }
 0x57a   : > { %v6836_v45 = vsel %vm6829_vm14, %v6810_v49, %v6826_v59  ;;  %v6860_v21 = vsel %vm6829_vm14, %v6826_v59, %v6778_v14 }
 0x57b   : > { %v6828_v29 = vpop.permute.xlu1 %6827  ;;  %v6911_v50 = vmul.f32 %v20333_v46, %v6836_v45  ;;  %v6912_v30 = vmul.f32 %v20336_v58, %v6860_v21  ;;  %7915 = vrot.lane.b32.xlu0 %v24138_v55, %s14903_s20  ;;  %v14192_v41 = vpack.c.bf16 %v6914_v61, %v6910_v47 }
 0x57c   : > { %v6837_v22 = vsel %vm6829_vm14, %v6812_v35, %v6828_v29  ;;  %v6861_v1 = vsel %vm6829_vm14, %v6828_v29, %v6780_v24 }
 0x57d   : > { %v6774_v36 = vpop.permute.xlu0 %6773  ;;  %v6915_v14 = vmul.f32 %v20333_v46, %v6837_v22  ;;  %v6916_v49 = vmul.f32 %v20336_v58, %v6861_v1  ;;  %7917 = vrot.lane.b32.xlu1 %v24139_v32, %s14903_s20  ;;  %7477 = vmatprep.subr.bf16.mxu0 %v14192_v41 }
 0x57e   : > { %7478 = vmatpush2.bf16.msra.mxu0 %v14191_v6 }
 0x57f   : > { %v14193_v4 = vpack.c.bf16 %v6915_v14, %v6911_v50  ;;  %v6776_v33 = vpop.permute.xlu1 %6775  ;;  %7931 = vrot.lane.b32.xlu0 %v24102_v52, %s14903_s20  ;;  %v14194_v5 = vpack.c.bf16 %v6916_v49, %v6912_v30 }
 0x581   : > { %v6790_v35 = vpop.permute.xlu0 %6789  ;;  %7933 = vrot.lane.b32.xlu1 %v24022_v19, %s14903_s20  ;;  %7550 = vmatprep.subr.bf16.mxu1 %v14194_v5 }
 0x582   : > { %7551 = vmatpush2.bf16.msra.mxu1 %v14193_v4  ;;  %v6850_v48 = vsel %vm6829_vm14, %v6774_v36, %v6790_v35 }
 0x583   : > { %v6792_v24 = vpop.permute.xlu1 %6791  ;;  %7947 = vrot.lane.b32.xlu0 %v24023_v34, %s14903_s20  ;;  %v6901_v21 = vmul.f32 %v20319_v7, %v6850_v48 }
 0x584   : > { %v6851_v10 = vsel %vm6829_vm14, %v6776_v33, %v6792_v24 }
 0x585   : > { %v6806_v47 = vpop.permute.xlu0 %6805  ;;  %7949 = vrot.lane.b32.xlu1 %v24029_v37, %s14903_s20  ;;  %v6905_v45 = vmul.f32 %v20319_v7, %v6851_v10 }
 0x586   : > { %v6842_v60 = vsel %vm6829_vm14, %v6790_v35, %v6806_v47 }
 0x587   : > { %v6808_v59 = vpop.permute.xlu1 %6807  ;;  %v6902_v61 = vmul.f32 %v20316_v18, %v6842_v60  ;;  %7963 = vrot.lane.b32.xlu0 %v24030_v16, %s14903_s20  ;;  %v14187_v4 = vpack.c.bf16 %v6905_v45, %v6901_v21  ;;  %v20409_v21 = vpop.f32.mrf.mxu1 }
 0x588   : > { %v6843_v29 = vsel %vm6829_vm14, %v6792_v24, %v6808_v59 }
 0x589   : > { %v6822_v50 = vpop.permute.xlu0 %6821  ;;  %v6906_v30 = vmul.f32 %v20316_v18, %v6843_v29  ;;  %7965 = vrot.lane.b32.xlu1 %v24031_v31, %s14903_s20 }
 0x58a   : > { %v6834_v41 = vsel %vm6829_vm14, %v6806_v47, %v6822_v50  ;;  %v6858_v6 = vsel %vm6829_vm14, %v6822_v50, %v6774_v36 }
 0x58b   : > { %v6824_v22 = vpop.permute.xlu1 %6823  ;;  %v6903_v1 = vmul.f32 %v20333_v46, %v6834_v41  ;;  %v6904_v14 = vmul.f32 %v20336_v58, %v6858_v6  ;;  %7911 = vrot.lane.b32.xlu0 %v24032_v53, %s14903_s20  ;;  %v14188_v49 = vpack.c.bf16 %v6906_v30, %v6902_v61  ;;  %v20407_v61 = vpop.f32.mrf.mxu0 }
 0x58c   : > { %v6835_v5 = vsel %vm6829_vm14, %v6808_v59, %v6824_v22  ;;  %v6859_v35 = vsel %vm6829_vm14, %v6824_v22, %v6776_v33 }
 0x58d   : > { %v6770_v24 = vpop.permute.xlu0 %6769  ;;  %v6907_v47 = vmul.f32 %v20333_v46, %v6835_v5  ;;  %v6908_v36 = vmul.f32 %v20336_v58, %v6859_v35  ;;  %7913 = vrot.lane.b32.xlu1 %v24037_v8, %s14903_s20  ;;  %7479 = vmatprep.subr.bf16.mxu0 %v14188_v49  ;;  %v20422_v22 = vpop.f32.mrf.mxu0 }
 0x58e   : > { %7480 = vmatpush2.bf16.msra.mxu0 %v14187_v4  ;;  %v20428_v5 = vpop.f32.mrf.mxu1 }
 0x58f   : > { %v14189_v10 = vpack.c.bf16 %v6907_v47, %v6903_v1  ;;  %v6772_v48 = vpop.permute.xlu1 %6771  ;;  %7927 = vrot.lane.b32.xlu0 %v24038_v39, %s14903_s20  ;;  %v14190_v60 = vpack.c.bf16 %v6908_v36, %v6904_v14 }
 0x591   : > { %v6786_v59 = vpop.permute.xlu0 %6785  ;;  %7929 = vrot.lane.b32.xlu1 %v24041_v26, %s14903_s20  ;;  %7552 = vmatprep.subr.bf16.mxu1 %v14190_v60  ;;  %v20439_v60 = vpop.f32.mrf.mxu1 }
 0x592   : > { %7553 = vmatpush2.bf16.msra.mxu1 %v14189_v10  ;;  %v6848_v50 = vsel %vm6829_vm14, %v6770_v24, %v6786_v59  ;;  %v20437_v10 = vpop.f32.mrf.mxu0 }
 0x593   : > { %v6788_v33 = vpop.permute.xlu1 %6787  ;;  %7943 = vrot.lane.b32.xlu0 %v24042_v42, %s14903_s20  ;;  %v6893_v14 = vmul.f32 %v20319_v7, %v6848_v50 }
 0x594   : > { %v6849_v29 = vsel %vm6829_vm14, %v6772_v48, %v6788_v33 }
 0x595   : > { %v6802_v45 = vpop.permute.xlu0 %6801  ;;  %7945 = vrot.lane.b32.xlu1 %v24045_v56, %s14903_s20  ;;  %v6897_v1 = vmul.f32 %v20319_v7, %v6849_v29 }
 0x596   : > { %v6840_v30 = vsel %vm6829_vm14, %v6786_v59, %v6802_v45 }
 0x597   : > { %v6804_v41 = vpop.permute.xlu1 %6803  ;;  %v6894_v6 = vmul.f32 %v20316_v18, %v6840_v30  ;;  %7959 = vrot.lane.b32.xlu0 %v24046_v62, %s14903_s20  ;;  %v20445_v30 = vpop.f32.mrf.mxu0 }
 0x598   : > { %v6841_v49 = vsel %vm6829_vm14, %v6788_v33, %v6804_v41  ;;  %24142 = vst [vmem:[#allocation26_spill] sm:$0xff] %v20445_v30 }
 0x599   : > { %v6818_v4 = vpop.permute.xlu0 %6817  ;;  %v6898_v35 = vmul.f32 %v20316_v18, %v6841_v49  ;;  %7961 = vrot.lane.b32.xlu1 %v24047_v15, %s14903_s20  ;;  %v14183_v49 = vpack.c.bf16 %v6897_v1, %v6893_v14  ;;  %v20451_v15 = vpop.f32.mrf.mxu1 }
 0x59a   : > { %v6832_v47 = vsel %vm6829_vm14, %v6802_v45, %v6818_v4  ;;  %v6856_v36 = vsel %vm6829_vm14, %v6818_v4, %v6770_v24  ;;  %24143 = vst [vmem:[#allocation28_spill] sm:$0xff] %v20451_v15 }
 0x59b   : > { %v6820_v59 = vpop.permute.xlu1 %6819  ;;  %v6895_v33 = vmul.f32 %v20333_v46, %v6832_v47  ;;  %v6896_v29 = vmul.f32 %v20336_v58, %v6856_v36  ;;  %7907 = vrot.lane.b32.xlu0 %v24140_v40, %s14903_s20  ;;  %v14184_v50 = vpack.c.bf16 %v6898_v35, %v6894_v6  ;;  %v20457_v6 = vpop.f32.mrf.mxu0 }
 0x59c   : > { %v6833_v45 = vsel %vm6829_vm14, %v6804_v41, %v6820_v59  ;;  %v6857_v24 = vsel %vm6829_vm14, %v6820_v59, %v6772_v48  ;;  %v20459_v1 = vpop.f32.mrf.mxu1 }
 0x59d   : > { %v6766_v4 = vpop.permute.xlu0 %6765  ;;  %v6899_v47 = vmul.f32 %v20333_v46, %v6833_v45  ;;  %v6900_v36 = vmul.f32 %v20336_v58, %v6857_v24  ;;  %7909 = vrot.lane.b32.xlu1 %v24141_v57, %s14903_s20  ;;  %7481 = vmatprep.subr.bf16.mxu0 %v14184_v50  ;;  %v20463_v35 = vpop.f32.mrf.mxu0 }
 0x59e   : > { %7482 = vmatpush2.bf16.msra.mxu0 %v14183_v49  ;;  %v20465_v45 = vpop.f32.mrf.mxu1 }
 0x59f   : > { %v14185_v41 = vpack.c.bf16 %v6899_v47, %v6895_v33  ;;  %v6768_v14 = vpop.permute.xlu1 %6767  ;;  %7923 = vrot.lane.b32.xlu0 %v24104_v54, %s14903_s20  ;;  %v14186_v48 = vpack.c.bf16 %v6900_v36, %v6896_v29  ;;  %v20469_v50 = vpop.f32.mrf.mxu0 }
 0x5a0   : > { %v20471_v49 = vpop.f32.mrf.mxu1 }
 0x5a1   : > { %v6782_v59 = vpop.permute.xlu0 %6781  ;;  %7925 = vrot.lane.b32.xlu1 %v24057_v13, %s14903_s20  ;;  %7554 = vmatprep.subr.bf16.mxu1 %v14186_v48  ;;  %v20475_v24 = vpop.f32.mrf.mxu0 }
 0x5a2   : > { %7555 = vmatpush2.bf16.msra.mxu1 %v14185_v41  ;;  %v20477_v29 = vpop.f32.mrf.mxu1  ;;  %v6846_v36 = vsel %vm6829_vm14, %v6766_v4, %v6782_v59 }
 0x5a3   : > { %v6784_v33 = vpop.permute.xlu1 %6783  ;;  %7939 = vrot.lane.b32.xlu0 %v24058_v3, %s14903_s20  ;;  %v20485_v48 = vpop.f32.mrf.mxu0 }
 0x5a4   : > { %v6847_v47 = vsel %vm6829_vm14, %v6768_v14, %v6784_v33  ;;  %v20489_v30 = vpop.f32.mrf.mxu1 }
 0x5a5   : > { %7941 = vrot.lane.b32.xlu1 %v23891_v0, %s14903_s20  ;;  %v6798_v41 = vpop.permute.xlu0 %6797  ;;  %v20494_v54 = vpop.f32.mrf.mxu0  ;;  %v6889_v57 = vmul.f32 %v20319_v7, %v6847_v47  ;;  %v6885_v0 = vmul.f32 %v20319_v7, %v6846_v36 }
 0x5a6   : > { %v6838_v15 = vsel %vm6829_vm14, %v6782_v59, %v6798_v41  ;;  %v20500_v62 = vpop.f32.mrf.mxu1 }
 0x5a7   : > { %v6800_v3 = vpop.permute.xlu1 %6799  ;;  %v6886_v13 = vmul.f32 %v20316_v18, %v6838_v15  ;;  %7955 = vrot.lane.b32.xlu0 %v23889_v38, %s14903_s20  ;;  %v20505_v56 = vpop.f32.mrf.mxu0 }
 0x5a8   : > { %v6839_v40 = vsel %vm6829_vm14, %v6784_v33, %v6800_v3  ;;  %v20511_v7 = vpop.f32.mrf.mxu1 }
 0x5a9   : > { %v6890_v59 = vmul.f32 %v20316_v18, %v6839_v40  ;;  %7957 = vrot.lane.b32.xlu1 %v23893_v27, %s14903_s20  ;;  %v6814_v15 = vpop.permute.xlu0 %6813  ;;  %v20517_v18 = vpop.f32.mrf.mxu0  ;;  %v14179_v27 = vpack.c.bf16 %v6889_v57, %v6885_v0 }
 0x5aa   : > { %v6830_v38 = vsel %vm6829_vm14, %v6798_v41, %v6814_v15  ;;  %v6854_v47 = vsel %vm6829_vm14, %v6814_v15, %v6766_v4  ;;  %v20523_v15 = vpop.f32.mrf.mxu1 }
 0x5ab   : > { %v6816_v36 = vpop.permute.xlu1 %6815  ;;  %v6887_v33 = vmul.f32 %v20333_v46, %v6830_v38  ;;  %v6888_v42 = vmul.f32 %v20336_v58, %v6854_v47  ;;  %7903 = vrot.lane.b32.xlu0 %v23892_v51, %s14903_s20  ;;  %v14180_v40 = vpack.c.bf16 %v6890_v59, %v6886_v13  ;;  %v20529_v59 = vpop.f32.mrf.mxu0 }
 0x5ac   : > { %v6831_v41 = vsel %vm6829_vm14, %v6800_v3, %v6816_v36  ;;  %v6855_v4 = vsel %vm6829_vm14, %v6816_v36, %v6768_v14  ;;  %v20531_v0 = vpop.f32.mrf.mxu1 }
 0x5ad   : > { %v6891_v26 = vmul.f32 %v20333_v46, %v6831_v41  ;;  %v6892_v38 = vmul.f32 %v20336_v58, %v6855_v4  ;;  %7905 = vrot.lane.b32.xlu1 %v23899_v43, %s14903_s20  ;;  %7483 = vmatprep.subr.bf16.mxu0 %v14180_v40  ;;  %v6514_v13 = vpop.permute.xlu0 %6513  ;;  %v20535_v47 = vpop.f32.mrf.mxu0  ;;  %v6599_v58 = vld [vmem:[#allocation3 + $0x26] ss:$8 sm:$0xf] }
 0x5ae   : > { %7484 = vmatpush2.bf16.msra.mxu0 %v14179_v27  ;;  %v20537_v46 = vpop.f32.mrf.mxu1  ;;  %v20554_v41 = vrot.slane %v6599_v58, %v23911_v28  ;;  %v20573_v51 = vrot.slane %v6599_v58, %v23919_v11 }
 0x5af   : > { %v14181_v3 = vpack.c.bf16 %v6891_v26, %v6887_v33  ;;  %v6516_v57 = vpop.permute.xlu1 %6515  ;;  %7919 = vrot.lane.b32.xlu0 %v23897_v25, %s14903_s20  ;;  %v14182_v14 = vpack.c.bf16 %v6892_v38, %v6888_v42  ;;  %v20541_v40 = vpop.f32.mrf.mxu0  ;;  %v20549_v42 = vrot.slane %v6599_v58, %v23910_v17 }
 0x5b0   : > { %v20544_v27 = vpop.f32.mrf.mxu1 }
 0x5b1   : > { %7921 = vrot.lane.b32.xlu1 %v23903_v20, %s14903_s20  ;;  %7556 = vmatprep.subr.bf16.mxu1 %v14182_v14  ;;  %v6530_v36 = vpop.permute.xlu0 %6529  ;;  %v20551_v33 = vpop.f32.mrf.mxu0 }
 0x5b2   : > { %7557 = vmatpush2.bf16.msra.mxu1 %v14181_v3  ;;  %v20556_v4 = vpop.f32.mrf.mxu1  ;;  %v6588_v3 = vsel %vm6565_vm15, %v6514_v13, %v6530_v36 }
 0x5b3   : > { %v6532_v26 = vpop.permute.xlu1 %6531  ;;  %7935 = vrot.lane.b32.xlu0 %v23900_v9, %s14903_s20  ;;  %24144 = vst [vmem:[#allocation326_spill] sm:$0xff] %v20556_v4  ;;  %v4347_v9 = vpop.f32.mrf.mxu0 }
 0x5b4   : > { %v6589_v38 = vsel %vm6565_vm15, %v6516_v57, %v6532_v26  ;;  %v20567_v20 = vadd.f32 %v4347_v9, %v20407_v61  ;;  %v4420_v28 = vpop.f32.mrf.mxu1  ;;  %v6645_v61 = vmul.f32 %v20554_v41, %v6588_v3 }
 0x5b5   : > { %7937 = vrot.lane.b32.xlu1 %v23907_v23, %s14903_s20  ;;  %v6546_v14 = vpop.permute.xlu0 %6545  ;;  %v20576_v23 = vrot.slane %v6599_v58, %v23927_v63  ;;  %v20579_v4 = vadd.f32 %v4420_v28, %v20409_v21  ;;  %v6649_v9 = vmul.f32 %v20554_v41, %v6589_v38 }
 0x5b6   : > { %v6580_v17 = vsel %vm6565_vm15, %v6530_v36, %v6546_v14  ;;  %24145 = vst [vmem:[#allocation327_spill] sm:$0xff] %v20567_v20  ;;  %v4349_v36 = vpop.f32.mrf.mxu0 }
 0x5b7   : > { %v6548_v25 = vpop.permute.xlu1 %6547  ;;  %v6646_v43 = vmul.f32 %v20549_v42, %v6580_v17  ;;  %7951 = vrot.lane.b32.xlu0 %v23905_v12, %s14903_s20  ;;  %v20586_v20 = vadd.f32 %v4349_v36, %v20422_v22  ;;  %v4422_v12 = vpop.f32.mrf.mxu1 }
 0x5b8   : > { %v6581_v17 = vsel %vm6565_vm15, %v6532_v26, %v6548_v25  ;;  %v20592_v28 = vadd.f32 %v4422_v12, %v20428_v5  ;;  %v4351_v21 = vpop.f32.mrf.mxu0 }
 0x5b9   : > { %v6650_v11 = vmul.f32 %v20549_v42, %v6581_v17  ;;  %7953 = vrot.lane.b32.xlu1 %v24137_v2, %s14903_s20  ;;  %v6562_v58 = vpop.permute.xlu0 %6561  ;;  %v20599_v22 = vadd.f32 %v4351_v21, %v20437_v10  ;;  %v4424_v3 = vpop.f32.mrf.mxu1  ;;  %s13938_s20 = sshll.u32 %s14972_s28, 10  ;;  %s22833_s28 = scalar_lea.sflag [#allocation5], %s299_s16 }
 0x5ba   : > { %v6572_v38 = vsel %vm6565_vm15, %v6546_v14, %v6562_v58  ;;  %v6596_v26 = vsel %vm6565_vm15, %v6562_v58, %v6514_v13  ;;  %v20606_v5 = vadd.f32 %v4424_v3, %v20439_v60  ;;  %v20608_v14 = vpop.f32.mrf.mxu0  ;;  %v14175_v13 = vpack.c.bf16 %v6649_v9, %v6645_v61  ;;  %s22824_s29 = scalar_lea.hbm %s22880_s7, %s13938_s20 }
 0x5bb   : > { %v6564_v36 = vpop.permute.xlu1 %6563  ;;  %v6647_v17 = vmul.f32 %v20573_v51, %v6572_v38  ;;  %v6648_v2 = vmul.f32 %v20576_v23, %v6596_v26  ;;  %7651 = vrot.lane.b32.xlu0 %v24138_v55, %s14904_s21  ;;  %v14176_v12 = vpack.c.bf16 %v6650_v11, %v6646_v43  ;;  %v20614_v21 = vpop.f32.mrf.mxu1 }
 0x5bc   : > { %v6573_v10 = vsel %vm6565_vm15, %v6548_v25, %v6564_v36  ;;  %v6597_v58 = vsel %vm6565_vm15, %v6564_v36, %v6516_v57  ;;  %v4357_v11 = vpop.f32.mrf.mxu0 }
 0x5bd   : > { %v6651_v38 = vmul.f32 %v20573_v51, %v6573_v10  ;;  %v6652_v26 = vmul.f32 %v20576_v23, %v6597_v58  ;;  %7653 = vrot.lane.b32.xlu1 %v24139_v32, %s14904_s21  ;;  %7485 = vmatprep.subr.bf16.mxu0 %v14176_v12  ;;  %v6510_v43 = vpop.permute.xlu0 %6509  ;;  %v20621_v55 = vadd.f32 %v4357_v11, %v20457_v6  ;;  %v4430_v25 = vpop.f32.mrf.mxu1 }
 0x5be   : > { %7486 = vmatpush2.bf16.msra.mxu0 %v14175_v13  ;;  %v20626_v61 = vadd.f32 %v4430_v25, %v20459_v1  ;;  %v4359_v3 = vpop.f32.mrf.mxu0 }
 0x5bf   : > { %v14177_v60 = vpack.c.bf16 %v6651_v38, %v6647_v17  ;;  %v6512_v9 = vpop.permute.xlu1 %6511  ;;  %7667 = vrot.lane.b32.xlu0 %v24102_v52, %s14904_s21  ;;  %v14178_v57 = vpack.c.bf16 %v6652_v26, %v6648_v2  ;;  %v20629_v32 = vadd.f32 %v4359_v3, %v20463_v35  ;;  %v4432_v36 = vpop.f32.mrf.mxu1 }
 0x5c0   : > { %v20634_v17 = vadd.f32 %v4432_v36, %v20465_v45  ;;  %v4361_v12 = vpop.f32.mrf.mxu0 }
 0x5c1   : > { %7669 = vrot.lane.b32.xlu1 %v24022_v19, %s14904_s21  ;;  %7558 = vmatprep.subr.bf16.mxu1 %v14178_v57  ;;  %v6526_v6 = vpop.permute.xlu0 %6525  ;;  %v20637_v52 = vadd.f32 %v4361_v12, %v20469_v50  ;;  %v4434_v2 = vpop.f32.mrf.mxu1 }
 0x5c2   : > { %7559 = vmatpush2.bf16.msra.mxu1 %v14177_v60  ;;  %v20642_v35 = vadd.f32 %v4434_v2, %v20471_v49  ;;  %v4363_v13 = vpop.f32.mrf.mxu0  ;;  %v6586_v50 = vsel %vm6565_vm15, %v6510_v43, %v6526_v6 }
 0x5c3   : > { %v6528_v1 = vpop.permute.xlu1 %6527  ;;  %7683 = vrot.lane.b32.xlu0 %v24023_v34, %s14904_s21  ;;  %v20645_v19 = vadd.f32 %v4363_v13, %v20475_v24  ;;  %v4436_v10 = vpop.f32.mrf.mxu1  ;;  %v6637_v57 = vmul.f32 %v20554_v41, %v6586_v50 }
 0x5c4   : > { %v6587_v45 = vsel %vm6565_vm15, %v6512_v9, %v6528_v1  ;;  %v20654_v34 = vadd.f32 %v4436_v10, %v20477_v29  ;;  %v4367_v49 = vpop.f32.mrf.mxu0 }
 0x5c5   : > { %7685 = vrot.lane.b32.xlu1 %v24029_v37, %s14904_s21  ;;  %v6542_v58 = vpop.permute.xlu0 %6541  ;;  %v20659_v24 = vadd.f32 %v4367_v49, %v20485_v48  ;;  %v4440_v26 = vpop.f32.mrf.mxu1  ;;  %v6641_v29 = vmul.f32 %v20554_v41, %v6587_v45 }
 0x5c6   : > { %v6578_v38 = vsel %vm6565_vm15, %v6526_v6, %v6542_v58  ;;  %v20665_v37 = vadd.f32 %v4440_v26, %v20489_v30  ;;  %v4369_v60 = vpop.f32.mrf.mxu0 }
 0x5c7   : > { %v6544_v11 = vpop.permute.xlu1 %6543  ;;  %v6638_v25 = vmul.f32 %v20549_v42, %v6578_v38  ;;  %7699 = vrot.lane.b32.xlu0 %v24030_v16, %s14904_s21  ;;  %v20672_v48 = vadd.f32 %v4369_v60, %v20494_v54  ;;  %v4442_v36 = vpop.f32.mrf.mxu1  ;;  %v14171_v49 = vpack.c.bf16 %v6641_v29, %v6637_v57 }
 0x5c8   : > { %v6579_v3 = vsel %vm6565_vm15, %v6528_v1, %v6544_v11  ;;  %v20678_v30 = vadd.f32 %v4442_v36, %v20500_v62  ;;  %v4371_v12 = vpop.f32.mrf.mxu0 }
 0x5c9   : > { %v6642_v6 = vmul.f32 %v20549_v42, %v6579_v3  ;;  %7701 = vrot.lane.b32.xlu1 %v24031_v31, %s14904_s21  ;;  %v6558_v16 = vpop.permute.xlu0 %6557  ;;  %v20685_v54 = vadd.f32 %v4371_v12, %v20505_v56  ;;  %v4444_v13 = vpop.f32.mrf.mxu1 }
 0x5ca   : > { %v6570_v2 = vsel %vm6565_vm15, %v6542_v58, %v6558_v16  ;;  %v6594_v1 = vsel %vm6565_vm15, %v6558_v16, %v6510_v43  ;;  %v20692_v50 = vadd.f32 %v4444_v13, %v20511_v7  ;;  %v4373_v58 = vpop.f32.mrf.mxu0  ;;  %v24146_v16 = vld [vmem:[#allocation46_spill] sm:$0xff]  ;;  %v24147_v13 = vld [vmem:[#allocation31_spill] sm:$0xff] }
 0x5cb   : > { %v6560_v10 = vpop.permute.xlu1 %6559  ;;  %v6639_v45 = vmul.f32 %v20573_v51, %v6570_v2  ;;  %v6640_v31 = vmul.f32 %v20576_v23, %v6594_v1  ;;  %7647 = vrot.lane.b32.xlu0 %v24032_v53, %s14904_s21  ;;  %v14172_v62 = vpack.c.bf16 %v6642_v6, %v6638_v25  ;;  %v20699_v38 = vadd.f32 %v4373_v58, %v20517_v18  ;;  %v4446_v26 = vpop.f32.mrf.mxu1 }
 0x5cc   : > { %v6571_v43 = vsel %vm6565_vm15, %v6544_v11, %v6560_v10  ;;  %v6595_v56 = vsel %vm6565_vm15, %v6560_v10, %v6512_v9  ;;  %v20706_v25 = vadd.f32 %v4446_v26, %v20523_v15  ;;  %v4377_v11 = vpop.f32.mrf.mxu0  ;;  %v24150_v26 = vld [vmem:[#allocation52_spill] sm:$0xff] }
 0x5cd   : > { %v6643_v60 = vmul.f32 %v20573_v51, %v6571_v43  ;;  %v6644_v53 = vmul.f32 %v20576_v23, %v6595_v56  ;;  %7649 = vrot.lane.b32.xlu1 %v24037_v8, %s14904_s21  ;;  %7487 = vmatprep.subr.bf16.mxu0 %v14172_v62  ;;  %v6506_v7 = vpop.permute.xlu0 %6505  ;;  %v20709_v9 = vadd.f32 %v4377_v11, %v20529_v59  ;;  %v4450_v18 = vpop.f32.mrf.mxu1  ;;  %v24148_v62 = vld [vmem:[#allocation34_spill] sm:$0xff] }
 0x5ce   : > { %7488 = vmatpush2.bf16.msra.mxu0 %v14171_v49  ;;  %v20714_v36 = vadd.f32 %v4450_v18, %v20531_v0  ;;  %v4379_v8 = vpop.f32.mrf.mxu0  ;;  %v24149_v49 = vld [vmem:[#allocation326_spill] sm:$0xff] }
 0x5cf   : > { %v14173_v29 = vpack.c.bf16 %v6643_v60, %v6639_v45  ;;  %v6508_v57 = vpop.permute.xlu1 %6507  ;;  %7663 = vrot.lane.b32.xlu0 %v24038_v39, %s14904_s21  ;;  %v14174_v3 = vpack.c.bf16 %v6644_v53, %v6640_v31  ;;  %v20717_v6 = vadd.f32 %v4379_v8, %v20535_v47  ;;  %v4452_v15 = vpop.f32.mrf.mxu1 }
 0x5d0   : > { %v20722_v12 = vadd.f32 %v4452_v15, %v20537_v46  ;;  %v4381_v2 = vpop.f32.mrf.mxu0 }
 0x5d1   : > { %7665 = vrot.lane.b32.xlu1 %v24146_v16, %s14904_s21  ;;  %7560 = vmatprep.subr.bf16.mxu1 %v14174_v3  ;;  %v6522_v59 = vpop.permute.xlu0 %6521  ;;  %v20725_v39 = vadd.f32 %v4381_v2, %v20541_v40  ;;  %v4454_v0 = vpop.f32.mrf.mxu1 }
 0x5d2   : > { %7561 = vmatpush2.bf16.msra.mxu1 %v14173_v29  ;;  %v20730_v47 = vadd.f32 %v4454_v0, %v20544_v27  ;;  %v4383_v10 = vpop.f32.mrf.mxu0  ;;  %v6584_v40 = vsel %vm6565_vm15, %v6506_v7, %v6522_v59  ;;  %v24151_v29 = vld [vmem:[#allocation58_spill] sm:$0xff]  ;;  %v24152_v0 = vld [vmem:[#allocation20_spill] sm:$0xff] }
 0x5d3   : > { %v6524_v1 = vpop.permute.xlu1 %6523  ;;  %7679 = vrot.lane.b32.xlu0 %v24147_v13, %s14904_s21  ;;  %v20733_v45 = vadd.f32 %v4383_v10, %v20551_v33  ;;  %v4456_v31 = vpop.f32.mrf.mxu1  ;;  %v6629_v53 = vmul.f32 %v20554_v41, %v6584_v40  ;;  %v24153_v40 = vld [vmem:[#allocation23_spill] sm:$0xff] }
 0x5d4   : > { %v6585_v46 = vsel %vm6565_vm15, %v6508_v57, %v6524_v1  ;;  %v20742_v43 = vadd.f32 %v4456_v31, %v24149_v49 }
 0x5d5   : > { %7681 = vrot.lane.b32.xlu1 %v24148_v62, %s14904_s21  ;;  %v6538_v58 = vpop.permute.xlu0 %6537  ;;  %v6633_v60 = vmul.f32 %v20554_v41, %v6585_v46 }
 0x5d6   : > { %v6576_v27 = vsel %vm6565_vm15, %v6522_v59, %v6538_v58 }
 0x5d7   : > { %v6540_v56 = vpop.permute.xlu1 %6539  ;;  %v6630_v33 = vmul.f32 %v20549_v42, %v6576_v27  ;;  %7695 = vrot.lane.b32.xlu0 %v24150_v26, %s14904_s21  ;;  %v14167_v13 = vpack.c.bf16 %v6633_v60, %v6629_v53  ;;  %v24154_v27 = vld [vmem:[#allocation18_spill] sm:$0xff]  ;;  %v24156_v60 = vld [vmem:[#allocation29_spill] sm:$0xff] }
 0x5d8   : > { %v6577_v11 = vsel %vm6565_vm15, %v6524_v1, %v6540_v56 }
 0x5d9   : > { %v6634_v18 = vmul.f32 %v20549_v42, %v6577_v11  ;;  %7697 = vrot.lane.b32.xlu1 %v24151_v29, %s14904_s21  ;;  %v6554_v3 = vpop.permute.xlu0 %6553 }
 0x5da   : > { %v6568_v8 = vsel %vm6565_vm15, %v6538_v58, %v6554_v3  ;;  %v6592_v15 = vsel %vm6565_vm15, %v6554_v3, %v6506_v7 }
 0x5db   : > { %v6556_v16 = vpop.permute.xlu1 %6555  ;;  %v6631_v59 = vmul.f32 %v20573_v51, %v6568_v8  ;;  %v6632_v2 = vmul.f32 %v20576_v23, %v6592_v15  ;;  %7643 = vrot.lane.b32.xlu0 %v24152_v0, %s14904_s21  ;;  %v14168_v1 = vpack.c.bf16 %v6634_v18, %v6630_v33  ;;  %v24157_v18 = vld [vmem:[#allocation32_spill] sm:$0xff] }
 0x5dc   : > { %v6569_v10 = vsel %vm6565_vm15, %v6540_v56, %v6556_v16  ;;  %v6593_v31 = vsel %vm6565_vm15, %v6556_v16, %v6508_v57  ;;  %v24155_v56 = vld [vmem:[#allocation43_spill] sm:$0xff]  ;;  %v24158_v16 = vld [vmem:[#allocation50_spill] sm:$0xff] }
 0x5dd   : > { %v6635_v46 = vmul.f32 %v20573_v51, %v6569_v10  ;;  %v6636_v7 = vmul.f32 %v20576_v23, %v6593_v31  ;;  %7645 = vrot.lane.b32.xlu1 %v24153_v40, %s14904_s21  ;;  %7489 = vmatprep.subr.bf16.mxu0 %v14168_v1  ;;  %v6502_v62 = vpop.permute.xlu0 %6501 }
 0x5de   : > { %7490 = vmatpush2.bf16.msra.mxu0 %v14167_v13  ;;  %v24159_v13 = vld [vmem:[#allocation54_spill] sm:$0xff] }
 0x5df   : > { %v14169_v58 = vpack.c.bf16 %v6635_v46, %v6631_v59  ;;  %v6504_v49 = vpop.permute.xlu1 %6503  ;;  %7659 = vrot.lane.b32.xlu0 %v24154_v27, %s14904_s21  ;;  %v14170_v33 = vpack.c.bf16 %v6636_v7, %v6632_v2 }
 0x5e1   : > { %7661 = vrot.lane.b32.xlu1 %v24155_v56, %s14904_s21  ;;  %7562 = vmatprep.subr.bf16.mxu1 %v14170_v33  ;;  %v6518_v57 = vpop.permute.xlu0 %6517 }
 0x5e2   : > { %7563 = vmatpush2.bf16.msra.mxu1 %v14169_v58  ;;  %v6582_v11 = vsel %vm6565_vm15, %v6502_v62, %v6518_v57  ;;  %v24160_v58 = vld [vmem:[#allocation19_spill] sm:$0xff] }
 0x5e3   : > { %v6520_v26 = vpop.permute.xlu1 %6519  ;;  %7675 = vrot.lane.b32.xlu0 %v24156_v60, %s14904_s21  ;;  %v6621_v2 = vmul.f32 %v20554_v41, %v6582_v11  ;;  %v14527_v11 = vld [vmem:[#allocation6 + $0x8c] ss:$56 sps:$4 sm:$0xff]  }
 0x5e4   : > { %v6583_v53 = vsel %vm6565_vm15, %v6504_v49, %v6520_v26 }
 0x5e5   : > { %7677 = vrot.lane.b32.xlu1 %v24157_v18, %s14904_s21  ;;  %v6534_v29 = vpop.permute.xlu0 %6533  ;;  %v6625_v59 = vmul.f32 %v20554_v41, %v6583_v53  ;;  %v14524_v53 = vld [vmem:[#allocation6 + $0x18] ss:$56 sps:$4 sm:$0xff]  }
 0x5e6   : > { %v6574_v3 = vsel %vm6565_vm15, %v6518_v57, %v6534_v29 }
 0x5e7   : > { %v6536_v8 = vpop.permute.xlu1 %6535  ;;  %v6622_v15 = vmul.f32 %v20549_v42, %v6574_v3  ;;  %7691 = vrot.lane.b32.xlu0 %v24158_v16, %s14904_s21  ;;  %v24162_v3 = vld [vmem:[#allocation17_spill] sm:$0xff]  ;;  %v24164_v16 = vld [vmem:[#allocation27_spill] sm:$0xff] }
 0x5e8   : > { %v6575_v0 = vsel %vm6565_vm15, %v6520_v26, %v6536_v8  ;;  %v24161_v26 = vld [vmem:[#allocation22_spill] sm:$0xff] }
 0x5e9   : > { %v6626_v1 = vmul.f32 %v20549_v42, %v6575_v0  ;;  %7693 = vrot.lane.b32.xlu1 %v24159_v13, %s14904_s21  ;;  %v6550_v10 = vpop.permute.xlu0 %6549  ;;  %v14163_v42 = vpack.c.bf16 %v6625_v59, %v6621_v2  ;;  %v24165_v59 = vld [vmem:[#allocation117_spill] sm:$0xff]  ;;  %v24166_v0 = vld [vmem:[#allocation103_spill] sm:$0xff] }
 0x5ea   : > { %v6566_v31 = vsel %vm6565_vm15, %v6534_v29, %v6550_v10  ;;  %v6590_v46 = vsel %vm6565_vm15, %v6550_v10, %v6502_v62 }
 0x5eb   : > { %v6552_v7 = vpop.permute.xlu1 %6551  ;;  %v6623_v40 = vmul.f32 %v20573_v51, %v6566_v31  ;;  %v6624_v41 = vmul.f32 %v20576_v23, %v6590_v46  ;;  %7639 = vrot.lane.b32.xlu0 %v24160_v58, %s14904_s21  ;;  %v14164_v27 = vpack.c.bf16 %v6626_v1, %v6622_v15  ;;  %v24167_v46 = vld [vmem:[#allocation30_spill] sm:$0xff] }
 0x5ec   : > { %v6567_v33 = vsel %vm6565_vm15, %v6536_v8, %v6552_v7  ;;  %v6591_v56 = vsel %vm6565_vm15, %v6552_v7, %v6504_v49  ;;  %v24163_v49 = vld [vmem:[#allocation39_spill] sm:$0xff] }
 0x5ed   : > { %v6627_v57 = vmul.f32 %v20573_v51, %v6567_v33  ;;  %v6628_v62 = vmul.f32 %v20576_v23, %v6591_v56  ;;  %7641 = vrot.lane.b32.xlu1 %v24161_v26, %s14904_s21  ;;  %7491 = vmatprep.subr.bf16.mxu0 %v14164_v27  ;;  %v7916_v60 = vpop.permute.xlu0 %7915  ;;  %v8001_v51 = vld [vmem:[#allocation3 + $0x41] ss:$8 sm:$0xf] }
 0x5ee   : > { %7492 = vmatpush2.bf16.msra.mxu0 %v14163_v42  ;;  %v20820_v2 = vrot.slane %v8001_v51, %v24165_v59  ;;  %v20823_v1 = vrot.slane %v8001_v51, %v24166_v0  ;;  %v24169_v42 = vld [vmem:[#allocation118_spill] sm:$0xff]  ;;  %v20840_v56 = vrot.slane %v8001_v51, %v23927_v63 }
 0x5ef   : > { %v14165_v18 = vpack.c.bf16 %v6627_v57, %v6623_v40  ;;  %v7918_v29 = vpop.permute.xlu1 %7917  ;;  %7655 = vrot.lane.b32.xlu0 %v24162_v3, %s14904_s21  ;;  %v14166_v8 = vpack.c.bf16 %v6628_v62, %v6624_v41  ;;  %v14529_v40 = vld [vmem:[#allocation6 + $0x88] ss:$56 sps:$4 sm:$0xff]   ;;  %v24168_v41 = vld [vmem:[#allocation327_spill] sm:$0xff]  ;;  %v20837_v33 = vrot.slane %v8001_v51, %v24169_v42  ;;  %v24170_v62 = vld [vmem:[#allocation26_spill] sm:$0xff] }
 0x5f0   : > { %v14530_v57 = vld [vmem:[#allocation6 + $0xfc] ss:$56 sps:$4 sm:$0xff]   ;;  %v4354_v26 = vadd.f32 %v20608_v14, %v24170_v62 }
 0x5f1   : > { %7657 = vrot.lane.b32.xlu1 %v24163_v49, %s14904_s21  ;;  %7494 = vmatmul.mubr.bf16.vlgmr.msra.gmra.mxu0 %v14524_v53  ;;  %v7932_v23 = vpop.permute.xlu0 %7931 }
 0x5f2   : > { %7564 = vmatprep.subr.bf16.mxu1 %v14166_v8  ;;  %7503 = vmatprep.mubr.bf16.mxu0 %v14527_v11  ;;  %v7990_v31 = vsel %vm7967_vm0, %v7916_v60, %v7932_v23 }
 0x5f3   : > { %7565 = vmatpush2.bf16.msra.mxu1 %v14165_v18  ;;  %v7934_v15 = vpop.permute.xlu1 %7933  ;;  %7671 = vrot.lane.b32.xlu0 %v24164_v16, %s14904_s21 }
 0x5f4   : > { %v5981_v13 = vpop.f32.mrf.mxu0  ;;  %v7991_v10 = vsel %vm7967_vm0, %v7918_v29, %v7934_v15 }
 0x5f5   : > { %7673 = vrot.lane.b32.xlu1 %v24167_v46, %s14904_s21  ;;  %v7948_v7 = vpop.permute.xlu0 %7947  ;;  %v20832_v58 = vadd.f32 %v5981_v13, %v24168_v41  ;;  %v8051_v51 = vmul.f32 %v20823_v1, %v7991_v10  ;;  %v8047_v46 = vmul.f32 %v20823_v1, %v7990_v31 }
 0x5f6   : > { %7567 = vmatmul.mubr.bf16.vlgmr.msra.gmra.mxu1 %v14524_v53  ;;  %v7982_v27 = vsel %vm7967_vm0, %v7932_v23, %v7948_v7  ;;  %v6054_v18 = vpop.f32.mrf.mxu1  ;;  %v5983_v3 = vpop.f32.mrf.mxu0  ;;  %v24171_v53 = vld [vmem:[#allocation48_spill] sm:$0xff] }
 0x5f7   : > { %v7950_v8 = vpop.permute.xlu1 %7949  ;;  %v8048_v49 = vmul.f32 %v20820_v2, %v7982_v27  ;;  %7687 = vrot.lane.b32.xlu0 %v24171_v53, %s14904_s21  ;;  %7576 = vmatprep.mubr.bf16.mxu1 %v14527_v11  ;;  %v24172_v23 = vld [vmem:[#allocation28_spill] sm:$0xff]  ;;  %v20850_v13 = vadd.f32 %v6054_v18, %v20579_v4  ;;  %v20857_v41 = vadd.f32 %v5983_v3, %v20586_v20  ;;  %v24173_v53 = vld [vmem:[#allocation51_spill] sm:$0xff] }
 0x5f8   : > { %v4427_v16 = vadd.f32 %v20614_v21, %v24172_v23  ;;  %v7983_v14 = vsel %vm7967_vm0, %v7934_v15, %v7950_v8  ;;  %v6056_v27 = vpop.f32.mrf.mxu1  ;;  %v5985_v62 = vpop.f32.mrf.mxu0 }
 0x5f9   : > { %v8052_v11 = vmul.f32 %v20820_v2, %v7983_v14  ;;  %7689 = vrot.lane.b32.xlu1 %v24173_v53, %s14904_s21  ;;  %7504 = vmatmul.mubr.bf16.gmra.mxu0 %v14529_v40  ;;  %v7964_v4 = vpop.permute.xlu0 %7963  ;;  %v20863_v21 = vadd.f32 %v6056_v27, %v20592_v28  ;;  %v20866_v10 = vadd.f32 %v5985_v62, %v20599_v22 }
 0x5fa   : > { %v7974_v15 = vsel %vm7967_vm0, %v7948_v7, %v7964_v4  ;;  %v7998_v20 = vsel %vm7967_vm0, %v7964_v4, %v7916_v60  ;;  %7513 = vmatprep.mubr.bf16.mxu0 %v14530_v57  ;;  %v6058_v31 = vpop.f32.mrf.mxu1  ;;  %v5987_v18 = vpop.f32.mrf.mxu0  ;;  %v14223_v22 = vpack.c.bf16 %v8051_v51, %v8047_v46 }
 0x5fb   : > { %v7966_v3 = vpop.permute.xlu1 %7965  ;;  %v8049_v23 = vmul.f32 %v20837_v33, %v7974_v15  ;;  %v8050_v14 = vmul.f32 %v20840_v56, %v7998_v20  ;;  %v14224_v53 = vpack.c.bf16 %v8052_v11, %v8048_v49  ;;  %v20875_v28 = vadd.f32 %v6058_v31, %v20606_v5  ;;  %v14532_v49 = vld [vmem:[#allocation6 + $0xf8] ss:$56 sps:$4 sm:$0xff]   ;;  %v14533_v5 = vld [vmem:[#allocation6 + $0x16c] ss:$56 sps:$4 sm:$0xff]  }
 0x5fc   : > { %v7975_v27 = vsel %vm7967_vm0, %v7950_v8, %v7966_v3  ;;  %v7999_v7 = vsel %vm7967_vm0, %v7966_v3, %v7918_v29  ;;  %v20881_v60 = vadd.f32 %v5987_v18, %v4354_v26  ;;  %v6060_v62 = vpop.f32.mrf.mxu1 }
 0x5fd   : > { %v8053_v4 = vmul.f32 %v20837_v33, %v7975_v27  ;;  %v8054_v15 = vmul.f32 %v20840_v56, %v7999_v7  ;;  %8933 = vmatprep.subr.bf16.mxu0 %v14224_v53  ;;  %v7912_v20 = vpop.permute.xlu0 %7911  ;;  %v20885_v11 = vadd.f32 %v6060_v62, %v4427_v16  ;;  %v14535_v27 = vld [vmem:[#allocation6 + $0x168] ss:$56 sps:$4 sm:$0xff]  }
 0x5fe   : > { %7577 = vmatmul.mubr.bf16.gmra.mxu1 %v14529_v40  ;;  %8934 = vmatpush1.bf16.msra.mxu0 %v14223_v22  ;;  %v5991_v29 = vpop.f32.mrf.mxu0 }
 0x5ff   : > { %v14225_v51 = vpack.c.bf16 %v8053_v4, %v8049_v23  ;;  %v7914_v8 = vpop.permute.xlu1 %7913  ;;  %v14226_v46 = vpack.c.bf16 %v8054_v15, %v8050_v14  ;;  %7586 = vmatprep.mubr.bf16.mxu1 %v14530_v57  ;;  %v20888_v31 = vadd.f32 %v5991_v29, %v20621_v55 }
 0x600   : > { %v6064_v18 = vpop.f32.mrf.mxu1  ;;  %v5993_v3 = vpop.f32.mrf.mxu0 }
 0x601   : > { %7514 = vmatmul.mubr.bf16.gmra.mxu0 %v14532_v49  ;;  %9006 = vmatprep.subr.bf16.mxu1 %v14226_v46  ;;  %v7928_v26 = vpop.permute.xlu0 %7927  ;;  %v20891_v40 = vadd.f32 %v6064_v18, %v20626_v61  ;;  %v20894_v23 = vadd.f32 %v5993_v3, %v20629_v32 }
 0x602   : > { %9007 = vmatpush1.bf16.msra.mxu1 %v14225_v51  ;;  %7523 = vmatprep.mubr.bf16.mxu0 %v14533_v5  ;;  %v6066_v14 = vpop.f32.mrf.mxu1  ;;  %v5995_v57 = vpop.f32.mrf.mxu0  ;;  %v7988_v55 = vsel %vm7967_vm0, %v7912_v20, %v7928_v26 }
 0x603   : > { %v7930_v16 = vpop.permute.xlu1 %7929  ;;  %v20901_v7 = vadd.f32 %v6066_v14, %v20634_v17  ;;  %v20904_v62 = vadd.f32 %v5995_v57, %v20637_v52  ;;  %v8039_v52 = vmul.f32 %v20823_v1, %v7988_v55 }
 0x604   : > { %v7989_v53 = vsel %vm7967_vm0, %v7914_v8, %v7930_v16  ;;  %v6068_v32 = vpop.f32.mrf.mxu1  ;;  %v5997_v4 = vpop.f32.mrf.mxu0 }
 0x605   : > { %v7944_v22 = vpop.permute.xlu0 %7943  ;;  %v20910_v46 = vadd.f32 %v6068_v32, %v20642_v35  ;;  %v20913_v29 = vadd.f32 %v5997_v4, %v20645_v19  ;;  %v8043_v17 = vmul.f32 %v20823_v1, %v7989_v53 }
 0x606   : > { %7587 = vmatmul.mubr.bf16.gmra.mxu1 %v14532_v49  ;;  %v7980_v61 = vsel %vm7967_vm0, %v7928_v26, %v7944_v22  ;;  %v6070_v26 = vpop.f32.mrf.mxu1  ;;  %v6001_v18 = vpop.f32.mrf.mxu0 }
 0x607   : > { %v7946_v15 = vpop.permute.xlu1 %7945  ;;  %v8040_v51 = vmul.f32 %v20820_v2, %v7980_v61  ;;  %7596 = vmatprep.mubr.bf16.mxu1 %v14533_v5  ;;  %v20921_v5 = vadd.f32 %v6070_v26, %v20654_v34  ;;  %v20924_v35 = vadd.f32 %v6001_v18, %v20659_v24 }
 0x608   : > { %v7981_v49 = vsel %vm7967_vm0, %v7930_v16, %v7946_v15  ;;  %v6074_v53 = vpop.f32.mrf.mxu1  ;;  %v6003_v16 = vpop.f32.mrf.mxu0 }
 0x609   : > { %v8044_v3 = vmul.f32 %v20820_v2, %v7981_v49  ;;  %7524 = vmatmul.mubr.bf16.gmra.mxu0 %v14535_v27  ;;  %v7960_v14 = vpop.permute.xlu0 %7959  ;;  %v20933_v34 = vadd.f32 %v6074_v53, %v20665_v37  ;;  %v14219_v49 = vpack.c.bf16 %v8043_v17, %v8039_v52 }
 0x60a   : > { %v7972_v19 = vsel %vm7967_vm0, %v7944_v22, %v7960_v14  ;;  %v7996_v57 = vsel %vm7967_vm0, %v7960_v14, %v7912_v20  ;;  %v20940_v20 = vadd.f32 %v6003_v16, %v20672_v48  ;;  %v6076_v26 = vpop.f32.mrf.mxu1  ;;  %v6005_v18 = vpop.f32.mrf.mxu0  ;;  %v14538_v16 = vld [vmem:[#allocation6 + $0x24] ss:$56 sps:$4 sm:$0xff]  }
 0x60b   : > { %v7962_v55 = vpop.permute.xlu1 %7961  ;;  %v8041_v61 = vmul.f32 %v20837_v33, %v7972_v19  ;;  %v8042_v32 = vmul.f32 %v20840_v56, %v7996_v57  ;;  %v14220_v4 = vpack.c.bf16 %v8044_v3, %v8040_v51  ;;  %v20945_v37 = vadd.f32 %v6076_v26, %v20678_v30  ;;  %8965 = vmatprep.mubr.bf16.mxu0 %v14538_v16 }
 0x60c   : > { %v7973_v24 = vsel %vm7967_vm0, %v7946_v15, %v7962_v55  ;;  %v7997_v22 = vsel %vm7967_vm0, %v7962_v55, %v7914_v8  ;;  %v20948_v17 = vadd.f32 %v6005_v18, %v20685_v54  ;;  %v6078_v8 = vpop.f32.mrf.mxu1  ;;  %v6007_v15 = vpop.f32.mrf.mxu0 }
 0x60d   : > { %v8045_v14 = vmul.f32 %v20837_v33, %v7973_v24  ;;  %v8046_v19 = vmul.f32 %v20840_v56, %v7997_v22  ;;  %8935 = vmatprep.subr.bf16.mxu0 %v14220_v4  ;;  %v7908_v51 = vpop.permute.xlu0 %7907  ;;  %v20951_v57 = vadd.f32 %v6078_v8, %v20692_v50  ;;  %v20954_v53 = vadd.f32 %v6007_v15, %v20699_v38 }
 0x60e   : > { %7597 = vmatmul.mubr.bf16.gmra.mxu1 %v14535_v27  ;;  %8936 = vmatpush1.bf16.msra.mxu0 %v14219_v49  ;;  %v6080_v55 = vpop.f32.mrf.mxu1  ;;  %v6011_v30 = vpop.f32.mrf.mxu0 }
 0x60f   : > { %v14221_v48 = vpack.c.bf16 %v8045_v14, %v8041_v61  ;;  %v7910_v52 = vpop.permute.xlu1 %7909  ;;  %v14222_v3 = vpack.c.bf16 %v8046_v19, %v8042_v32  ;;  %v20957_v54 = vadd.f32 %v6080_v55, %v20706_v25  ;;  %v20960_v27 = vadd.f32 %v6011_v30, %v20709_v9  ;;  %9038 = vmatprep.mubr.bf16.mxu1 %v14538_v16 }
 0x610   : > { %v6084_v61 = vpop.f32.mrf.mxu1  ;;  %v6013_v32 = vpop.f32.mrf.mxu0 }
 0x611   : > { %9008 = vmatprep.subr.bf16.mxu1 %v14222_v3  ;;  %v7924_v4 = vpop.permute.xlu0 %7923  ;;  %v20963_v38 = vadd.f32 %v6084_v61, %v20714_v36  ;;  %v20966_v49 = vadd.f32 %v6013_v32, %v20717_v6 }
 0x612   : > { %9009 = vmatpush1.bf16.msra.mxu1 %v14221_v48  ;;  %v6086_v24 = vpop.f32.mrf.mxu1  ;;  %v6015_v22 = vpop.f32.mrf.mxu0  ;;  %v7986_v9 = vsel %vm7967_vm0, %v7908_v51, %v7924_v4 }
 0x613   : > { %v7926_v50 = vpop.permute.xlu1 %7925  ;;  %v20973_v18 = vadd.f32 %v6086_v24, %v20722_v12  ;;  %v20976_v14 = vadd.f32 %v6015_v22, %v20725_v39  ;;  %v8031_v3 = vmul.f32 %v20823_v1, %v7986_v9 }
 0x614   : > { %v7987_v25 = vsel %vm7967_vm0, %v7910_v52, %v7926_v50  ;;  %v6088_v6 = vpop.f32.mrf.mxu1 }
 0x615   : > { %v7940_v26 = vpop.permute.xlu0 %7939  ;;  %v20982_v15 = vadd.f32 %v6088_v6, %v20730_v47  ;;  %v8035_v48 = vmul.f32 %v20823_v1, %v7987_v25 }
 0x616   : > { %v7978_v36 = vsel %vm7967_vm0, %v7924_v4, %v7940_v26 }
 0x617   : > { %v7942_v19 = vpop.permute.xlu1 %7941  ;;  %v8032_v8 = vmul.f32 %v20820_v2, %v7978_v36  ;;  %v14215_v24 = vpack.c.bf16 %v8035_v48, %v8031_v3 }
 0x618   : > { %v7979_v12 = vsel %vm7967_vm0, %v7926_v50, %v7942_v19 }
 0x619   : > { %v8036_v39 = vmul.f32 %v20820_v2, %v7979_v12  ;;  %v7956_v16 = vpop.permute.xlu0 %7955 }
 0x61a   : > { %v7970_v55 = vsel %vm7967_vm0, %v7940_v26, %v7956_v16  ;;  %v7994_v30 = vsel %vm7967_vm0, %v7956_v16, %v7908_v51 }
 0x61b   : > { %v7958_v4 = vpop.permute.xlu1 %7957  ;;  %v8033_v47 = vmul.f32 %v20837_v33, %v7970_v55  ;;  %v8034_v61 = vmul.f32 %v20840_v56, %v7994_v30  ;;  %v14216_v32 = vpack.c.bf16 %v8036_v39, %v8032_v8 }
 0x61c   : > { %v7971_v22 = vsel %vm7967_vm0, %v7942_v19, %v7958_v4  ;;  %v7995_v50 = vsel %vm7967_vm0, %v7958_v4, %v7910_v52 }
 0x61d   : > { %v8037_v25 = vmul.f32 %v20837_v33, %v7971_v22  ;;  %v8038_v9 = vmul.f32 %v20840_v56, %v7995_v50  ;;  %8937 = vmatprep.subr.bf16.mxu0 %v14216_v32  ;;  %v7904_v26 = vpop.permute.xlu0 %7903 }
 0x61e   : > { %8938 = vmatpush1.bf16.msra.mxu0 %v14215_v24 }
 0x61f   : > { %v14217_v51 = vpack.c.bf16 %v8037_v25, %v8033_v47  ;;  %v7906_v36 = vpop.permute.xlu1 %7905  ;;  %v14218_v6 = vpack.c.bf16 %v8038_v9, %v8034_v61 }
 0x621   : > { %9010 = vmatprep.subr.bf16.mxu1 %v14218_v6  ;;  %v7920_v12 = vpop.permute.xlu0 %7919 }
 0x622   : > { %9011 = vmatpush1.bf16.msra.mxu1 %v14217_v51  ;;  %v7984_v52 = vsel %vm7967_vm0, %v7904_v26, %v7920_v12 }
 0x623   : > { %v7922_v8 = vpop.permute.xlu1 %7921  ;;  %v8023_v30 = vmul.f32 %v20823_v1, %v7984_v52 }
 0x624   : > { %v7985_v19 = vsel %vm7967_vm0, %v7906_v36, %v7922_v8 }
 0x625   : > { %v7936_v48 = vpop.permute.xlu0 %7935  ;;  %v8027_v55 = vmul.f32 %v20823_v1, %v7985_v19 }
 0x626   : > { %v7976_v3 = vsel %vm7967_vm0, %v7920_v12, %v7936_v48 }
 0x627   : > { %v7938_v39 = vpop.permute.xlu1 %7937  ;;  %v8024_v16 = vmul.f32 %v20820_v2, %v7976_v3  ;;  %v14211_v51 = vpack.c.bf16 %v8027_v55, %v8023_v30 }
 0x628   : > { %v7977_v4 = vsel %vm7967_vm0, %v7922_v8, %v7938_v39 }
 0x629   : > { %v8028_v47 = vmul.f32 %v20820_v2, %v7977_v4  ;;  %v7952_v61 = vpop.permute.xlu0 %7951 }
 0x62a   : > { %v7968_v32 = vsel %vm7967_vm0, %v7936_v48, %v7952_v61  ;;  %v7992_v24 = vsel %vm7967_vm0, %v7952_v61, %v7904_v26  ;;  %v7737_v48 = vld [vmem:[#allocation3 + $0x40] ss:$8 sm:$0xf] }
 0x62b   : > { %v7954_v22 = vpop.permute.xlu1 %7953  ;;  %v8025_v50 = vmul.f32 %v20837_v33, %v7968_v32  ;;  %v8026_v25 = vmul.f32 %v20840_v56, %v7992_v24  ;;  %v14212_v9 = vpack.c.bf16 %v8028_v47, %v8024_v16  ;;  %v21027_v16 = vrot.slane %v7737_v48, %v24165_v59 }
 0x62c   : > { %v7969_v1 = vsel %vm7967_vm0, %v7938_v39, %v7954_v22  ;;  %v7993_v2 = vsel %vm7967_vm0, %v7954_v22, %v7906_v36  ;;  %v21040_v61 = vrot.slane %v7737_v48, %v24169_v42  ;;  %v21043_v59 = vrot.slane %v7737_v48, %v23927_v63 }
 0x62d   : > { %v8029_v6 = vmul.f32 %v20837_v33, %v7969_v1  ;;  %v8030_v12 = vmul.f32 %v20840_v56, %v7993_v2  ;;  %8939 = vmatprep.subr.bf16.mxu0 %v14212_v9  ;;  %v7652_v8 = vpop.permute.xlu0 %7651  ;;  %v21030_v33 = vrot.slane %v7737_v48, %v24166_v0 }
 0x62e   : > { %8940 = vmatpush1.bf16.msra.mxu0 %v14211_v51 }
 0x62f   : > { %v14213_v26 = vpack.c.bf16 %v8029_v6, %v8025_v50  ;;  %v7654_v19 = vpop.permute.xlu1 %7653  ;;  %v14214_v52 = vpack.c.bf16 %v8030_v12, %v8026_v25 }
 0x631   : > { %9012 = vmatprep.subr.bf16.mxu1 %v14214_v52  ;;  %v7668_v3 = vpop.permute.xlu0 %7667 }
 0x632   : > { %9013 = vmatpush1.bf16.msra.mxu1 %v14213_v26  ;;  %v7726_v36 = vsel %vm7703_vm1, %v7652_v8, %v7668_v3 }
 0x633   : > { %v7670_v39 = vpop.permute.xlu1 %7669  ;;  %v7783_v32 = vmul.f32 %v21030_v33, %v7726_v36 }
 0x634   : > { %v7727_v56 = vsel %vm7703_vm1, %v7654_v19, %v7670_v39 }
 0x635   : > { %v7684_v55 = vpop.permute.xlu0 %7683  ;;  %v7787_v0 = vmul.f32 %v21030_v33, %v7727_v56 }
 0x636   : > { %v7718_v30 = vsel %vm7703_vm1, %v7668_v3, %v7684_v55 }
 0x637   : > { %v7686_v4 = vpop.permute.xlu1 %7685  ;;  %v7784_v47 = vmul.f32 %v21027_v16, %v7718_v30  ;;  %v14207_v2 = vpack.c.bf16 %v7787_v0, %v7783_v32 }
 0x638   : > { %v7719_v24 = vsel %vm7703_vm1, %v7670_v39, %v7686_v4 }
 0x639   : > { %v7788_v22 = vmul.f32 %v21027_v16, %v7719_v24  ;;  %v7700_v50 = vpop.permute.xlu0 %7699 }
 0x63a   : > { %v7710_v25 = vsel %vm7703_vm1, %v7684_v55, %v7700_v50  ;;  %v7734_v42 = vsel %vm7703_vm1, %v7700_v50, %v7652_v8 }
 0x63b   : > { %v7702_v9 = vpop.permute.xlu1 %7701  ;;  %v7785_v63 = vmul.f32 %v21040_v61, %v7710_v25  ;;  %v7786_v51 = vmul.f32 %v21043_v59, %v7734_v42  ;;  %v14208_v1 = vpack.c.bf16 %v7788_v22, %v7784_v47 }
 0x63c   : > { %v7711_v6 = vsel %vm7703_vm1, %v7686_v4, %v7702_v9  ;;  %v7735_v12 = vsel %vm7703_vm1, %v7702_v9, %v7654_v19 }
 0x63d   : > { %v7789_v26 = vmul.f32 %v21040_v61, %v7711_v6  ;;  %v7790_v52 = vmul.f32 %v21043_v59, %v7735_v12  ;;  %8941 = vmatprep.subr.bf16.mxu0 %v14208_v1  ;;  %v7648_v48 = vpop.permute.xlu0 %7647 }
 0x63e   : > { %8942 = vmatpush1.bf16.msra.mxu0 %v14207_v2 }
 0x63f   : > { %v14209_v8 = vpack.c.bf16 %v7789_v26, %v7785_v63  ;;  %v7650_v3 = vpop.permute.xlu1 %7649  ;;  %v14210_v39 = vpack.c.bf16 %v7790_v52, %v7786_v51 }
 0x641   : > { %9014 = vmatprep.subr.bf16.mxu1 %v14210_v39  ;;  %v7664_v56 = vpop.permute.xlu0 %7663 }
 0x642   : > { %9015 = vmatpush1.bf16.msra.mxu1 %v14209_v8  ;;  %v7724_v19 = vsel %vm7703_vm1, %v7648_v48, %v7664_v56 }
 0x643   : > { %v7666_v36 = vpop.permute.xlu1 %7665  ;;  %v7775_v24 = vmul.f32 %v21030_v33, %v7724_v19 }
 0x644   : > { %v7725_v55 = vsel %vm7703_vm1, %v7650_v3, %v7666_v36 }
 0x645   : > { %v7680_v30 = vpop.permute.xlu0 %7679  ;;  %v7779_v32 = vmul.f32 %v21030_v33, %v7725_v55 }
 0x646   : > { %v7716_v4 = vsel %vm7703_vm1, %v7664_v56, %v7680_v30 }
 0x647   : > { %v7682_v47 = vpop.permute.xlu1 %7681  ;;  %v7776_v0 = vmul.f32 %v21027_v16, %v7716_v4  ;;  %v14203_v6 = vpack.c.bf16 %v7779_v32, %v7775_v24 }
 0x648   : > { %v7717_v22 = vsel %vm7703_vm1, %v7666_v36, %v7682_v47 }
 0x649   : > { %v7780_v50 = vmul.f32 %v21027_v16, %v7717_v22  ;;  %v7696_v25 = vpop.permute.xlu0 %7695 }
 0x64a   : > { %v7708_v42 = vsel %vm7703_vm1, %v7680_v30, %v7696_v25  ;;  %v7732_v9 = vsel %vm7703_vm1, %v7696_v25, %v7648_v48 }
 0x64b   : > { %v7698_v63 = vpop.permute.xlu1 %7697  ;;  %v7777_v51 = vmul.f32 %v21040_v61, %v7708_v42  ;;  %v7778_v1 = vmul.f32 %v21043_v59, %v7732_v9  ;;  %v14204_v2 = vpack.c.bf16 %v7780_v50, %v7776_v0 }
 0x64c   : > { %v7709_v12 = vsel %vm7703_vm1, %v7682_v47, %v7698_v63  ;;  %v7733_v26 = vsel %vm7703_vm1, %v7698_v63, %v7650_v3 }
 0x64d   : > { %v7781_v52 = vmul.f32 %v21040_v61, %v7709_v12  ;;  %v7782_v8 = vmul.f32 %v21043_v59, %v7733_v26  ;;  %8943 = vmatprep.subr.bf16.mxu0 %v14204_v2  ;;  %v7644_v39 = vpop.permute.xlu0 %7643 }
 0x64e   : > { %8944 = vmatpush1.bf16.msra.mxu0 %v14203_v6 }
 0x64f   : > { %v14205_v48 = vpack.c.bf16 %v7781_v52, %v7777_v51  ;;  %v7646_v56 = vpop.permute.xlu1 %7645  ;;  %v14206_v36 = vpack.c.bf16 %v7782_v8, %v7778_v1 }
 0x651   : > { %9016 = vmatprep.subr.bf16.mxu1 %v14206_v36  ;;  %v7660_v55 = vpop.permute.xlu0 %7659 }
 0x652   : > { %9017 = vmatpush1.bf16.msra.mxu1 %v14205_v48  ;;  %v7722_v3 = vsel %vm7703_vm1, %v7644_v39, %v7660_v55 }
 0x653   : > { %v7662_v19 = vpop.permute.xlu1 %7661  ;;  %v7767_v22 = vmul.f32 %v21030_v33, %v7722_v3 }
 0x654   : > { %v7723_v30 = vsel %vm7703_vm1, %v7646_v56, %v7662_v19 }
 0x655   : > { %v7676_v4 = vpop.permute.xlu0 %7675  ;;  %v7771_v24 = vmul.f32 %v21030_v33, %v7723_v30 }
 0x656   : > { %v7714_v47 = vsel %vm7703_vm1, %v7660_v55, %v7676_v4 }
 0x657   : > { %v7678_v0 = vpop.permute.xlu1 %7677  ;;  %v7768_v32 = vmul.f32 %v21027_v16, %v7714_v47  ;;  %v14199_v12 = vpack.c.bf16 %v7771_v24, %v7767_v22 }
 0x658   : > { %v7715_v50 = vsel %vm7703_vm1, %v7662_v19, %v7678_v0 }
 0x659   : > { %v7772_v25 = vmul.f32 %v21027_v16, %v7715_v50  ;;  %v7692_v42 = vpop.permute.xlu0 %7691 }
 0x65a   : > { %v7706_v9 = vsel %vm7703_vm1, %v7676_v4, %v7692_v42  ;;  %v7730_v63 = vsel %vm7703_vm1, %v7692_v42, %v7644_v39 }
 0x65b   : > { %v7694_v51 = vpop.permute.xlu1 %7693  ;;  %v7769_v1 = vmul.f32 %v21040_v61, %v7706_v9  ;;  %v7770_v2 = vmul.f32 %v21043_v59, %v7730_v63  ;;  %v14200_v6 = vpack.c.bf16 %v7772_v25, %v7768_v32 }
 0x65c   : > { %v7707_v26 = vsel %vm7703_vm1, %v7678_v0, %v7694_v51  ;;  %v7731_v52 = vsel %vm7703_vm1, %v7694_v51, %v7646_v56 }
 0x65d   : > { %v7773_v8 = vmul.f32 %v21040_v61, %v7707_v26  ;;  %v7774_v48 = vmul.f32 %v21043_v59, %v7731_v52  ;;  %8945 = vmatprep.subr.bf16.mxu0 %v14200_v6  ;;  %v7640_v36 = vpop.permute.xlu0 %7639 }
 0x65e   : > { %8946 = vmatpush1.bf16.msra.mxu0 %v14199_v12 }
 0x65f   : > { %v14201_v39 = vpack.c.bf16 %v7773_v8, %v7769_v1  ;;  %v7642_v55 = vpop.permute.xlu1 %7641  ;;  %v14202_v19 = vpack.c.bf16 %v7774_v48, %v7770_v2 }
 0x661   : > { %9018 = vmatprep.subr.bf16.mxu1 %v14202_v19  ;;  %v7656_v30 = vpop.permute.xlu0 %7655 }
 0x662   : > { %9019 = vmatpush1.bf16.msra.mxu1 %v14201_v39  ;;  %v7720_v56 = vsel %vm7703_vm1, %v7640_v36, %v7656_v30  ;;  %v24175_v39 = vld [vmem:[#allocation120_spill] sm:$0xff] }
 0x663   : > { %v7658_v3 = vpop.permute.xlu1 %7657  ;;  %v7759_v50 = vmul.f32 %v21030_v33, %v7720_v56 }
 0x664   : > { %v7721_v4 = vsel %vm7703_vm1, %v7642_v55, %v7658_v3 }
 0x665   : > { %v7672_v47 = vpop.permute.xlu0 %7671  ;;  %v7763_v22 = vmul.f32 %v21030_v33, %v7721_v4  ;;  %v24178_v4 = vld [vmem:[#allocation245_spill] sm:$0xff] }
 0x666   : > { %v7712_v0 = vsel %vm7703_vm1, %v7656_v30, %v7672_v47 }
 0x667   : > { %v7674_v32 = vpop.permute.xlu1 %7673  ;;  %v7760_v24 = vmul.f32 %v21027_v16, %v7712_v0  ;;  %v14195_v26 = vpack.c.bf16 %v7763_v22, %v7759_v50  ;;  %v24189_v50 = vld [vmem:[#allocation250_spill] sm:$0xff] }
 0x668   : > { %v7713_v25 = vsel %vm7703_vm1, %v7658_v3, %v7674_v32  ;;  %v24177_v3 = vld [vmem:[#allocation47_spill] sm:$0xff] }
 0x669   : > { %v7764_v42 = vmul.f32 %v21027_v16, %v7713_v25  ;;  %v7688_v9 = vpop.permute.xlu0 %7687  ;;  %v24179_v56 = vpack.c.bf16 %v24177_v3, %v24178_v4  ;;  %v24190_v25 = vld [vmem:[#allocation249_spill] sm:$0xff]  ;;  %v24210_v4 = vld [vmem:[#allocation162_spill] sm:$0xff] }
 0x66a   : > { %v7704_v63 = vsel %vm7703_vm1, %v7672_v47, %v7688_v9  ;;  %v7728_v51 = vsel %vm7703_vm1, %v7688_v9, %v7640_v36  ;;  %v24174_v36 = vld [vmem:[#allocation248_spill] sm:$0xff] }
 0x66b   : > { %v7690_v1 = vpop.permute.xlu1 %7689  ;;  %v7761_v2 = vmul.f32 %v21040_v61, %v7704_v63  ;;  %v7762_v6 = vmul.f32 %v21043_v59, %v7728_v51  ;;  %v14196_v12 = vpack.c.bf16 %v7764_v42, %v7760_v24  ;;  %v24176_v19 = vpack.c.bf16 %v24174_v36, %v24175_v39  ;;  %v24187_v24 = vld [vmem:[#allocation252_spill] sm:$0xff] }
 0x66c   : > { %v7705_v33 = vsel %vm7703_vm1, %v7674_v32, %v7690_v1  ;;  %v7729_v16 = vsel %vm7703_vm1, %v7690_v1, %v7642_v55  ;;  %v24181_v55 = vld [vmem:[#allocation253_spill] sm:$0xff]  ;;  %v24186_v32 = vld [vmem:[#allocation44_spill] sm:$0xff]  ;;  %v24191_v42 = vpack.c.bf16 %v24189_v50, %v24190_v25 }
 0x66d   : > { %v7765_v52 = vmul.f32 %v21040_v61, %v7705_v33  ;;  %v7766_v8 = vmul.f32 %v21043_v59, %v7729_v16  ;;  %8947 = vmatprep.subr.bf16.mxu0 %v14196_v12  ;;  %v24182_v47 = vpack.c.bf16 %v24180_v44, %v24181_v55  ;;  %v24183_v61 = vld [vmem:[#allocation251_spill] sm:$0xff]  ;;  %v24184_v59 = vld [vmem:[#allocation12_spill] sm:$0xff]  ;;  %v24188_v22 = vpack.c.bf16 %v24186_v32, %v24187_v24  ;;  %v24195_v1 = vld [vmem:[#allocation257_spill] sm:$0xff] }
 0x66e   : > { %8948 = vmatpush1.bf16.msra.mxu0 %v14195_v26  ;;  %v24185_v0 = vpack.c.bf16 %v24183_v61, %v24184_v59  ;;  %v24192_v9 = vld [vmem:[#allocation148_spill] sm:$0xff]  ;;  %v24199_v26 = vld [vmem:[#allocation258_spill] sm:$0xff]  ;;  %v24216_v59 = vld [vmem:[#allocation163_spill] sm:$0xff] }
 0x66f   : > { %v14197_v48 = vpack.c.bf16 %v7765_v52, %v7761_v2  ;;  %8949 = vmatprep.subr.bf16.mxu0 %v24176_v19  ;;  %v14198_v30 = vpack.c.bf16 %v7766_v8, %v7762_v6  ;;  %v24193_v63 = vld [vmem:[#allocation108_spill] sm:$0xff]  ;;  %v24196_v2 = vld [vmem:[#allocation15_spill] sm:$0xff]  ;;  %v24219_v24 = vld [vmem:[#allocation173_spill] sm:$0xff] }
 0x670   : > { %v24194_v51 = vpack.c.bf16 %v24192_v9, %v24193_v63  ;;  %v24197_v6 = vpack.c.bf16 %v24195_v1, %v24196_v2  ;;  %v24198_v12 = vld [vmem:[#allocation40_spill] sm:$0xff]  ;;  %v24202_v52 = vld [vmem:[#allocation255_spill] sm:$0xff] }
 0x671   : > { %9020 = vmatprep.subr.bf16.mxu1 %v14198_v30  ;;  %v24200_v33 = vpack.c.bf16 %v24198_v12, %v24199_v26  ;;  %v24201_v16 = vld [vmem:[#allocation256_spill] sm:$0xff]  ;;  %v24207_v19 = vld [vmem:[#allocation111_spill] sm:$0xff] }
 0x672   : > { %8950 = vmatpush2.bf16.msra.mxu0 %v24179_v56  ;;  %9021 = vmatpush1.bf16.msra.mxu1 %v14197_v48  ;;  %v24203_v8 = vpack.c.bf16 %v24201_v16, %v24202_v52  ;;  %v24204_v48 = vld [vmem:[#allocation152_spill] sm:$0xff]  ;;  %v24211_v56 = vld [vmem:[#allocation21_spill] sm:$0xff]  ;;  %v24225_v63 = vld [vmem:[#allocation115_spill] sm:$0xff] }
 0x673   : > { %8951 = vmatprep.subr.bf16.mxu0 %v24182_v47  ;;  %9022 = vmatprep.subr.bf16.mxu1 %v24185_v0  ;;  %v24205_v36 = vld [vmem:[#allocation116_spill] sm:$0xff]  ;;  %v24212_v44 = vpack.c.bf16 %v24210_v4, %v24211_v56  ;;  %v24214_v47 = vld [vmem:[#allocation107_spill] sm:$0xff]  ;;  %v24243_v56 = vld [vmem:[#allocation62_spill] sm:$0xff] }
 0x674   : > { %v24206_v39 = vpack.c.bf16 %v24204_v48, %v24205_v36  ;;  %v24208_v30 = vld [vmem:[#allocation112_spill] sm:$0xff]  ;;  %v24234_v52 = vld [vmem:[#allocation119_spill] sm:$0xff]  ;;  %v24237_v36 = vld [vmem:[#allocation174_spill] sm:$0xff] }
 0x675   : > { %v24209_v3 = vpack.c.bf16 %v24207_v19, %v24208_v30  ;;  %v24213_v55 = vld [vmem:[#allocation160_spill] sm:$0xff]  ;;  %v24240_v30 = vld [vmem:[#allocation166_spill] sm:$0xff] }
 0x676   : > { %8952 = vmatpush2.bf16.msra.mxu0 %v24188_v22  ;;  %9023 = vmatpush2.bf16.msra.mxu1 %v24191_v42  ;;  %v24215_v61 = vpack.c.bf16 %v24213_v55, %v24214_v47  ;;  %v24217_v0 = vld [vmem:[#allocation164_spill] sm:$0xff]  ;;  %v24223_v42 = vld [vmem:[#allocation121_spill] sm:$0xff] }
 0x677   : > { %8953 = vmatprep.subr.bf16.mxu0 %v24194_v51  ;;  %9024 = vmatprep.subr.bf16.mxu1 %v24197_v6  ;;  %v24218_v32 = vpack.c.bf16 %v24216_v59, %v24217_v0  ;;  %v24220_v22 = vld [vmem:[#allocation16_spill] sm:$0xff]  ;;  %v24226_v51 = vld [vmem:[#allocation151_spill] sm:$0xff]  ;;  %v24229_v6 = vld [vmem:[#allocation169_spill] sm:$0xff] }
 0x678   : > { %v24221_v50 = vpack.c.bf16 %v24219_v24, %v24220_v22  ;;  %v24222_v25 = vld [vmem:[#allocation124_spill] sm:$0xff]  ;;  %v24227_v1 = vpack.c.bf16 %v24225_v63, %v24226_v51  ;;  %v24246_v47 = vld [vmem:[#allocation113_spill] sm:$0xff]  ;;  %v24252_v22 = vld [vmem:[#allocation158_spill] sm:$0xff] }
 0x679   : > { %v24224_v9 = vpack.c.bf16 %v24222_v25, %v24223_v42  ;;  %v24228_v2 = vld [vmem:[#allocation172_spill] sm:$0xff]  ;;  %v24249_v0 = vld [vmem:[#allocation161_spill] sm:$0xff]  ;;  %v24255_v42 = vld [vmem:[#allocation191_spill] sm:$0xff] }
 0x67a   : > { %8954 = vmatpush2.bf16.msra.mxu0 %v24200_v33  ;;  %9025 = vmatpush2.bf16.msra.mxu1 %v24203_v8  ;;  %v24230_v12 = vpack.c.bf16 %v24228_v2, %v24229_v6  ;;  %v24231_v26 = vld [vmem:[#allocation184_spill] sm:$0xff]  ;;  %v24232_v33 = vld [vmem:[#allocation182_spill] sm:$0xff] }
 0x67b   : > { %8955 = vmatprep.subr.bf16.mxu0 %v24206_v39  ;;  %9026 = vmatprep.subr.bf16.mxu1 %v24209_v3  ;;  %v24233_v16 = vpack.c.bf16 %v24231_v26, %v24232_v33  ;;  %v24235_v8 = vld [vmem:[#allocation114_spill] sm:$0xff]  ;;  %v24238_v39 = vld [vmem:[#allocation167_spill] sm:$0xff] }
 0x67c   : > { %v24236_v48 = vpack.c.bf16 %v24234_v52, %v24235_v8  ;;  %v24239_v19 = vpack.c.bf16 %v24237_v36, %v24238_v39  ;;  %v24241_v3 = vld [vmem:[#allocation159_spill] sm:$0xff]  ;;  %v24259_v2 = vld [vmem:[#allocation106_spill] sm:$0xff]  ;;  %v24265_v52 = vld [vmem:[#allocation180_spill] sm:$0xff] }
 0x67d   : > { %v24242_v4 = vpack.c.bf16 %v24240_v30, %v24241_v3  ;;  %v14536_v51 = vld [vmem:[#allocation6 + $0x20] ss:$56 sps:$4 sm:$0xff]   ;;  %v24262_v26 = vld [vmem:[#allocation138_spill] sm:$0xff]  ;;  %v24268_v36 = vld [vmem:[#allocation53_spill] sm:$0xff] }
 0x67e   : > { %8956 = vmatpush2.bf16.msra.mxu0 %v24212_v44  ;;  %9027 = vmatpush2.bf16.msra.mxu1 %v24215_v61  ;;  %v24244_v44 = vld [vmem:[#allocation36_spill] sm:$0xff]  ;;  %v24247_v61 = vld [vmem:[#allocation110_spill] sm:$0xff]  ;;  %v24270_v30 = vld [vmem:[#allocation133_spill] sm:$0xff] }
 0x67f   : > { %8957 = vmatprep.subr.bf16.mxu0 %v24218_v32  ;;  %9028 = vmatprep.subr.bf16.mxu1 %v24221_v50  ;;  %v24245_v55 = vpack.c.bf16 %v24243_v56, %v24244_v44  ;;  %v24248_v59 = vpack.c.bf16 %v24246_v47, %v24247_v61  ;;  %v24250_v32 = vld [vmem:[#allocation153_spill] sm:$0xff]  ;;  %v24253_v50 = vld [vmem:[#allocation154_spill] sm:$0xff]  ;;  %v24271_v3 = vld [vmem:[#allocation128_spill] sm:$0xff] }
 0x680   : > { %v24251_v24 = vpack.c.bf16 %v24249_v0, %v24250_v32  ;;  %v24254_v25 = vpack.c.bf16 %v24252_v22, %v24253_v50  ;;  %v24273_v56 = vld [vmem:[#allocation122_spill] sm:$0xff]  ;;  %v24274_v44 = vld [vmem:[#allocation123_spill] sm:$0xff]  ;;  %v24277_v61 = vld [vmem:[#allocation57_spill] sm:$0xff] }
 0x681   : > { %v24276_v47 = vld [vmem:[#allocation142_spill] sm:$0xff]  ;;  %v24279_v0 = vld [vmem:[#allocation176_spill] sm:$0xff]  ;;  %v24282_v50 = vld [vmem:[#allocation55_spill] sm:$0xff] }
 0x682   : > { %8958 = vmatpush2.bf16.msra.mxu0 %v24224_v9  ;;  %9029 = vmatpush2.bf16.msra.mxu1 %v24227_v1  ;;  %v24256_v9 = vld [vmem:[#allocation190_spill] sm:$0xff]  ;;  %v24258_v1 = vld [vmem:[#allocation109_spill] sm:$0xff] }
 0x683   : > { %8959 = vmatprep.subr.bf16.mxu0 %v24230_v12  ;;  %9030 = vmatprep.subr.bf16.mxu1 %v24233_v16  ;;  %v24257_v63 = vpack.c.bf16 %v24255_v42, %v24256_v9  ;;  %v24260_v6 = vpack.c.bf16 %v24258_v1, %v24259_v2  ;;  %v24261_v12 = vld [vmem:[#allocation146_spill] sm:$0xff]  ;;  %v24264_v16 = vld [vmem:[#allocation65_spill] sm:$0xff] }
 0x684   : > { %v24263_v33 = vpack.c.bf16 %v24261_v12, %v24262_v26  ;;  %v24266_v8 = vpack.c.bf16 %v24264_v16, %v24265_v52  ;;  %v24280_v32 = vld [vmem:[#allocation170_spill] sm:$0xff]  ;;  %v24285_v9 = vld [vmem:[#allocation177_spill] sm:$0xff]  ;;  %v14542_v52 = vld [vmem:[#allocation6 + $0x104] ss:$56 sps:$4 sm:$0xff]  }
 0x685   : > { %v14541_v22 = vld [vmem:[#allocation6 + $0x90] ss:$56 sps:$4 sm:$0xff]  }
 0x686   : > { %8960 = vmatpush2.bf16.msra.mxu0 %v24236_v48  ;;  %9031 = vmatpush2.bf16.msra.mxu1 %v24239_v19  ;;  %v24267_v48 = vld [vmem:[#allocation60_spill] sm:$0xff]  ;;  %v14539_v19 = vld [vmem:[#allocation6 + $0x94] ss:$56 sps:$4 sm:$0xff]  }
 0x687   : > { %8961 = vmatprep.subr.bf16.mxu0 %v24242_v4  ;;  %9032 = vmatprep.subr.bf16.mxu1 %v24245_v55  ;;  %v24269_v39 = vpack.c.bf16 %v24267_v48, %v24268_v36  ;;  %v24272_v4 = vpack.c.bf16 %v24270_v30, %v24271_v3  ;;  %v24275_v55 = vpack.c.bf16 %v24273_v56, %v24274_v44  ;;  %v24288_v2 = vld [vmem:[#allocation33_spill] sm:$0xff]  ;;  %v24297_v36 = vld [vmem:[#allocation38_spill] sm:$0xff]  ;;  %v24303_v44 = vld [vmem:[#allocation35_spill] sm:$0xff] }
 0x688   : > { %v24291_v26 = vld [vmem:[#allocation141_spill] sm:$0xff] }
 0x689   : > { %v24300_v3 = vld [vmem:[#allocation41_spill] sm:$0xff] }
 0x68a   : > { %8962 = vmatpush2.bf16.msra.mxu0 %v24248_v59  ;;  %9033 = vmatpush2.bf16.msra.mxu1 %v24251_v24  ;;  %v24278_v59 = vpack.c.bf16 %v24276_v47, %v24277_v61  ;;  %v24281_v24 = vpack.c.bf16 %v24279_v0, %v24280_v32  ;;  %v24306_v61 = vld [vmem:[#allocation25_spill] sm:$0xff] }
 0x68b   : > { %8963 = vmatprep.subr.bf16.mxu0 %v24254_v25  ;;  %9034 = vmatprep.subr.bf16.mxu1 %v24257_v63  ;;  %v24283_v25 = vld [vmem:[#allocation157_spill] sm:$0xff]  ;;  %v24286_v63 = vld [vmem:[#allocation130_spill] sm:$0xff] }
 0x68c   : > { %v24284_v42 = vpack.c.bf16 %v24282_v50, %v24283_v25  ;;  %v24287_v1 = vpack.c.bf16 %v24285_v9, %v24286_v63  ;;  %v24309_v32 = vld [vmem:[#allocation145_spill] sm:$0xff]  ;;  %v24312_v25 = vld [vmem:[#allocation266_spill] sm:$0xff] }
 0x68d   : > { %v24315_v63 = vld [vmem:[#allocation261_spill] sm:$0xff] }
 0x68e   : > { %8964 = vmatpush2.bf16.msra.mxu0 %v24260_v6  ;;  %9035 = vmatpush2.bf16.msra.mxu1 %v24263_v33  ;;  %v24289_v6 = vld [vmem:[#allocation147_spill] sm:$0xff]  ;;  %v24292_v33 = vld [vmem:[#allocation129_spill] sm:$0xff] }
 0x68f   : > { %9036 = vmatprep.subr.bf16.mxu1 %v24266_v8  ;;  %10211 = vmatprep.subr.bf16.mxu0 %v24269_v39  ;;  %v24290_v12 = vpack.c.bf16 %v24288_v2, %v24289_v6  ;;  %v24293_v16 = vpack.c.bf16 %v24291_v26, %v24292_v33  ;;  %v24295_v8 = vld [vmem:[#allocation105_spill] sm:$0xff]  ;;  %v24298_v39 = vld [vmem:[#allocation156_spill] sm:$0xff]  ;;  %v24319_v33 = vld [vmem:[#allocation263_spill] sm:$0xff] }
 0x690   : > { %v24299_v30 = vpack.c.bf16 %v24297_v36, %v24298_v39  ;;  %v14545_v6 = vld [vmem:[#allocation6 + $0x174] ss:$56 sps:$4 sm:$0xff]   ;;  %v24318_v26 = vld [vmem:[#allocation264_spill] sm:$0xff]  ;;  %v24325_v36 = vld [vmem:[#allocation275_spill] sm:$0xff] }
 0x691   : > { %8966 = vmatmul.mubr.bf16.vlgmr.msra.gmra.mxu0 %v14536_v51 }
 0x692   : > { %9037 = vmatpush2.bf16.msra.mxu1 %v24272_v4  ;;  %10212 = vmatpush1.bf16.msra.mxu0 %v24275_v55  ;;  %v24301_v4 = vld [vmem:[#allocation259_spill] sm:$0xff]  ;;  %v24304_v55 = vld [vmem:[#allocation56_spill] sm:$0xff] }
 0x693   : > { %10213 = vmatprep.subr.bf16.mxu0 %v24278_v59  ;;  %10284 = vmatprep.subr.bf16.mxu1 %v24281_v24  ;;  %v24302_v56 = vpack.c.bf16 %v24300_v3, %v24301_v4  ;;  %v24305_v47 = vpack.c.bf16 %v24303_v44, %v24304_v55  ;;  %v24307_v59 = vld [vmem:[#allocation61_spill] sm:$0xff]  ;;  %v24328_v3 = vld [vmem:[#allocation270_spill] sm:$0xff]  ;;  %v24330_v55 = vld [vmem:[#allocation272_spill] sm:$0xff] }
 0x694   : > { %8975 = vmatprep.mubr.bf16.mxu0 %v14539_v19  ;;  %v24308_v0 = vpack.c.bf16 %v24306_v61, %v24307_v59  ;;  %v24310_v24 = vld [vmem:[#allocation49_spill] sm:$0xff]  ;;  %v24333_v59 = vld [vmem:[#allocation268_spill] sm:$0xff] }
 0x695   : > { %9039 = vmatmul.mubr.bf16.vlgmr.msra.gmra.mxu1 %v14536_v51  ;;  %v24294_v51 = vld [vmem:[#allocation155_spill] sm:$0xff]  ;;  %v24311_v50 = vpack.c.bf16 %v24309_v32, %v24310_v24  ;;  %v21299_v44 = vld [vmem:[%s22878_s5 + $0x8] sm:$0xff]  ;;  %v24336_v24 = vld [vmem:[#allocation282_spill] sm:$0xff] }
 0x696   : > { %10214 = vmatpush1.bf16.msra.mxu0 %v24284_v42  ;;  %10285 = vmatpush1.bf16.msra.mxu1 %v24287_v1  ;;  %v24296_v48 = vpack.c.bf16 %v24294_v51, %v24295_v8  ;;  %v24313_v42 = vld [vmem:[#allocation267_spill] sm:$0xff]  ;;  %v24316_v1 = vld [vmem:[#allocation262_spill] sm:$0xff]  ;;  %v24321_v51 = vld [vmem:[#allocation260_spill] sm:$0xff] }
 0x697   : > { %10215 = vmatprep.subr.bf16.mxu0 %v24290_v12  ;;  %10286 = vmatprep.subr.bf16.mxu1 %v24293_v16  ;;  %v24314_v9 = vpack.c.bf16 %v24312_v25, %v24313_v42  ;;  %v24317_v2 = vpack.c.bf16 %v24315_v63, %v24316_v1  ;;  %v21281_v12 = vld [vmem:[%s22878_s5] sm:$0xff]  ;;  %v24320_v16 = vpack.c.bf16 %v24318_v26, %v24319_v33  ;;  %v24340_v42 = vld [vmem:[#allocation278_spill] sm:$0xff]  ;;  %v21317_v1 = vld [vmem:[%s22878_s5 + $0x18] sm:$0xff] }
 0x698   : > { %9048 = vmatprep.mubr.bf16.mxu1 %v14539_v19  ;;  %v14544_v19 = vld [vmem:[#allocation6 + $0x100] ss:$56 sps:$4 sm:$0xff]   ;;  %v14550_v63 = vld [vmem:[#allocation6 + $0x2c] ss:$56 sps:$4 sm:$0xff]  }
 0x699   : > { %8976 = vmatmul.mubr.bf16.gmra.mxu0 %v14541_v22  ;;  %v24322_v8 = vld [vmem:[#allocation24_spill] sm:$0xff]  ;;  %v24343_v26 = vld [vmem:[#allocation279_spill] sm:$0xff] }
 0x69a   : > { %10216 = vmatpush1.bf16.msra.mxu0 %v24296_v48  ;;  %10287 = vmatpush1.bf16.msra.mxu1 %v24299_v30  ;;  %v24323_v48 = vpack.c.bf16 %v24321_v51, %v24322_v8  ;;  %v24327_v30 = vld [vmem:[#allocation269_spill] sm:$0xff]  ;;  %v24348_v8 = vld [vmem:[#allocation290_spill] sm:$0xff] }
 0x69b   : > { %10217 = vmatprep.subr.bf16.mxu0 %v24302_v56  ;;  %10288 = vmatprep.subr.bf16.mxu1 %v24305_v47  ;;  %v24329_v4 = vpack.c.bf16 %v24327_v30, %v24328_v3  ;;  %v14547_v56 = vld [vmem:[#allocation6 + $0x170] ss:$56 sps:$4 sm:$0xff]   ;;  %v24331_v47 = vld [vmem:[#allocation271_spill] sm:$0xff] }
 0x69c   : > { %8985 = vmatprep.mubr.bf16.mxu0 %v14542_v52  ;;  %v24332_v61 = vpack.c.bf16 %v24330_v55, %v24331_v47  ;;  %v21341_v3 = vld [vmem:[%s22878_s5 + $0x28] sm:$0xff]  ;;  %v24354_v55 = vld [vmem:[#allocation288_spill] sm:$0xff]  ;;  %v24355_v47 = vld [vmem:[#allocation287_spill] sm:$0xff] }
 0x69d   : > { %9049 = vmatmul.mubr.bf16.gmra.mxu1 %v14541_v22  ;;  %v14905_v22 = vmov 3  }
 0x69e   : > { %10218 = vmatpush1.bf16.msra.mxu0 %v24308_v0  ;;  %10289 = vmatpush1.bf16.msra.mxu1 %v24311_v50  ;;  %v24334_v0 = vld [vmem:[#allocation265_spill] sm:$0xff]  ;;  %v24337_v50 = vld [vmem:[#allocation283_spill] sm:$0xff] }
 0x69f   : > { %10219 = vmatprep.subr.bf16.mxu0 %v24314_v9  ;;  %10290 = vmatprep.subr.bf16.mxu1 %v24317_v2  ;;  %v24335_v32 = vpack.c.bf16 %v24333_v59, %v24334_v0  ;;  %v24338_v25 = vpack.c.bf16 %v24336_v24, %v24337_v50  ;;  %v21323_v2 = vld [vmem:[%s22878_s5 + $0x10] sm:$0xff]  ;;  %v24357_v59 = vld [vmem:[#allocation284_spill] sm:$0xff]  ;;  %v24358_v0 = vld [vmem:[#allocation281_spill] sm:$0xff]  ;;  %v21356_v24 = vpop.f32.mrf.mxu0 }
 0x6a0   : > { %9058 = vmatprep.mubr.bf16.mxu1 %v14542_v52  ;;  %14466 = vset.pattern.permute.xlu0 %v14905_v22  ;;  %v24324_v52 = vld [vmem:[#allocation274_spill] sm:$0xff] }
 0x6a1   : > { %8986 = vmatmul.mubr.bf16.gmra.mxu0 %v14544_v19  ;;  %11414 = vperm.xlu0 %14466, %v21281_v12   ;;  %v24326_v39 = vpack.c.bf16 %v24324_v52, %v24325_v36  ;;  %v24351_v36 = vld [vmem:[#allocation285_spill] sm:$0xff]  ;;  %v24360_v50 = vld [vmem:[#allocation126_spill] sm:$0xff] }
 0x6a2   : > { %10220 = vmatpush1.bf16.msra.mxu0 %v24320_v16  ;;  %10291 = vmatpush1.bf16.msra.mxu1 %v24323_v48  ;;  %v24346_v16 = vld [vmem:[#allocation273_spill] sm:$0xff]  ;;  %v24349_v48 = vld [vmem:[#allocation291_spill] sm:$0xff] }
 0x6a3   : > { %10221 = vmatprep.subr.bf16.mxu0 %v24326_v39  ;;  %10292 = vmatprep.subr.bf16.mxu1 %v24329_v4  ;;  %v24350_v52 = vpack.c.bf16 %v24348_v8, %v24349_v48  ;;  %v24352_v39 = vld [vmem:[#allocation286_spill] sm:$0xff]  ;;  %v21347_v4 = vld [vmem:[%s22878_s5 + $0x20] sm:$0xff]  ;;  %v24370_v48 = vld [vmem:[#allocation289_spill] sm:$0xff] }
 0x6a4   : > { %8995 = vmatprep.mubr.bf16.mxu0 %v14545_v6  ;;  %14467 = vset.pattern.permute.xlu1 %v14905_v22  ;;  %v24342_v22 = vld [vmem:[#allocation280_spill] sm:$0xff]  ;;  %v24353_v30 = vpack.c.bf16 %v24351_v36, %v24352_v39  ;;  %v24372_v39 = vld [vmem:[#allocation134_spill] sm:$0xff] }
 0x6a5   : > { %9059 = vmatmul.mubr.bf16.gmra.mxu1 %v14544_v19  ;;  %11418 = vperm.xlu1 %14467, %v21299_v44   ;;  %v24339_v19 = vld [vmem:[#allocation277_spill] sm:$0xff]  ;;  %v24344_v33 = vpack.c.bf16 %v24342_v22, %v24343_v26  ;;  %v21367_v22 = vld [vmem:[%s22878_s5 + $0x38] sm:$0xff]  ;;  %v24369_v8 = vld [vmem:[#allocation292_spill] sm:$0xff] }
 0x6a6   : > { %10222 = vmatpush1.bf16.msra.mxu0 %v24332_v61  ;;  %10293 = vmatpush1.bf16.msra.mxu1 %v24335_v32  ;;  %v24341_v9 = vpack.c.bf16 %v24339_v19, %v24340_v42  ;;  %v24356_v61 = vpack.c.bf16 %v24354_v55, %v24355_v47  ;;  %v24359_v32 = vpack.c.bf16 %v24357_v59, %v24358_v0  ;;  %v24363_v19 = vld [vmem:[#allocation293_spill] sm:$0xff]  ;;  %v24364_v42 = vld [vmem:[#allocation294_spill] sm:$0xff]  ;;  %v24375_v47 = vld [vmem:[#allocation135_spill] sm:$0xff]  ;;  %v21391_v0 = vpop.f32.mrf.mxu1 }
 0x6a7   : > { %10223 = vmatprep.subr.bf16.mxu0 %v24338_v25  ;;  %9068 = vmatprep.mubr.bf16.mxu1 %v14545_v6  ;;  %v24345_v6 = vld [vmem:[#allocation276_spill] sm:$0xff] }
 0x6a8   : > { %10294 = vmatprep.subr.bf16.mxu1 %v24341_v9  ;;  %11426 = vperm.xlu0 %14466, %v21317_v1   ;;  %v24347_v51 = vpack.c.bf16 %v24345_v6, %v24346_v16  ;;  %v24361_v25 = vld [vmem:[#allocation192_spill] sm:$0xff]  ;;  %v24365_v9 = vpack.c.bf16 %v24363_v19, %v24364_v42  ;;  %v24366_v16 = vld [vmem:[#allocation183_spill] sm:$0xff] }
 0x6a9   : > { %8996 = vmatmul.mubr.bf16.gmra.mxu0 %v14547_v56  ;;  %11422 = vperm.xlu1 %14467, %v21323_v2   ;;  %v24379_v19 = vld [vmem:[#allocation187_spill] sm:$0xff] }
 0x6aa   : > { %10224 = vmatpush1.bf16.msra.mxu0 %v24344_v33  ;;  %10295 = vmatpush1.bf16.msra.mxu1 %v24347_v51  ;;  %v21373_v33 = vld [vmem:[%s22878_s5 + $0x30] sm:$0xff] }
 0x6ab   : > { %10225 = vmatprep.subr.bf16.mxu0 %v24350_v52  ;;  %10296 = vmatprep.subr.bf16.mxu1 %v24353_v30  ;;  %v24371_v52 = vpack.c.bf16 %v24369_v8, %v24370_v48  ;;  %v24373_v30 = vld [vmem:[#allocation70_spill] sm:$0xff]  ;;  %v24384_v8 = vld [vmem:[#allocation195_spill] sm:$0xff] }
 0x6ac   : > { %10243 = vmatprep.mubr.bf16.mxu0 %v14550_v63  ;;  %11434 = vperm.xlu0 %14466, %v21341_v3   ;;  %v24374_v55 = vpack.c.bf16 %v24372_v39, %v24373_v30 }
 0x6ad   : > { %9069 = vmatmul.mubr.bf16.gmra.mxu1 %v14547_v56  ;;  %11430 = vperm.xlu1 %14467, %v21347_v4   ;;  %v24362_v56 = vpack.c.bf16 %v24360_v50, %v24361_v25 }
 0x6ae   : > { %10226 = vmatpush1.bf16.msra.mxu0 %v24356_v61  ;;  %10297 = vmatpush1.bf16.msra.mxu1 %v24359_v32  ;;  %v24376_v61 = vld [vmem:[#allocation69_spill] sm:$0xff] }
 0x6af   : > { %10227 = vmatprep.subr.bf16.mxu0 %v24362_v56  ;;  %10298 = vmatprep.subr.bf16.mxu1 %v24365_v9  ;;  %v24377_v59 = vpack.c.bf16 %v24375_v47, %v24376_v61  ;;  %v24378_v56 = vld [vmem:[#allocation125_spill] sm:$0xff]  ;;  %v24381_v9 = vld [vmem:[#allocation186_spill] sm:$0xff] }
 0x6b0   : > { %10316 = vmatprep.mubr.bf16.mxu1 %v14550_v63  ;;  %11442 = vperm.xlu0 %14466, %v21367_v22   ;;  %v24367_v63 = vld [vmem:[#allocation179_spill] sm:$0xff]  ;;  %v24380_v42 = vpack.c.bf16 %v24378_v56, %v24379_v19  ;;  %v24394_v19 = vld [vmem:[#allocation14_spill] sm:$0xff] }
 0x6b1   : > { %v7495_v26 = vpop.f32.mrf.mxu0  ;;  %11438 = vperm.xlu1 %14467, %v21373_v33   ;;  %v24368_v51 = vpack.c.bf16 %v24366_v16, %v24367_v63  ;;  %v24393_v56 = vld [vmem:[#allocation59_spill] sm:$0xff] }
 0x6b2   : > { %v21377_v6 = vadd.f32 %v7495_v26, %v20832_v58  ;;  %10299 = vmatpush1.bf16.msra.mxu1 %v24371_v52  ;;  %v24382_v26 = vld [vmem:[#allocation185_spill] sm:$0xff] }
 0x6b3   : > { %10228 = vmatpush2.bf16.msra.mxu0 %v24368_v51  ;;  %v7497_v36 = vpop.f32.mrf.mxu0  ;;  %10300 = vmatprep.subr.bf16.mxu1 %v24377_v59  ;;  %v24383_v16 = vpack.c.bf16 %v24381_v9, %v24382_v26  ;;  %v24387_v52 = vld [vmem:[#allocation73_spill] sm:$0xff]  ;;  %v24390_v59 = vld [vmem:[#allocation127_spill] sm:$0xff] }
 0x6b4   : > { %10229 = vmatprep.subr.bf16.mxu0 %v24374_v55  ;;  %v21394_v58 = vadd.f32 %v7497_v36, %v20857_v41  ;;  %v24385_v41 = vld [vmem:[#allocation194_spill] sm:$0xff]  ;;  %v24396_v26 = vld [vmem:[#allocation77_spill] sm:$0xff] }
 0x6b5   : > { %v7499_v32 = vpop.f32.mrf.mxu0  ;;  %v24386_v48 = vpack.c.bf16 %v24384_v8, %v24385_v41 }
 0x6b6   : > { %v21397_v50 = vadd.f32 %v7499_v32, %v20866_v10  ;;  %v7568_v25 = vpop.f32.mrf.mxu1  ;;  %10301 = vmatpush2.bf16.msra.mxu1 %v24383_v16  ;;  %v24388_v10 = vld [vmem:[#allocation71_spill] sm:$0xff]  ;;  %v24391_v32 = vld [vmem:[#allocation13_spill] sm:$0xff] }
 0x6b7   : > { %10230 = vmatpush2.bf16.msra.mxu0 %v24380_v42  ;;  %v21406_v63 = vadd.f32 %v7568_v25, %v20850_v13  ;;  %v7501_v51 = vpop.f32.mrf.mxu0  ;;  %v24389_v36 = vpack.c.bf16 %v24387_v52, %v24388_v10  ;;  %v24392_v25 = vpack.c.bf16 %v24390_v59, %v24391_v32  ;;  %v24395_v42 = vpack.c.bf16 %v24393_v56, %v24394_v19  ;;  %v24405_v59 = vld [vmem:[#allocation63_spill] sm:$0xff]  ;;  %v24406_v32 = vld [vmem:[#allocation64_spill] sm:$0xff]  ;;  %v24408_v19 = vld [vmem:[#allocation81_spill] sm:$0xff] }
 0x6b8   : > { %10231 = vmatprep.subr.bf16.mxu0 %v24386_v48  ;;  %v21415_v39 = vadd.f32 %v7501_v51, %v20881_v60  ;;  %v7570_v30 = vpop.f32.mrf.mxu1  ;;  %v24399_v51 = vld [vmem:[#allocation196_spill] sm:$0xff] }
 0x6b9   : > { %10302 = vmatprep.subr.bf16.mxu1 %v24389_v36  ;;  %v21418_v55 = vadd.f32 %v7570_v30, %v20863_v21  ;;  %v7505_v47 = vpop.f32.mrf.mxu0  ;;  %v24397_v21 = vld [vmem:[#allocation199_spill] sm:$0xff]  ;;  %v24402_v30 = vld [vmem:[#allocation66_spill] sm:$0xff] }
 0x6ba   : > { %v21421_v13 = vadd.f32 %v7505_v47, %v20888_v31  ;;  %v7572_v61 = vpop.f32.mrf.mxu1  ;;  %10303 = vmatpush2.bf16.msra.mxu1 %v24395_v42  ;;  %v24398_v16 = vpack.c.bf16 %v24396_v26, %v24397_v21  ;;  %v24400_v31 = vld [vmem:[#allocation197_spill] sm:$0xff] }
 0x6bb   : > { %10232 = vmatpush2.bf16.msra.mxu0 %v24392_v25  ;;  %v21430_v60 = vadd.f32 %v7572_v61, %v20875_v28  ;;  %v7507_v9 = vpop.f32.mrf.mxu0  ;;  %v24401_v8 = vpack.c.bf16 %v24399_v51, %v24400_v31  ;;  %v24403_v47 = vld [vmem:[#allocation189_spill] sm:$0xff]  ;;  %v24407_v25 = vpack.c.bf16 %v24405_v59, %v24406_v32 }
 0x6bc   : > { %10233 = vmatprep.subr.bf16.mxu0 %v24398_v16  ;;  %v21439_v41 = vadd.f32 %v7507_v9, %v20894_v23  ;;  %v7574_v48 = vpop.f32.mrf.mxu1  ;;  %v24404_v61 = vpack.c.bf16 %v24402_v30, %v24403_v47  ;;  %v24411_v9 = vld [vmem:[#allocation201_spill] sm:$0xff]  ;;  %v24417_v30 = vld [vmem:[#allocation67_spill] sm:$0xff]  ;;  %v24418_v47 = vld [vmem:[#allocation68_spill] sm:$0xff] }
 0x6bd   : > { %10304 = vmatprep.subr.bf16.mxu1 %v24401_v8  ;;  %v21442_v52 = vadd.f32 %v7574_v48, %v20885_v11  ;;  %v7509_v10 = vpop.f32.mrf.mxu0  ;;  %v24409_v11 = vld [vmem:[#allocation136_spill] sm:$0xff]  ;;  %v24414_v48 = vld [vmem:[#allocation131_spill] sm:$0xff]  ;;  %v24420_v32 = vld [vmem:[#allocation205_spill] sm:$0xff] }
 0x6be   : > { %v21445_v28 = vadd.f32 %v7509_v10, %v20904_v62  ;;  %v7578_v36 = vpop.f32.mrf.mxu1  ;;  %10305 = vmatpush2.bf16.msra.mxu1 %v24407_v25  ;;  %v24410_v42 = vpack.c.bf16 %v24408_v19, %v24409_v11  ;;  %v24412_v62 = vld [vmem:[#allocation200_spill] sm:$0xff] }
 0x6bf   : > { %10234 = vmatpush2.bf16.msra.mxu0 %v24404_v61  ;;  %v21454_v23 = vadd.f32 %v7578_v36, %v20891_v40  ;;  %v7511_v56 = vpop.f32.mrf.mxu0  ;;  %v24413_v26 = vpack.c.bf16 %v24411_v9, %v24412_v62  ;;  %v24415_v10 = vld [vmem:[#allocation132_spill] sm:$0xff]  ;;  %v24419_v61 = vpack.c.bf16 %v24417_v30, %v24418_v47 }
 0x6c0   : > { %10235 = vmatprep.subr.bf16.mxu0 %v24410_v42  ;;  %v21463_v21 = vadd.f32 %v7511_v56, %v20913_v29  ;;  %v7580_v16 = vpop.f32.mrf.mxu1  ;;  %v24416_v36 = vpack.c.bf16 %v24414_v48, %v24415_v10  ;;  %v24423_v56 = vld [vmem:[#allocation204_spill] sm:$0xff]  ;;  %v24429_v48 = vld [vmem:[#allocation137_spill] sm:$0xff] }
 0x6c1   : > { %10306 = vmatprep.subr.bf16.mxu1 %v24413_v26  ;;  %v21466_v51 = vadd.f32 %v7580_v16, %v20901_v7  ;;  %v7515_v31 = vpop.f32.mrf.mxu0  ;;  %v24421_v7 = vld [vmem:[#allocation206_spill] sm:$0xff]  ;;  %v24430_v10 = vld [vmem:[#allocation72_spill] sm:$0xff] }
 0x6c2   : > { %v21469_v40 = vadd.f32 %v7515_v31, %v20924_v35  ;;  %v7582_v8 = vpop.f32.mrf.mxu1  ;;  %10307 = vmatpush2.bf16.msra.mxu1 %v24419_v61  ;;  %v24422_v25 = vpack.c.bf16 %v24420_v32, %v24421_v7  ;;  %v24424_v35 = vld [vmem:[#allocation203_spill] sm:$0xff]  ;;  %v24426_v16 = vld [vmem:[#allocation74_spill] sm:$0xff]  ;;  %v24427_v31 = vld [vmem:[#allocation193_spill] sm:$0xff] }
 0x6c3   : > { %10236 = vmatpush2.bf16.msra.mxu0 %v24416_v36  ;;  %v21478_v29 = vadd.f32 %v7582_v8, %v20910_v46  ;;  %v7517_v59 = vpop.f32.mrf.mxu0  ;;  %v24425_v19 = vpack.c.bf16 %v24423_v56, %v24424_v35  ;;  %v24428_v8 = vpack.c.bf16 %v24426_v16, %v24427_v31  ;;  %v24431_v36 = vpack.c.bf16 %v24429_v48, %v24430_v10  ;;  %v24432_v47 = vld [vmem:[#allocation140_spill] sm:$0xff]  ;;  %v24441_v16 = vld [vmem:[#allocation75_spill] sm:$0xff]  ;;  %v24444_v10 = vld [vmem:[#allocation210_spill] sm:$0xff] }
 0x6c4   : > { %10237 = vmatprep.subr.bf16.mxu0 %v24422_v25  ;;  %v21487_v11 = vadd.f32 %v7517_v59, %v20940_v20  ;;  %v7584_v42 = vpop.f32.mrf.mxu1  ;;  %v24435_v59 = vld [vmem:[#allocation143_spill] sm:$0xff]  ;;  %v24442_v31 = vld [vmem:[#allocation76_spill] sm:$0xff] }
 0x6c5   : > { %10308 = vmatprep.subr.bf16.mxu1 %v24425_v19  ;;  %v21490_v9 = vadd.f32 %v7584_v42, %v20921_v5  ;;  %v7519_v62 = vpop.f32.mrf.mxu0  ;;  %v24433_v5 = vld [vmem:[#allocation207_spill] sm:$0xff]  ;;  %v24438_v42 = vld [vmem:[#allocation78_spill] sm:$0xff] }
 0x6c6   : > { %v21493_v46 = vadd.f32 %v7519_v62, %v20948_v17  ;;  %v7588_v26 = vpop.f32.mrf.mxu1  ;;  %10309 = vmatpush2.bf16.msra.mxu1 %v24431_v36  ;;  %v24434_v61 = vpack.c.bf16 %v24432_v47, %v24433_v5  ;;  %v24436_v17 = vld [vmem:[#allocation85_spill] sm:$0xff]  ;;  %v24439_v62 = vld [vmem:[#allocation198_spill] sm:$0xff] }
 0x6c7   : > { %10238 = vmatpush2.bf16.msra.mxu0 %v24428_v8  ;;  %v21502_v20 = vadd.f32 %v7588_v26, %v20933_v34  ;;  %v7521_v30 = vpop.f32.mrf.mxu0  ;;  %v24437_v32 = vpack.c.bf16 %v24435_v59, %v24436_v17  ;;  %v24440_v26 = vpack.c.bf16 %v24438_v42, %v24439_v62  ;;  %v24443_v8 = vpack.c.bf16 %v24441_v16, %v24442_v31  ;;  %v24453_v62 = vld [vmem:[#allocation79_spill] sm:$0xff] }
 0x6c8   : > { %10239 = vmatprep.subr.bf16.mxu0 %v24434_v61  ;;  %v21511_v7 = vadd.f32 %v7521_v30, %v20954_v53  ;;  %v7590_v25 = vpop.f32.mrf.mxu1  ;;  %v24447_v30 = vld [vmem:[#allocation89_spill] sm:$0xff]  ;;  %v24456_v31 = vld [vmem:[#allocation211_spill] sm:$0xff] }
 0x6c9   : > { %10310 = vmatprep.subr.bf16.mxu1 %v24437_v32  ;;  %v21514_v56 = vadd.f32 %v7590_v25, %v20945_v37  ;;  %v7525_v35 = vpop.f32.mrf.mxu0  ;;  %v24445_v37 = vld [vmem:[#allocation209_spill] sm:$0xff] }
 0x6ca   : > { %v21517_v34 = vadd.f32 %v7525_v35, %v20960_v27  ;;  %v7592_v19 = vpop.f32.mrf.mxu1  ;;  %10311 = vmatpush2.bf16.msra.mxu1 %v24443_v8  ;;  %v24446_v36 = vpack.c.bf16 %v24444_v10, %v24445_v37  ;;  %v24448_v27 = vld [vmem:[#allocation87_spill] sm:$0xff]  ;;  %v14548_v32 = vld [vmem:[#allocation6 + $0x28] ss:$56 sps:$4 sm:$0xff]   ;;  %v24450_v35 = vld [vmem:[#allocation82_spill] sm:$0xff] }
 0x6cb   : > { %10240 = vmatpush2.bf16.msra.mxu0 %v24440_v26  ;;  %v21526_v53 = vadd.f32 %v7592_v19, %v20951_v57  ;;  %v7527_v48 = vpop.f32.mrf.mxu0  ;;  %v24449_v47 = vpack.c.bf16 %v24447_v30, %v24448_v27  ;;  %v24451_v19 = vld [vmem:[#allocation202_spill] sm:$0xff]  ;;  %v24454_v26 = vld [vmem:[#allocation80_spill] sm:$0xff] }
 0x6cc   : > { %10241 = vmatprep.subr.bf16.mxu0 %v24446_v36  ;;  %v21535_v5 = vadd.f32 %v7527_v48, %v20966_v49  ;;  %v7594_v61 = vpop.f32.mrf.mxu1  ;;  %v24452_v42 = vpack.c.bf16 %v24450_v35, %v24451_v19  ;;  %v24455_v16 = vpack.c.bf16 %v24453_v62, %v24454_v26  ;;  %v24459_v48 = vld [vmem:[#allocation93_spill] sm:$0xff]  ;;  %v24460_v10 = vld [vmem:[#allocation144_spill] sm:$0xff]  ;;  %v14551_v36 = vld [vmem:[#allocation6 + $0x9c] ss:$56 sps:$4 sm:$0xff]  }
 0x6cd   : > { %10312 = vmatprep.subr.bf16.mxu1 %v24449_v47  ;;  %v21538_v59 = vadd.f32 %v7594_v61, %v20957_v54  ;;  %v7529_v17 = vpop.f32.mrf.mxu0  ;;  %v24457_v54 = vld [vmem:[#allocation212_spill] sm:$0xff]  ;;  %v24462_v47 = vld [vmem:[#allocation83_spill] sm:$0xff] }
 0x6ce   : > { %v21541_v57 = vadd.f32 %v7529_v17, %v20976_v14  ;;  %v7598_v25 = vpop.f32.mrf.mxu1  ;;  %10313 = vmatpush2.bf16.msra.mxu1 %v24455_v16  ;;  %v24458_v8 = vpack.c.bf16 %v24456_v31, %v24457_v54  ;;  %v24461_v14 = vpack.c.bf16 %v24459_v48, %v24460_v10  ;;  %v24463_v61 = vld [vmem:[#allocation84_spill] sm:$0xff]  ;;  %v24471_v16 = vld [vmem:[#allocation214_spill] sm:$0xff] }
 0x6cf   : > { %10242 = vmatpush2.bf16.msra.mxu0 %v24452_v42  ;;  %v21550_v49 = vadd.f32 %v7598_v25, %v20963_v38  ;;  %v24464_v17 = vpack.c.bf16 %v24462_v47, %v24463_v61  ;;  %v24465_v38 = vld [vmem:[#allocation86_spill] sm:$0xff]  ;;  %v24466_v25 = vld [vmem:[#allocation139_spill] sm:$0xff]  ;;  %v24469_v62 = vld [vmem:[#allocation216_spill] sm:$0xff] }
 0x6d0   : > { %10314 = vmatprep.subr.bf16.mxu1 %v24458_v8  ;;  %11235 = vmatprep.subr.bf16.mxu0 %v24461_v14  ;;  %v7600_v37 = vpop.f32.mrf.mxu1  ;;  %v24467_v35 = vpack.c.bf16 %v24465_v38, %v24466_v25  ;;  %v24468_v42 = vld [vmem:[#allocation215_spill] sm:$0xff]  ;;  %v24474_v8 = vld [vmem:[#allocation90_spill] sm:$0xff]  ;;  %v24475_v48 = vld [vmem:[#allocation208_spill] sm:$0xff] }
 0x6d1   : > { %v21559_v30 = vadd.f32 %v7600_v37, %v20973_v18  ;;  %v24470_v26 = vpack.c.bf16 %v24468_v42, %v24469_v62  ;;  %v24472_v18 = vld [vmem:[#allocation150_spill] sm:$0xff]  ;;  %v24476_v10 = vpack.c.bf16 %v24474_v8, %v24475_v48  ;;  %v24477_v14 = vld [vmem:[#allocation149_spill] sm:$0xff]  ;;  %v24478_v37 = vld [vmem:[#allocation88_spill] sm:$0xff] }
 0x6d2   : > { %10244 = vmatmul.mubr.bf16.vlgmr.msra.gmra.mxu0 %v14548_v32  ;;  %v7602_v27 = vpop.f32.mrf.mxu1  ;;  %10315 = vmatpush2.bf16.msra.mxu1 %v24464_v17  ;;  %v24473_v31 = vpack.c.bf16 %v24471_v16, %v24472_v18  ;;  %v14553_v54 = vld [vmem:[#allocation6 + $0x98] ss:$56 sps:$4 sm:$0xff]   ;;  %v24479_v47 = vpack.c.bf16 %v24477_v14, %v24478_v37  ;;  %v24484_v38 = vld [vmem:[#allocation100_spill] sm:$0xff]  ;;  %v24487_v42 = vld [vmem:[#allocation213_spill] sm:$0xff] }
 0x6d3   : > { %11236 = vmatpush1.bf16.msra.mxu0 %v24467_v35  ;;  %v21568_v19 = vadd.f32 %v7602_v27, %v20982_v15  ;;  %10253 = vmatprep.mubr.bf16.mxu0 %v14551_v36  ;;  %v24480_v15 = vld [vmem:[#allocation219_spill] sm:$0xff]  ;;  %v24481_v27 = vld [vmem:[#allocation220_spill] sm:$0xff] }
 0x6d4   : > { %11237 = vmatprep.subr.bf16.mxu0 %v24470_v26  ;;  %11308 = vmatprep.subr.bf16.mxu1 %v24473_v31  ;;  %v24482_v61 = vpack.c.bf16 %v24480_v15, %v24481_v27  ;;  %v24483_v17 = vld [vmem:[#allocation99_spill] sm:$0xff]  ;;  %v14554_v35 = vld [vmem:[#allocation6 + $0x10c] ss:$56 sps:$4 sm:$0xff]   ;;  %v24492_v31 = vld [vmem:[#allocation178_spill] sm:$0xff] }
 0x6d5   : > { %10317 = vmatmul.mubr.bf16.vlgmr.msra.gmra.mxu1 %v14548_v32  ;;  %v24485_v25 = vpack.c.bf16 %v24483_v17, %v24484_v38  ;;  %v24486_v32 = vld [vmem:[#allocation94_spill] sm:$0xff]  ;;  %v24489_v26 = vld [vmem:[#allocation91_spill] sm:$0xff]  ;;  %v24490_v16 = vld [vmem:[#allocation92_spill] sm:$0xff] }
 0x6d6   : > { %11309 = vmatpush1.bf16.msra.mxu1 %v24479_v47  ;;  %10326 = vmatprep.mubr.bf16.mxu1 %v14551_v36  ;;  %v24488_v62 = vpack.c.bf16 %v24486_v32, %v24487_v42  ;;  %v24491_v18 = vpack.c.bf16 %v24489_v26, %v24490_v16  ;;  %v24493_v8 = vld [vmem:[#allocation104_spill] sm:$0xff]  ;;  %v24496_v14 = vld [vmem:[#allocation171_spill] sm:$0xff]  ;;  %v24498_v47 = vld [vmem:[#allocation98_spill] sm:$0xff] }
 0x6d7   : > { %11238 = vmatpush1.bf16.msra.mxu0 %v24476_v10  ;;  %11310 = vmatprep.subr.bf16.mxu1 %v24485_v25  ;;  %v24494_v48 = vpack.c.bf16 %v24492_v31, %v24493_v8  ;;  %v24495_v10 = vld [vmem:[#allocation102_spill] sm:$0xff]  ;;  %v14556_v36 = vld [vmem:[#allocation6 + $0x108] ss:$56 sps:$4 sm:$0xff]   ;;  %v24504_v25 = vld [vmem:[#allocation175_spill] sm:$0xff] }
 0x6d8   : > { %11239 = vmatprep.subr.bf16.mxu0 %v24482_v61  ;;  %v24497_v37 = vpack.c.bf16 %v24495_v10, %v24496_v14  ;;  %v24499_v15 = vld [vmem:[#allocation97_spill] sm:$0xff]  ;;  %v24501_v61 = vld [vmem:[#allocation95_spill] sm:$0xff]  ;;  %v24502_v17 = vld [vmem:[#allocation96_spill] sm:$0xff] }
 0x6d9   : > { %v24500_v27 = vpack.c.bf16 %v24498_v47, %v24499_v15  ;;  %v24503_v38 = vpack.c.bf16 %v24501_v61, %v24502_v17  ;;  %v24505_v32 = vld [vmem:[#allocation222_spill] sm:$0xff]  ;;  %v24508_v26 = vld [vmem:[#allocation221_spill] sm:$0xff] }
 0x6da   : > { %10254 = vmatmul.mubr.bf16.gmra.mxu0 %v14553_v54  ;;  %11311 = vmatpush1.bf16.msra.mxu1 %v24491_v18  ;;  %v24506_v42 = vpack.c.bf16 %v24504_v25, %v24505_v32  ;;  %v14557_v18 = vld [vmem:[#allocation6 + $0x17c] ss:$56 sps:$4 sm:$0xff]   ;;  %v24511_v31 = vld [vmem:[#allocation165_spill] sm:$0xff] }
 0x6db   : > { %11240 = vmatpush1.bf16.msra.mxu0 %v24488_v62  ;;  %11312 = vmatprep.subr.bf16.mxu1 %v24497_v37  ;;  %v24507_v62 = vld [vmem:[#allocation168_spill] sm:$0xff]  ;;  %v24514_v10 = vld [vmem:[#allocation217_spill] sm:$0xff]  ;;  %v24517_v47 = vld [vmem:[#allocation226_spill] sm:$0xff] }
 0x6dc   : > { %11241 = vmatprep.subr.bf16.mxu0 %v24494_v48  ;;  %10263 = vmatprep.mubr.bf16.mxu0 %v14554_v35  ;;  %v24509_v16 = vpack.c.bf16 %v24507_v62, %v24508_v26  ;;  %v24513_v48 = vld [vmem:[#allocation218_spill] sm:$0xff]  ;;  %v24516_v37 = vld [vmem:[#allocation228_spill] sm:$0xff]  ;;  %v24520_v61 = vld [vmem:[#allocation37_spill] sm:$0xff] }
 0x6dd   : > { %10327 = vmatmul.mubr.bf16.gmra.mxu1 %v14553_v54  ;;  %v24510_v54 = vld [vmem:[#allocation101_spill] sm:$0xff]  ;;  %v24515_v14 = vpack.c.bf16 %v24513_v48, %v24514_v10  ;;  %v24518_v15 = vpack.c.bf16 %v24516_v37, %v24517_v47  ;;  %v24523_v25 = vld [vmem:[#allocation223_spill] sm:$0xff]  ;;  %v24535_v37 = vld [vmem:[#allocation232_spill] sm:$0xff] }
 0x6de   : > { %11313 = vmatpush1.bf16.msra.mxu1 %v24503_v38  ;;  %10336 = vmatprep.mubr.bf16.mxu1 %v14554_v35  ;;  %v24512_v8 = vpack.c.bf16 %v24510_v54, %v24511_v31  ;;  %v14559_v35 = vld [vmem:[#allocation6 + $0x178] ss:$56 sps:$4 sm:$0xff]   ;;  %v24522_v38 = vld [vmem:[#allocation224_spill] sm:$0xff]  ;;  %v24526_v62 = vld [vmem:[#allocation181_spill] sm:$0xff] }
 0x6df   : > { %11242 = vmatpush1.bf16.msra.mxu0 %v24500_v27  ;;  %11314 = vmatprep.subr.bf16.mxu1 %v24509_v16  ;;  %v24519_v27 = vld [vmem:[#allocation225_spill] sm:$0xff]  ;;  %v24524_v32 = vpack.c.bf16 %v24522_v38, %v24523_v25  ;;  %v24528_v16 = vld [vmem:[#allocation235_spill] sm:$0xff]  ;;  %v24529_v54 = vld [vmem:[#allocation236_spill] sm:$0xff] }
 0x6e0   : > { %11243 = vmatprep.subr.bf16.mxu0 %v24506_v42  ;;  %v24521_v17 = vpack.c.bf16 %v24519_v27, %v24520_v61  ;;  %v24525_v42 = vld [vmem:[#allocation188_spill] sm:$0xff]  ;;  %v24530_v31 = vpack.c.bf16 %v24528_v16, %v24529_v54  ;;  %v24532_v48 = vld [vmem:[#allocation231_spill] sm:$0xff]  ;;  %v24549_v54 = vld [vmem:[#allocation237_spill] sm:$0xff] }
 0x6e1   : > { %v24527_v26 = vpack.c.bf16 %v24525_v42, %v24526_v62  ;;  %v24538_v27 = vld [vmem:[#allocation227_spill] sm:$0xff] }
 0x6e2   : > { %10264 = vmatmul.mubr.bf16.gmra.mxu0 %v14556_v36  ;;  %11315 = vmatpush1.bf16.msra.mxu1 %v24515_v14  ;;  %v14562_v14 = vld [vmem:[#allocation6 + $0x34] ss:$56 sps:$4 sm:$0xff]   ;;  %v24541_v38 = vld [vmem:[#allocation243_spill] sm:$0xff] }
 0x6e3   : > { %11244 = vmatpush1.bf16.msra.mxu0 %v24512_v8  ;;  %11316 = vmatprep.subr.bf16.mxu1 %v24521_v17  ;;  %v24531_v8 = vld [vmem:[#allocation230_spill] sm:$0xff]  ;;  %v24544_v42 = vld [vmem:[#allocation239_spill] sm:$0xff] }
 0x6e4   : > { %11245 = vmatprep.subr.bf16.mxu0 %v24518_v15  ;;  %10273 = vmatprep.mubr.bf16.mxu0 %v14557_v18  ;;  %v24533_v10 = vpack.c.bf16 %v24531_v8, %v24532_v48  ;;  %v24537_v15 = vld [vmem:[#allocation229_spill] sm:$0xff]  ;;  %v24540_v17 = vld [vmem:[#allocation42_spill] sm:$0xff] }
 0x6e5   : > { %10337 = vmatmul.mubr.bf16.gmra.mxu1 %v14556_v36  ;;  %v24534_v36 = vld [vmem:[#allocation233_spill] sm:$0xff]  ;;  %v24539_v61 = vpack.c.bf16 %v24537_v15, %v24538_v27  ;;  %v24542_v25 = vpack.c.bf16 %v24540_v17, %v24541_v38  ;;  %v24558_v27 = vld [vmem:[#allocation295_spill] sm:$0xff]  ;;  %v24561_v17 = vld [vmem:[#allocation244_spill] sm:$0xff] }
 0x6e6   : > { %11317 = vmatpush1.bf16.msra.mxu1 %v24527_v26  ;;  %10346 = vmatprep.mubr.bf16.mxu1 %v14557_v18  ;;  %v24536_v47 = vpack.c.bf16 %v24534_v36, %v24535_v37  ;;  %v24546_v18 = vld [vmem:[#allocation241_spill] sm:$0xff]  ;;  %v24547_v26 = vld [vmem:[#allocation240_spill] sm:$0xff]  ;;  %v24555_v37 = vld [vmem:[#allocation246_spill] sm:$0xff] }
 0x6e7   : > { %11246 = vmatpush1.bf16.msra.mxu0 %v24524_v32  ;;  %11318 = vmatprep.subr.bf16.mxu1 %v24533_v10  ;;  %v24543_v32 = vld [vmem:[#allocation238_spill] sm:$0xff]  ;;  %v24548_v16 = vpack.c.bf16 %v24546_v18, %v24547_v26  ;;  %v24552_v48 = vld [vmem:[#allocation297_spill] sm:$0xff]  ;;  %v24567_v18 = vld [vmem:[#allocation300_spill] sm:$0xff] }
 0x6e8   : > { %11247 = vmatprep.subr.bf16.mxu0 %v24530_v31  ;;  %v24545_v62 = vpack.c.bf16 %v24543_v32, %v24544_v42  ;;  %v24550_v31 = vld [vmem:[#allocation234_spill] sm:$0xff]  ;;  %v24564_v32 = vld [vmem:[#allocation305_spill] sm:$0xff] }
 0x6e9   : > { %v24551_v8 = vpack.c.bf16 %v24549_v54, %v24550_v31  ;;  %v24553_v10 = vld [vmem:[#allocation298_spill] sm:$0xff]  ;;  %v24568_v26 = vld [vmem:[#allocation301_spill] sm:$0xff]  ;;  %v14906_v54 = vmov 4   ;;  %v14907_v31 = vmov 5  }
 0x6ea   : > { %10274 = vmatmul.mubr.bf16.gmra.mxu0 %v14559_v35  ;;  %11319 = vmatpush1.bf16.msra.mxu1 %v24539_v61  ;;  %v24554_v36 = vpack.c.bf16 %v24552_v48, %v24553_v10  ;;  %v24562_v38 = vld [vmem:[#allocation242_spill] sm:$0xff]  ;;  %v24573_v10 = vld [vmem:[#allocation299_spill] sm:$0xff] }
 0x6eb   : > { %11248 = vmatpush1.bf16.msra.mxu0 %v24536_v47  ;;  %11320 = vmatprep.subr.bf16.mxu1 %v24545_v62  ;;  %v24556_v47 = vld [vmem:[#allocation247_spill] sm:$0xff]  ;;  %v24565_v42 = vld [vmem:[#allocation306_spill] sm:$0xff] }
 0x6ec   : > { %11249 = vmatprep.subr.bf16.mxu0 %v24542_v25  ;;  %13489 = vmatprep.mubr.msk.bf16.mxu0 %vm11222_vm2, %v14562_v14  ;;  %v24557_v15 = vpack.c.bf16 %v24555_v37, %v24556_v47  ;;  %v24563_v25 = vpack.c.bf16 %v24561_v17, %v24562_v38  ;;  %v24566_v62 = vpack.c.bf16 %v24564_v32, %v24565_v42  ;;  %v24576_v47 = vld [vmem:[#allocation313_spill] sm:$0xff]  ;;  %v24582_v38 = vld [vmem:[#allocation311_spill] sm:$0xff] }
 0x6ed   : > { %10347 = vmatmul.mubr.bf16.gmra.mxu1 %v14559_v35  ;;  %v24559_v35 = vld [vmem:[#allocation45_spill] sm:$0xff]  ;;  %14468 = vset.pattern.permute.xlu1 %v14906_v54  ;;  %v24585_v42 = vld [vmem:[#allocation307_spill] sm:$0xff] }
 0x6ee   : > { %11321 = vmatpush1.bf16.msra.mxu1 %v24551_v8  ;;  %13493 = vmatprep.mubr.msk.bf16.mxu1 %vm11222_vm2, %v14562_v14  ;;  %v24560_v61 = vpack.c.bf16 %v24558_v27, %v24559_v35  ;;  %v24570_v14 = vld [vmem:[#allocation303_spill] sm:$0xff]  ;;  %v24571_v8 = vld [vmem:[#allocation302_spill] sm:$0xff]  ;;  %v24579_v35 = vld [vmem:[#allocation308_spill] sm:$0xff] }
 0x6ef   : > { %11250 = vmatpush1.bf16.msra.mxu0 %v24548_v16  ;;  %11322 = vmatprep.subr.bf16.mxu1 %v24557_v15  ;;  %v24569_v16 = vpack.c.bf16 %v24567_v18, %v24568_v26  ;;  %v24572_v48 = vpack.c.bf16 %v24570_v14, %v24571_v8  ;;  %v24577_v15 = vld [vmem:[#allocation314_spill] sm:$0xff]  ;;  %v24588_v26 = vld [vmem:[#allocation321_spill] sm:$0xff]  ;;  %v24591_v8 = vld [vmem:[#allocation316_spill] sm:$0xff] }
 0x6f0   : > { %11259 = vmatprep.subr.bf16.mxu0 %v24554_v36  ;;  %14471 = vset.pattern.permute.xlu0 %v14907_v31  ;;  %v24574_v36 = vld [vmem:[#allocation296_spill] sm:$0xff]  ;;  %v24578_v27 = vpack.c.bf16 %v24576_v47, %v24577_v15  ;;  %v24595_v47 = vld [vmem:[#allocation318_spill] sm:$0xff] }
 0x6f1   : > { %v24575_v37 = vpack.c.bf16 %v24573_v10, %v24574_v36  ;;  %11718 = vperm.xlu1 %14468, %v21373_v33   ;;  %11774 = vperm.xlu0 %14471, %v21347_v4   ;;  %v14560_v36 = vld [vmem:[#allocation6 + $0x30] ss:$56 sps:$4 sm:$0xff]  }
 0x6f2   : > { %11323 = vmatpush1.bf16.msra.mxu1 %v24563_v25  ;;  %v24583_v25 = vld [vmem:[#allocation310_spill] sm:$0xff] }
 0x6f3   : > { %11260 = vmatpush2.bf16.msra.mxu0 %v24560_v61  ;;  %11332 = vmatprep.subr.bf16.mxu1 %v24569_v16  ;;  %v24580_v61 = vld [vmem:[#allocation309_spill] sm:$0xff]  ;;  %v24584_v32 = vpack.c.bf16 %v24582_v38, %v24583_v25  ;;  %v24589_v16 = vld [vmem:[#allocation322_spill] sm:$0xff]  ;;  %v24600_v38 = vld [vmem:[#allocation324_spill] sm:$0xff] }
 0x6f4   : > { %11261 = vmatprep.subr.bf16.mxu0 %v24566_v62  ;;  %v24581_v17 = vpack.c.bf16 %v24579_v35, %v24580_v61  ;;  %v24586_v62 = vld [vmem:[#allocation304_spill] sm:$0xff]  ;;  %v24590_v14 = vpack.c.bf16 %v24588_v26, %v24589_v16  ;;  %v24601_v25 = vld [vmem:[#allocation325_spill] sm:$0xff]  ;;  %v24606_v16 = vmov 0  }
 0x6f5   : > { %v24587_v18 = vpack.c.bf16 %v24585_v42, %v24586_v62  ;;  %14469 = vset.pattern.permute.xlu1 %v14907_v31  ;;  %14472 = vset.pattern.permute.xlu0 %v14906_v54  ;;  %v24598_v35 = vld [vmem:[#allocation312_spill] sm:$0xff]  ;;  %v24603_v42 = vld [vmem:[#allocation323_spill] sm:$0xff]  ;;  %v14566_v26 = vld [vmem:[#allocation6 + $0x114] ss:$56 sps:$4 sm:$0xff]  }
 0x6f6   : > { %11333 = vmatpush2.bf16.msra.mxu1 %v24575_v37  ;;  %11782 = vperm.xlu1 %14469, %v21373_v33   ;;  %v24594_v37 = vld [vmem:[#allocation319_spill] sm:$0xff]  ;;  %v24604_v33 = vld [vmem:[#allocation320_spill] sm:$0xff] }
 0x6f7   : > { %11262 = vmatpush2.bf16.msra.mxu0 %v24572_v48  ;;  %11334 = vmatprep.subr.bf16.mxu1 %v24581_v17  ;;  %v24592_v48 = vld [vmem:[#allocation317_spill] sm:$0xff]  ;;  %v24596_v15 = vpack.c.bf16 %v24594_v37, %v24595_v47  ;;  %v14563_v17 = vld [vmem:[#allocation6 + $0xa4] ss:$56 sps:$4 sm:$0xff]   ;;  %v24605_v62 = vpack.c.bf16 %v24603_v42, %v24604_v33 }
 0x6f8   : > { %11263 = vmatprep.subr.bf16.mxu0 %v24578_v27  ;;  %v24593_v10 = vpack.c.bf16 %v24591_v8, %v24592_v48  ;;  %11722 = vperm.xlu0 %14472, %v21367_v22   ;;  %v24597_v27 = vld [vmem:[#allocation315_spill] sm:$0xff] }
 0x6f9   : > { %v24599_v61 = vpack.c.bf16 %v24597_v27, %v24598_v35 }
 0x6fa   : > { %11335 = vmatpush2.bf16.msra.mxu1 %v24587_v18  ;;  %11786 = vperm.xlu1 %14469, %v21367_v22   ;;  %v14565_v18 = vld [vmem:[#allocation6 + $0xa0] ss:$56 sps:$4 sm:$0xff]   ;;  %v14569_v22 = vld [vmem:[#allocation6 + $0x184] ss:$56 sps:$4 sm:$0xff]  }
 0x6fb   : > { %11264 = vmatpush2.bf16.msra.mxu0 %v24584_v32  ;;  %11336 = vmatprep.subr.bf16.mxu1 %v24593_v10  ;;  %v24602_v32 = vpack.c.bf16 %v24600_v38, %v24601_v25 }
 0x6fc   : > { %11265 = vmatprep.subr.bf16.mxu0 %v24590_v14  ;;  %11710 = vperm.xlu0 %14472, %v21347_v4   ;;  %v14568_v4 = vld [vmem:[#allocation6 + $0x110] ss:$56 sps:$4 sm:$0xff]  }
 0x6fe   : > { %11337 = vmatpush2.bf16.msra.mxu1 %v24599_v61  ;;  %14470 = vset.pattern.permute.xlu1 %v14906_v54 }
 0x6ff   : > { %11266 = vmatpush2.bf16.msra.mxu0 %v24596_v15  ;;  %11338 = vmatprep.subr.bf16.mxu1 %v24602_v32 }
 0x700   : > { %11714 = vperm.xlu1 %14470, %v21341_v3   ;;  %11706 = vperm.xlu0 %14472, %v21317_v1  }
 0x702   : > { %11268 = vmatmul.mubr.bf16.vlgmr.msra.gmra.mxu0 %v14560_v36  ;;  %11339 = vmatpush2.bf16.msra.mxu1 %v24605_v62 }
 0x703   : > { %13490 = vmatprep.mubr.msk.bf16.mxu0 %vm11222_vm2, %v14563_v17 }
 0x704   : > { %14473 = vset.pattern.permute.xlu1 %v14907_v31  ;;  %11694 = vperm.xlu0 %14472, %v21281_v12  }
 0x705   : > { %11341 = vmatmul.mubr.bf16.vlgmr.msra.gmra.mxu1 %v14560_v36  ;;  %11778 = vperm.xlu1 %14473, %v21341_v3   ;;  %v14571_v3 = vld [vmem:[#allocation6 + $0x180] ss:$56 sps:$4 sm:$0xff]  }
 0x706   : > { %13494 = vmatprep.mubr.msk.bf16.mxu1 %vm11222_vm2, %v14563_v17 }
 0x708   : > { %14477 = vset.pattern.permute.xlu0 %v14907_v31 }
 0x709   : > { %14474 = vset.pattern.permute.xlu1 %v14906_v54  ;;  %11758 = vperm.xlu0 %14477, %v21281_v12   ;;  %v21736_v12 = vpop.f32.mrf.mxu0 }
 0x70a   : > { %11278 = vmatmul.mubr.bf16.gmra.mxu0 %v14565_v18  ;;  %11702 = vperm.xlu1 %14474, %v21323_v2  }
 0x70b   : > { %13491 = vmatprep.mubr.msk.bf16.mxu0 %vm11222_vm2, %v14566_v26 }
 0x70d   : > { %11351 = vmatmul.mubr.bf16.gmra.mxu1 %v14565_v18  ;;  %14480 = vset.pattern.permute.xlu0 %v24606_v16 }
 0x70e   : > { %13495 = vmatprep.mubr.msk.bf16.mxu1 %vm11222_vm2, %v14566_v26  ;;  %14475 = vset.pattern.permute.xlu1 %v14907_v31 }
 0x70f   : > { %11766 = vperm.xlu1 %14475, %v21323_v2  }
 0x712   : > { %11288 = vmatmul.mubr.bf16.gmra.mxu0 %v14568_v4 }
 0x713   : > { %13492 = vmatprep.mubr.msk.bf16.mxu0 %vm11222_vm2, %v14569_v22  ;;  %11770 = vperm.xlu1 %14475, %v21317_v1   ;;  %v21741_v1 = vpop.f32.mrf.mxu1 }
 0x715   : > { %11361 = vmatmul.mubr.bf16.gmra.mxu1 %v14568_v4 }
 0x716   : > { %13496 = vmatprep.mubr.msk.bf16.mxu1 %vm11222_vm2, %v14569_v22 }
 0x717   : > { %14476 = vset.pattern.permute.xlu1 %v14906_v54 }
 0x718   : > { %11698 = vperm.xlu1 %14476, %v21299_v44  }
 0x71a   : > { %11298 = vmatmul.mubr.bf16.gmra.mxu0 %v14571_v3 }
 0x71b   : > { %12177 = vmatprep.mubr.bf16.mxu0 %v24606_v16 }
 0x71c   : > { %14478 = vset.pattern.permute.xlu1 %v14907_v31 }
 0x71d   : > { %11371 = vmatmul.mubr.bf16.gmra.mxu1 %v14571_v3  ;;  %11762 = vperm.xlu1 %14478, %v21299_v44  }
 0x71e   : > { %12220 = vmatprep.mubr.bf16.mxu1 %v24606_v16 }
 0x721   : > { %14479 = vset.pattern.permute.xlu1 %v24606_v16 }
 0x751   : > { %v8967_v2 = vpop.f32.mrf.mxu0 }
 0x752   : > { %v21739_v14 = vadd.f32 %v8967_v2, %v21377_v6 }
 0x753   : > { %v8969_v8 = vpop.f32.mrf.mxu0 }
 0x754   : > { %v21744_v54 = vadd.f32 %v8969_v8, %v21394_v58 }
 0x755   : > { %v8971_v48 = vpop.f32.mrf.mxu0  ;;  %v9040_v10 = vpop.f32.mrf.mxu1 }
 0x756   : > { %v21747_v31 = vadd.f32 %v8971_v48, %v21397_v50  ;;  %v21750_v44 = vadd.f32 %v9040_v10, %v21406_v63 }
 0x757   : > { %v8973_v36 = vpop.f32.mrf.mxu0  ;;  %v9042_v37 = vpop.f32.mrf.mxu1 }
 0x758   : > { %v21753_v47 = vadd.f32 %v8973_v36, %v21415_v39  ;;  %v21756_v6 = vadd.f32 %v9042_v37, %v21418_v55 }
 0x759   : > { %v8977_v15 = vpop.f32.mrf.mxu0  ;;  %v9044_v27 = vpop.f32.mrf.mxu1 }
 0x75a   : > { %v21759_v58 = vadd.f32 %v8977_v15, %v21421_v13  ;;  %v21762_v35 = vadd.f32 %v9044_v27, %v21430_v60 }
 0x75b   : > { %v8979_v50 = vpop.f32.mrf.mxu0  ;;  %v9046_v61 = vpop.f32.mrf.mxu1 }
 0x75c   : > { %v21765_v63 = vadd.f32 %v8979_v50, %v21439_v41  ;;  %v21768_v17 = vadd.f32 %v9046_v61, %v21442_v52 }
 0x75d   : > { %v8981_v39 = vpop.f32.mrf.mxu0  ;;  %v9050_v38 = vpop.f32.mrf.mxu1 }
 0x75e   : > { %v21771_v55 = vadd.f32 %v8981_v39, %v21445_v28  ;;  %v21774_v25 = vadd.f32 %v9050_v38, %v21454_v23 }
 0x75f   : > { %v8983_v13 = vpop.f32.mrf.mxu0  ;;  %v9052_v32 = vpop.f32.mrf.mxu1 }
 0x760   : > { %v21777_v60 = vadd.f32 %v8983_v13, %v21463_v21  ;;  %v21780_v42 = vadd.f32 %v9052_v32, %v21466_v51 }
 0x761   : > { %v8987_v41 = vpop.f32.mrf.mxu0  ;;  %v9054_v33 = vpop.f32.mrf.mxu1 }
 0x762   : > { %v21783_v52 = vadd.f32 %v8987_v41, %v21469_v40  ;;  %v21786_v62 = vadd.f32 %v9054_v33, %v21478_v29 }
 0x763   : > { %v8989_v28 = vpop.f32.mrf.mxu0  ;;  %v9056_v18 = vpop.f32.mrf.mxu1 }
 0x764   : > { %v21789_v23 = vadd.f32 %v8989_v28, %v21487_v11  ;;  %v21792_v26 = vadd.f32 %v9056_v18, %v21490_v9 }
 0x765   : > { %v8991_v21 = vpop.f32.mrf.mxu0  ;;  %v9060_v4 = vpop.f32.mrf.mxu1 }
 0x766   : > { %v21795_v51 = vadd.f32 %v8991_v21, %v21493_v46  ;;  %v21798_v22 = vadd.f32 %v9060_v4, %v21502_v20 }
 0x767   : > { %v8993_v40 = vpop.f32.mrf.mxu0  ;;  %v9062_v16 = vpop.f32.mrf.mxu1 }
 0x768   : > { %24607 = vst [vmem:[#allocation46_spill] sm:$0xff] %v21798_v22  ;;  %v21801_v29 = vadd.f32 %v8993_v40, %v21511_v7  ;;  %v21804_v3 = vadd.f32 %v9062_v16, %v21514_v56 }
 0x769   : > { %v8997_v11 = vpop.f32.mrf.mxu0  ;;  %v9064_v2 = vpop.f32.mrf.mxu1 }
 0x76a   : > { %24608 = vst [vmem:[#allocation31_spill] sm:$0xff] %v21801_v29  ;;  %24609 = vst [vmem:[#allocation34_spill] sm:$0xff] %v21804_v3  ;;  %v21807_v9 = vadd.f32 %v8997_v11, %v21517_v34  ;;  %v21810_v8 = vadd.f32 %v9064_v2, %v21526_v53 }
 0x76b   : > { %v9066_v46 = vpop.f32.mrf.mxu1  ;;  %v8999_v7 = vpop.f32.mrf.mxu0 }
 0x76c   : > { %24610 = vst [vmem:[#allocation326_spill] sm:$0xff] %v21807_v9  ;;  %24611 = vst [vmem:[#allocation52_spill] sm:$0xff] %v21810_v8  ;;  %v21813_v20 = vadd.f32 %v9066_v46, %v21538_v59 }
 0x76d   : > { %v9070_v48 = vpop.f32.mrf.mxu1  ;;  %v9001_v36 = vpop.f32.mrf.mxu0 }
 0x76e   : > { %24612 = vst [vmem:[#allocation58_spill] sm:$0xff] %v21813_v20  ;;  %v21816_v10 = vadd.f32 %v9070_v48, %v21550_v49 }
 0x76f   : > { %v9072_v56 = vpop.f32.mrf.mxu1  ;;  %v9003_v37 = vpop.f32.mrf.mxu0 }
 0x770   : > { %24613 = vst [vmem:[#allocation20_spill] sm:$0xff] %v21816_v10 }
 0x771   : > { %v9074_v15 = vpop.f32.mrf.mxu1 }
 0x773   : > { %v21818_v50 = vpop.f32.mrf.mxu1 }
 0x774   : > { %24614 = vst [vmem:[#allocation23_spill] sm:$0xff] %v21818_v50 }
 0x792   : > { %v10245_v27 = vpop.f32.mrf.mxu0 }
 0x794   : > { %v10247_v34 = vpop.f32.mrf.mxu0 }
 0x795   : > { %v10318_v53 = vpop.f32.mrf.mxu1 }
 0x796   : > { %v10249_v61 = vpop.f32.mrf.mxu0 }
 0x797   : > { %v10320_v38 = vpop.f32.mrf.mxu1 }
 0x798   : > { %v10251_v39 = vpop.f32.mrf.mxu0 }
 0x799   : > { %v10322_v59 = vpop.f32.mrf.mxu1 }
 0x79a   : > { %v10255_v13 = vpop.f32.mrf.mxu0 }
 0x79b   : > { %v10324_v41 = vpop.f32.mrf.mxu1 }
 0x79c   : > { %v10257_v32 = vpop.f32.mrf.mxu0 }
 0x79d   : > { %v21822_v49 = vpop.f32.mrf.mxu1 }
 0x79e   : > { %v21820_v33 = vpop.f32.mrf.mxu0 }
 0x79f   : > { %v21826_v18 = vpop.f32.mrf.mxu1 }
 0x7a0   : > { %v21824_v28 = vpop.f32.mrf.mxu0 }
 0x7a1   : > { %v21828_v21 = vpop.f32.mrf.mxu1 }
 0x7a2   : > { %v21830_v4 = vpop.f32.mrf.mxu0 }
 0x7a3   : > { %v21832_v40 = vpop.f32.mrf.mxu1 }
 0x7a4   : > { %v21834_v16 = vpop.f32.mrf.mxu0 }
 0x7a5   : > { %v21836_v11 = vpop.f32.mrf.mxu1 }
 0x7a6   : > { %24615 = vst [vmem:[#allocation18_spill] sm:$0xff] %v21836_v11  ;;  %v21838_v2 = vpop.f32.mrf.mxu0 }
 0x7a7   : > { %24616 = vst [vmem:[#allocation43_spill] sm:$0xff] %v21838_v2  ;;  %v21840_v46 = vpop.f32.mrf.mxu1  ;;  %v11415_v2 = vpop.permute.xlu0 %11414 }
 0x7a8   : > { %24617 = vst [vmem:[#allocation29_spill] sm:$0xff] %v21840_v46  ;;  %v21842_v48 = vpop.f32.mrf.mxu0  ;;  %v6122_v46 = vadd.f32 %v21356_v24, %v20733_v45  ;;  %v21876_v24 = vadd.f32 %v8999_v7, %v21535_v5  ;;  %v10359_v5 = vadd.f32 %v10318_v53, %v21750_v44 }
 0x7a9   : > { %24618 = vst [vmem:[#allocation32_spill] sm:$0xff] %v21842_v48  ;;  %v21844_v50 = vpop.f32.mrf.mxu1  ;;  %v11419_v48 = vpop.permute.xlu1 %11418 }
 0x7aa   : > { %24619 = vst [vmem:[#allocation50_spill] sm:$0xff] %v21844_v50  ;;  %v21846_v10 = vpop.f32.mrf.mxu0 }
 0x7ab   : > { %24620 = vst [vmem:[#allocation54_spill] sm:$0xff] %v21846_v10  ;;  %v21848_v20 = vpop.f32.mrf.mxu1  ;;  %v10357_v10 = vadd.f32 %v10245_v27, %v21739_v14  ;;  %v21879_v14 = vadd.f32 %v9001_v36, %v21541_v57  ;;  %v21884_v27 = vadd.f32 %v9072_v56, %v21559_v30  ;;  %v10365_v57 = vadd.f32 %v10255_v13, %v21759_v58 }
 0x7ac   : > { %24621 = vst [vmem:[#allocation19_spill] sm:$0xff] %v21848_v20  ;;  %v21850_v8 = vpop.f32.mrf.mxu0  ;;  %v6124_v20 = vadd.f32 %v21391_v0, %v20742_v43  ;;  %v10363_v36 = vadd.f32 %v10322_v59, %v21762_v35 }
 0x7ad   : > { %24622 = vst [vmem:[#allocation22_spill] sm:$0xff] %v21850_v8  ;;  %v21852_v9 = vpop.f32.mrf.mxu1 }
 0x7ae   : > { %24623 = vst [vmem:[#allocation17_spill] sm:$0xff] %v21852_v9  ;;  %v21854_v3 = vpop.f32.mrf.mxu0  ;;  %v7636_v9 = vadd.f32 %v21736_v12, %v6122_v46  ;;  %v21873_v45 = vadd.f32 %v21741_v1, %v6124_v20  ;;  %v21888_v1 = vadd.f32 %v9074_v15, %v21568_v19  ;;  %v10360_v20 = vadd.f32 %v10320_v38, %v21756_v6 }
 0x7af   : > { %24624 = vst [vmem:[#allocation39_spill] sm:$0xff] %v21854_v3  ;;  %v21856_v29 = vpop.f32.mrf.mxu1  ;;  %v10364_v19 = vadd.f32 %v10324_v41, %v21768_v17  ;;  %v10370_v17 = vadd.f32 %v21824_v28, %v21777_v60  ;;  %v10368_v41 = vadd.f32 %v21826_v18, %v21780_v42  ;;  %v10371_v42 = vadd.f32 %v21828_v21, %v21786_v62 }
 0x7b0   : > { %24625 = vst [vmem:[#allocation27_spill] sm:$0xff] %v21856_v29  ;;  %v21858_v11 = vpop.f32.mrf.mxu0  ;;  %v10358_v29 = vadd.f32 %v10247_v34, %v21744_v54  ;;  %v21881_v43 = vadd.f32 %v9003_v37, %v7636_v9  ;;  %v10362_v54 = vadd.f32 %v10251_v39, %v21753_v47  ;;  %v10369_v34 = vadd.f32 %v21820_v33, %v21771_v55 }
 0x7b1   : > { %24626 = vst [vmem:[#allocation117_spill] sm:$0xff] %v21858_v11  ;;  %v21860_v22 = vpop.f32.mrf.mxu1  ;;  %v10361_v11 = vadd.f32 %v10249_v61, %v21747_v31  ;;  %v10372_v62 = vadd.f32 %v21832_v40, %v21792_v26 }
 0x7b2   : > { %24627 = vst [vmem:[#allocation103_spill] sm:$0xff] %v21860_v22 }
 0x7b3   : > { %v21868_v8 = vpop.f32.mrf.mxu1 }
 0x7c2   : > { %v11269_v50 = vpop.f32.mrf.mxu0 }
 0x7c3   : > { %v11381_v22 = vadd.f32 %v11269_v50, %v10357_v10 }
 0x7c4   : > { %v11271_v3 = vpop.f32.mrf.mxu0 }
 0x7c5   : > { %v11342_v12 = vpop.f32.mrf.mxu1  ;;  %v11382_v31 = vadd.f32 %v11271_v3, %v10358_v29  ;;  %v21894_v37 = vadd.f32 %v11415_v2, %v11381_v22  ;;  %v11423_v29 = vpop.permute.xlu1 %11422  ;;  %v10366_v3 = vadd.f32 %v10257_v32, %v21765_v63  ;;  %v10367_v63 = vadd.f32 %v21822_v49, %v21774_v25 }
 0x7c6   : > { %v11273_v0 = vpop.f32.mrf.mxu0  ;;  %v11383_v56 = vadd.f32 %v11342_v12, %v10359_v5  ;;  %v11427_v12 = vpop.permute.xlu0 %11426 }
 0x7c7   : > { %v11385_v10 = vadd.f32 %v11273_v0, %v10361_v11  ;;  %v11344_v7 = vpop.f32.mrf.mxu1  ;;  %v21900_v50 = vadd.f32 %v11415_v2, %v11382_v31 }
 0x7c8   : > { %v11275_v9 = vpop.f32.mrf.mxu0  ;;  %v11384_v44 = vadd.f32 %v11344_v7, %v10360_v20  ;;  %v21918_v55 = vadd.f32 %v11415_v2, %v11383_v56 }
 0x7c9   : > { %v21896_v30 = vadd.f32 %v11419_v48, %v11385_v10  ;;  %v11386_v47 = vadd.f32 %v11275_v9, %v10362_v54  ;;  %v11346_v6 = vpop.f32.mrf.mxu1  ;;  %v10373_v54 = vadd.f32 %v21830_v4, %v21783_v52  ;;  %v11431_v9 = vpop.permute.xlu1 %11430  ;;  %v10374_v52 = vadd.f32 %v21834_v16, %v21789_v23  ;;  %v24630_v23 = vld [vmem:[#allocation18_spill] sm:$0xff] }
 0x7ca   : > { %v11279_v15 = vpop.f32.mrf.mxu0  ;;  %v11387_v61 = vadd.f32 %v11346_v6, %v10363_v36  ;;  %v21920_v33 = vadd.f32 %v11415_v2, %v11384_v44  ;;  %v24628_v44 = vld [vmem:[#allocation43_spill] sm:$0xff]  ;;  %v24629_v6 = vld [vmem:[#allocation46_spill] sm:$0xff] }
 0x7cb   : > { %v11477_v58 = vadd.f32 %v21896_v30, %v21894_v37  ;;  %v21904_v35 = vadd.f32 %v11419_v48, %v11386_v47  ;;  %v11389_v22 = vadd.f32 %v11279_v15, %v10365_v57  ;;  %v11348_v39 = vpop.f32.mrf.mxu1  ;;  %v10377_v15 = vadd.f32 %v24628_v44, %v21795_v51  ;;  %v24633_v51 = vld [vmem:[#allocation34_spill] sm:$0xff] }
 0x7cc   : > { %v11281_v53 = vpop.f32.mrf.mxu0  ;;  %v11388_v32 = vadd.f32 %v11348_v39, %v10364_v19  ;;  %v21922_v25 = vadd.f32 %v11419_v48, %v11387_v61  ;;  %v10375_v16 = vadd.f32 %v24630_v23, %v24629_v6  ;;  %v24631_v61 = vld [vmem:[#allocation31_spill] sm:$0xff]  ;;  %v24640_v23 = vld [vmem:[#allocation58_spill] sm:$0xff] }
 0x7cd   : > { %v11490_v38 = vadd.f32 %v21904_v35, %v21900_v50  ;;  %v21914_v13 = vadd.f32 %v11423_v29, %v11389_v22  ;;  %v11390_v59 = vadd.f32 %v11281_v53, %v10366_v3  ;;  %v11352_v49 = vpop.f32.mrf.mxu1  ;;  %v24632_v53 = vld [vmem:[#allocation32_spill] sm:$0xff] }
 0x7ce   : > { %v11283_v60 = vpop.f32.mrf.mxu0  ;;  %v21927_v46 = vadd.f32 %v11419_v48, %v11388_v32  ;;  %v11503_v18 = vadd.f32 %v21922_v25, %v21918_v55  ;;  %v11391_v2 = vadd.f32 %v11352_v49, %v10367_v63  ;;  %v10378_v39 = vadd.f32 %v24632_v53, %v24631_v61 }
 0x7cf   : > { %v11478_v28 = vadd.f32 %v11477_v58, %v21914_v13  ;;  %v21925_v11 = vadd.f32 %v11423_v29, %v11390_v59  ;;  %v11393_v0 = vadd.f32 %v11283_v60, %v10369_v34  ;;  %v11354_v10 = vpop.f32.mrf.mxu1 }
 0x7d0   : > { %v11285_v31 = vpop.f32.mrf.mxu0  ;;  %v11516_v48 = vadd.f32 %v21927_v46, %v21920_v33  ;;  %v11392_v57 = vadd.f32 %v11354_v10, %v10368_v41  ;;  %v21942_v21 = vadd.f32 %v11423_v29, %v11391_v2  ;;  %v24635_v2 = vld [vmem:[#allocation326_spill] sm:$0xff] }
 0x7d1   : > { %v11491_v5 = vadd.f32 %v11490_v38, %v21925_v11  ;;  %v11394_v20 = vadd.f32 %v11285_v31, %v10370_v17  ;;  %v21944_v4 = vadd.f32 %v11427_v12, %v11393_v0  ;;  %v11356_v36 = vpop.f32.mrf.mxu1  ;;  %v24634_v38 = vld [vmem:[#allocation29_spill] sm:$0xff]  ;;  %v24636_v31 = vld [vmem:[#allocation54_spill] sm:$0xff] }
 0x7d2   : > { %v11289_v7 = vpop.f32.mrf.mxu0  ;;  %v21946_v47 = vadd.f32 %v11423_v29, %v11392_v57  ;;  %v11395_v56 = vadd.f32 %v11356_v36, %v10371_v42  ;;  %v11504_v26 = vadd.f32 %v11503_v18, %v21942_v21  ;;  %v10376_v59 = vadd.f32 %v24634_v38, %v24633_v51  ;;  %v11435_v18 = vpop.permute.xlu0 %11434  ;;  %v24642_v38 = vld [vmem:[#allocation39_spill] sm:$0xff] }
 0x7d3   : > { %v21948_v3 = vadd.f32 %v11427_v12, %v11394_v20  ;;  %v11397_v19 = vadd.f32 %v11289_v7, %v10373_v54  ;;  %v11479_v40 = vadd.f32 %v11478_v28, %v21944_v4  ;;  %v11358_v22 = vpop.f32.mrf.mxu1  ;;  %v10381_v10 = vadd.f32 %v24636_v31, %v24635_v2  ;;  %v24638_v20 = vld [vmem:[#allocation50_spill] sm:$0xff] }
 0x7d4   : > { %v11291_v58 = vpop.f32.mrf.mxu0  ;;  %v11517_v34 = vadd.f32 %v11516_v48, %v21946_v47  ;;  %v21957_v29 = vadd.f32 %v11427_v12, %v11395_v56  ;;  %v11396_v41 = vadd.f32 %v11358_v22, %v10372_v62  ;;  %v24637_v48 = vld [vmem:[#allocation52_spill] sm:$0xff] }
 0x7d5   : > { %v21959_v63 = vadd.f32 %v11431_v9, %v11397_v19  ;;  %v11398_v17 = vadd.f32 %v11291_v58, %v10374_v52  ;;  %v11492_v32 = vadd.f32 %v11491_v5, %v21948_v3  ;;  %v11362_v49 = vpop.f32.mrf.mxu1  ;;  %v10379_v57 = vadd.f32 %v24638_v20, %v24637_v48 }
 0x7d6   : > { %v11293_v60 = vpop.f32.mrf.mxu0  ;;  %v11505_v28 = vadd.f32 %v11504_v26, %v21957_v29  ;;  %v21974_v52 = vadd.f32 %v11427_v12, %v11396_v41  ;;  %v11399_v5 = vadd.f32 %v11362_v49, %v10375_v16  ;;  %v24641_v26 = vld [vmem:[#allocation19_spill] sm:$0xff] }
 0x7d7   : > { %v11480_v0 = vadd.f32 %v11479_v40, %v21959_v63  ;;  %v21968_v54 = vadd.f32 %v11431_v9, %v11398_v17  ;;  %v11401_v42 = vadd.f32 %v11293_v60, %v10377_v15  ;;  %v11364_v7 = vpop.f32.mrf.mxu1  ;;  %v24639_v15 = vld [vmem:[#allocation22_spill] sm:$0xff]  ;;  %v10380_v40 = vadd.f32 %v24641_v26, %v24640_v23  ;;  %v11439_v17 = vpop.permute.xlu1 %11438 }
 0x7d8   : > { %v11295_v62 = vpop.f32.mrf.mxu0  ;;  %v11400_v44 = vadd.f32 %v11364_v7, %v10376_v59  ;;  %v10382_v6 = vadd.f32 %v24639_v15, %v21876_v24  ;;  %v11518_v58 = vadd.f32 %v11517_v34, %v21974_v52  ;;  %v21984_v22 = vadd.f32 %v11431_v9, %v11399_v5  ;;  %v24643_v59 = vld [vmem:[#allocation20_spill] sm:$0xff] }
 0x7d9   : > { %v11493_v36 = vadd.f32 %v11492_v32, %v21968_v54  ;;  %v21977_v19 = vadd.f32 %v11435_v18, %v11401_v42  ;;  %v11402_v56 = vadd.f32 %v11295_v62, %v10378_v39  ;;  %v11366_v16 = vpop.f32.mrf.mxu1  ;;  %v10385_v24 = vadd.f32 %v24642_v38, %v21879_v14  ;;  %v24644_v32 = vld [vmem:[#allocation17_spill] sm:$0xff] }
 0x7da   : > { %v11299_v12 = vpop.f32.mrf.mxu0  ;;  %v21988_v53 = vadd.f32 %v11431_v9, %v11400_v44  ;;  %v10383_v41 = vadd.f32 %v24644_v32, %v24643_v59  ;;  %v11506_v34 = vadd.f32 %v11505_v28, %v21984_v22  ;;  %v11403_v60 = vadd.f32 %v11366_v16, %v10379_v57  ;;  %v24646_v14 = vld [vmem:[#allocation117_spill] sm:$0xff] }
 0x7db   : > { %v21986_v61 = vadd.f32 %v11435_v18, %v11402_v56  ;;  %v11405_v51 = vadd.f32 %v11299_v12, %v10381_v10  ;;  %v11481_v39 = vadd.f32 %v11480_v0, %v21977_v19  ;;  %v11368_v42 = vpop.f32.mrf.mxu1  ;;  %v24645_v0 = vld [vmem:[#allocation23_spill] sm:$0xff]  ;;  %v10386_v20 = vadd.f32 %v24646_v14, %v21881_v43  ;;  %v11443_v56 = vpop.permute.xlu0 %11442 }
 0x7dc   : > { %v11301_v49 = vpop.f32.mrf.mxu0  ;;  %v11519_v31 = vadd.f32 %v11518_v58, %v21988_v53  ;;  %v9110_v48 = vadd.f32 %v24645_v0, %v21873_v45  ;;  %v22004_v5 = vadd.f32 %v11435_v18, %v11403_v60  ;;  %v11404_v62 = vadd.f32 %v11368_v42, %v10380_v40  ;;  %v24648_v45 = vld [vmem:[#allocation103_spill] sm:$0xff] }
 0x7dd   : > { %v11494_v2 = vadd.f32 %v11493_v36, %v21986_v61  ;;  %v21998_v9 = vadd.f32 %v11439_v17, %v11405_v51  ;;  %v11406_v10 = vadd.f32 %v11301_v49, %v10382_v6  ;;  %v11372_v57 = vpop.f32.mrf.mxu1  ;;  %v24647_v6 = vld [vmem:[#allocation27_spill] sm:$0xff]  ;;  %v10387_v26 = vadd.f32 %v24648_v45, %v21888_v1 }
 0x7de   : > { %v11303_v28 = vpop.f32.mrf.mxu0  ;;  %v11407_v15 = vadd.f32 %v11372_v57, %v10383_v41  ;;  %v10384_v23 = vadd.f32 %v24647_v6, %v21884_v27  ;;  %v11507_v43 = vadd.f32 %v11506_v34, %v22004_v5  ;;  %v22014_v58 = vadd.f32 %v11435_v18, %v11404_v62 }
 0x7df   : > { %v11482_v7 = vadd.f32 %v11481_v39, %v21998_v9  ;;  %v22007_v36 = vadd.f32 %v11439_v17, %v11406_v10  ;;  %v11409_v44 = vadd.f32 %v11303_v28, %v10385_v24  ;;  %v11374_v12 = vpop.f32.mrf.mxu1  ;;  %v10388_v24 = vadd.f32 %v21868_v8, %v9110_v48 }
 0x7e0   : > { %v11305_v40 = vpop.f32.mrf.mxu0  ;;  %v22017_v39 = vadd.f32 %v11439_v17, %v11407_v15  ;;  %v11520_v59 = vadd.f32 %v11519_v31, %v22014_v58  ;;  %v11408_v27 = vadd.f32 %v11374_v12, %v10384_v23 }
 0x7e1   : > { %v11495_v16 = vadd.f32 %v11494_v2, %v22007_v36  ;;  %v11473_v51 = vadd.f32 %v11443_v56, %v11409_v44  ;;  %v11410_v38 = vadd.f32 %v11305_v40, %v10386_v20  ;;  %v11376_v32 = vpop.f32.mrf.mxu1 }
 0x7e2   : > { %v11508_v1 = vadd.f32 %v11507_v43, %v22017_v39  ;;  %v11411_v18 = vadd.f32 %v11376_v32, %v10387_v26  ;;  %v22022_v60 = vadd.f32 %v11439_v17, %v11408_v27 }
 0x7e3   : > { %v11483_v41 = vadd.f32 %v11482_v7, %v11473_v51  ;;  %v11474_v34 = vadd.f32 %v11443_v56, %v11410_v38  ;;  %v11378_v49 = vpop.f32.mrf.mxu1 }
 0x7e4   : > { %v22024_v10 = vadd.f32 %v11443_v56, %v11411_v18  ;;  %v11412_v0 = vadd.f32 %v11378_v49, %v10388_v24  ;;  %v11521_v14 = vadd.f32 %v11520_v59, %v22022_v60 }
 0x7e5   : > { %v11484_v42 = vrot.slane %v11483_v41, 4  ;;  %v11496_v2 = vadd.f32 %v11495_v16, %v11474_v34 }
 0x7e6   : > { %v11509_v31 = vadd.f32 %v11508_v1, %v22024_v10  ;;  %v22028_v20 = vadd.f32 %v11443_v56, %v11412_v0 }
 0x7e7   : > { %v11485_v8 = vadd.f32 %v11484_v42, %v11483_v41  ;;  %v11497_v48 = vrot.slane %v11496_v2, 4 }
 0x7e8   : > { %v11510_v57 = vrot.slane %v11509_v31, 4  ;;  %v11522_v17 = vadd.f32 %v11521_v14, %v22028_v20 }
 0x7e9   : > { %v11486_v62 = vrot.slane %v11485_v8, 2  ;;  %v11498_v28 = vadd.f32 %v11497_v48, %v11496_v2 }
 0x7ea   : > { %v11511_v15 = vadd.f32 %v11510_v57, %v11509_v31  ;;  %v11523_v6 = vrot.slane %v11522_v17, 4 }
 0x7eb   : > { %v11487_v7 = vadd.f32 %v11486_v62, %v11485_v8  ;;  %v11499_v44 = vrot.slane %v11498_v28, 2 }
 0x7ec   : > { %v11512_v26 = vrot.slane %v11511_v15, 2  ;;  %v11524_v43 = vadd.f32 %v11523_v6, %v11522_v17 }
 0x7ed   : > { %v11488_v23 = vrot.slane %v11487_v7, 1  ;;  %v11500_v45 = vadd.f32 %v11499_v44, %v11498_v28 }
 0x7ee   : > { %v11513_v16 = vadd.f32 %v11512_v26, %v11511_v15  ;;  %v11525_v38 = vrot.slane %v11524_v43, 2 }
 0x7ef   : > { %v11489_v40 = vadd.f32 %v11488_v23, %v11487_v7  ;;  %v11501_v12 = vrot.slane %v11500_v45, 1 }
 0x7f0   : > { %v11514_v59 = vrot.slane %v11513_v16, 1  ;;  %v11526_v27 = vadd.f32 %v11525_v38, %v11524_v43 }
 0x7f1   : > { %v11529_v24 = vmul.f32 0.015625, %v11489_v40  ;;  %v11502_v56 = vadd.f32 %v11501_v12, %v11500_v45  ;;  %v22101_v45 = vpop.permute.xlu1 %11718 }
 0x7f2   : > { %v11515_v14 = vadd.f32 %v11514_v59, %v11513_v16 }
 0x7f3   : > { %v22032_v32 = vsub.f32 %v21894_v37, %v11529_v24  ;;  %v22035_v41 = vsub.f32 %v21896_v30, %v11529_v24  ;;  %v22038_v1 = vsub.f32 %v21914_v13, %v11529_v24  ;;  %v22041_v18 = vsub.f32 %v21944_v4, %v11529_v24 }
 0x7f4   : > { %v22044_v49 = vsub.f32 %v21959_v63, %v11529_v24  ;;  %v22047_v42 = vsub.f32 %v21977_v19, %v11529_v24  ;;  %v22050_v2 = vsub.f32 %v21998_v9, %v11529_v24  ;;  %v22052_v37 = vsub.f32 %v11473_v51, %v11529_v24 }
 0x7f5   : > { %v11565_v30 = vmul.f32 %v22032_v32, %v22032_v32  ;;  %v11569_v13 = vmul.f32 %v22035_v41, %v22035_v41  ;;  %v11573_v4 = vmul.f32 %v22038_v1, %v22038_v1  ;;  %v11530_v63 = vmul.f32 0.015625, %v11502_v56 }
 0x7f6   : > { %v11577_v19 = vmul.f32 %v22041_v18, %v22041_v18  ;;  %v11581_v9 = vmul.f32 %v22044_v49, %v22044_v49  ;;  %v11527_v51 = vrot.slane %v11526_v27, 1  ;;  %v11531_v23 = vmul.f32 0.015625, %v11515_v14 }
 0x7f7   : > { %v11597_v0 = vadd.f32 %v11569_v13, %v11565_v30  ;;  %v22065_v48 = vsub.f32 %v21900_v50, %v11530_v63  ;;  %v22068_v31 = vsub.f32 %v21904_v35, %v11530_v63  ;;  %v22071_v62 = vsub.f32 %v21925_v11, %v11530_v63 }
 0x7f8   : > { %v22074_v28 = vsub.f32 %v21948_v3, %v11530_v63  ;;  %v22077_v57 = vsub.f32 %v21968_v54, %v11530_v63  ;;  %v22080_v17 = vsub.f32 %v21986_v61, %v11530_v63  ;;  %v22083_v7 = vsub.f32 %v22007_v36, %v11530_v63 }
 0x7f9   : > { %v11598_v8 = vadd.f32 %v11597_v0, %v11573_v4  ;;  %v22085_v44 = vsub.f32 %v11474_v34, %v11530_v63  ;;  %v11566_v35 = vmul.f32 %v22065_v48, %v22065_v48  ;;  %v11570_v11 = vmul.f32 %v22068_v31, %v22068_v31  ;;  %v22139_v63 = vpop.permute.xlu1 %11782 }
 0x7fa   : > { %v11585_v3 = vmul.f32 %v22047_v42, %v22047_v42  ;;  %v11574_v61 = vmul.f32 %v22071_v62, %v22071_v62  ;;  %v11589_v36 = vmul.f32 %v22050_v2, %v22050_v2  ;;  %v11593_v34 = vmul.f32 %v22052_v37, %v22052_v37 }
 0x7fb   : > { %v11599_v50 = vadd.f32 %v11598_v8, %v11577_v19  ;;  %v11610_v15 = vadd.f32 %v11570_v11, %v11566_v35  ;;  %v11578_v6 = vmul.f32 %v22074_v28, %v22074_v28  ;;  %v11582_v43 = vmul.f32 %v22077_v57, %v22077_v57 }
 0x7fc   : > { %v11528_v12 = vadd.f32 %v11527_v51, %v11526_v27  ;;  %v22106_v16 = vsub.f32 %v21918_v55, %v11531_v23  ;;  %v22109_v38 = vsub.f32 %v21922_v25, %v11531_v23  ;;  %v22112_v24 = vsub.f32 %v21942_v21, %v11531_v23 }
 0x7fd   : > { %v11600_v54 = vadd.f32 %v11599_v50, %v11581_v9  ;;  %v11611_v40 = vadd.f32 %v11610_v15, %v11574_v61  ;;  %v22115_v56 = vsub.f32 %v21957_v29, %v11531_v23  ;;  %v22118_v13 = vsub.f32 %v21984_v22, %v11531_v23 }
 0x7fe   : > { %v22121_v4 = vsub.f32 %v22004_v5, %v11531_v23  ;;  %v22124_v55 = vsub.f32 %v22017_v39, %v11531_v23  ;;  %v22127_v25 = vsub.f32 %v22024_v10, %v11531_v23  ;;  %v11567_v21 = vmul.f32 %v22106_v16, %v22106_v16 }
 0x7ff   : > { %v11601_v26 = vadd.f32 %v11600_v54, %v11585_v3  ;;  %v11612_v30 = vadd.f32 %v11611_v40, %v11578_v6  ;;  %v11571_v29 = vmul.f32 %v22109_v38, %v22109_v38  ;;  %v11586_v22 = vmul.f32 %v22080_v17, %v22080_v17 }
 0x800   : > { %v11590_v5 = vmul.f32 %v22083_v7, %v22083_v7  ;;  %v11575_v39 = vmul.f32 %v22112_v24, %v22112_v24  ;;  %v11532_v14 = vmul.f32 0.015625, %v11528_v12  ;;  %v11594_v51 = vmul.f32 %v22085_v44, %v22085_v44 }
 0x801   : > { %v11602_v59 = vadd.f32 %v11601_v26, %v11589_v36  ;;  %v11613_v0 = vadd.f32 %v11612_v30, %v11582_v43  ;;  %v11623_v9 = vadd.f32 %v11571_v29, %v11567_v21  ;;  %v11579_v8 = vmul.f32 %v22115_v56, %v22115_v56 }
 0x802   : > { %v11583_v50 = vmul.f32 %v22118_v13, %v22118_v13  ;;  %v22148_v54 = vsub.f32 %v21920_v33, %v11532_v14  ;;  %v22151_v61 = vsub.f32 %v21927_v46, %v11532_v14  ;;  %v22154_v15 = vsub.f32 %v21946_v47, %v11532_v14 }
 0x803   : > { %v11603_v27 = vadd.f32 %v11602_v59, %v11593_v34  ;;  %v11614_v19 = vadd.f32 %v11613_v0, %v11586_v22  ;;  %v11624_v3 = vadd.f32 %v11623_v9, %v11575_v39  ;;  %v22157_v36 = vsub.f32 %v21974_v52, %v11532_v14 }
 0x804   : > { %v22160_v34 = vsub.f32 %v21988_v53, %v11532_v14  ;;  %v22163_v43 = vsub.f32 %v22014_v58, %v11532_v14  ;;  %v22166_v33 = vsub.f32 %v22022_v60, %v11532_v14  ;;  %v22169_v46 = vsub.f32 %v22028_v20, %v11532_v14  ;;  %v22175_v53 = vpop.permute.xlu1 %11786 }
 0x805   : > { %v11604_v10 = vrot.slane %v11603_v27, 4  ;;  %v11615_v11 = vadd.f32 %v11614_v19, %v11590_v5  ;;  %v11625_v26 = vadd.f32 %v11624_v3, %v11579_v8  ;;  %v11568_v47 = vmul.f32 %v22148_v54, %v22148_v54 }
 0x806   : > { %v11572_v52 = vmul.f32 %v22151_v61, %v22151_v61  ;;  %v11587_v58 = vmul.f32 %v22121_v4, %v22121_v4  ;;  %v11591_v20 = vmul.f32 %v22124_v55, %v22124_v55  ;;  %v11576_v29 = vmul.f32 %v22154_v15, %v22154_v15 }
 0x807   : > { %v11605_v35 = vadd.f32 %v11604_v10, %v11603_v27  ;;  %v11616_v23 = vadd.f32 %v11615_v11, %v11594_v51  ;;  %v11626_v59 = vadd.f32 %v11625_v26, %v11583_v50  ;;  %v11595_v5 = vmul.f32 %v22127_v25, %v22127_v25 }
 0x808   : > { %v11636_v27 = vadd.f32 %v11572_v52, %v11568_v47  ;;  %v11580_v10 = vmul.f32 %v22157_v36, %v22157_v36  ;;  %v22187_v9 = vpop.permute.xlu1 %11714  ;;  %v11584_v50 = vmul.f32 %v22160_v34, %v22160_v34 }
 0x809   : > { %v11606_v6 = vrot.slane %v11605_v35, 2  ;;  %v11617_v12 = vrot.slane %v11616_v23, 4  ;;  %v11627_v21 = vadd.f32 %v11626_v59, %v11587_v58 }
 0x80a   : > { %v11637_v19 = vadd.f32 %v11636_v27, %v11576_v29  ;;  %v22199_v27 = vpop.permute.xlu0 %11774 }
 0x80b   : > { %v11607_v40 = vadd.f32 %v11606_v6, %v11605_v35  ;;  %v11618_v60 = vadd.f32 %v11617_v12, %v11616_v23  ;;  %v11628_v39 = vadd.f32 %v11627_v21, %v11591_v20  ;;  %v11588_v23 = vmul.f32 %v22163_v43, %v22163_v43 }
 0x80c   : > { %v11638_v35 = vadd.f32 %v11637_v19, %v11580_v10  ;;  %v22195_v58 = vpop.permute.xlu1 %11778  ;;  %v316_v10 = vld [vmem:[%s22879_s6] sm:$0xff]  ;;  %v317_v19 = vld [vmem:[%s22879_s6 + $0x8] sm:$0xff] }
 0x80d   : > { %v11608_v30 = vrot.slane %v11607_v40, 1  ;;  %v11619_v0 = vrot.slane %v11618_v60, 2  ;;  %v11629_v8 = vadd.f32 %v11628_v39, %v11595_v5  ;;  %12129 = vperm.xlu1 %14479, %v316_v10   ;;  %12134 = vperm.xlu0 %14480, %v317_v19  }
 0x80e   : > { %v11639_v26 = vadd.f32 %v11638_v35, %v11584_v50  ;;  %v22209_v50 = vpop.permute.xlu0 %11722 }
 0x80f   : > { %v11609_v22 = vadd.f32 %v11608_v30, %v11607_v40  ;;  %v11620_v51 = vadd.f32 %v11619_v0, %v11618_v60  ;;  %v11630_v6 = vrot.slane %v11629_v8, 4  ;;  %v11592_v40 = vmul.f32 %v22166_v33, %v22166_v33 }
 0x810   : > { %v11640_v12 = vadd.f32 %v11639_v26, %v11588_v23  ;;  %v11596_v60 = vmul.f32 %v22169_v46, %v22169_v46  ;;  %v22201_v39 = vpop.permute.xlu1 %11702 }
 0x811   : > { %v11649_v14 = vmul.f32 0.015625, %v11609_v22  ;;  %v11621_v3 = vrot.slane %v11620_v51, 1  ;;  %v11631_v52 = vadd.f32 %v11630_v6, %v11629_v8  ;;  %v24650_v6 = vmov 2  }
 0x812   : > { %v11641_v20 = vadd.f32 %v11640_v12, %v11592_v40  ;;  %14482 = vset.pattern.permute.xlu0 %v24650_v6 }
 0x813   : > { %v11653_v11 = vadd.f32 1e-06, %v11649_v14  ;;  %v11622_v47 = vadd.f32 %v11621_v3, %v11620_v51  ;;  %v11632_v30 = vrot.slane %v11631_v52, 2  ;;  %v24649_v3 = vmov 1   ;;  %12345 = vperm.xlu0 %14482, %v316_v10  }
 0x814   : > { %v11642_v22 = vadd.f32 %v11641_v20, %v11596_v60  ;;  %14481 = vset.pattern.permute.xlu1 %v24649_v3 }
 0x815   : > { %14645 = vrsqrt.f32 %v11653_v11  ;;  %v11650_v59 = vmul.f32 0.015625, %v11622_v47  ;;  %v11633_v29 = vadd.f32 %v11632_v30, %v11631_v52  ;;  %v22215_v47 = vpop.permute.xlu1 %11766  ;;  %12329 = vperm.xlu1 %14481, %v316_v10  }
 0x816   : > { %v11643_v5 = vrot.slane %v11642_v22, 4 }
 0x817   : > { %v11654_v21 = vadd.f32 1e-06, %v11650_v59  ;;  %v11634_v0 = vrot.slane %v11633_v29, 1 }
 0x818   : > { %v11644_v51 = vadd.f32 %v11643_v5, %v11642_v22 }
 0x819   : > { %14647 = vrsqrt.f32 %v11654_v21  ;;  %v11635_v14 = vadd.f32 %v11634_v0, %v11633_v29  ;;  %12333 = vperm.xlu1 %14481, %v317_v19  }
 0x81a   : > { %v11645_v35 = vrot.slane %v11644_v51, 2 }
 0x81b   : > { %v11651_v8 = vmul.f32 0.015625, %v11635_v14 }
 0x81c   : > { %v11646_v26 = vadd.f32 %v11645_v35, %v11644_v51 }
 0x81d   : > { %v11655_v11 = vadd.f32 1e-06, %v11651_v8  ;;  %14483 = vset.pattern.permute.xlu1 %v24650_v6 }
 0x81e   : > { %v11647_v59 = vrot.slane %v11646_v26, 1  ;;  %12349 = vperm.xlu1 %14483, %v317_v19  }
 0x81f   : > { %14649 = vrsqrt.f32 %v11655_v11 }
 0x820   : > { %v11648_v22 = vadd.f32 %v11647_v59, %v11646_v26 }
 0x822   : > { %v22213_v23 = vpop.eup %14645  ;;  %v11652_v10 = vmul.f32 0.015625, %v11648_v22 }
 0x823   : > { %v11689_v52 = vmul.f32 %v22213_v23, %v22052_v37  ;;  %v11685_v40 = vmul.f32 %v22213_v23, %v22050_v2  ;;  %v11681_v12 = vmul.f32 %v22213_v23, %v22047_v42  ;;  %v11669_v30 = vmul.f32 %v22213_v23, %v22038_v1  ;;  %v22232_v2 = vpop.permute.xlu0 %11710 }
 0x824   : > { %v11677_v60 = vmul.f32 %v22213_v23, %v22044_v49  ;;  %v11673_v20 = vmul.f32 %v22213_v23, %v22041_v18  ;;  %v11665_v42 = vmul.f32 %v22213_v23, %v22035_v41  ;;  %v22251_v41 = vpop.permute.xlu1 %11770  ;;  %v11656_v3 = vadd.f32 1e-06, %v11652_v10 }
 0x825   : > { %v11749_v21 = vmul.f32 %v22101_v45, %v11685_v40  ;;  %v11745_v37 = vmul.f32 %v22187_v9, %v11681_v12  ;;  %v11753_v29 = vmul.f32 %v22209_v50, %v11689_v52  ;;  %v11733_v1 = vmul.f32 %v22201_v39, %v11669_v30 }
 0x826   : > { %v22246_v5 = vpop.eup %14647  ;;  %14651 = vrsqrt.f32 %v11656_v3 }
 0x827   : > { %v22238_v49 = vadd.f32 %v22139_v63, %v11749_v21  ;;  %v22241_v18 = vadd.f32 %v22195_v58, %v11745_v37  ;;  %v22244_v0 = vadd.f32 %v22175_v53, %v11753_v29  ;;  %v22249_v14 = vadd.f32 %v22215_v47, %v11733_v1  ;;  %v22272_v59 = vpop.permute.xlu0 %11706 }
 0x828   : > { %v11690_v51 = vmul.f32 %v22246_v5, %v22085_v44  ;;  %v11686_v8 = vmul.f32 %v22246_v5, %v22083_v7  ;;  %v11682_v11 = vmul.f32 %v22246_v5, %v22080_v17  ;;  %v11670_v52 = vmul.f32 %v22246_v5, %v22071_v62  ;;  %v22285_v10 = vpop.permute.xlu1 %11698 }
 0x829   : > { %24651 = vst [vmem:[#allocation30_spill] sm:$0xff] %v22238_v49  ;;  %24652 = vst [vmem:[#allocation327_spill] sm:$0xff] %v22241_v18  ;;  %v11877_v35 = vmul.f32 %v22238_v49, %v22238_v49  ;;  %v11873_v26 = vmul.f32 %v22241_v18, %v22241_v18  ;;  %v11881_v40 = vmul.f32 %v22244_v0, %v22244_v0 }
 0x82a   : > { %24653 = vst [vmem:[#allocation118_spill] sm:$0xff] %v22244_v0  ;;  %v11750_v7 = vmul.f32 %v22101_v45, %v11686_v8  ;;  %v11746_v12 = vmul.f32 %v22187_v9, %v11682_v11  ;;  %v11754_v17 = vmul.f32 %v22209_v50, %v11690_v51  ;;  %v11741_v62 = vmul.f32 %v22232_v2, %v11677_v60 }
 0x82b   : > { %v11909_v44 = vmul.f32 %v11877_v35, %v22238_v49  ;;  %v11905_v30 = vmul.f32 %v11873_v26, %v22241_v18  ;;  %v11737_v21 = vmul.f32 %v22272_v59, %v11673_v20  ;;  %v11734_v22 = vmul.f32 %v22201_v39, %v11670_v52 }
 0x82c   : > { %v22278_v6 = vadd.f32 %v22139_v63, %v11750_v7  ;;  %v22281_v29 = vadd.f32 %v22195_v58, %v11746_v12  ;;  %v11913_v1 = vmul.f32 %v11881_v40, %v22244_v0  ;;  %v22288_v19 = vadd.f32 %v22175_v53, %v11754_v17  ;;  %v22295_v51 = vpop.eup %14649 }
 0x82d   : > { %v11941_v37 = vmul.f32 0.044715, %v11909_v44  ;;  %v11861_v60 = vmul.f32 %v22249_v14, %v22249_v14  ;;  %v22293_v20 = vmul.f32 %v22285_v10, %v11665_v42  ;;  %v11937_v35 = vmul.f32 0.044715, %v11905_v30 }
 0x82e   : > { %24654 = vst [vmem:[#allocation26_spill] sm:$0xff] %v22281_v29  ;;  %v11878_v8 = vmul.f32 %v22278_v6, %v22278_v6  ;;  %v22300_v11 = vadd.f32 %v22199_v27, %v11741_v62  ;;  %v22303_v3 = vadd.f32 %v22251_v41, %v11737_v21  ;;  %v11691_v26 = vmul.f32 %v22295_v51, %v22127_v25 }
 0x82f   : > { %v11687_v52 = vmul.f32 %v22295_v51, %v22124_v55  ;;  %v11973_v42 = vadd.f32 %v11941_v37, %v22238_v49  ;;  %v11874_v40 = vmul.f32 %v22281_v29, %v22281_v29  ;;  %v11683_v7 = vmul.f32 %v22295_v51, %v22121_v4 }
 0x830   : > { %v11671_v44 = vmul.f32 %v22295_v51, %v22112_v24  ;;  %v11945_v12 = vmul.f32 0.044715, %v11913_v1  ;;  %v22317_v17 = vadd.f32 %v22215_v47, %v11734_v22  ;;  %v11755_v30 = vmul.f32 %v22209_v50, %v11691_v26 }
 0x831   : > { %v11751_v25 = vmul.f32 %v22101_v45, %v11687_v52  ;;  %v22323_v55 = vmul.f32 %v22288_v19, %v22288_v19  ;;  %v11893_v62 = vmul.f32 %v11861_v60, %v22249_v14  ;;  %v11910_v21 = vmul.f32 %v11878_v8, %v22278_v6 }
 0x832   : > { %v11747_v4 = vmul.f32 %v22187_v9, %v11683_v7  ;;  %v11969_v24 = vadd.f32 %v11937_v35, %v22241_v18  ;;  %v11735_v37 = vmul.f32 %v22201_v39, %v11671_v44  ;;  %v12005_v1 = vmul.f32 0.7978846, %v11973_v42 }
 0x833   : > { %v22331_v22 = vadd.f32 %v22139_v63, %v11751_v25  ;;  %v11906_v26 = vmul.f32 %v11874_v40, %v22281_v29  ;;  %v22335_v52 = vadd.f32 %v22175_v53, %v11755_v30  ;;  %v11678_v8 = vmul.f32 %v22246_v5, %v22077_v57 }
 0x834   : > { %v22338_v49 = vadd.f32 %v22195_v58, %v11747_v4  ;;  %v22341_v60 = vadd.f32 %v22215_v47, %v11735_v37  ;;  %v11679_v35 = vmul.f32 %v22295_v51, %v22118_v13  ;;  %v22350_v40 = vadd.f32 %v11945_v12, %v22244_v0  ;;  %v22360_v4 = vpop.eup %14651 }
 0x835   : > { %v11879_v42 = vmul.f32 %v22331_v22, %v22331_v22  ;;  %v11862_v7 = vmul.f32 %v22317_v17, %v22317_v17  ;;  %v11925_v44 = vmul.f32 0.044715, %v11893_v62  ;;  %v12001_v30 = vmul.f32 0.7978846, %v11969_v24 }
 0x836   : > { %24655 = vst [vmem:[#allocation48_spill] sm:$0xff] %v22338_v49  ;;  %24656 = vst [vmem:[#allocation28_spill] sm:$0xff] %v22341_v60  ;;  %v11875_v25 = vmul.f32 %v22338_v49, %v22338_v49  ;;  %v11883_v57 = vmul.f32 %v22335_v52, %v22335_v52  ;;  %v11863_v13 = vmul.f32 %v22341_v60, %v22341_v60  ;;  %v22363_v12 = vmul.f32 0.044715, %v11910_v21 }
 0x837   : > { %24657 = vst [vmem:[#allocation51_spill] sm:$0xff] %v22350_v40  ;;  %v11911_v37 = vmul.f32 %v11879_v42, %v22331_v22  ;;  %14653 = vtanh.f32 %v12005_v1  ;;  %v22365_v18 = vmul.f32 0.044715, %v11906_v26  ;;  %v11692_v62 = vmul.f32 %v22360_v4, %v22169_v46 }
 0x838   : > { %24658 = vst [vmem:[#allocation248_spill] sm:$0xff] %v22363_v12  ;;  %v11688_v24 = vmul.f32 %v22360_v4, %v22166_v33  ;;  %v11684_v0 = vmul.f32 %v22360_v4, %v22163_v43  ;;  %v11907_v29 = vmul.f32 %v11875_v25, %v22338_v49  ;;  %v11672_v42 = vmul.f32 %v22360_v4, %v22154_v15 }
 0x839   : > { %24659 = vst [vmem:[#allocation120_spill] sm:$0xff] %v22365_v18  ;;  %v11943_v40 = vmul.f32 0.044715, %v11911_v37  ;;  %v11895_v21 = vmul.f32 %v11863_v13, %v22341_v60  ;;  %v11957_v1 = vadd.f32 %v11925_v44, %v22249_v14  ;;  %v11915_v33 = vmul.f32 %v11883_v57, %v22335_v52 }
 0x83a   : > { %v11752_v26 = vmul.f32 %v22101_v45, %v11688_v24  ;;  %v11748_v46 = vmul.f32 %v22187_v9, %v11684_v0  ;;  %v11939_v18 = vmul.f32 0.044715, %v11907_v29  ;;  %v11736_v43 = vmul.f32 %v22201_v39, %v11672_v42 }
 0x83b   : > { %v11975_v12 = vadd.f32 %v11943_v40, %v22331_v22  ;;  %v11894_v25 = vmul.f32 %v11862_v7, %v22317_v17  ;;  %v11927_v37 = vmul.f32 0.044715, %v11895_v21  ;;  %v11756_v9 = vmul.f32 %v22209_v50, %v11692_v62 }
 0x83c   : > { %v22385_v15 = vadd.f32 %v22139_v63, %v11752_v26  ;;  %v22388_v13 = vadd.f32 %v22195_v58, %v11748_v46  ;;  %v11971_v45 = vadd.f32 %v11939_v18, %v22338_v49  ;;  %v22393_v0 = vadd.f32 %v22215_v47, %v11736_v43 }
 0x83d   : > { %v11959_v29 = vadd.f32 %v11927_v37, %v22341_v60  ;;  %v11989_v40 = vmul.f32 0.7978846, %v11957_v1  ;;  %v11743_v39 = vmul.f32 %v22232_v2, %v11679_v35  ;;  %v12007_v63 = vmul.f32 0.7978846, %v11975_v12 }
 0x83e   : > { %v11880_v7 = vmul.f32 %v22385_v15, %v22385_v15  ;;  %v11947_v44 = vmul.f32 0.044715, %v11915_v33  ;;  %v11869_v58 = vmul.f32 %v22300_v11, %v22300_v11  ;;  %v11876_v18 = vmul.f32 %v22388_v13, %v22388_v13 }
 0x83f   : > { %v12003_v50 = vmul.f32 0.7978846, %v11971_v45  ;;  %v11680_v47 = vmul.f32 %v22360_v4, %v22160_v34  ;;  %v11742_v57 = vmul.f32 %v22232_v2, %v11678_v8  ;;  %14655 = vtanh.f32 %v12001_v30 }
 0x840   : > { %v22407_v35 = vadd.f32 %v22175_v53, %v11756_v9  ;;  %v11864_v12 = vmul.f32 %v22393_v0, %v22393_v0  ;;  %v22411_v62 = vmul.f32 0.044715, %v11894_v25  ;;  %v11991_v24 = vmul.f32 0.7978846, %v11959_v29 }
 0x841   : > { %14657 = vtanh.f32 %v11989_v40  ;;  %v11744_v42 = vmul.f32 %v22232_v2, %v11680_v47  ;;  %v22415_v21 = vadd.f32 %v22199_v27, %v11743_v39  ;;  %v11912_v34 = vmul.f32 %v11880_v7, %v22385_v15 }
 0x842   : > { %14659 = vtanh.f32 %v12007_v63  ;;  %v22419_v8 = vadd.f32 %v11947_v44, %v22335_v52  ;;  %v11901_v53 = vmul.f32 %v11869_v58, %v22300_v11  ;;  %v11908_v30 = vmul.f32 %v11876_v18, %v22388_v13 }
 0x843   : > { %14661 = vtanh.f32 %v12003_v50  ;;  %v22424_v1 = vadd.f32 %v22199_v27, %v11742_v57  ;;  %v11674_v2 = vmul.f32 %v22246_v5, %v22074_v28  ;;  %v11896_v46 = vmul.f32 %v11864_v12, %v22393_v0  ;;  %v11763_v50 = vpop.permute.xlu1 %11762 }
 0x844   : > { %v22428_v26 = vpop.eup %14653  ;;  %v22432_v33 = vadd.f32 %v22199_v27, %v11744_v42  ;;  %v11675_v43 = vmul.f32 %v22295_v51, %v22115_v56  ;;  %v11676_v25 = vmul.f32 %v22360_v4, %v22157_v36  ;;  %v22440_v37 = vmul.f32 %v22407_v35, %v22407_v35  ;;  %v11695_v36 = vpop.permute.xlu0 %11694 }
 0x845   : > { %14663 = vtanh.f32 %v11991_v24  ;;  %v11871_v28 = vmul.f32 %v22415_v21, %v22415_v21  ;;  %v11666_v45 = vmul.f32 %v22246_v5, %v22068_v31  ;;  %v22446_v9 = vmul.f32 0.044715, %v11912_v34 }
 0x846   : > { %v11933_v27 = vmul.f32 0.044715, %v11901_v53  ;;  %v11739_v29 = vmul.f32 %v22272_v59, %v11675_v43  ;;  %v11865_v56 = vmul.f32 %v22303_v3, %v22303_v3  ;;  %v22451_v40 = vmul.f32 0.044715, %v11908_v30 }
 0x847   : > { %v22455_v39 = vmul.f32 %v22424_v1, %v22424_v1  ;;  %v11667_v7 = vmul.f32 %v22295_v51, %v22109_v38  ;;  %v11668_v31 = vmul.f32 %v22360_v4, %v22151_v61  ;;  %v22461_v63 = vmul.f32 0.044715, %v11896_v46 }
 0x848   : > { %v22465_v44 = vmul.f32 %v22432_v33, %v22432_v33  ;;  %v22468_v58 = vadd.f32 %v22251_v41, %v11739_v29  ;;  %v11730_v18 = vmul.f32 %v22285_v10, %v11666_v45  ;;  %v11903_v47 = vmul.f32 %v11871_v28, %v22415_v21 }
 0x849   : > { %v11738_v57 = vmul.f32 %v22272_v59, %v11674_v2  ;;  %v11731_v38 = vmul.f32 %v22285_v10, %v11667_v7  ;;  %v11732_v61 = vmul.f32 %v22285_v10, %v11668_v31  ;;  %v22476_v12 = vadd.f32 %v11933_v27, %v22300_v11 }
 0x84a   : > { %24660 = vst [vmem:[#allocation47_spill] sm:$0xff] %v22468_v58  ;;  %v11740_v24 = vmul.f32 %v22272_v59, %v11676_v25  ;;  %v11897_v42 = vmul.f32 %v11865_v56, %v22303_v3  ;;  %v11661_v34 = vmul.f32 %v22213_v23, %v22032_v32  ;;  %v11662_v53 = vmul.f32 %v22246_v5, %v22065_v48  ;;  %v11759_v32 = vpop.permute.xlu0 %11758 }
 0x84b   : > { %v11663_v30 = vmul.f32 %v22295_v51, %v22106_v16  ;;  %v11664_v2 = vmul.f32 %v22360_v4, %v22148_v54  ;;  %v22489_v10 = vadd.f32 %v11763_v50, %v22293_v20  ;;  %v11867_v59 = vmul.f32 %v22468_v58, %v22468_v58 }
 0x84c   : > { %v11725_v46 = vmul.f32 %v11695_v36, %v11661_v34  ;;  %v22493_v43 = vadd.f32 %v11763_v50, %v11730_v18  ;;  %v22495_v25 = vadd.f32 %v11763_v50, %v11731_v38  ;;  %v22497_v23 = vpop.eup %14655  ;;  %v11726_v48 = vmul.f32 %v11695_v36, %v11662_v53 }
 0x84d   : > { %v11727_v5 = vmul.f32 %v11695_v36, %v11663_v30  ;;  %v11728_v16 = vmul.f32 %v11695_v36, %v11664_v2  ;;  %v22499_v51 = vadd.f32 %v11763_v50, %v11732_v61  ;;  %v11935_v20 = vmul.f32 0.044715, %v11903_v47 }
 0x84e   : > { %24661 = vst [vmem:[#allocation245_spill] sm:$0xff] %v22495_v25  ;;  %v22501_v54 = vpop.eup %14657  ;;  %v11857_v4 = vmul.f32 %v22489_v10, %v22489_v10  ;;  %v11858_v28 = vmul.f32 %v22493_v43, %v22493_v43  ;;  %v11859_v45 = vmul.f32 %v22495_v25, %v22495_v25  ;;  %v22513_v56 = vadd.f32 %v11759_v32, %v11725_v46 }
 0x84f   : > { %24662 = vst [vmem:[#allocation254_spill] sm:$0xff] %v22499_v51  ;;  %v22509_v27 = vpop.eup %14659  ;;  %v11860_v29 = vmul.f32 %v22499_v51, %v22499_v51  ;;  %v22515_v36 = vadd.f32 %v11759_v32, %v11726_v48  ;;  %v22517_v7 = vadd.f32 %v11759_v32, %v11727_v5  ;;  %v22522_v18 = vadd.f32 %v22251_v41, %v11738_v57 }
 0x850   : > { %v22519_v31 = vpop.eup %14661  ;;  %v22525_v50 = vadd.f32 %v22251_v41, %v11740_v24  ;;  %v11889_v47 = vmul.f32 %v11857_v4, %v22489_v10  ;;  %v11891_v38 = vmul.f32 %v11859_v45, %v22495_v25  ;;  %v11899_v61 = vmul.f32 %v11867_v59, %v22468_v58 }
 0x851   : > { %v11929_v34 = vmul.f32 0.044715, %v11897_v42  ;;  %v22530_v53 = vadd.f32 %v11759_v32, %v11728_v16  ;;  %v11853_v30 = vmul.f32 %v22513_v56, %v22513_v56  ;;  %v11854_v41 = vmul.f32 %v22515_v36, %v22515_v36 }
 0x852   : > { %v22534_v2 = vpop.eup %14663  ;;  %v11921_v46 = vmul.f32 0.044715, %v11889_v47  ;;  %v11923_v57 = vmul.f32 0.044715, %v11891_v38  ;;  %v11855_v24 = vmul.f32 %v22517_v7, %v22517_v7  ;;  %v22541_v48 = vadd.f32 %v11935_v20, %v22415_v21 }
 0x853   : > { %24663 = vst [vmem:[#allocation253_spill] sm:$0xff] %v22534_v2  ;;  %v11890_v42 = vmul.f32 %v11858_v28, %v22493_v43  ;;  %v11892_v59 = vmul.f32 %v11860_v29, %v22499_v51  ;;  %v11885_v32 = vmul.f32 %v11853_v30, %v22513_v56  ;;  %v11856_v4 = vmul.f32 %v22530_v53, %v22530_v53  ;;  %v24664_v2 = vld [vmem:[#allocation248_spill] sm:$0xff] }
 0x854   : > { %v11953_v5 = vadd.f32 %v11921_v46, %v22489_v10  ;;  %v11955_v16 = vadd.f32 %v11923_v57, %v22495_v25  ;;  %v11887_v45 = vmul.f32 %v11855_v24, %v22517_v7  ;;  %v11866_v47 = vmul.f32 %v22522_v18, %v22522_v18 }
 0x855   : > { %v22555_v20 = vmul.f32 %v22525_v50, %v22525_v50  ;;  %v11931_v28 = vmul.f32 0.044715, %v11899_v61  ;;  %v11917_v29 = vmul.f32 0.044715, %v11885_v32  ;;  %v22558_v38 = vadd.f32 %v11929_v34, %v22303_v3 }
 0x856   : > { %v11985_v30 = vmul.f32 0.7978846, %v11953_v5  ;;  %v11886_v46 = vmul.f32 %v11854_v41, %v22515_v36  ;;  %v11914_v57 = vmul.f32 %v22323_v55, %v22288_v19  ;;  %v22563_v25 = vmul.f32 0.044715, %v11890_v42 }
 0x857   : > { %v11987_v24 = vmul.f32 0.7978846, %v11955_v16  ;;  %v11949_v60 = vadd.f32 %v11917_v29, %v22513_v56  ;;  %v11974_v51 = vadd.f32 %v24664_v2, %v22278_v6  ;;  %v22568_v49 = vmul.f32 0.044715, %v11892_v59  ;;  %v24666_v59 = vld [vmem:[#allocation51_spill] sm:$0xff] }
 0x858   : > { %v11888_v61 = vmul.f32 %v11856_v4, %v22530_v53  ;;  %v11919_v34 = vmul.f32 0.044715, %v11887_v45  ;;  %v11946_v32 = vmul.f32 0.044715, %v11914_v57  ;;  %v22572_v5 = vadd.f32 %v11931_v28, %v22468_v58  ;;  %v24667_v28 = vld [vmem:[#allocation26_spill] sm:$0xff] }
 0x859   : > { %24665 = vst [vmem:[#allocation251_spill] sm:$0xff] %v22568_v49  ;;  %v11981_v41 = vmul.f32 0.7978846, %v11949_v60  ;;  %v22575_v55 = vmul.f32 0.5, %v22278_v6  ;;  %v12006_v42 = vmul.f32 0.7978846, %v11974_v51  ;;  %14665 = vtanh.f32 %v11985_v30 }
 0x85a   : > { %v22577_v16 = vmul.f32 0.044715, %v11886_v46  ;;  %v22580_v29 = vmul.f32 0.5, %v22288_v19  ;;  %v11978_v2 = vadd.f32 %v11946_v32, %v22288_v19  ;;  %14667 = vtanh.f32 %v11987_v24  ;;  %v24668_v60 = vld [vmem:[#allocation120_spill] sm:$0xff]  ;;  %v24669_v46 = vld [vmem:[#allocation30_spill] sm:$0xff] }
 0x85b   : > { %v12009_v4 = vmul.f32 0.7978846, %v24666_v59  ;;  %v11902_v45 = vmul.f32 %v22455_v39, %v22424_v1  ;;  %v11970_v57 = vadd.f32 %v24668_v60, %v24667_v28  ;;  %v22588_v6 = vmul.f32 0.044715, %v11888_v61  ;;  %v24670_v61 = vld [vmem:[#allocation118_spill] sm:$0xff] }
 0x85c   : > { %v11951_v51 = vadd.f32 %v11919_v34, %v22517_v7  ;;  %14669 = vtanh.f32 %v11981_v41  ;;  %v12010_v30 = vmul.f32 0.7978846, %v11978_v2  ;;  %v11845_v58 = vmul.f32 0.5, %v24669_v46  ;;  %v24671_v46 = vld [vmem:[#allocation327_spill] sm:$0xff] }
 0x85d   : > { %14671 = vtanh.f32 %v12006_v42  ;;  %v11934_v49 = vmul.f32 0.044715, %v11902_v45  ;;  %v12002_v19 = vmul.f32 0.7978846, %v11970_v57  ;;  %v12069_v24 = vadd.f32 1.0, %v22428_v26 }
 0x85e   : > { %14673 = vtanh.f32 %v12010_v30  ;;  %v11916_v39 = vmul.f32 %v22440_v37, %v22407_v35  ;;  %v11976_v32 = vadd.f32 %v22446_v9, %v22385_v15  ;;  %v22598_v59 = vmul.f32 0.5, %v24670_v61 }
 0x85f   : > { %14675 = vtanh.f32 %v12009_v4  ;;  %v11966_v34 = vadd.f32 %v11934_v49, %v22424_v1  ;;  %v11997_v41 = vmul.f32 0.7978846, %v22476_v12  ;;  %v22602_v42 = vmul.f32 0.7978846, %v11951_v51 }
 0x860   : > { %14677 = vtanh.f32 %v12002_v19  ;;  %v11948_v2 = vmul.f32 0.044715, %v11916_v39  ;;  %v12008_v45 = vmul.f32 0.7978846, %v11976_v32  ;;  %v22605_v26 = vmul.f32 0.5, %v22424_v1 }
 0x861   : > { %v22608_v37 = vmul.f32 0.5, %v24667_v28  ;;  %v11998_v9 = vmul.f32 0.7978846, %v11966_v34  ;;  %14679 = vtanh.f32 %v11997_v41  ;;  %v22610_v60 = vmul.f32 %v12069_v24, %v11845_v58 }
 0x862   : > { %v11980_v4 = vadd.f32 %v11948_v2, %v22407_v35  ;;  %14681 = vtanh.f32 %v12008_v45  ;;  %v12011_v49 = vmul.f32 0.7978846, %v22419_v8  ;;  %v22615_v12 = vmul.f32 0.5, %v22385_v15 }
 0x863   : > { %14683 = vtanh.f32 %v11998_v9  ;;  %v22618_v57 = vmul.f32 0.5, %v22407_v35  ;;  %v12065_v1 = vadd.f32 1.0, %v22497_v23  ;;  %v11898_v51 = vmul.f32 %v11866_v47, %v22522_v18 }
 0x864   : > { %v12012_v28 = vmul.f32 0.7978846, %v11980_v4  ;;  %14685 = vtanh.f32 %v12011_v49  ;;  %v11958_v58 = vadd.f32 %v22411_v62, %v22317_v17  ;;  %v11837_v30 = vmul.f32 0.5, %v22300_v11 }
 0x865   : > { %v11841_v8 = vmul.f32 0.5, %v24671_v46  ;;  %v12071_v19 = vadd.f32 1.0, %v22509_v27  ;;  %v11904_v15 = vmul.f32 %v22465_v44, %v22432_v33  ;;  %v11930_v35 = vmul.f32 0.044715, %v11898_v51 }
 0x866   : > { %14687 = vtanh.f32 %v12012_v28  ;;  %v11990_v24 = vmul.f32 0.7978846, %v11958_v58  ;;  %v11972_v23 = vadd.f32 %v22451_v40, %v22388_v13  ;;  %v22631_v39 = vpop.eup %14665  ;;  %v11847_v47 = vmul.f32 0.5, %v22331_v22 }
 0x867   : > { %v22635_v62 = vmul.f32 0.5, %v22335_v52  ;;  %v11936_v11 = vmul.f32 0.044715, %v11904_v15  ;;  %v11993_v32 = vmul.f32 0.7978846, %v22558_v38  ;;  %v22638_v27 = vpop.eup %14667  ;;  %v22640_v61 = vmul.f32 %v12065_v1, %v11841_v8 }
 0x868   : > { %v11962_v44 = vadd.f32 %v11930_v35, %v22522_v18  ;;  %14689 = vtanh.f32 %v11990_v24  ;;  %v12004_v34 = vmul.f32 0.7978846, %v11972_v23  ;;  %v22646_v40 = vmul.f32 0.5, %v22317_v17 }
 0x869   : > { %v22643_v41 = vpop.eup %14669  ;;  %v22649_v22 = vmul.f32 0.5, %v22522_v18  ;;  %v11968_v52 = vadd.f32 %v11936_v11, %v22432_v33  ;;  %14691 = vtanh.f32 %v11993_v32  ;;  %v22652_v2 = vmul.f32 %v12071_v19, %v11847_v47 }
 0x86a   : > { %v14672_v38 = vpop.eup %14671  ;;  %v11994_v45 = vmul.f32 0.7978846, %v11962_v44  ;;  %14693 = vtanh.f32 %v12004_v34  ;;  %v11999_v9 = vmul.f32 0.7978846, %v22541_v48  ;;  %v22656_v1 = vmul.f32 0.5, %v22432_v33 }
 0x86b   : > { %v14674_v4 = vpop.eup %14673  ;;  %v12070_v49 = vadd.f32 1.0, %v14672_v38  ;;  %v22659_v17 = vmul.f32 0.5, %v22388_v13  ;;  %v12000_v18 = vmul.f32 0.7978846, %v11968_v52  ;;  %v11829_v58 = vmul.f32 0.5, %v22249_v14 }
 0x86c   : > { %v14676_v28 = vpop.eup %14675  ;;  %v12074_v51 = vadd.f32 1.0, %v14674_v4  ;;  %14695 = vtanh.f32 %v11994_v45  ;;  %v11950_v46 = vadd.f32 %v22577_v16, %v22515_v36  ;;  %v12053_v33 = vadd.f32 1.0, %v22501_v54 }
 0x86d   : > { %v14678_v8 = vpop.eup %14677  ;;  %v12102_v48 = vmul.f32 %v12070_v49, %v22575_v55  ;;  %v12073_v19 = vadd.f32 1.0, %v14676_v28  ;;  %14697 = vtanh.f32 %v12000_v18  ;;  %v11954_v24 = vadd.f32 %v22563_v25, %v22493_v43 }
 0x86e   : > { %v14680_v15 = vpop.eup %14679  ;;  %v12106_v13 = vmul.f32 %v12074_v51, %v22580_v29  ;;  %v12066_v35 = vadd.f32 1.0, %v14678_v8  ;;  %14699 = vtanh.f32 %v11999_v9  ;;  %v11833_v16 = vmul.f32 0.5, %v22303_v3 }
 0x86f   : > { %v14682_v23 = vpop.eup %14681  ;;  %v12105_v14 = vmul.f32 %v12073_v19, %v22598_v59  ;;  %v12061_v47 = vadd.f32 1.0, %v14680_v15  ;;  %v11982_v11 = vmul.f32 0.7978846, %v11950_v46  ;;  %v11986_v34 = vmul.f32 0.7978846, %v11954_v24 }
 0x870   : > { %v14684_v55 = vpop.eup %14683  ;;  %v12124_v32 = vpack.c.bf16 %v12106_v13, %v12102_v48  ;;  %v12098_v44 = vmul.f32 %v12066_v35, %v22608_v37  ;;  %v12072_v54 = vadd.f32 1.0, %v14682_v23  ;;  %v22674_v9 = vmul.f32 %v12053_v33, %v11829_v58  ;;  %v24672_v23 = vld [vmem:[#allocation48_spill] sm:$0xff] }
 0x871   : > { %v14686_v52 = vpop.eup %14685  ;;  %v12123_v29 = vpack.c.bf16 %v12105_v14, %v22610_v60  ;;  %v12062_v38 = vadd.f32 1.0, %v14684_v55  ;;  %v12093_v45 = vmul.f32 %v12061_v47, %v11837_v30  ;;  %14701 = vtanh.f32 %v11982_v11 }
 0x872   : > { %12153 = vmatprep.subr.bf16.mxu0 %v12124_v32  ;;  %v12104_v25 = vmul.f32 %v12072_v54, %v22615_v12  ;;  %v12075_v59 = vadd.f32 1.0, %v14686_v52  ;;  %14703 = vtanh.f32 %v11986_v34  ;;  %v11900_v49 = vmul.f32 %v22555_v20, %v22525_v50 }
 0x873   : > { %v14688_v3 = vpop.eup %14687  ;;  %12154 = vmatpush1.bf16.msra.mxu0 %v12123_v29  ;;  %v12094_v4 = vmul.f32 %v12062_v38, %v22605_v26  ;;  %v12119_v37 = vpack.c.bf16 %v22640_v61, %v12093_v45  ;;  %v11960_v60 = vadd.f32 %v22461_v63, %v22393_v0  ;;  %v11821_v12 = vmul.f32 0.5, %v22513_v56 }
 0x874   : > { %v12076_v30 = vadd.f32 1.0, %v14688_v3  ;;  %v12107_v18 = vmul.f32 %v12075_v59, %v22635_v62  ;;  %v11825_v28 = vmul.f32 0.5, %v22489_v10  ;;  %v11932_v46 = vmul.f32 0.044715, %v11900_v49  ;;  %v24673_v59 = vld [vmem:[#allocation254_spill] sm:$0xff] }
 0x875   : > { %v14690_v51 = vpop.eup %14689  ;;  %v12120_v58 = vpack.c.bf16 %v12098_v44, %v12094_v4  ;;  %v11992_v8 = vmul.f32 0.7978846, %v11960_v60  ;;  %v12045_v26 = vadd.f32 1.0, %v22643_v41  ;;  %v12049_v63 = vadd.f32 1.0, %v22631_v39 }
 0x876   : > { %v14692_v61 = vpop.eup %14691  ;;  %v12108_v48 = vmul.f32 %v12076_v30, %v22618_v57  ;;  %v12125_v20 = vpack.c.bf16 %v12107_v18, %v22652_v2  ;;  %v12054_v19 = vadd.f32 1.0, %v14690_v51  ;;  %v11964_v56 = vadd.f32 %v11932_v46, %v22525_v50  ;;  %v14572_v46 = vld [vmem:[%s22877_s4] sm:$0xff]  }
 0x877   : > { %v14694_v33 = vpop.eup %14693  ;;  %12155 = vmatprep.subr.bf16.mxu0 %v12120_v58  ;;  %v12057_v62 = vadd.f32 1.0, %v14692_v61  ;;  %14705 = vtanh.f32 %v11992_v8  ;;  %v12077_v10 = vmul.f32 %v12045_v26, %v11821_v12  ;;  %v12067_v41 = vadd.f32 1.0, %v22519_v31  ;;  %v24676_v26 = vld [vmem:[#allocation28_spill] sm:$0xff] }
 0x878   : > { %v12126_v15 = vpack.c.bf16 %v12108_v48, %v12104_v25  ;;  %12156 = vmatpush1.bf16.msra.mxu0 %v12119_v37  ;;  %v12068_v13 = vadd.f32 1.0, %v14694_v33  ;;  %v12081_v35 = vmul.f32 %v12049_v63, %v11825_v28  ;;  %v11839_v2 = vmul.f32 0.5, %v22415_v21 }
 0x879   : > { %v14696_v24 = vpop.eup %14695  ;;  %v12089_v57 = vmul.f32 %v12057_v62, %v11833_v16  ;;  %v11843_v14 = vmul.f32 0.5, %v24672_v23  ;;  %v11996_v39 = vmul.f32 0.7978846, %v11964_v56  ;;  %v12086_v55 = vmul.f32 %v12054_v19, %v22646_v40  ;;  %v24677_v62 = vld [vmem:[#allocation47_spill] sm:$0xff] }
 0x87a   : > { %v14698_v47 = vpop.eup %14697  ;;  %12196 = vmatprep.subr.bf16.mxu1 %v12126_v15  ;;  %v12058_v11 = vadd.f32 1.0, %v14696_v24  ;;  %v12111_v32 = vpack.c.bf16 %v12081_v35, %v12077_v10  ;;  %v11995_v44 = vmul.f32 0.7978846, %v22572_v5  ;;  %v12100_v31 = vmul.f32 %v12068_v13, %v22659_v17  ;;  %v24674_v17 = vld [vmem:[#allocation251_spill] sm:$0xff] }
 0x87b   : > { %v14700_v54 = vpop.eup %14699  ;;  %12197 = vmatpush1.bf16.msra.mxu1 %v12125_v20  ;;  %v12064_v34 = vadd.f32 1.0, %v14698_v47  ;;  %v12115_v16 = vpack.c.bf16 %v12089_v57, %v22674_v9  ;;  %14707 = vtanh.f32 %v11996_v39  ;;  %v12099_v29 = vmul.f32 %v12067_v41, %v11843_v14  ;;  %v24678_v47 = vld [vmem:[#allocation245_spill] sm:$0xff] }
 0x87c   : > { %v12090_v21 = vmul.f32 %v12058_v11, %v22649_v22  ;;  %v12063_v52 = vadd.f32 1.0, %v14700_v54  ;;  %14709 = vtanh.f32 %v11995_v44  ;;  %v11952_v5 = vadd.f32 %v22588_v6, %v22530_v53 }
 0x87d   : > { %14711 = vtanh.f32 %v22602_v42  ;;  %v12096_v40 = vmul.f32 %v12064_v34, %v22656_v1  ;;  %v11956_v3 = vadd.f32 %v24674_v17, %v24673_v59  ;;  %v11822_v22 = vmul.f32 0.5, %v22515_v36  ;;  %v24675_v36 = vld [vmem:[#allocation253_spill] sm:$0xff] }
 0x87e   : > { %v14702_v38 = vpop.eup %14701  ;;  %v12116_v45 = vpack.c.bf16 %v12090_v21, %v12086_v55  ;;  %v12095_v25 = vmul.f32 %v12063_v52, %v11839_v2  ;;  %v11984_v49 = vmul.f32 0.7978846, %v11952_v5  ;;  %v11826_v42 = vmul.f32 0.5, %v22493_v43 }
 0x87f   : > { %v14704_v9 = vpop.eup %14703  ;;  %v12122_v4 = vpack.c.bf16 %v12100_v31, %v12096_v40  ;;  %v12046_v37 = vadd.f32 1.0, %v14702_v38  ;;  %v11988_v30 = vmul.f32 0.7978846, %v11956_v3  ;;  %v12055_v58 = vadd.f32 1.0, %v24675_v36 }
 0x880   : > { %12157 = vmatprep.subr.bf16.mxu0 %v12116_v45  ;;  %v12121_v60 = vpack.c.bf16 %v12099_v29, %v12095_v25  ;;  %v12050_v1 = vadd.f32 1.0, %v14704_v9  ;;  %14713 = vtanh.f32 %v11984_v49  ;;  %v11832_v43 = vmul.f32 0.5, %v22393_v0 }
 0x881   : > { %12198 = vmatprep.subr.bf16.mxu1 %v12122_v4  ;;  %12158 = vmatpush1.bf16.msra.mxu0 %v12115_v16  ;;  %v12078_v6 = vmul.f32 %v12046_v37, %v11822_v22  ;;  %14715 = vtanh.f32 %v11988_v30  ;;  %v11831_v61 = vmul.f32 0.5, %v24676_v26  ;;  %v11836_v20 = vmul.f32 0.5, %v22525_v50 }
 0x882   : > { %12199 = vmatpush1.bf16.msra.mxu1 %v12121_v60  ;;  %v12082_v18 = vmul.f32 %v12050_v1, %v11826_v42  ;;  %v11835_v56 = vmul.f32 0.5, %v24677_v62  ;;  %v12051_v24 = vadd.f32 1.0, %v22638_v27  ;;  %v11824_v50 = vmul.f32 0.5, %v22530_v53 }
 0x883   : > { %v12087_v15 = vmul.f32 %v12055_v58, %v11831_v61  ;;  %v11823_v39 = vmul.f32 0.5, %v22517_v7  ;;  %v11827_v11 = vmul.f32 0.5, %v24678_v47  ;;  %v11828_v55 = vmul.f32 0.5, %v24673_v59 }
 0x884   : > { %v14706_v12 = vpop.eup %14705  ;;  %v12112_v28 = vpack.c.bf16 %v12082_v18, %v12078_v6 }
 0x885   : > { %v12056_v51 = vadd.f32 1.0, %v14706_v12  ;;  %v12083_v34 = vmul.f32 %v12051_v24, %v11827_v11 }
 0x886   : > { %12159 = vmatprep.subr.bf16.mxu0 %v12112_v28 }
 0x887   : > { %12160 = vmatpush1.bf16.msra.mxu0 %v12111_v32  ;;  %v12088_v63 = vmul.f32 %v12056_v51, %v11832_v43 }
 0x888   : > { %v14708_v8 = vpop.eup %14707  ;;  %v12130_v21 = vpop.permute.xlu1 %12129 }
 0x889   : > { %v14710_v48 = vpop.eup %14709  ;;  %v12060_v19 = vadd.f32 1.0, %v14708_v8  ;;  %v12135_v7 = vpop.permute.xlu0 %12134 }
 0x88a   : > { %v14712_v33 = vpop.eup %14711  ;;  %v12059_v10 = vadd.f32 1.0, %v14710_v48  ;;  %13498 = vmatmul.mubr.msk.bf16.vlgmr.msra.gmra.mxu0 %vm11222_vm2, %v14572_v46 }
 0x88b   : > { %v12092_v13 = vmul.f32 %v12060_v19, %v11836_v20  ;;  %v12047_v0 = vadd.f32 1.0, %v14712_v33 }
 0x88c   : > { %v12091_v41 = vmul.f32 %v12059_v10, %v11835_v56 }
 0x88d   : > { %v12118_v35 = vpack.c.bf16 %v12092_v13, %v12088_v63  ;;  %v14714_v57 = vpop.eup %14713  ;;  %v12079_v54 = vmul.f32 %v12047_v0, %v11823_v39 }
 0x88e   : > { %v12117_v2 = vpack.c.bf16 %v12091_v41, %v12087_v15  ;;  %v14716_v23 = vpop.eup %14715  ;;  %v12048_v14 = vadd.f32 1.0, %v14714_v57 }
 0x88f   : > { %12200 = vmatprep.subr.bf16.mxu1 %v12118_v35  ;;  %v12052_v32 = vadd.f32 1.0, %v14716_v23  ;;  %v12113_v16 = vpack.c.bf16 %v12083_v34, %v12079_v54 }
 0x890   : > { %12201 = vmatpush1.bf16.msra.mxu1 %v12117_v2  ;;  %v12080_v44 = vmul.f32 %v12048_v14, %v11824_v50 }
 0x891   : > { %v12084_v31 = vmul.f32 %v12052_v32, %v11828_v55 }
 0x893   : > { %v12114_v27 = vpack.c.bf16 %v12084_v31, %v12080_v44 }
 0x895   : > { %12202 = vmatprep.subr.bf16.mxu1 %v12114_v27 }
 0x896   : > { %12203 = vmatpush1.bf16.msra.mxu1 %v12113_v16 }
 0x899   : > { %13499 = vmatmul.mubr.msk.bf16.vlgmr.msra.gmra.mxu1 %vm11222_vm2, %v14572_v46 }
 0x94a   : > { %v12179_v53 = vpop.f32.mrf.mxu0 }
 0x94b   : > { %v12180_v29 = vadd.f32 %v12179_v53, %v12130_v21 }
 0x94c   : > { %v12181_v52 = vpop.f32.mrf.mxu0 }
 0x94d   : > { %v12182_v25 = vadd.f32 %v12181_v52, %v12130_v21 }
 0x94e   : > { %v12183_v40 = vpop.f32.mrf.mxu0 }
 0x94f   : > { %v12184_v5 = vadd.f32 %v12183_v40, %v12135_v7 }
 0x950   : > { %v12185_v38 = vpop.f32.mrf.mxu0 }
 0x951   : > { %v12231_v45 = vadd.f32 %v12184_v5, %v12180_v29  ;;  %v12186_v59 = vadd.f32 %v12185_v38, %v12135_v7 }
 0x953   : > { %v12232_v17 = vrot.slane %v12231_v45, 4  ;;  %v12238_v3 = vadd.f32 %v12186_v59, %v12182_v25 }
 0x955   : > { %v12233_v9 = vadd.f32 %v12232_v17, %v12231_v45  ;;  %v12239_v4 = vrot.slane %v12238_v3, 4 }
 0x957   : > { %v12234_v22 = vrot.slane %v12233_v9, 2  ;;  %v12240_v37 = vadd.f32 %v12239_v4, %v12238_v3 }
 0x959   : > { %v12235_v49 = vadd.f32 %v12234_v22, %v12233_v9  ;;  %v12241_v60 = vrot.slane %v12240_v37, 2  ;;  %v12222_v42 = vpop.f32.mrf.mxu1 }
 0x95a   : > { %v12223_v51 = vadd.f32 %v12222_v42, %v12130_v21 }
 0x95b   : > { %v12236_v1 = vrot.slane %v12235_v49, 1  ;;  %v12242_v30 = vadd.f32 %v12241_v60, %v12240_v37  ;;  %v12224_v6 = vpop.f32.mrf.mxu1 }
 0x95c   : > { %v12225_v20 = vadd.f32 %v12224_v6, %v12130_v21 }
 0x95d   : > { %v12237_v18 = vadd.f32 %v12236_v1, %v12235_v49  ;;  %v12243_v12 = vrot.slane %v12242_v30, 1  ;;  %v12226_v28 = vpop.f32.mrf.mxu1 }
 0x95e   : > { %v12227_v46 = vadd.f32 %v12226_v28, %v12135_v7  ;;  %v22753_v28 = vpop.permute.xlu1 %12329 }
 0x95f   : > { %v12260_v36 = vmul.f32 0.0625, %v12237_v18  ;;  %v12244_v58 = vadd.f32 %v12243_v12, %v12242_v30  ;;  %v12228_v43 = vpop.f32.mrf.mxu1 }
 0x960   : > { %v12245_v48 = vadd.f32 %v12227_v46, %v12223_v51  ;;  %v12229_v19 = vadd.f32 %v12228_v43, %v12135_v7 }
 0x961   : > { %v22721_v8 = vsub.f32 %v12180_v29, %v12260_v36  ;;  %v22723_v26 = vsub.f32 %v12184_v5, %v12260_v36  ;;  %v12261_v61 = vmul.f32 0.0625, %v12244_v58 }
 0x962   : > { %v12246_v10 = vrot.slane %v12245_v48, 4  ;;  %v12252_v15 = vadd.f32 %v12229_v19, %v12225_v20 }
 0x963   : > { %v12272_v63 = vmul.f32 %v22721_v8, %v22721_v8  ;;  %v12276_v33 = vmul.f32 %v22723_v26, %v22723_v26  ;;  %v22729_v62 = vsub.f32 %v12182_v25, %v12261_v61  ;;  %v22731_v56 = vsub.f32 %v12186_v59, %v12261_v61 }
 0x964   : > { %v12247_v0 = vadd.f32 %v12246_v10, %v12245_v48  ;;  %v12253_v24 = vrot.slane %v12252_v15, 4  ;;  %v22755_v48 = vpop.permute.xlu1 %12333 }
 0x965   : > { %v12280_v13 = vadd.f32 %v12276_v33, %v12272_v63  ;;  %v12273_v41 = vmul.f32 %v22729_v62, %v22729_v62  ;;  %v12277_v35 = vmul.f32 %v22731_v56, %v22731_v56 }
 0x966   : > { %v12248_v23 = vrot.slane %v12247_v0, 2  ;;  %v12254_v50 = vadd.f32 %v12253_v24, %v12252_v15 }
 0x967   : > { %v12281_v57 = vrot.slane %v12280_v13, 4  ;;  %v12287_v2 = vadd.f32 %v12277_v35, %v12273_v41 }
 0x968   : > { %v12249_v47 = vadd.f32 %v12248_v23, %v12247_v0  ;;  %v12255_v11 = vrot.slane %v12254_v50, 2  ;;  %v12350_v24 = vpop.permute.xlu1 %12349 }
 0x969   : > { %v12282_v14 = vadd.f32 %v12281_v57, %v12280_v13  ;;  %v12288_v39 = vrot.slane %v12287_v2, 4  ;;  %v12346_v57 = vpop.permute.xlu0 %12345 }
 0x96a   : > { %v12250_v44 = vrot.slane %v12249_v47, 1  ;;  %v12256_v54 = vadd.f32 %v12255_v11, %v12254_v50 }
 0x96b   : > { %v12283_v55 = vrot.slane %v12282_v14, 2  ;;  %v12289_v32 = vadd.f32 %v12288_v39, %v12287_v2 }
 0x96c   : > { %v12251_v27 = vadd.f32 %v12250_v44, %v12249_v47  ;;  %v12257_v16 = vrot.slane %v12256_v54, 1 }
 0x96d   : > { %v12284_v34 = vadd.f32 %v12283_v55, %v12282_v14  ;;  %v12290_v31 = vrot.slane %v12289_v32, 2 }
 0x96e   : > { %v12262_v52 = vmul.f32 0.0625, %v12251_v27  ;;  %v12258_v7 = vadd.f32 %v12257_v16, %v12256_v54  ;;  %v14750_v54 = vld [vmem:[%s15049_s19] sm:$0xff]  ;;  %v14752_v16 = vld [vmem:[%s15049_s19 + $0x8] sm:$0xff] }
 0x96f   : > { %v12285_v53 = vrot.slane %v12284_v34, 1  ;;  %v12291_v21 = vadd.f32 %v12290_v31, %v12289_v32  ;;  %v14749_v32 = vld [vmem:[%s15049_s19 + $0x20] sm:$0xff] }
 0x970   : > { %v22737_v5 = vsub.f32 %v12223_v51, %v12262_v52  ;;  %v22739_v38 = vsub.f32 %v12227_v46, %v12262_v52  ;;  %v12263_v45 = vmul.f32 0.0625, %v12258_v7 }
 0x971   : > { %v12286_v29 = vadd.f32 %v12285_v53, %v12284_v34  ;;  %v12292_v40 = vrot.slane %v12291_v21, 1 }
 0x972   : > { %v12274_v17 = vmul.f32 %v22737_v5, %v22737_v5  ;;  %v12278_v3 = vmul.f32 %v22739_v38, %v22739_v38  ;;  %v22745_v9 = vsub.f32 %v12225_v20, %v12263_v45  ;;  %v22747_v4 = vsub.f32 %v12229_v19, %v12263_v45 }
 0x973   : > { %v12308_v25 = vmul.f32 0.0625, %v12286_v29  ;;  %v12293_v59 = vadd.f32 %v12292_v40, %v12291_v21 }
 0x974   : > { %v12294_v49 = vadd.f32 %v12278_v3, %v12274_v17  ;;  %v12275_v60 = vmul.f32 %v22745_v9, %v22745_v9  ;;  %v12279_v42 = vmul.f32 %v22747_v4, %v22747_v4 }
 0x975   : > { %v12312_v22 = vadd.f32 1e-06, %v12308_v25  ;;  %v12309_v37 = vmul.f32 0.0625, %v12293_v59 }
 0x976   : > { %v12295_v30 = vrot.slane %v12294_v49, 4  ;;  %v12301_v6 = vadd.f32 %v12279_v42, %v12275_v60 }
 0x977   : > { %14717 = vrsqrt.f32 %v12312_v22  ;;  %v12313_v1 = vadd.f32 1e-06, %v12309_v37 }
 0x978   : > { %v12296_v18 = vadd.f32 %v12295_v30, %v12294_v49  ;;  %v12302_v12 = vrot.slane %v12301_v6, 4 }
 0x979   : > { %14719 = vrsqrt.f32 %v12313_v1 }
 0x97a   : > { %v12297_v51 = vrot.slane %v12296_v18, 2  ;;  %v12303_v36 = vadd.f32 %v12302_v12, %v12301_v6 }
 0x97c   : > { %v12298_v58 = vadd.f32 %v12297_v51, %v12296_v18  ;;  %v12304_v46 = vrot.slane %v12303_v36, 2 }
 0x97e   : > { %v12299_v43 = vrot.slane %v12298_v58, 1  ;;  %v12305_v61 = vadd.f32 %v12304_v46, %v12303_v36 }
 0x980   : > { %v12300_v20 = vadd.f32 %v12299_v43, %v12298_v58  ;;  %v12306_v19 = vrot.slane %v12305_v61, 1 }
 0x982   : > { %v12310_v33 = vmul.f32 0.0625, %v12300_v20  ;;  %v12307_v10 = vadd.f32 %v12306_v19, %v12305_v61 }
 0x984   : > { %v14718_v63 = vpop.eup %14717  ;;  %v12314_v35 = vadd.f32 1e-06, %v12310_v33  ;;  %v12311_v0 = vmul.f32 0.0625, %v12307_v10 }
 0x985   : > { %v12324_v15 = vmul.f32 %v14718_v63, %v22723_v26  ;;  %v12320_v13 = vmul.f32 %v14718_v63, %v22721_v8 }
 0x986   : > { %v14720_v41 = vpop.eup %14719  ;;  %14721 = vrsqrt.f32 %v12314_v35  ;;  %v12315_v26 = vadd.f32 1e-06, %v12311_v0 }
 0x987   : > { %v12325_v2 = vmul.f32 %v14720_v41, %v22731_v56  ;;  %v12340_v23 = vmul.f32 %v22755_v48, %v12324_v15  ;;  %v12321_v50 = vmul.f32 %v14720_v41, %v22729_v62  ;;  %v12336_v14 = vmul.f32 %v22753_v28, %v12320_v13  ;;  %v14751_v62 = vld [vmem:[%s15049_s19 + $0x28] sm:$0xff]  ;;  %v14754_v13 = vld [vmem:[%s15049_s19 + $0x10] sm:$0xff]  ;;  %v14755_v41 = vld [vmem:[%s15049_s19 + $0x38] sm:$0xff] }
 0x988   : > { %14723 = vrsqrt.f32 %v12315_v26 }
 0x989   : > { %v12341_v8 = vmul.f32 %v22755_v48, %v12325_v2  ;;  %v12356_v39 = vadd.f32 %v12350_v24, %v12340_v23  ;;  %v12337_v47 = vmul.f32 %v22753_v28, %v12321_v50  ;;  %v12352_v11 = vadd.f32 %v12346_v57, %v12336_v14  ;;  %v14756_v2 = vld [vmem:[%s15049_s19 + $0x18] sm:$0xff] }
 0x98b   : > { %v12357_v55 = vadd.f32 %v12350_v24, %v12341_v8  ;;  %v22766_v56 = vadd.f32 %v14749_v32, %v12356_v39  ;;  %v12353_v44 = vadd.f32 %v12346_v57, %v12337_v47  ;;  %v22769_v34 = vadd.f32 %v14750_v54, %v12352_v11 }
 0x98d   : > { %v22772_v31 = vadd.f32 %v14751_v62, %v12357_v55  ;;  %v12380_v27 = vmul.f32 %v22766_v56, %v22766_v56  ;;  %v22777_v53 = vadd.f32 %v14752_v16, %v12353_v44  ;;  %v12376_v21 = vmul.f32 %v22769_v34, %v22769_v34 }
 0x98e   : > { %v12372_v32 = vmul.f32 0.5, %v22766_v56 }
 0x98f   : > { %v12381_v52 = vmul.f32 %v22772_v31, %v22772_v31  ;;  %v12388_v7 = vmul.f32 %v12380_v27, %v22766_v56  ;;  %v12377_v29 = vmul.f32 %v22777_v53, %v22777_v53  ;;  %v12384_v40 = vmul.f32 %v12376_v21, %v22769_v34 }
 0x990   : > { %v12373_v16 = vmul.f32 0.5, %v22772_v31 }
 0x991   : > { %v12389_v45 = vmul.f32 %v12381_v52, %v22772_v31  ;;  %v12396_v25 = vmul.f32 0.044715, %v12388_v7  ;;  %v12385_v59 = vmul.f32 %v12377_v29, %v22777_v53  ;;  %v12392_v17 = vmul.f32 0.044715, %v12384_v40 }
 0x993   : > { %v12397_v3 = vmul.f32 0.044715, %v12389_v45  ;;  %v12404_v22 = vadd.f32 %v12396_v25, %v22766_v56  ;;  %v12393_v37 = vmul.f32 0.044715, %v12385_v59  ;;  %v12400_v49 = vadd.f32 %v12392_v17, %v22769_v34  ;;  %v14722_v60 = vpop.eup %14721 }
 0x994   : > { %v12326_v30 = vmul.f32 %v14722_v60, %v22739_v38  ;;  %v12322_v6 = vmul.f32 %v14722_v60, %v22737_v5  ;;  %v12368_v17 = vmul.f32 0.5, %v22769_v34 }
 0x995   : > { %v12405_v42 = vadd.f32 %v12397_v3, %v22772_v31  ;;  %v12412_v1 = vmul.f32 0.7978846, %v12404_v22  ;;  %v12401_v18 = vadd.f32 %v12393_v37, %v22777_v53  ;;  %v14724_v12 = vpop.eup %14723  ;;  %v12408_v36 = vmul.f32 0.7978846, %v12400_v49 }
 0x996   : > { %v12327_v58 = vmul.f32 %v14724_v12, %v22747_v4  ;;  %v12342_v46 = vmul.f32 %v22755_v48, %v12326_v30  ;;  %v12323_v43 = vmul.f32 %v14724_v12, %v22745_v9  ;;  %v12338_v61 = vmul.f32 %v22753_v28, %v12322_v6  ;;  %v14753_v4 = vld [vmem:[%s15049_s19 + $0x30] sm:$0xff]  ;;  %s22811_s19 = scalar_lea.vmem [#allocation8], %s12554_s18 }
 0x997   : > { %v12413_v51 = vmul.f32 0.7978846, %v12405_v42  ;;  %14725 = vtanh.f32 %v12412_v1  ;;  %v12409_v38 = vmul.f32 0.7978846, %v12401_v18  ;;  %v12369_v37 = vmul.f32 0.5, %v22777_v53  ;;  %s12462_s21 = sshll.u32 %s22811_s19, 4  ;;  %s22826_s21 = int_to_ptr.vmem [resolvable:$true] %s12462_s21 }
 0x998   : > { %v12343_v5 = vmul.f32 %v22755_v48, %v12327_v58  ;;  %v12358_v20 = vadd.f32 %v12350_v24, %v12342_v46  ;;  %v12339_v19 = vmul.f32 %v22753_v28, %v12323_v43  ;;  %v12354_v63 = vadd.f32 %v12346_v57, %v12338_v61  ;;  %s14809_s8 = scalar_lea.vmem %s22826_s21, 1024  ;;  %p14816_p11 = scmp.lt.s32.totalorder %s22826_s21, %s14814_s14 }
 0x999   : > { %14727 = vtanh.f32 %v12413_v51  ;;  %p14810_p10 = scmp.ne.s32.totalorder %s22826_s21, %s14809_s8  ;;  %p14817_p0 = scmp.lt.s32.totalorder %s14815_s17, %s14809_s8 }
 0x99a   : > { %14729 = vtanh.f32 %v12408_v36  ;;  %v12359_v33 = vadd.f32 %v12350_v24, %v12343_v5  ;;  %v12366_v10 = vadd.f32 %v14753_v4, %v12358_v20  ;;  %v12355_v15 = vadd.f32 %v12346_v57, %v12339_v19 }
 0x99b   : > { %v12362_v9 = vadd.f32 %v14754_v13, %v12354_v63  ;;  %14731 = vtanh.f32 %v12409_v38  ;;  %p14811_p12 = pnand %p14810_p10, %p14989_p5  ;;  %p14818_p1 = por %p14817_p0, %p14816_p11 }
 0x99c   : > { %v12367_v35 = vadd.f32 %v14755_v41, %v12359_v33  ;;  %v12382_v0 = vmul.f32 %v12366_v10, %v12366_v10  ;;  %v12363_v23 = vadd.f32 %v14756_v2, %v12355_v15  ;;  %v12374_v30 = vmul.f32 0.5, %v12366_v10 }
 0x99d   : > { %v12378_v48 = vmul.f32 %v12362_v9, %v12362_v9  ;;  %v12370_v12 = vmul.f32 0.5, %v12362_v9  ;;  %p14812_p8 = pneg %p14811_p12 }
 0x99e   : > { %v12383_v50 = vmul.f32 %v12367_v35, %v12367_v35  ;;  %v12390_v28 = vmul.f32 %v12382_v0, %v12366_v10  ;;  %v12379_v14 = vmul.f32 %v12363_v23, %v12363_v23  ;;  %v12375_v36 = vmul.f32 0.5, %v12367_v35 }
 0x99f   : > { %v12386_v26 = vmul.f32 %v12378_v48, %v12362_v9  ;;  %v12371_v43 = vmul.f32 0.5, %v12363_v23  ;;  %p14819_p3 = pnand %p14818_p1, %p14812_p8 }
 0x9a0   : > { %v12391_v8 = vmul.f32 %v12383_v50, %v12367_v35  ;;  %v12398_v24 = vmul.f32 0.044715, %v12390_v28  ;;  %v12387_v57 = vmul.f32 %v12379_v14, %v12363_v23 }
 0x9a1   : > { %v12394_v39 = vmul.f32 0.044715, %v12386_v26 }
 0x9a2   : > { %v12399_v11 = vmul.f32 0.044715, %v12391_v8  ;;  %v12406_v55 = vadd.f32 %v12398_v24, %v12366_v10  ;;  %v12395_v54 = vmul.f32 0.044715, %v12387_v57 }
 0x9a3   : > { %v12402_v62 = vadd.f32 %v12394_v39, %v12362_v9 }
 0x9a4   : > { %v14726_v47 = vpop.eup %14725  ;;  %v12407_v21 = vadd.f32 %v12399_v11, %v12367_v35  ;;  %v12414_v52 = vmul.f32 0.7978846, %v12406_v55  ;;  %v12403_v40 = vadd.f32 %v12395_v54, %v12363_v23 }
 0x9a5   : > { %v12428_v44 = vadd.f32 1.0, %v14726_v47  ;;  %v12410_v45 = vmul.f32 0.7978846, %v12402_v62 }
 0x9a6   : > { %v14728_v27 = vpop.eup %14727  ;;  %v12415_v59 = vmul.f32 0.7978846, %v12407_v21  ;;  %14733 = vtanh.f32 %v12414_v52  ;;  %v12411_v56 = vmul.f32 0.7978846, %v12403_v40 }
 0x9a7   : > { %v12429_v7 = vadd.f32 1.0, %v14728_v27  ;;  %v12436_v29 = vmul.f32 %v12428_v44, %v12372_v32  ;;  %v14730_v25 = vpop.eup %14729  ;;  %14735 = vtanh.f32 %v12410_v45 }
 0x9a8   : > { %v12424_v31 = vadd.f32 1.0, %v14730_v25  ;;  %v14732_v22 = vpop.eup %14731  ;;  %14737 = vtanh.f32 %v12415_v59 }
 0x9a9   : > { %v12437_v3 = vmul.f32 %v12429_v7, %v12373_v16  ;;  %12444 = vst [vmem:[%s22811_s19 + $0x20] sm:$0xff] %v12436_v29  ;;  %14739 = vtanh.f32 %v12411_v56  ;;  %v12425_v34 = vadd.f32 1.0, %v14732_v22 }
 0x9aa   : > { %v12432_v49 = vmul.f32 %v12424_v31, %v12368_v17 }
 0x9ab   : > { %12445 = vst [vmem:[%s22811_s19 + $0x28] sm:$0xff] %v12437_v3  ;;  %v12433_v60 = vmul.f32 %v12425_v34, %v12369_v37 }
 0x9ac   : > { %12440 = vst [vmem:[%s22811_s19] sm:$0xff] %v12432_v49 }
 0x9ad   : > { %12441 = vst [vmem:[%s22811_s19 + $0x8] sm:$0xff] %v12433_v60 }
 0x9b3   : > { %v14734_v42 = vpop.eup %14733 }
 0x9b4   : > { %v14736_v1 = vpop.eup %14735  ;;  %v12430_v6 = vadd.f32 1.0, %v14734_v42 }
 0x9b5   : > { %v14738_v18 = vpop.eup %14737  ;;  %v12426_v51 = vadd.f32 1.0, %v14736_v1 }
 0x9b6   : > { %v14740_v53 = vpop.eup %14739  ;;  %v12431_v58 = vadd.f32 1.0, %v14738_v18  ;;  %v12438_v46 = vmul.f32 %v12430_v6, %v12374_v30 }
 0x9b7   : > { %v12427_v61 = vadd.f32 1.0, %v14740_v53  ;;  %v12434_v38 = vmul.f32 %v12426_v51, %v12370_v12 }
 0x9b8   : > { %v12439_v5 = vmul.f32 %v12431_v58, %v12375_v36  ;;  %12446 = vst [vmem:[%s22811_s19 + $0x30] sm:$0xff] %v12438_v46 }
 0x9b9   : > { %v12435_v20 = vmul.f32 %v12427_v61, %v12371_v43  ;;  %12442 = vst [vmem:[%s22811_s19 + $0x10] sm:$0xff] %v12434_v38 }
 0x9ba   : > { %12447 = vst [vmem:[%s22811_s19 + $0x38] sm:$0xff] %v12439_v5 }
 0x9bb   : > { %12443 = vst [vmem:[%s22811_s19 + $0x18] sm:$0xff] %v12435_v20 }
 0x9bc   : > { %14822 = shalt.err (!%p14819_p3)
}
 0x9bd   : > { %s14823_s13 = scalar_lea.hbm %s22824_s29, 1024  ;;  %s14827_s18 = scalar_lea.hbm %s22880_s7, 2048 }
 0x9be   : > { %p14824_p2 = scmp.ne.s32.totalorder %s22824_s29, %s14823_s13  ;;  %p14828_p6 = scmp.lt.s32.totalorder %s22824_s29, %s22880_s7 }
 0x9bf   : > { %p14829_p9 = scmp.lt.s32.totalorder %s14827_s18, %s14823_s13 }
 0x9c0   : > { %p14825_p4 = pnand %p14824_p2, %p14989_p5 }
 0x9c1   : > { %p14830_p7 = por %p14829_p9, %p14828_p6 }
 0x9c2   : > { %p14826_p13 = pneg %p14825_p4 }
 0x9c4   : > { %p14831_p10 = pnand %p14830_p7, %p14826_p13 }
 0x9c6   : > { %14834 = shalt.err (!%p14831_p10)
}
 0x9c7   : > { %s14909_s22 = smov 512   ;;  %s14910_s23 = smov 32  }
 0x9c8   : > { %14379 = dma.vmem_to_hbm [thread:$0]  (%p14989_p5), %s22826_s21, 1024, %s22824_s29, %s22833_s28, %s14909_s22, %s14909_s22, %s14910_s23  }
 0x9c9 PF: > { %p14396_p12 = scmp.ge.s32.totalorder %s14877_s27, 2  ;;  %s12477_s8 = sand.u32 1, %s14865_s24  }
 0x9ca   : > { %p24679_p8 = scmp.ne.s32.totalorder %s23427_s12, 0  ;;  %s12478_s9 = scalar_lea.sflag [#allocation5], %s12477_s8 }
 0x9cc   : > { %p14389_p11 = pnand %p14396_p12, %p24679_p8 }
 0x9ce   : > { %p14390_p0 = pneg %p14389_p11 }
 0x9d0   : > { %14860 = dma.done.wait (%p14390_p0), %s12478_s9, 1024  }
 0x9d1   : > { %14862 = vsyncadd (%p14390_p0), %s12478_s9, 4294966272  ;;  %p19_p1 = scmp.ge.s32.totalorder %s14976_s30, 4   ;;  %s24680_s24 = smov %s14869_s25 }
 0x9d2   : > { %s24681_s25 = smov %s14873_s26  ;;  %s24682_s26 = smov %s14987_s10 }
 0x9d3   : > { %s24683_s27 = smov %s14976_s30  ;;  %21 = sbr.rel (!%p19_p1) target bundleno = 5 (0x5), region = 117 }
 0x9d8   :  { %12483 = vsyncpa [#allocation4], 1 }
 0x9d9   :  { %12485 = vsyncpa [#allocation4 + $0x1], 1 }
 0x9da   :  { %12486 = vsyncpa [#allocation7], 1 }
 0x9db   :  { %12487 = vsyncpa [#allocation5], 1 }
 0x9dc   :  { %12489 = vsyncpa [#allocation5 + $0x1], 1 }

</bundles_post_ra>
